<compile_context>
chip_gen: v6e
topology: v6e:2x2x1
jax: 0.10.0
libtpu: 0.0.40
codegen_flags: <defaults>
</compile_context>

<pallas_src>
import functools

import jax
import jax.numpy as jnp
from jax.experimental import pallas as pl
from jax.experimental.pallas import tpu as pltpu

_VMEM_LIMIT = 32 * 1024 * 1024
# Activation after each of the 8 Linear layers (matches the nn.Sequential definitions).
_RELU = (True, True, True, False, True, True, True, False)


def _round_up(x, m):
    return (x + m - 1) // m * m


def _num_tiles(dim, col_bytes, budget=3 << 20):
    """Fewest equal 128-aligned tiles of `dim` such that one tile is <= `budget` bytes."""
    upper = max(dim // 128, 1)
    for n in range(1, upper + 1):
        if dim % n == 0 and (dim // n) % 128 == 0 and (dim // n) * col_bytes <= budget:
            return n
    return upper


# ---------------------------------------------------------------------------
# Single fused kernel: entire autoencoder forward.
# refs = (x, w0, b0, w1, b1, ..., w6, b6, w7, b7, out, h_scratch)
# ---------------------------------------------------------------------------
def _fused_ae_kernel(*refs, k_steps, mid_relu):
    x_ref, w0_ref, b0_ref = refs[0], refs[1], refs[2]
    n_mid = 2 * len(mid_relu)
    mid_refs = refs[3:3 + n_mid]
    w7_ref, b7_ref, o_ref, h_ref = refs[3 + n_mid:]

    i = pl.program_id(0)
    last_k = k_steps - 1

    # ---- Phase A: Linear(4096, 1280), K-tiled; bias folded into the step-0 init ----
    @pl.when(i == 0)
    def _():
        h_ref[...] = jnp.broadcast_to(b0_ref[...], h_ref.shape)

    @pl.when(i <= last_k)
    def _():
        h_ref[...] += jnp.dot(
            x_ref[...].astype(jnp.bfloat16), w0_ref[...],
            preferred_element_type=jnp.float32)

    # ---- Middle layers L1..L6, once, right after the last K tile; all in VMEM ----
    @pl.when(i == last_k)
    def _():
        h = jnp.maximum(h_ref[...], 0.0)                      # ReLU after layer 0
        for li, relu in enumerate(mid_relu):
            w = mid_refs[2 * li][...]
            b = mid_refs[2 * li + 1][...]
            h = jnp.dot(h.astype(jnp.bfloat16), w,
                        preferred_element_type=jnp.float32) + b
            if relu:
                h = jnp.maximum(h, 0.0)
        h_ref[...] = h                                        # (Bp, 1280) input to layer 7

    # ---- Phase B: Linear(1280, 4096), N-tiled, lane-dense output stores (no final ReLU) ----
    @pl.when(i > last_k)
    def _():
        o_ref[...] = (jnp.dot(h_ref[...].astype(jnp.bfloat16), w7_ref[...],
                              preferred_element_type=jnp.float32)
                      + b7_ref[...])


# ---------------------------------------------------------------------------
# Parameter construction (mimics torch.nn.Linear default init) and prep.
# ---------------------------------------------------------------------------
def init_linear(key, fan_in, fan_out):
    kw, kb = jax.random.split(key)
    bound = 1.0 / jnp.sqrt(float(fan_in))
    w = jax.random.uniform(kw, (fan_in, fan_out), jnp.float32, -bound, bound)
    b = jax.random.uniform(kb, (fan_out,), jnp.float32, -bound, bound)
    return w, b


def make_autoencoder_params(key, n_components):
    enc_dims = [(4096, 1280), (1280, 640), (640, 120), (120, n_components)]
    dec_dims = [(n_components, 120), (120, 640), (640, 1280), (1280, 4096)]
    params = []
    for fan_in, fan_out in enc_dims + dec_dims:
        key, sub = jax.random.split(key)
        params.append(init_linear(sub, fan_in, fan_out))
    return params


def prepare_params(raw_params):
    """Pad every layer to (128,128) multiples ONCE and cast weights to bf16."""
    prepared = []
    for w, b in raw_params:
        K, N = w.shape
        Kp, Np = _round_up(K, 128), _round_up(N, 128)
        wp = jnp.zeros((Kp, Np), jnp.bfloat16).at[:K, :N].set(w.astype(jnp.bfloat16))
        bp = jnp.zeros((1, Np), jnp.float32).at[:, :N].set(b)
        prepared.append((wp, bp))
    return prepared


# ---------------------------------------------------------------------------
# Full forward: decoder(encoder(x)) — ONE pallas_call, jitted.
# ---------------------------------------------------------------------------
@functools.partial(jax.jit, static_argnames=("out_dim",))
def autoencoder_forward(params, x, *, out_dim):
    B, _ = x.shape
    Bp = _round_up(B, 8)
    if Bp != B:
        x = jnp.pad(x, ((0, Bp - B), (0, 0)))

    (w0, b0) = params[0]
    mids = params[1:7]
    (w7, b7) = params[7]
    K0, N0 = w0.shape                      # 4096, 1280
    K7, N7 = w7.shape                      # 1280, 4096

    k_tiles = _num_tiles(K0, N0 * w0.dtype.itemsize)   # 4 tiles of (1024, 1280)
    n_tiles = _num_tiles(N7, K7 * w7.dtype.itemsize)   # 4 tiles of (1280, 1024)
    tk = K0 // k_tiles
    tn = N7 // n_tiles

    kernel = functools.partial(_fused_ae_kernel, k_steps=k_tiles, mid_relu=_RELU[1:7])

    # Index maps clamp to the last/first useful block so idle operands stay resident
    # (no redundant DMAs across phases).
    in_specs = [
        pl.BlockSpec((Bp, tk), lambda i: (0, jnp.minimum(i, k_tiles - 1))),      # x K-tile
        pl.BlockSpec((tk, N0), lambda i: (jnp.minimum(i, k_tiles - 1), 0)),      # W0 K-tile
        pl.BlockSpec((1, N0), lambda i: (0, 0)),                                 # b0
    ]
    operands = [x, w0, b0]
    for w, b in mids:                                                            # L1..L6
        in_specs.append(pl.BlockSpec(w.shape, lambda i: (0, 0)))
        in_specs.append(pl.BlockSpec(b.shape, lambda i: (0, 0)))
        operands.extend((w, b))
    in_specs += [
        pl.BlockSpec((K7, tn), lambda i: (0, jnp.maximum(i - k_tiles, 0))),      # W7 N-tile
        pl.BlockSpec((1, tn), lambda i: (0, jnp.maximum(i - k_tiles, 0))),       # b7 N-tile
    ]
    operands += [w7, b7]

    out = pl.pallas_call(
        kernel,
        out_shape=jax.ShapeDtypeStruct((Bp, N7), jnp.float32),
        grid_spec=pltpu.PrefetchScalarGridSpec(
            num_scalar_prefetch=0,
            grid=(k_tiles + n_tiles,),
            in_specs=in_specs,
            out_specs=pl.BlockSpec((Bp, tn), lambda i: (0, jnp.maximum(i - k_tiles, 0))),
            scratch_shapes=[pltpu.VMEM((Bp, N0), jnp.float32)],   # resident activation
        ),
        compiler_params=pltpu.CompilerParams(
            dimension_semantics=("arbitrary",),
            vmem_limit_bytes=_VMEM_LIMIT,
        ),
    )(*operands)
    return out[:B, :out_dim]


# ---------------------------------------------------------------------------
# Plain-JAX reference (same bf16-weight math as the kernel).
# ---------------------------------------------------------------------------
def autoencoder_forward_ref(raw_params, x):
    h = x
    for i, (w, b) in enumerate(raw_params):
        h = jnp.dot(h.astype(jnp.bfloat16), w.astype(jnp.bfloat16),
                    preferred_element_type=jnp.float32) + b
        if _RELU[i]:
            h = jnp.maximum(h, 0.0)
    return h


if __name__ == "__main__":
    key = jax.random.PRNGKey(0)
    k_params, k_x = jax.random.split(key)

    n_components = 32
    batch = 8

    raw_params = make_autoencoder_params(k_params, n_components)
    params = prepare_params(raw_params)
    x = jax.random.normal(k_x, (batch, 4096), dtype=jnp.float32)

    out = jax.block_until_ready(autoencoder_forward(params, x, out_dim=4096))
    ref = jax.block_until_ready(autoencoder_forward_ref(raw_params, x))

    assert out.shape == (batch, 4096), out.shape
    assert jnp.allclose(out, ref, atol=1e-2, rtol=1e-2), "mismatch vs reference"

    print("KERNEL_OK")
</pallas_src>

<mosaic_0001>
module attributes {stable_mosaic.version = 11 : i64} {
  func.func @_fused_ae_kernel(%arg0: i32, %arg1: memref<8x1024xf32, #tpu.memory_space<vmem>>, %arg2: memref<1024x1280xbf16, #tpu.memory_space<vmem>>, %arg3: memref<1x1280xf32, #tpu.memory_space<vmem>>, %arg4: memref<1280x640xbf16, #tpu.memory_space<vmem>>, %arg5: memref<1x640xf32, #tpu.memory_space<vmem>>, %arg6: memref<640x128xbf16, #tpu.memory_space<vmem>>, %arg7: memref<1x128xf32, #tpu.memory_space<vmem>>, %arg8: memref<128x128xbf16, #tpu.memory_space<vmem>>, %arg9: memref<1x128xf32, #tpu.memory_space<vmem>>, %arg10: memref<128x128xbf16, #tpu.memory_space<vmem>>, %arg11: memref<1x128xf32, #tpu.memory_space<vmem>>, %arg12: memref<128x640xbf16, #tpu.memory_space<vmem>>, %arg13: memref<1x640xf32, #tpu.memory_space<vmem>>, %arg14: memref<640x1280xbf16, #tpu.memory_space<vmem>>, %arg15: memref<1x1280xf32, #tpu.memory_space<vmem>>, %arg16: memref<1280x1024xbf16, #tpu.memory_space<vmem>>, %arg17: memref<1x1024xf32, #tpu.memory_space<vmem>>, %arg18: memref<8x1024xf32, #tpu.memory_space<vmem>>, %arg19: memref<8x1280xf32, #tpu.memory_space<vmem>>) attributes {dimension_semantics = [#tpu.dimension_semantics<arbitrary>], iteration_bounds = array<i64: 8>, scalar_prefetch = 0 : i64, scratch_operands = 1 : i64, tpu.core_type = #tpu.core_type<tc>, window_params = [{transform_indices = @transform_0, window_bounds = array<i64: 8, 1024>}, {transform_indices = @transform_1, window_bounds = array<i64: 1024, 1280>}, {pipeline_mode = #tpu.pipeline_mode<synchronous>, transform_indices = @transform_2, window_bounds = array<i64: 1, 1280>}, {pipeline_mode = #tpu.pipeline_mode<synchronous>, transform_indices = @transform_3, window_bounds = array<i64: 1280, 640>}, {pipeline_mode = #tpu.pipeline_mode<synchronous>, transform_indices = @transform_4, window_bounds = array<i64: 1, 640>}, {pipeline_mode = #tpu.pipeline_mode<synchronous>, transform_indices = @transform_5, window_bounds = array<i64: 640, 128>}, {pipeline_mode = #tpu.pipeline_mode<synchronous>, transform_indices = @transform_6, window_bounds = array<i64: 1, 128>}, {pipeline_mode = #tpu.pipeline_mode<synchronous>, transform_indices = @transform_7, window_bounds = array<i64: 128, 128>}, {pipeline_mode = #tpu.pipeline_mode<synchronous>, transform_indices = @transform_8, window_bounds = array<i64: 1, 128>}, {pipeline_mode = #tpu.pipeline_mode<synchronous>, transform_indices = @transform_9, window_bounds = array<i64: 128, 128>}, {pipeline_mode = #tpu.pipeline_mode<synchronous>, transform_indices = @transform_10, window_bounds = array<i64: 1, 128>}, {pipeline_mode = #tpu.pipeline_mode<synchronous>, transform_indices = @transform_11, window_bounds = array<i64: 128, 640>}, {pipeline_mode = #tpu.pipeline_mode<synchronous>, transform_indices = @transform_12, window_bounds = array<i64: 1, 640>}, {pipeline_mode = #tpu.pipeline_mode<synchronous>, transform_indices = @transform_13, window_bounds = array<i64: 640, 1280>}, {pipeline_mode = #tpu.pipeline_mode<synchronous>, transform_indices = @transform_14, window_bounds = array<i64: 1, 1280>}, {transform_indices = @transform_15, window_bounds = array<i64: 1280, 1024>}, {transform_indices = @transform_16, window_bounds = array<i64: 1, 1024>}, {transform_indices = @transform_17, window_bounds = array<i64: 8, 1024>}]} {
    %c0_i32 = arith.constant 0 : i32
    %0 = arith.cmpi eq, %arg0, %c0_i32 : i32
    %1 = arith.extui %0 : i1 to i32
    %c0_i32_0 = arith.constant 0 : i32
    %2 = arith.cmpi ne, %1, %c0_i32_0 : i32
    scf.if %2 {
      %c0 = arith.constant 0 : index
      %c0_6 = arith.constant 0 : index
      %12 = vector.load %arg3[%c0, %c0_6] : memref<1x1280xf32, #tpu.memory_space<vmem>>, vector<1x1280xf32>
      %13 = vector.shape_cast %12 : vector<1x1280xf32> to vector<1x1280xf32>
      %14 = vector.broadcast %13 : vector<1x1280xf32> to vector<8x1280xf32>
      %c0_7 = arith.constant 0 : index
      %c0_8 = arith.constant 0 : index
      %15 = vector.load %arg19[%c0_7, %c0_8] : memref<8x1280xf32, #tpu.memory_space<vmem>>, vector<8x1280xf32>
      tpu.vector_store %arg19[%c0_7, %c0_8], %14 {strides = array<i32>} : memref<8x1280xf32, #tpu.memory_space<vmem>>, vector<8x1280xf32>,
    } else {
    }
    %c3_i32 = arith.constant 3 : i32
    %3 = arith.cmpi sle, %arg0, %c3_i32 : i32
    %4 = arith.extui %3 : i1 to i32
    %c0_i32_1 = arith.constant 0 : i32
    %5 = arith.cmpi ne, %4, %c0_i32_1 : i32
    scf.if %5 {
      %c0 = arith.constant 0 : index
      %c0_6 = arith.constant 0 : index
      %12 = vector.load %arg19[%c0, %c0_6] : memref<8x1280xf32, #tpu.memory_space<vmem>>, vector<8x1280xf32>
      %c0_7 = arith.constant 0 : index
      %c0_8 = arith.constant 0 : index
      %13 = vector.load %arg1[%c0_7, %c0_8] : memref<8x1024xf32, #tpu.memory_space<vmem>>, vector<8x1024xf32>
      %14 = arith.truncf %13 : vector<8x1024xf32> to vector<8x1024xbf16>
      %c0_9 = arith.constant 0 : index
      %c0_10 = arith.constant 0 : index
      %15 = vector.load %arg2[%c0_9, %c0_10] : memref<1024x1280xbf16, #tpu.memory_space<vmem>>, vector<1024x1280xbf16>
      %cst = arith.constant dense<0.000000e+00> : vector<8x1280xf32>
      %16 = tpu.matmul %14, %15, %cst {dimension_numbers = #tpu.dot_dimension_numbers<[1], [0], [0], [1], [0, 0, 1, 1], [], []>} : vector<8x1024xbf16>, vector<1024x1280xbf16>, vector<8x1280xf32> -> vector<8x1280xf32>
      %17 = arith.addf %12, %16 : vector<8x1280xf32>
      %c0_11 = arith.constant 0 : index
      %c0_12 = arith.constant 0 : index
      %18 = vector.load %arg19[%c0_11, %c0_12] : memref<8x1280xf32, #tpu.memory_space<vmem>>, vector<8x1280xf32>
      tpu.vector_store %arg19[%c0_11, %c0_12], %17 {strides = array<i32>} : memref<8x1280xf32, #tpu.memory_space<vmem>>, vector<8x1280xf32>,
    } else {
    }
    %c3_i32_2 = arith.constant 3 : i32
    %6 = arith.cmpi eq, %arg0, %c3_i32_2 : i32
    %7 = arith.extui %6 : i1 to i32
    %c0_i32_3 = arith.constant 0 : i32
    %8 = arith.cmpi ne, %7, %c0_i32_3 : i32
    scf.if %8 {
      %c0 = arith.constant 0 : index
      %c0_6 = arith.constant 0 : index
      %12 = vector.load %arg19[%c0, %c0_6] : memref<8x1280xf32, #tpu.memory_space<vmem>>, vector<8x1280xf32>
      %cst = arith.constant 0.000000e+00 : f32
      %13 = vector.broadcast %cst : f32 to vector<8x1280xf32>
      %14 = arith.maximumf %12, %13 : vector<8x1280xf32>
      %c0_7 = arith.constant 0 : index
      %c0_8 = arith.constant 0 : index
      %15 = vector.load %arg4[%c0_7, %c0_8] : memref<1280x640xbf16, #tpu.memory_space<vmem>>, vector<1280x640xbf16>
      %c0_9 = arith.constant 0 : index
      %c0_10 = arith.constant 0 : index
      %16 = vector.load %arg5[%c0_9, %c0_10] : memref<1x640xf32, #tpu.memory_space<vmem>>, vector<1x640xf32>
      %17 = arith.truncf %14 : vector<8x1280xf32> to vector<8x1280xbf16>
      %cst_11 = arith.constant dense<0.000000e+00> : vector<8x640xf32>
      %18 = tpu.matmul %17, %15, %cst_11 {dimension_numbers = #tpu.dot_dimension_numbers<[1], [0], [0], [1], [0, 0, 1, 1], [], []>} : vector<8x1280xbf16>, vector<1280x640xbf16>, vector<8x640xf32> -> vector<8x640xf32>
      %19 = vector.broadcast %16 : vector<1x640xf32> to vector<8x640xf32>
      %20 = arith.addf %18, %19 : vector<8x640xf32>
      %cst_12 = arith.constant 0.000000e+00 : f32
      %21 = vector.broadcast %cst_12 : f32 to vector<8x640xf32>
      %22 = arith.maximumf %20, %21 : vector<8x640xf32>
      %c0_13 = arith.constant 0 : index
      %c0_14 = arith.constant 0 : index
      %23 = vector.load %arg6[%c0_13, %c0_14] : memref<640x128xbf16, #tpu.memory_space<vmem>>, vector<640x128xbf16>
      %c0_15 = arith.constant 0 : index
      %c0_16 = arith.constant 0 : index
      %24 = vector.load %arg7[%c0_15, %c0_16] : memref<1x128xf32, #tpu.memory_space<vmem>>, vector<1x128xf32>
      %25 = arith.truncf %22 : vector<8x640xf32> to vector<8x640xbf16>
      %cst_17 = arith.constant dense<0.000000e+00> : vector<8x128xf32>
      %26 = tpu.matmul %25, %23, %cst_17 {dimension_numbers = #tpu.dot_dimension_numbers<[1], [0], [0], [1], [0, 0, 1, 1], [], []>} : vector<8x640xbf16>, vector<640x128xbf16>, vector<8x128xf32> -> vector<8x128xf32>
      %27 = vector.broadcast %24 : vector<1x128xf32> to vector<8x128xf32>
      %28 = arith.addf %26, %27 : vector<8x128xf32>
      %cst_18 = arith.constant 0.000000e+00 : f32
      %29 = vector.broadcast %cst_18 : f32 to vector<8x128xf32>
      %30 = arith.maximumf %28, %29 : vector<8x128xf32>
      %c0_19 = arith.constant 0 : index
      %c0_20 = arith.constant 0 : index
      %31 = vector.load %arg8[%c0_19, %c0_20] : memref<128x128xbf16, #tpu.memory_space<vmem>>, vector<128x128xbf16>
      %c0_21 = arith.constant 0 : index
      %c0_22 = arith.constant 0 : index
      %32 = vector.load %arg9[%c0_21, %c0_22] : memref<1x128xf32, #tpu.memory_space<vmem>>, vector<1x128xf32>
      %33 = arith.truncf %30 : vector<8x128xf32> to vector<8x128xbf16>
      %cst_23 = arith.constant dense<0.000000e+00> : vector<8x128xf32>
      %34 = tpu.matmul %33, %31, %cst_23 {dimension_numbers = #tpu.dot_dimension_numbers<[1], [0], [0], [1], [0, 0, 1, 1], [], []>} : vector<8x128xbf16>, vector<128x128xbf16>, vector<8x128xf32> -> vector<8x128xf32>
      %35 = vector.broadcast %32 : vector<1x128xf32> to vector<8x128xf32>
      %36 = arith.addf %34, %35 : vector<8x128xf32>
      %c0_24 = arith.constant 0 : index
      %c0_25 = arith.constant 0 : index
      %37 = vector.load %arg10[%c0_24, %c0_25] : memref<128x128xbf16, #tpu.memory_space<vmem>>, vector<128x128xbf16>
      %c0_26 = arith.constant 0 : index
      %c0_27 = arith.constant 0 : index
      %38 = vector.load %arg11[%c0_26, %c0_27] : memref<1x128xf32, #tpu.memory_space<vmem>>, vector<1x128xf32>
      %39 = arith.truncf %36 : vector<8x128xf32> to vector<8x128xbf16>
      %cst_28 = arith.constant dense<0.000000e+00> : vector<8x128xf32>
      %40 = tpu.matmul %39, %37, %cst_28 {dimension_numbers = #tpu.dot_dimension_numbers<[1], [0], [0], [1], [0, 0, 1, 1], [], []>} : vector<8x128xbf16>, vector<128x128xbf16>, vector<8x128xf32> -> vector<8x128xf32>
      %41 = vector.broadcast %38 : vector<1x128xf32> to vector<8x128xf32>
      %42 = arith.addf %40, %41 : vector<8x128xf32>
      %cst_29 = arith.constant 0.000000e+00 : f32
      %43 = vector.broadcast %cst_29 : f32 to vector<8x128xf32>
      %44 = arith.maximumf %42, %43 : vector<8x128xf32>
      %c0_30 = arith.constant 0 : index
      %c0_31 = arith.constant 0 : index
      %45 = vector.load %arg12[%c0_30, %c0_31] : memref<128x640xbf16, #tpu.memory_space<vmem>>, vector<128x640xbf16>
      %c0_32 = arith.constant 0 : index
      %c0_33 = arith.constant 0 : index
      %46 = vector.load %arg13[%c0_32, %c0_33] : memref<1x640xf32, #tpu.memory_space<vmem>>, vector<1x640xf32>
      %47 = arith.truncf %44 : vector<8x128xf32> to vector<8x128xbf16>
      %cst_34 = arith.constant dense<0.000000e+00> : vector<8x640xf32>
      %48 = tpu.matmul %47, %45, %cst_34 {dimension_numbers = #tpu.dot_dimension_numbers<[1], [0], [0], [1], [0, 0, 1, 1], [], []>} : vector<8x128xbf16>, vector<128x640xbf16>, vector<8x640xf32> -> vector<8x640xf32>
      %49 = vector.broadcast %46 : vector<1x640xf32> to vector<8x640xf32>
      %50 = arith.addf %48, %49 : vector<8x640xf32>
      %cst_35 = arith.constant 0.000000e+00 : f32
      %51 = vector.broadcast %cst_35 : f32 to vector<8x640xf32>
      %52 = arith.maximumf %50, %51 : vector<8x640xf32>
      %c0_36 = arith.constant 0 : index
      %c0_37 = arith.constant 0 : index
      %53 = vector.load %arg14[%c0_36, %c0_37] : memref<640x1280xbf16, #tpu.memory_space<vmem>>, vector<640x1280xbf16>
      %c0_38 = arith.constant 0 : index
      %c0_39 = arith.constant 0 : index
      %54 = vector.load %arg15[%c0_38, %c0_39] : memref<1x1280xf32, #tpu.memory_space<vmem>>, vector<1x1280xf32>
      %55 = arith.truncf %52 : vector<8x640xf32> to vector<8x640xbf16>
      %cst_40 = arith.constant dense<0.000000e+00> : vector<8x1280xf32>
      %56 = tpu.matmul %55, %53, %cst_40 {dimension_numbers = #tpu.dot_dimension_numbers<[1], [0], [0], [1], [0, 0, 1, 1], [], []>} : vector<8x640xbf16>, vector<640x1280xbf16>, vector<8x1280xf32> -> vector<8x1280xf32>
      %57 = vector.broadcast %54 : vector<1x1280xf32> to vector<8x1280xf32>
      %58 = arith.addf %56, %57 : vector<8x1280xf32>
      %cst_41 = arith.constant 0.000000e+00 : f32
      %59 = vector.broadcast %cst_41 : f32 to vector<8x1280xf32>
      %60 = arith.maximumf %58, %59 : vector<8x1280xf32>
      %c0_42 = arith.constant 0 : index
      %c0_43 = arith.constant 0 : index
      %61 = vector.load %arg19[%c0_42, %c0_43] : memref<8x1280xf32, #tpu.memory_space<vmem>>, vector<8x1280xf32>
      tpu.vector_store %arg19[%c0_42, %c0_43], %60 {strides = array<i32>} : memref<8x1280xf32, #tpu.memory_space<vmem>>, vector<8x1280xf32>,
    } else {
    }
    %c3_i32_4 = arith.constant 3 : i32
    %9 = arith.cmpi sgt, %arg0, %c3_i32_4 : i32
    %10 = arith.extui %9 : i1 to i32
    %c0_i32_5 = arith.constant 0 : i32
    %11 = arith.cmpi ne, %10, %c0_i32_5 : i32
    scf.if %11 {
      %c0 = arith.constant 0 : index
      %c0_6 = arith.constant 0 : index
      %12 = vector.load %arg19[%c0, %c0_6] : memref<8x1280xf32, #tpu.memory_space<vmem>>, vector<8x1280xf32>
      %13 = arith.truncf %12 : vector<8x1280xf32> to vector<8x1280xbf16>
      %c0_7 = arith.constant 0 : index
      %c0_8 = arith.constant 0 : index
      %14 = vector.load %arg16[%c0_7, %c0_8] : memref<1280x1024xbf16, #tpu.memory_space<vmem>>, vector<1280x1024xbf16>
      %cst = arith.constant dense<0.000000e+00> : vector<8x1024xf32>
      %15 = tpu.matmul %13, %14, %cst {dimension_numbers = #tpu.dot_dimension_numbers<[1], [0], [0], [1], [0, 0, 1, 1], [], []>} : vector<8x1280xbf16>, vector<1280x1024xbf16>, vector<8x1024xf32> -> vector<8x1024xf32>
      %c0_9 = arith.constant 0 : index
      %c0_10 = arith.constant 0 : index
      %16 = vector.load %arg17[%c0_9, %c0_10] : memref<1x1024xf32, #tpu.memory_space<vmem>>, vector<1x1024xf32>
      %17 = vector.broadcast %16 : vector<1x1024xf32> to vector<8x1024xf32>
      %18 = arith.addf %15, %17 : vector<8x1024xf32>
      %c0_11 = arith.constant 0 : index
      %c0_12 = arith.constant 0 : index
      %19 = vector.load %arg18[%c0_11, %c0_12] : memref<8x1024xf32, #tpu.memory_space<vmem>>, vector<8x1024xf32>
      tpu.vector_store %arg18[%c0_11, %c0_12], %18 {strides = array<i32>} : memref<8x1024xf32, #tpu.memory_space<vmem>>, vector<8x1024xf32>,
    } else {
    }
    return
  }
  func.func @transform_0(%arg0: i32) -> (i32, i32) {
    %c3_i32 = arith.constant 3 : i32
    %0 = arith.minsi %arg0, %c3_i32 : i32
    %c0_i32 = arith.constant 0 : i32
    %c0_i32_0 = arith.constant 0 : i32
    return %c0_i32, %0 : i32, i32
  }
  func.func @transform_1(%arg0: i32) -> (i32, i32) {
    %c3_i32 = arith.constant 3 : i32
    %0 = arith.minsi %arg0, %c3_i32 : i32
    %c0_i32 = arith.constant 0 : i32
    %c0_i32_0 = arith.constant 0 : i32
    return %0, %c0_i32 : i32, i32
  }
  func.func @transform_2(%arg0: i32) -> (i32, i32) {
    %c0_i32 = arith.constant 0 : i32
    %c0_i32_0 = arith.constant 0 : i32
    %c0_i32_1 = arith.constant 0 : i32
    return %c0_i32, %c0_i32_0 : i32, i32
  }
  func.func @transform_3(%arg0: i32) -> (i32, i32) {
    %c0_i32 = arith.constant 0 : i32
    %c0_i32_0 = arith.constant 0 : i32
    %c0_i32_1 = arith.constant 0 : i32
    return %c0_i32, %c0_i32_0 : i32, i32
  }
  func.func @transform_4(%arg0: i32) -> (i32, i32) {
    %c0_i32 = arith.constant 0 : i32
    %c0_i32_0 = arith.constant 0 : i32
    %c0_i32_1 = arith.constant 0 : i32
    return %c0_i32, %c0_i32_0 : i32, i32
  }
  func.func @transform_5(%arg0: i32) -> (i32, i32) {
    %c0_i32 = arith.constant 0 : i32
    %c0_i32_0 = arith.constant 0 : i32
    %c0_i32_1 = arith.constant 0 : i32
    return %c0_i32, %c0_i32_0 : i32, i32
  }
  func.func @transform_6(%arg0: i32) -> (i32, i32) {
    %c0_i32 = arith.constant 0 : i32
    %c0_i32_0 = arith.constant 0 : i32
    %c0_i32_1 = arith.constant 0 : i32
    return %c0_i32, %c0_i32_0 : i32, i32
  }
  func.func @transform_7(%arg0: i32) -> (i32, i32) {
    %c0_i32 = arith.constant 0 : i32
    %c0_i32_0 = arith.constant 0 : i32
    %c0_i32_1 = arith.constant 0 : i32
    return %c0_i32, %c0_i32_0 : i32, i32
  }
  func.func @transform_8(%arg0: i32) -> (i32, i32) {
    %c0_i32 = arith.constant 0 : i32
    %c0_i32_0 = arith.constant 0 : i32
    %c0_i32_1 = arith.constant 0 : i32
    return %c0_i32, %c0_i32_0 : i32, i32
  }
  func.func @transform_9(%arg0: i32) -> (i32, i32) {
    %c0_i32 = arith.constant 0 : i32
    %c0_i32_0 = arith.constant 0 : i32
    %c0_i32_1 = arith.constant 0 : i32
    return %c0_i32, %c0_i32_0 : i32, i32
  }
  func.func @transform_10(%arg0: i32) -> (i32, i32) {
    %c0_i32 = arith.constant 0 : i32
    %c0_i32_0 = arith.constant 0 : i32
    %c0_i32_1 = arith.constant 0 : i32
    return %c0_i32, %c0_i32_0 : i32, i32
  }
  func.func @transform_11(%arg0: i32) -> (i32, i32) {
    %c0_i32 = arith.constant 0 : i32
    %c0_i32_0 = arith.constant 0 : i32
    %c0_i32_1 = arith.constant 0 : i32
    return %c0_i32, %c0_i32_0 : i32, i32
  }
  func.func @transform_12(%arg0: i32) -> (i32, i32) {
    %c0_i32 = arith.constant 0 : i32
    %c0_i32_0 = arith.constant 0 : i32
    %c0_i32_1 = arith.constant 0 : i32
    return %c0_i32, %c0_i32_0 : i32, i32
  }
  func.func @transform_13(%arg0: i32) -> (i32, i32) {
    %c0_i32 = arith.constant 0 : i32
    %c0_i32_0 = arith.constant 0 : i32
    %c0_i32_1 = arith.constant 0 : i32
    return %c0_i32, %c0_i32_0 : i32, i32
  }
  func.func @transform_14(%arg0: i32) -> (i32, i32) {
    %c0_i32 = arith.constant 0 : i32
    %c0_i32_0 = arith.constant 0 : i32
    %c0_i32_1 = arith.constant 0 : i32
    return %c0_i32, %c0_i32_0 : i32, i32
  }
  func.func @transform_15(%arg0: i32) -> (i32, i32) {
    %c4_i32 = arith.constant 4 : i32
    %0 = arith.subi %arg0, %c4_i32 : i32
    %c0_i32 = arith.constant 0 : i32
    %1 = arith.maxsi %0, %c0_i32 : i32
    %c0_i32_0 = arith.constant 0 : i32
    %c0_i32_1 = arith.constant 0 : i32
    return %c0_i32_0, %1 : i32, i32
  }
  func.func @transform_16(%arg0: i32) -> (i32, i32) {
    %c4_i32 = arith.constant 4 : i32
    %0 = arith.subi %arg0, %c4_i32 : i32
    %c0_i32 = arith.constant 0 : i32
    %1 = arith.maxsi %0, %c0_i32 : i32
    %c0_i32_0 = arith.constant 0 : i32
    %c0_i32_1 = arith.constant 0 : i32
    return %c0_i32_0, %1 : i32, i32
  }
  func.func @transform_17(%arg0: i32) -> (i32, i32) {
    %c4_i32 = arith.constant 4 : i32
    %0 = arith.subi %arg0, %c4_i32 : i32
    %c0_i32 = arith.constant 0 : i32
    %1 = arith.maxsi %0, %c0_i32 : i32
    %c0_i32_0 = arith.constant 0 : i32
    %c0_i32_1 = arith.constant 0 : i32
    return %c0_i32_0, %1 : i32, i32
  }
}

</mosaic_0001>

<bundles_post_ra>
// kernel: autoencoder_forward.1
= control target key start
LH: loop header
LB: loop body
LE: loop exit
PB: predicated region body
PF: predicated region fallthrough
CT: control target
= control target key end

     0   :  { %s26052_s0 = inlined_call_operand.hbm [shape: f32[8,4096], index: 0, kind: input, shape index: {}]   ;;  %s26053_s1 = inlined_call_operand.hbm [shape: bf16[4096,1280], index: 1, kind: input, shape index: {}]   ;;  %s26054_s2 = inlined_call_operand.hbm [shape: f32[1,1280], index: 2, kind: input, shape index: {}]   ;;  %s26055_s3 = inlined_call_operand.hbm [shape: bf16[1280,640], index: 3, kind: input, shape index: {}]   ;;  %s26056_s4 = inlined_call_operand.hbm [shape: f32[1,640], index: 4, kind: input, shape index: {}]   ;;  %s26057_s5 = inlined_call_operand.hbm [shape: bf16[640,128], index: 5, kind: input, shape index: {}]   ;;  %s26058_s6 = inlined_call_operand.hbm [shape: f32[1,128], index: 6, kind: input, shape index: {}]   ;;  %s26059_s7 = inlined_call_operand.hbm [shape: bf16[128,128], index: 7, kind: input, shape index: {}]   ;;  %s26060_s8 = inlined_call_operand.hbm [shape: f32[1,128], index: 8, kind: input, shape index: {}]   ;;  %s26061_s9 = inlined_call_operand.hbm [shape: bf16[128,128], index: 9, kind: input, shape index: {}]   ;;  %s26062_s10 = inlined_call_operand.hbm [shape: f32[1,128], index: 10, kind: input, shape index: {}]   ;;  %s26063_s11 = inlined_call_operand.hbm [shape: bf16[128,640], index: 11, kind: input, shape index: {}]   ;;  %s26064_s12 = inlined_call_operand.hbm [shape: f32[1,640], index: 12, kind: input, shape index: {}]   ;;  %s26065_s13 = inlined_call_operand.hbm [shape: bf16[640,1280], index: 13, kind: input, shape index: {}]   ;;  %s26066_s14 = inlined_call_operand.hbm [shape: f32[1,1280], index: 14, kind: input, shape index: {}]   ;;  %s26067_s15 = inlined_call_operand.hbm [shape: bf16[1280,4096], index: 15, kind: input, shape index: {}]   ;;  %s26068_s16 = inlined_call_operand.hbm [shape: f32[1,4096], index: 16, kind: input, shape index: {}]   ;;  %s26069_s17 = inlined_call_operand.hbm [shape: f32[8,4096], index: 17, kind: output, shape index: {}]  }
   0x1   :  { %26097 = sst [smem:[#allocation48_spill]] %s26052_s0 }
   0x2   :  { %26098 = sst [smem:[#allocation49_spill]] %s26053_s1 }
   0x3   :  { %26099 = sst [smem:[#allocation50_spill]] %s26054_s2 }
   0x4   :  { %26100 = sst [smem:[#allocation51_spill]] %s26055_s3 }
   0x5   :  { %26101 = sst [smem:[#allocation52_spill]] %s26056_s4 }
   0x6   :  { %26102 = sst [smem:[#allocation53_spill]] %s26057_s5 }
   0x7   :  { %26103 = sst [smem:[#allocation54_spill]] %s26058_s6 }
   0x8   :  { %26104 = sst [smem:[#allocation55_spill]] %s26059_s7 }
   0x9   :  { %26105 = sst [smem:[#allocation56_spill]] %s26060_s8 }
   0xa   :  { %26106 = sst [smem:[#allocation57_spill]] %s26061_s9 }
   0xb   :  { %26107 = sst [smem:[#allocation58_spill]] %s26062_s10 }
   0xc   :  { %26108 = sst [smem:[#allocation59_spill]] %s26063_s11 }
   0xd   :  { %26109 = sst [smem:[#allocation60_spill]] %s26064_s12 }
   0xe   :  { %26110 = sst [smem:[#allocation61_spill]] %s26065_s13 }
   0xf   :  { %26111 = sst [smem:[#allocation62_spill]] %s26066_s14 }
  0x10   :  { %26112 = sst [smem:[#allocation63_spill]] %s26067_s15 }
  0x11   :  { %26113 = sst [smem:[#allocation64_spill]] %s26068_s16 }
  0x12   :  { %26114 = sst [smem:[#allocation65_spill]] %s26069_s17 }
  0x13   :  { %22 = vsyncpa [#allocation4], 0 }
  0x14   :  { %24 = vsyncpa [#allocation4 + $0x1], 0 }
  0x15   :  { %25 = vsyncpa [#allocation7], 0 }
  0x16   :  { %27 = vsyncpa [#allocation7 + $0x1], 0 }
  0x17   :  { %28 = vsyncpa [#allocation10], 0 }
  0x18   :  { %29 = vsyncpa [#allocation13], 0 }
  0x19   :  { %30 = vsyncpa [#allocation16], 0 }
  0x1a   :  { %31 = vsyncpa [#allocation19], 0 }
  0x1b   :  { %32 = vsyncpa [#allocation22], 0 }
  0x1c   :  { %33 = vsyncpa [#allocation25], 0 }
  0x1d   :  { %34 = vsyncpa [#allocation28], 0 }
  0x1e   :  { %36 = vsyncpa [#allocation28 + $0x1], 0 }
  0x1f   :  { %37 = vsyncpa [#allocation5], 0 }
  0x20   :  { %39 = vsyncpa [#allocation5 + $0x1], 0  ;;  %s23796_s24 = smov 0   ;;  %s23798_s25 = smov 0  }
  0x21   :  { %s23800_s26 = smov 0   ;;  %s23802_s27 = smov 0  }
  0x22   :  { %s23804_s28 = smov 0   ;;  %s23806_s29 = smov 0  }
  0x23   :  { %s23808_s0 = smov 0  }
  0x24 LB: > { %26115 = sst [smem:[#allocation42_spill]] %s23650_s24  ;;  %s23676_s30 = smov [#allocation8]   ;;  %s23674_s0 = sphi %s23808_s0, %s26196_s0   ;;  %s23670_s29 = sphi %s23806_s29, %s26190_s29   ;;  %s23666_s28 = sphi %s23804_s28, %s26195_s28   ;;  %s23662_s27 = sphi %s23802_s27, %s26194_s27   ;;  %s23658_s26 = sphi %s23800_s26, %s26193_s26   ;;  %s23654_s25 = sphi %s23798_s25, %s26192_s25   ;;  %s23650_s24 = sphi %s23796_s24, %s26191_s24  }
  0x25   : > { %26116 = sst [smem:[#allocation43_spill]] %s23662_s27  ;;  %s492_s18 = sshll.u32 %s23676_s30, 4  ;;  %s493_s18 = int_to_ptr.vmem [resolvable:$true] %s492_s18 }
  0x26   : > { %26117 = sst [smem:[#allocation44_spill]] %s23670_s29  ;;  %s23832_s19 = sadd.s32 4294967295, %s23674_s0  }
  0x27   : > { %p18125_p0 = scmp.ge.s32.totalorder %s23674_s0, 1  ;;  %p26083_p1 = scmp.eq.s32.totalorder %s23832_s19, 0 }
  0x28   : > { %p479_p2 = scmp.lt.s32.totalorder %s23674_s0, 9  ;;  %s23677_s20 = smov [#allocation9]  }
  0x29   : > { %s502_s21 = sshll.u32 %s23677_s20, 4  ;;  %s23678_s23 = smov [#allocation12]   ;;  %s23844_s21 = int_to_ptr.vmem [resolvable:$true] %s502_s21 }
  0x2a   : > { %p23838_p4 = pnand %p18125_p0, %p479_p2  ;;  %s526_s30 = sshll.u32 %s23678_s23, 4  ;;  %s23852_s30 = int_to_ptr.vmem [resolvable:$true] %s526_s30 }
  0x2b   : > { %p23119_p11 = scmp.lt.s32.totalorder %s493_s18, %s493_s18 }
  0x2c   : > { %s26118_s1 = scalar_select %p23838_p4, 1, 0 }
  0x2d   : > { %p20700_p5 = pneg %p23838_p4 }
  0x2e   : > { %26119 = sst [smem:[#allocation45_spill]] %s26118_s1  ;;  %s23111_s1 = scalar_lea.vmem %s493_s18, 160 }
  0x2f   : > { %p23848_p6 = pnand %p20700_p5, %p26083_p1  ;;  %p23112_p8 = scmp.ne.s32.totalorder %s493_s18, %s23111_s1 }
  0x30   : > { %p23120_p12 = scmp.lt.s32.totalorder %s23111_s1, %s23111_s1 }
  0x31   : > { %s26120_s22 = scalar_select %p23848_p6, 1, 0 }
  0x32   : > { %p23856_p7 = pneg %p23848_p6  ;;  %p23121_p13 = por %p23120_p12, %p23119_p11 }
  0x34   : > { %p23114_p9 = pnand %p23112_p8, %p23856_p7 }
  0x36   : > { %p23115_p10 = pneg %p23114_p9 }
  0x38   : > { %p23122_p0 = pnand %p23121_p13, %p23115_p10 }
  0x3a   : > { %23125 = shalt.err (!%p23122_p0)
}
  0x3b   : > { %s26122_s2 = sld [smem:[#allocation50_spill]]  ;;  %s23137_s16 = scalar_lea.vmem %s23844_s21, 51200 }
  0x3c   : > { %p23138_p2 = scmp.ne.s32.totalorder %s23844_s21, %s23137_s16  ;;  %p23145_p9 = scmp.lt.s32.totalorder %s23844_s21, %s23844_s21 }
  0x3d   : > { %p23146_p11 = scmp.lt.s32.totalorder %s23137_s16, %s23137_s16 }
  0x3e   : > { %p23140_p5 = pnand %p23138_p2, %p23856_p7 }
  0x3f   : > { %p23147_p10 = por %p23146_p11, %p23145_p9 }
  0x40   : > { %p23141_p8 = pneg %p23140_p5 }
  0x41   : > { %20703 = dma.hbm_to_vmem [thread:$0]  (!%p23848_p6), %s26122_s2, 160, %s493_s18, [#allocation7]  }
  0x42   : > { %p23148_p12 = pnand %p23147_p10, %p23141_p8 }
  0x44   : > { %23151 = shalt.err (!%p23148_p12)
}
  0x45   : > { %s26075_s1 = smov 320   ;;  %s26076_s20 = smov 20  }
  0x46   : > { %s26123_s3 = sld [smem:[#allocation51_spill]]  ;;  %s23163_s16 = scalar_lea.vmem %s23852_s30, 5120 }
  0x47   : > { %p23164_p13 = scmp.ne.s32.totalorder %s23852_s30, %s23163_s16  ;;  %p23171_p5 = scmp.lt.s32.totalorder %s23852_s30, %s23852_s30 }
  0x48   : > { %p23172_p8 = scmp.lt.s32.totalorder %s23163_s16, %s23163_s16 }
  0x49   : > { %p23166_p0 = pnand %p23164_p13, %p23856_p7 }
  0x4a   : > { %p23173_p9 = por %p23172_p8, %p23171_p5 }
  0x4b   : > { %p23167_p2 = pneg %p23166_p0 }
  0x4c   : > { %20706 = dma.hbm_to_vmem [thread:$0]  (!%p23848_p6), %s26123_s3, 51200, %s23844_s21, [#allocation10], %s26075_s1, %s26075_s1, %s26076_s20  }
  0x4d   : > { %p23174_p11 = pnand %p23173_p9, %p23167_p2 }
  0x4f   : > { %23177 = shalt.err (!%p23174_p11)
}
  0x50   : > { %s23681_s2 = smov 64   ;;  %s23682_s27 = smov 4  }
  0x51   : > { %s26124_s5 = sld [smem:[#allocation53_spill]]  ;;  %s23683_s23 = smov [#allocation15]  }
  0x52   : > { %s550_s1 = sshll.u32 %s23683_s23, 4  ;;  %s23684_s16 = smov [#allocation18]   ;;  %s551_s1 = int_to_ptr.vmem [resolvable:$true] %s550_s1 }
  0x53   : > { %s574_s20 = sshll.u32 %s23684_s16, 4  ;;  %s23189_s3 = scalar_lea.vmem %s551_s1, 1024  ;;  %s575_s20 = int_to_ptr.vmem [resolvable:$true] %s574_s20 }
  0x54   : > { %p23190_p10 = scmp.ne.s32.totalorder %s551_s1, %s23189_s3  ;;  %p23197_p0 = scmp.lt.s32.totalorder %s551_s1, %s551_s1 }
  0x55   : > { %p23198_p2 = scmp.lt.s32.totalorder %s23189_s3, %s23189_s3 }
  0x56   : > { %p23192_p12 = pnand %p23190_p10, %p23856_p7 }
  0x57   : > { %20712 = dma.hbm_to_vmem [thread:$0]  (!%p23848_p6), %s26124_s5, 5120, %s23852_s30, [#allocation13], %s23681_s2, %s23681_s2, %s23682_s27  }
  0x58   : > { %p23193_p13 = pneg %p23192_p12  ;;  %p23199_p5 = por %p23198_p2, %p23197_p0 }
  0x5a   : > { %p23200_p8 = pnand %p23199_p5, %p23193_p13 }
  0x5c   : > { %23203 = shalt.err (!%p23200_p8)
}
  0x5d   : > { %s26125_s7 = sld [smem:[#allocation55_spill]]  ;;  %s23215_s18 = scalar_lea.vmem %s575_s20, 1024 }
  0x5e   : > { %p23216_p9 = scmp.ne.s32.totalorder %s575_s20, %s23215_s18  ;;  %p23223_p12 = scmp.lt.s32.totalorder %s575_s20, %s575_s20 }
  0x5f   : > { %p23224_p0 = scmp.lt.s32.totalorder %s23215_s18, %s23215_s18 }
  0x60   : > { %p23218_p11 = pnand %p23216_p9, %p23856_p7 }
  0x61   : > { %p23225_p13 = por %p23224_p0, %p23223_p12 }
  0x62   : > { %p23219_p10 = pneg %p23218_p11 }
  0x63   : > { %20718 = dma.hbm_to_vmem [thread:$0]  (!%p23848_p6), %s26125_s7, 1024, %s551_s1, [#allocation16], %s23681_s2, %s23681_s2, %s23682_s27  }
  0x64   : > { %p23226_p2 = pnand %p23225_p13, %p23219_p10 }
  0x66   : > { %23229 = shalt.err (!%p23226_p2)
}
  0x67   : > { %s26126_s9 = sld [smem:[#allocation57_spill]]  ;;  %s23685_s1 = smov [#allocation21]  }
  0x68   : > { %s598_s16 = sshll.u32 %s23685_s1, 4  ;;  %s23686_s30 = smov [#allocation24]   ;;  %s599_s16 = int_to_ptr.vmem [resolvable:$true] %s598_s16 }
  0x69   : > { %s622_s21 = sshll.u32 %s23686_s30, 4  ;;  %s23241_s5 = scalar_lea.vmem %s599_s16, 5120  ;;  %s623_s21 = int_to_ptr.vmem [resolvable:$true] %s622_s21 }
  0x6a   : > { %p23242_p5 = scmp.ne.s32.totalorder %s599_s16, %s23241_s5  ;;  %p23249_p11 = scmp.lt.s32.totalorder %s599_s16, %s599_s16 }
  0x6b   : > { %p23250_p10 = scmp.lt.s32.totalorder %s23241_s5, %s23241_s5 }
  0x6c   : > { %p23244_p8 = pnand %p23242_p5, %p23856_p7 }
  0x6d   : > { %20724 = dma.hbm_to_vmem [thread:$0]  (!%p23848_p6), %s26126_s9, 1024, %s575_s20, [#allocation19], %s23681_s2, %s23681_s2, %s23682_s27  }
  0x6e   : > { %p23245_p9 = pneg %p23244_p8  ;;  %p23251_p12 = por %p23250_p10, %p23249_p11 }
  0x70   : > { %p23252_p0 = pnand %p23251_p12, %p23245_p9 }
  0x72   : > { %23255 = shalt.err (!%p23252_p0)
}
  0x73   : > { %s26127_s18 = smov 20   ;;  %s26128_s3 = smov 320  }
  0x74   : > { %s26129_s11 = sld [smem:[#allocation59_spill]]  ;;  %s23267_s20 = scalar_lea.vmem %s623_s21, 51200 }
  0x75   : > { %p23268_p13 = scmp.ne.s32.totalorder %s623_s21, %s23267_s20  ;;  %p23275_p8 = scmp.lt.s32.totalorder %s623_s21, %s623_s21 }
  0x76   : > { %p23276_p11 = scmp.lt.s32.totalorder %s23267_s20, %s23267_s20 }
  0x77   : > { %p23270_p2 = pnand %p23268_p13, %p23856_p7 }
  0x78   : > { %p23277_p9 = por %p23276_p11, %p23275_p8 }
  0x79   : > { %p23271_p5 = pneg %p23270_p2 }
  0x7a   : > { %20730 = dma.hbm_to_vmem [thread:$0]  (!%p23848_p6), %s26129_s11, 5120, %s599_s16, [#allocation22], %s26128_s3, %s26128_s3, %s26127_s18  }
  0x7b   : > { %p23278_p10 = pnand %p23277_p9, %p23271_p5 }
  0x7d   : > { %23281 = shalt.err (!%p23278_p10)
}
  0x7e   : > { %s26078_s5 = smov 640   ;;  %s26079_s23 = smov 40  }
  0x7f   : > { %s26130_s13 = sld [smem:[#allocation61_spill]]  ;;  %s18118_s30 = sadd.s32 4294967294, %s23674_s0  }
  0x80   : > { %p26084_p12 = scmp.eq.s32.totalorder %s23674_s0, 0  ;;  %s18119_s18 = sadd.s32 4294967292, %s23674_s0 }
  0x81   : > { %p383_p0 = scmp.gt.s32.totalorder %s18119_s18, 0  ;;  %p398_p13 = scmp.ne.s32.totalorder %s23658_s26, %s23654_s25 }
  0x82   : > { %p404_p2 = scmp.ne.s32.totalorder %s23654_s25, %s23650_s24  ;;  %p466_p11 = scmp.eq.s32.totalorder %s23832_s19, 7 }
  0x83   : > { %s26198_s18 = smov (!%p383_p0, %s18119_s18), 0  ;;  %p400_p5 = por %p398_p13, %p26084_p12 }
  0x84   : > { %p23951_p8 = por %p404_p2, %p26083_p1  ;;  %p472_p9 = scmp.eq.s32.totalorder %s18118_s30, 7 }
  0x85   : > { %20736 = dma.hbm_to_vmem [thread:$0]  (!%p23848_p6), %s26130_s13, 51200, %s623_s21, [#allocation25], %s26078_s5, %s26078_s5, %s26079_s23  }
  0x86   : > { %s26131_s2 = scalar_select %p23951_p8, 1, 0 }
  0x87   : > { %p26082_p10 = scmp.lt.s32.totalorder %s23674_s0, 8  ;;  %p23958_p3 = por %p466_p11, %p398_p13 }
  0x88   : > { %p23962_p4 = por %p472_p9, %p404_p2  ;;  %s26080_s1 = sand.u32 1, %s23658_s26  }
  0x89   : > { %s26132_s27 = scalar_select %p23958_p3, 1, 0 }
  0x8a   : > { %s26133_s20 = scalar_select %p23962_p4, 1, 0 }
  0x8b   : > { %s20635_s16 = smul.u32 5120, %s26080_s1  ;;  %s20360_s5 = sshll.u32 %s26198_s18, 9 }
  0x8c   : > { %26134 = sst [smem:[#allocation46_spill]] %s26133_s20  ;;  %p23977_p0 = pnand %p26082_p10, %p400_p5 }
  0x8d   : > { %s26135_s15 = sld [smem:[#allocation63_spill]]  ;;  %s696_s21 = scalar_lea.vmem [#allocation27], %s20635_s16 }
  0x8e   : > { %s26136_s30 = scalar_select %p23977_p0, 1, 0 }
  0x8f   : > { %s706_s9 = sshll.u32 %s696_s21, 4  ;;  %s26137_s1 = sand.u32 1, %s23674_s0   ;;  %s23981_s9 = int_to_ptr.vmem [resolvable:$true] %s706_s9 }
  0x90   : > { %s23985_s11 = scalar_lea.sflag [#allocation28], %s26137_s1  ;;  %p26090_p2 = pneg %p23977_p0 }
  0x93   : > { %s23973_s7 = scalar_lea.hbm %s26135_s15, %s20360_s5  ;;  %s23287_s13 = scalar_lea.hbm %s26135_s15, 327680 }
  0x94   : > { %s23282_s23 = scalar_lea.hbm %s23973_s7, 81920  ;;  %p23288_p9 = scmp.lt.s32.totalorder %s23973_s7, %s26135_s15 }
  0x95   : > { %p23283_p13 = scmp.ne.s32.totalorder %s23973_s7, %s23282_s23  ;;  %p23289_p10 = scmp.lt.s32.totalorder %s23287_s13, %s23282_s23 }
  0x97   : > { %p23285_p11 = pnand %p26090_p2, %p23283_p13  ;;  %p23290_p1 = por %p23289_p10, %p23288_p9 }
  0x99   : > { %p23286_p5 = pneg %p23285_p11 }
  0x9b   : > { %p23291_p12 = pnand %p23290_p1, %p23286_p5 }
  0x9d   : > { %23294 = shalt.err (!%p23291_p12)
}
  0x9e   : > { %s23295_s21 = scalar_lea.vmem %s23981_s9, 81920  ;;  %s23689_s1 = smov [#allocation27]  }
  0x9f   : > { %p23296_p4 = scmp.ne.s32.totalorder %s23981_s9, %s23295_s21  ;;  %s23300_s5 = sshll.u32 %s23689_s1, 4  ;;  %s23301_s5 = int_to_ptr.vmem [resolvable:$false] %s23300_s5 }
  0xa0   : > { %s23302_s3 = scalar_lea.vmem %s23301_s5, 163840  ;;  %p23303_p3 = scmp.lt.s32.totalorder %s23981_s9, %s23301_s5 }
  0xa1   : > { %p23298_p13 = pnand %p23296_p4, %p26090_p2  ;;  %p23304_p8 = scmp.lt.s32.totalorder %s23302_s3, %s23295_s21 }
  0xa3   : > { %p23299_p11 = pneg %p23298_p13  ;;  %p23305_p6 = por %p23304_p8, %p23303_p3 }
  0xa5   : > { %p23306_p10 = pnand %p23305_p6, %p23299_p11 }
  0xa7   : > { %23309 = shalt.err (!%p23306_p10)
}
  0xa8   : > { %s23690_s13 = smov 2048   ;;  %s23691_s20 = smov 512  }
  0xa9   : > { %s23692_s23 = smov 32   ;;  %s23693_s16 = smov [#allocation11]  }
  0xaa   : > { %20749 = dma.hbm_to_vmem [thread:$0]  (!%p23977_p0), %s23973_s7, 81920, %s23981_s9, %s23985_s11, %s23690_s13, %s23691_s20, %s23692_s23  }
  0xab   : > { %s516_s15 = sshll.u32 %s23693_s16, 4  ;;  %s23694_s1 = smov [#allocation14]   ;;  %s517_s15 = int_to_ptr.vmem [resolvable:$true] %s516_s15 }
  0xac   : > { %s540_s24 = sshll.u32 %s23694_s1, 4  ;;  %s23321_s5 = scalar_lea.vmem %s517_s15, 80  ;;  %s541_s24 = int_to_ptr.vmem [resolvable:$true] %s540_s24 }
  0xad   : > { %p23322_p1 = scmp.ne.s32.totalorder %s517_s15, %s23321_s5  ;;  %s23328_s21 = scalar_lea.vmem %s517_s15, 96 }
  0xae   : > { %p23329_p6 = scmp.lt.s32.totalorder %s517_s15, %s517_s15  ;;  %p23330_p12 = scmp.lt.s32.totalorder %s23328_s21, %s23321_s5 }
  0xaf   : > { %p23324_p3 = pnand %p23322_p1, %p23856_p7 }
  0xb0   : > { %p23331_p8 = por %p23330_p12, %p23329_p6 }
  0xb1   : > { %p23325_p4 = pneg %p23324_p3 }
  0xb3   : > { %p23332_p5 = pnand %p23331_p8, %p23325_p4 }
  0xb5   : > { %23335 = shalt.err (!%p23332_p5)
}
  0xb6   : > { %p26138_p9 = scmp.ne.s32.totalorder %s26120_s22, 0  ;;  %s26139_s4 = sld [smem:[#allocation52_spill]] }
  0xb7   : > { %s23347_s9 = scalar_lea.vmem %s541_s24, 16  ;;  %s23354_s13 = scalar_lea.vmem %s541_s24, 32 }
  0xb8   : > { %p23348_p13 = scmp.ne.s32.totalorder %s541_s24, %s23347_s9  ;;  %p23355_p1 = scmp.lt.s32.totalorder %s541_s24, %s541_s24 }
  0xb9   : > { %p23356_p3 = scmp.lt.s32.totalorder %s23354_s13, %s23347_s9 }
  0xba   : > { %p23350_p11 = pnand %p23348_p13, %p23856_p7 }
  0xbb   : > { %p23357_p2 = por %p23356_p3, %p23355_p1 }
  0xbc   : > { %20709 = dma.hbm_to_vmem [thread:$0]  (!%p26138_p9), %s26139_s4, 80, %s517_s15, [#allocation10]  }
  0xbd   : > { %p23351_p10 = pneg %p23350_p11 }
  0xbf   : > { %p23358_p6 = pnand %p23357_p2, %p23351_p10 }
  0xc1   : > { %23361 = shalt.err (!%p23358_p6)
}
  0xc2   : > { %s26140_s6 = sld [smem:[#allocation54_spill]]  ;;  %s23695_s15 = smov [#allocation17]  }
  0xc3   : > { %s564_s16 = sshll.u32 %s23695_s15, 4  ;;  %s23696_s1 = smov [#allocation20]   ;;  %s565_s16 = int_to_ptr.vmem [resolvable:$true] %s564_s16 }
  0xc4   : > { %s588_s5 = sshll.u32 %s23696_s1, 4  ;;  %s23373_s21 = scalar_lea.vmem %s565_s16, 16  ;;  %s589_s5 = int_to_ptr.vmem [resolvable:$true] %s588_s5 }
  0xc5   : > { %p23374_p4 = scmp.ne.s32.totalorder %s565_s16, %s23373_s21  ;;  %s23380_s3 = scalar_lea.vmem %s565_s16, 32 }
  0xc6   : > { %p23381_p2 = scmp.lt.s32.totalorder %s565_s16, %s565_s16  ;;  %p23382_p5 = scmp.lt.s32.totalorder %s23380_s3, %s23373_s21 }
  0xc7   : > { %p23376_p12 = pnand %p23374_p4, %p23856_p7 }
  0xc8   : > { %20715 = dma.hbm_to_vmem [thread:$0]  (!%p26138_p9), %s26140_s6, 16, %s541_s24, [#allocation13]  }
  0xc9   : > { %p23377_p8 = pneg %p23376_p12  ;;  %p23383_p13 = por %p23382_p5, %p23381_p2 }
  0xcb   : > { %p23384_p11 = pnand %p23383_p13, %p23377_p8 }
  0xcd   : > { %23387 = shalt.err (!%p23384_p11)
}
  0xce   : > { %s26141_s8 = sld [smem:[#allocation56_spill]]  ;;  %s23399_s9 = scalar_lea.vmem %s589_s5, 16 }
  0xcf   : > { %p23400_p10 = scmp.ne.s32.totalorder %s589_s5, %s23399_s9  ;;  %s23406_s13 = scalar_lea.vmem %s589_s5, 32 }
  0xd0   : > { %p23407_p6 = scmp.lt.s32.totalorder %s589_s5, %s589_s5  ;;  %p23408_p4 = scmp.lt.s32.totalorder %s23406_s13, %s23399_s9 }
  0xd1   : > { %p23402_p1 = pnand %p23400_p10, %p23856_p7 }
  0xd2   : > { %p23409_p12 = por %p23408_p4, %p23407_p6 }
  0xd3   : > { %p23403_p3 = pneg %p23402_p1 }
  0xd4   : > { %20721 = dma.hbm_to_vmem [thread:$0]  (!%p26138_p9), %s26141_s8, 16, %s565_s16, [#allocation16]  }
  0xd5   : > { %p23410_p2 = pnand %p23409_p12, %p23403_p3 }
  0xd7   : > { %23413 = shalt.err (!%p23410_p2)
}
  0xd8   : > { %s26142_s10 = sld [smem:[#allocation58_spill]]  ;;  %s23697_s15 = smov [#allocation23]  }
  0xd9   : > { %s612_s16 = sshll.u32 %s23697_s15, 4  ;;  %s23698_s1 = smov [#allocation26]   ;;  %s613_s16 = int_to_ptr.vmem [resolvable:$true] %s612_s16 }
  0xda   : > { %s636_s21 = sshll.u32 %s23698_s1, 4  ;;  %s23425_s3 = scalar_lea.vmem %s613_s16, 80  ;;  %s637_s21 = int_to_ptr.vmem [resolvable:$true] %s636_s21 }
  0xdb   : > { %p23426_p8 = scmp.ne.s32.totalorder %s613_s16, %s23425_s3  ;;  %s23432_s7 = scalar_lea.vmem %s613_s16, 96 }
  0xdc   : > { %p23433_p11 = scmp.lt.s32.totalorder %s613_s16, %s613_s16  ;;  %p23434_p10 = scmp.lt.s32.totalorder %s23432_s7, %s23425_s3 }
  0xdd   : > { %p23428_p5 = pnand %p23426_p8, %p23856_p7 }
  0xde   : > { %20727 = dma.hbm_to_vmem [thread:$0]  (!%p26138_p9), %s26142_s10, 16, %s589_s5, [#allocation19]  }
  0xdf   : > { %p23429_p13 = pneg %p23428_p5  ;;  %p23435_p1 = por %p23434_p10, %p23433_p11 }
  0xe1   : > { %p23436_p3 = pnand %p23435_p1, %p23429_p13 }
  0xe3   : > { %23439 = shalt.err (!%p23436_p3)
}
  0xe4   : > { %s26143_s12 = sld [smem:[#allocation60_spill]]  ;;  %s23451_s9 = scalar_lea.vmem %s637_s21, 160 }
  0xe5   : > { %p23452_p6 = scmp.ne.s32.totalorder %s637_s21, %s23451_s9  ;;  %p23459_p2 = scmp.lt.s32.totalorder %s637_s21, %s637_s21 }
  0xe6   : > { %p23460_p8 = scmp.lt.s32.totalorder %s23451_s9, %s23451_s9 }
  0xe7   : > { %p23454_p4 = pnand %p23452_p6, %p23856_p7 }
  0xe8   : > { %p23461_p5 = por %p23460_p8, %p23459_p2 }
  0xe9   : > { %p23455_p12 = pneg %p23454_p4 }
  0xea   : > { %20733 = dma.hbm_to_vmem [thread:$0]  (!%p26138_p9), %s26143_s12, 80, %s613_s16, [#allocation22]  }
  0xeb   : > { %p23462_p0 = pnand %p23461_p5, %p23455_p12 }
  0xed   : > { %23465 = shalt.err (!%p23462_p0)
}
  0xee   : > { %s26144_s14 = sld [smem:[#allocation62_spill]]  ;;  %s24055_s23 = sadd.s32 1, %s23674_s0  }
  0xef   : > { %s26145_s17 = sld [smem:[#allocation43_spill]]  ;;  %p49_p7 = scmp.lt.s32.totalorder %s23674_s0, 3 }
  0xf0   : > { %p51_p0 = scmp.lt.s32.totalorder %s24055_s23, 3  ;;  %s56_s22 = sadd.s32 1, %s23670_s29 }
  0xf1   : > { %p63_p13 = scmp.ne.s32.totalorder %s23670_s29, %s23666_s28  ;;  %p26146_p11 = scmp.eq.s32.totalorder %s23674_s0, 0 }
  0xf2   : > { %s24063_s15 = scalar_select %p49_p7, %s23674_s0, 3 }
  0xf3   : > { %s52_s16 = scalar_select %p51_p0, %s24055_s23, 3 }
  0xf4   : > { %20739 = dma.hbm_to_vmem [thread:$0]  (!%p26138_p9), %s26144_s14, 160, %s637_s21, [#allocation25]  }
  0xf5   : > { %p24068_p10 = por %p26146_p11, %p63_p13  ;;  %p69_p9 = scmp.ne.s32.totalorder %s23666_s28, %s26145_s17 }
  0xf6   : > { %s53_s21 = ssub.s32 %s24063_s15, %s52_s16  ;;  %s18120_s3 = sadd.s32 4294967292, %s24055_s23 }
  0xf7   : > { %p54_p1 = scmp.eq.s32.totalorder %s53_s21, 0  ;;  %p26148_p3 = scmp.eq.s32.totalorder %s23832_s19, 0 }
  0xf8   : > { %p386_p4 = scmp.gt.s32.totalorder %s18120_s3, 0  ;;  %s24083_s24 = sand.u32 1, %s23670_s29  }
  0xf9   : > { %p24078_p6 = por %p26148_p3, %p69_p9  ;;  %s18140_s9 = sshll.u32 %s24083_s24, 6 }
  0xfa   : > { %s24086_s5 = scalar_select %p54_p1, %s23670_s29, %s56_s22  }
  0xfb   : > { %s26149_s7 = scalar_select %p24078_p6, 1, 0 }
  0xfc   : > { %26150 = sst [smem:[#allocation47_spill]] %s24086_s5  ;;  %s26200_s3 = smov (!%p386_p4, %s18120_s3), 0 }
  0xfd   : > { %s388_s13 = ssub.s32 %s26198_s18, %s26200_s3  ;;  %s20359_s20 = sshll.u32 %s24063_s15, 10 }
  0xfe   : > { %p389_p12 = scmp.eq.s32.totalorder %s388_s13, 0  ;;  %s26151_s21 = sld [smem:[#allocation48_spill]] }
  0xff   : > { %s651_s6 = scalar_lea.vmem [#allocation3], %s18140_s9  ;;  %s26152_s10 = sadd.s32 1, %s23658_s26 }
 0x100   : > { %s661_s8 = sshll.u32 %s651_s6, 4  ;;  %p26153_p2 = scmp.lt.s32.totalorder %s23674_s0, 8  ;;  %s24101_s8 = int_to_ptr.vmem [resolvable:$true] %s661_s8 }
 0x101   : > { %s24099_s12 = scalar_select %p389_p12, %s23658_s26, %s26152_s10  }
 0x102   : > { %p24107_p8 = pnand %p26153_p2, %p24068_p10  ;;  %s20634_s13 = smul.u32 81920, %s24063_s15 }
 0x104   : > { %s24094_s4 = scalar_lea.hbm %s26151_s21, %s20359_s20  ;;  %s648_s20 = scalar_lea.sflag [#allocation4], %s24083_s24 }
 0x105   : > { %s23466_s17 = scalar_lea.hbm %s24094_s4, 1024  ;;  %p23468_p7 = pneg %p24107_p8 }
 0x106   : > { %p23467_p5 = scmp.ne.s32.totalorder %s24094_s4, %s23466_s17  ;;  %s23471_s1 = scalar_lea.hbm %s26151_s21, 4096 }
 0x107   : > { %p23472_p11 = scmp.lt.s32.totalorder %s24094_s4, %s26151_s21  ;;  %p23473_p10 = scmp.lt.s32.totalorder %s23471_s1, %s23466_s17 }
 0x108   : > { %p23469_p0 = pnand %p23468_p7, %p23467_p5 }
 0x109   : > { %p23474_p9 = por %p23473_p10, %p23472_p11 }
 0x10a   : > { %p23470_p13 = pneg %p23469_p0 }
 0x10c   : > { %p23475_p1 = pnand %p23474_p9, %p23470_p13 }
 0x10e   : > { %23478 = shalt.err (!%p23475_p1)
}
 0x10f   : > { %s23479_s15 = scalar_lea.vmem %s24101_s8, 1024  ;;  %s23699_s6 = smov [#allocation3]  }
 0x110   : > { %p23480_p3 = scmp.ne.s32.totalorder %s24101_s8, %s23479_s15  ;;  %s23484_s10 = sshll.u32 %s23699_s6, 4  ;;  %s23485_s10 = int_to_ptr.vmem [resolvable:$false] %s23484_s10 }
 0x111   : > { %s23486_s3 = scalar_lea.vmem %s23485_s10, 2048  ;;  %p23487_p2 = scmp.lt.s32.totalorder %s24101_s8, %s23485_s10 }
 0x112   : > { %p23482_p4 = pnand %p23480_p3, %p23468_p7  ;;  %p23488_p5 = scmp.lt.s32.totalorder %s23486_s3, %s23479_s15 }
 0x114   : > { %p23483_p12 = pneg %p23482_p4  ;;  %p23489_p0 = por %p23488_p5, %p23487_p2 }
 0x116   : > { %p23490_p11 = pnand %p23489_p0, %p23483_p12 }
 0x118   : > { %23493 = shalt.err (!%p23490_p11)
}
 0x119   : > { %20743 = dma.hbm_to_vmem [thread:$0]  (!%p24107_p8), %s24094_s4, 1024, %s24101_s8, %s648_s20  }
 0x11a   : > { %s26155_s9 = sld [smem:[#allocation49_spill]]  ;;  %s26156_s6 = smul.u32 5120, %s24083_s24 }
 0x11b   : > { %s26157_s10 = sand.u32 1, %s23658_s26   ;;  %s26158_s21 = sand.u32 1, %s23674_s0  }
 0x11c   : > { %s672_s3 = scalar_lea.vmem [#allocation6], %s26156_s6  ;;  %s24147_s14 = sshll.u32 %s26157_s10, 3 }
 0x11d   : > { %s682_s15 = sshll.u32 %s672_s3, 4  ;;  %s669_s5 = scalar_lea.sflag [#allocation7], %s26158_s21  ;;  %s24149_s15 = int_to_ptr.vmem [resolvable:$true] %s682_s15 }
 0x120   : > { %s24141_s16 = scalar_lea.hbm %s26155_s9, %s20634_s13  ;;  %s23499_s24 = scalar_lea.hbm %s26155_s9, 327680 }
 0x121   : > { %s23494_s29 = scalar_lea.hbm %s24141_s16, 81920  ;;  %p23500_p1 = scmp.lt.s32.totalorder %s24141_s16, %s26155_s9 }
 0x122   : > { %p23495_p13 = scmp.ne.s32.totalorder %s24141_s16, %s23494_s29  ;;  %p23501_p3 = scmp.lt.s32.totalorder %s23499_s24, %s23494_s29 }
 0x124   : > { %p23497_p10 = pnand %p23495_p13, %p23468_p7  ;;  %p23502_p4 = por %p23501_p3, %p23500_p1 }
 0x126   : > { %p23498_p9 = pneg %p23497_p10 }
 0x128   : > { %p23503_p12 = pnand %p23502_p4, %p23498_p9 }
 0x12a   : > { %23506 = shalt.err (!%p23503_p12)
}
 0x12b   : > { %s23507_s21 = scalar_lea.vmem %s24149_s15, 81920  ;;  %s23700_s17 = smov [#allocation6]  }
 0x12c   : > { %p23508_p2 = scmp.ne.s32.totalorder %s24149_s15, %s23507_s21  ;;  %s23512_s1 = sshll.u32 %s23700_s17, 4  ;;  %s23513_s1 = int_to_ptr.vmem [resolvable:$false] %s23512_s1 }
 0x12d   : > { %s23514_s6 = scalar_lea.vmem %s23513_s1, 163840  ;;  %p23515_p11 = scmp.lt.s32.totalorder %s24149_s15, %s23513_s1 }
 0x12e   : > { %p23510_p5 = pnand %p23508_p2, %p23468_p7  ;;  %p23516_p13 = scmp.lt.s32.totalorder %s23514_s6, %s23507_s21 }
 0x130   : > { %p23511_p0 = pneg %p23510_p5  ;;  %p23517_p10 = por %p23516_p13, %p23515_p11 }
 0x132   : > { %p23518_p1 = pnand %p23517_p10, %p23511_p0 }
 0x134   : > { %23521 = shalt.err (!%p23518_p1)
}
 0x135   : > { %s26159_s29 = smov 40   ;;  %s26160_s3 = smov 640  }
 0x136   : > { %20746 = dma.hbm_to_vmem [thread:$0]  (!%p24107_p8), %s24141_s16, 81920, %s24149_s15, %s669_s5, %s26160_s3, %s26160_s3, %s26159_s29  }
 0x137   : > { %s20361_s10 = sshll.u32 %s26198_s18, 7  ;;  %s720_s4 = scalar_lea.vmem [#allocation29], %s24147_s14 }
 0x138   : > { %s731_s8 = sshll.u32 %s720_s4, 4  ;;  %s26161_s20 = sld [smem:[#allocation64_spill]]  ;;  %s732_s8 = int_to_ptr.vmem [resolvable:$true] %s731_s8 }
 0x139   : > { %p26162_p9 = scmp.ne.s32.totalorder %s26136_s30, 0 }
 0x13b   : > { %p26163_p3 = pneg %p26162_p9 }
 0x13e   : > { %s729_s21 = scalar_lea.hbm %s26161_s20, %s20361_s10  ;;  %s23527_s6 = scalar_lea.hbm %s26161_s20, 512 }
 0x13f   : > { %s23522_s17 = scalar_lea.hbm %s729_s21, 128  ;;  %p23528_p8 = scmp.lt.s32.totalorder %s729_s21, %s26161_s20 }
 0x140   : > { %p23523_p7 = scmp.ne.s32.totalorder %s729_s21, %s23522_s17  ;;  %p23529_p2 = scmp.lt.s32.totalorder %s23527_s6, %s23522_s17 }
 0x142   : > { %p23525_p4 = pnand %p23523_p7, %p26163_p3  ;;  %p23530_p5 = por %p23529_p2, %p23528_p8 }
 0x144   : > { %p23526_p12 = pneg %p23525_p4 }
 0x146   : > { %p23531_p0 = pnand %p23530_p5, %p23526_p12 }
 0x148   : > { %23534 = shalt.err (!%p23531_p0)
}
 0x149   : > { %s23535_s14 = scalar_lea.vmem %s732_s8, 128  ;;  %p26164_p13 = pmov %p26163_p3 }
 0x14a   : > { %p23536_p11 = scmp.ne.s32.totalorder %s732_s8, %s23535_s14  ;;  %s23701_s18 = smov [#allocation29]  }
 0x14b   : > { %s23540_s16 = sshll.u32 %s23701_s18, 4  ;;  %s23541_s16 = int_to_ptr.vmem [resolvable:$false] %s23540_s16 }
 0x14c   : > { %p23538_p10 = pnand %p23536_p11, %p26164_p13  ;;  %s23542_s15 = scalar_lea.vmem %s23541_s16, 256 }
 0x14d   : > { %p23543_p7 = scmp.lt.s32.totalorder %s732_s8, %s23541_s16  ;;  %p23544_p3 = scmp.lt.s32.totalorder %s23542_s15, %s23535_s14 }
 0x14e   : > { %p23539_p1 = pneg %p23538_p10 }
 0x14f   : > { %p23545_p4 = por %p23544_p3, %p23543_p7 }
 0x151   : > { %p23546_p6 = pnand %p23545_p4, %p23539_p1 }
 0x153   : > { %23549 = shalt.err (!%p23546_p6)
}
 0x154   : > { %20752 = dma.hbm_to_vmem [thread:$0]  (!%p26162_p9), %s729_s21, 128, %s732_s8, %s23985_s11  }
 0x155   : > { %s26165_s9 = sld [smem:[#allocation45_spill]] }
 0x15b   : > { %p26166_p12 = scmp.ne.s32.totalorder %s26165_s9, 0 }
 0x15c   : > { %s742_s29 = sand.u32 (!%p26166_p12), 1, %s23666_s28   ;;  %p26167_p8 = scmp.ne.s32.totalorder (!%p26166_p12), %s26149_s7, 0 }
 0x15d   : > { %740 = sbr.rel (%p26166_p12) target bundleno = 4115 (0x1013), region = 88  ;;  %s18154_s3 = sshll.u32 (!%p26166_p12), %s742_s29, 6 }
 0x15e   : > { %s743_s10 = scalar_lea.sflag (!%p26166_p12), [#allocation4], %s742_s29  ;;  %s24201_s4 = scalar_lea.vmem (!%p26166_p12), [#allocation3], %s18154_s3 }
 0x162   : > { %23605 = dma.done.wait (%p26167_p8), %s743_s10, 1024  }
 0x163   : > { %23607 = vsyncadd (%p26167_p8), %s743_s10, 4294966272  ;;  %s751_s30 = sand.u32 1, %s23832_s19   ;;  %s20636_s24 = smul.u32 5120, %s742_s29 }
 0x164   : > { %s752_s11 = scalar_lea.sflag [#allocation7], %s751_s30 }
 0x165   : > { %s24208_s8 = scalar_lea.vmem [#allocation6], %s20636_s24 }
 0x166   : > { %23609 = dma.done.wait (%p26167_p8), %s752_s11, 81920  }
 0x167   : > { %23611 = vsyncadd (%p26167_p8), %s752_s11, 4294885376  ;;  %p26168_p6 = scmp.eq.s32.totalorder %s23832_s19, 0 }
 0x169   : > { %23613 = dma.done.wait (%p26168_p6), [#allocation7], 160   ;;  %p26169_p9 = pmov %p26168_p6 }
 0x16a   : > { %p26170_p2 = pmov %p26168_p6 }
 0x16b   : > { %23615 = vsyncadd (%p26169_p9), [#allocation7], 4294967136 }
 0x16c   : > { %23617 = dma.done.wait (%p26170_p2), [#allocation10], 51280   ;;  %p26171_p5 = pmov %p26170_p2 }
 0x16d   : > { %p26172_p0 = pmov %p26170_p2 }
 0x16e   : > { %23619 = vsyncadd (%p26171_p5), [#allocation10], 4294916016 }
 0x16f   : > { %23621 = dma.done.wait (%p26172_p0), [#allocation13], 5136   ;;  %p26173_p11 = pmov %p26172_p0 }
 0x170   : > { %p26174_p13 = pmov %p26172_p0 }
 0x171   : > { %23623 = vsyncadd (%p26173_p11), [#allocation13], 4294962160 }
 0x172   : > { %23625 = dma.done.wait (%p26174_p13), [#allocation16], 1040   ;;  %p26175_p10 = pmov %p26172_p0 }
 0x173   : > { %p26176_p1 = pmov %p26172_p0 }
 0x174   : > { %23627 = vsyncadd (%p26175_p10), [#allocation16], 4294966256 }
 0x175   : > { %23629 = dma.done.wait (%p26176_p1), [#allocation19], 1040   ;;  %p26177_p7 = pmov %p26172_p0 }
 0x176   : > { %p26178_p3 = pmov %p26172_p0 }
 0x177   : > { %23631 = vsyncadd (%p26177_p7), [#allocation19], 4294966256 }
 0x178   : > { %23633 = dma.done.wait (%p26178_p3), [#allocation22], 5200   ;;  %p26179_p4 = pmov %p26172_p0 }
 0x179   : > { %p26180_p12 = pmov %p26172_p0 }
 0x17a   : > { %23635 = vsyncadd (%p26179_p4), [#allocation22], 4294962096 }
 0x17b   : > { %23637 = dma.done.wait (%p26180_p12), [#allocation25], 51360   ;;  %p26181_p8 = pmov %p26172_p0 }
 0x17c   : > { %s24243_s7 = sand.u32 1, %s23654_s25   ;;  %s813_s21 = scalar_lea.sflag [#allocation28], %s751_s30 }
 0x17d   : > { %23639 = vsyncadd (%p26181_p8), [#allocation25], 4294915936  ;;  %s20637_s13 = smul.u32 5120, %s24243_s7  ;;  %p26182_p6 = scmp.ne.s32.totalorder %s26131_s2, 0 }
 0x17f   : > { %s24246_s17 = scalar_lea.vmem [#allocation27], %s20637_s13 }
 0x180   : > { %23641 = dma.done.wait (%p26182_p6), %s813_s21, 82048  }
 0x181   : > { %23643 = vsyncadd (%p26182_p6), %s813_s21, 4294885248  ;;  %s18168_s22 = sshll.u32 %s24243_s7, 3  ;;  %s18169_s1 = sshll.u32 %s24243_s7, 6 }
 0x182   : > { %s24254_s6 = scalar_lea.vmem [#allocation29], %s18168_s22  ;;  %s24256_s5 = scalar_lea.vmem [#allocation30], %s18169_s1 }
 0x183   : > { %p26183_p9 = scmp.ne.s32.totalorder %s23832_s19, 0 }
 0x185   : > { %913 = sbr.rel (%p26183_p9) target bundleno = 407 (0x197), region = 160 }
 0x18a   : > { %v918_v0 = vlaneseq  ;;  %v914_v2 = vld [vmem:[#allocation8] sm:$0xff]  ;;  %v915_v11 = vld [vmem:[#allocation8 + $0x8] sm:$0x3] }
 0x18c   : > { %v919_v1 = vshrl.u32 %v918_v0, 7 }
 0x18e   : > { %v920_v3 = vsub.s32 0, %v919_v1  ;;  %v924_v4 = vsub.s32 1, %v919_v1  ;;  %v928_v5 = vsub.s32 2, %v919_v1  ;;  %v932_v6 = vsub.s32 3, %v919_v1 }
 0x18f   : > { %v936_v7 = vsub.s32 4, %v919_v1  ;;  %v940_v8 = vsub.s32 5, %v919_v1  ;;  %v944_v9 = vsub.s32 6, %v919_v1  ;;  %v948_v10 = vsub.s32 7, %v919_v1 }
 0x190   : > { %v921_v12 = vrot.slane %v914_v2, %v920_v3  ;;  %v925_v13 = vrot.slane %v914_v2, %v924_v4  ;;  %v929_v14 = vrot.slane %v914_v2, %v928_v5  ;;  %v933_v15 = vrot.slane %v914_v2, %v932_v6 }
 0x191   : > { %v937_v16 = vrot.slane %v914_v2, %v936_v7  ;;  %v941_v17 = vrot.slane %v914_v2, %v940_v8  ;;  %v945_v18 = vrot.slane %v914_v2, %v944_v9  ;;  %v949_v19 = vrot.slane %v914_v2, %v948_v10 }
 0x192   : > { %968 = vst [vmem:[#allocation2 + $0x30] sm:$0xff] %v921_v12  ;;  %969 = vst [vmem:[#allocation2] sm:$0xff] %v925_v13  ;;  %v953_v20 = vrot.slane %v915_v11, %v920_v3  ;;  %v957_v21 = vrot.slane %v915_v11, %v924_v4 }
 0x193   : > { %970 = vst [vmem:[#allocation2 + $0x18] sm:$0xff] %v929_v14  ;;  %971 = vst [vmem:[#allocation2 + $0x10] sm:$0xff] %v933_v15 }
 0x194   : > { %972 = vst [vmem:[#allocation2 + $0x48] sm:$0xff] %v937_v16  ;;  %973 = vst [vmem:[#allocation2 + $0x28] sm:$0xff] %v941_v17 }
 0x195   : > { %974 = vst [vmem:[#allocation2 + $0x8] sm:$0xff] %v945_v18  ;;  %975 = vst [vmem:[#allocation2 + $0x20] sm:$0xff] %v949_v19 }
 0x196   : > { %976 = vst [vmem:[#allocation2 + $0x40] sm:$0xff] %v953_v20  ;;  %977 = vst [vmem:[#allocation2 + $0x38] sm:$0xff] %v957_v21 }
 0x197 PF: > { %p18171_p2 = scmp.gt.s32.totalorder %s23832_s19, 3 }
 0x199   : > { %981 = sbr.rel (%p18171_p2) target bundleno = 1257 (0x4e9), region = 164 }
 0x19e   : > { %v20866_v22 = vld [vmem:[%s24208_s8 + $0x234] ss:$40 sps:$4 sm:$0xff]   ;;  %v20870_v24 = vld [vmem:[%s24208_s8 + $0x230] ss:$40 sps:$4 sm:$0xff]   ;;  %v20872_v26 = vld [vmem:[%s24208_s8 + $0x1e4] ss:$40 sps:$4 sm:$0xff]  }
 0x19f   : > { %v20868_v23 = vld [vmem:[%s24208_s8 + $0x734] ss:$40 sps:$4 sm:$0xff]   ;;  %4848 = vmatprep.subr.bf16.mxu0 %v20866_v22  ;;  %v20871_v25 = vld [vmem:[%s24208_s8 + $0x730] ss:$40 sps:$4 sm:$0xff]   ;;  %v20874_v27 = vld [vmem:[%s24208_s8 + $0x6e4] ss:$40 sps:$4 sm:$0xff]  }
 0x1a0   : > { %4889 = vmatprep.subr.bf16.mxu1 %v20868_v23  ;;  %4849 = vmatpush1.bf16.msra.mxu0 %v20870_v24  ;;  %v20876_v28 = vld [vmem:[%s24208_s8 + $0x1e0] ss:$40 sps:$4 sm:$0xff]   ;;  %v20878_v30 = vld [vmem:[%s24208_s8 + $0x194] ss:$40 sps:$4 sm:$0xff]   ;;  %v20882_v32 = vld [vmem:[%s24208_s8 + $0x190] ss:$40 sps:$4 sm:$0xff]  }
 0x1a1   : > { %4890 = vmatpush1.bf16.msra.mxu1 %v20871_v25  ;;  %4850 = vmatprep.subr.bf16.mxu0 %v20872_v26  ;;  %v20877_v29 = vld [vmem:[%s24208_s8 + $0x6e0] ss:$40 sps:$4 sm:$0xff]   ;;  %v20880_v31 = vld [vmem:[%s24208_s8 + $0x694] ss:$40 sps:$4 sm:$0xff]   ;;  %v20883_v33 = vld [vmem:[%s24208_s8 + $0x690] ss:$40 sps:$4 sm:$0xff]  }
 0x1a2   : > { %4891 = vmatprep.subr.bf16.mxu1 %v20874_v27  ;;  %v20884_v34 = vld [vmem:[%s24208_s8 + $0x144] ss:$40 sps:$4 sm:$0xff]   ;;  %v20888_v36 = vld [vmem:[%s24208_s8 + $0x140] ss:$40 sps:$4 sm:$0xff]   ;;  %v20890_v38 = vld [vmem:[%s24208_s8 + $0xf4] ss:$40 sps:$4 sm:$0xff]  }
 0x1a3   : > { %v20886_v35 = vld [vmem:[%s24208_s8 + $0x644] ss:$40 sps:$4 sm:$0xff]   ;;  %v20889_v37 = vld [vmem:[%s24208_s8 + $0x640] ss:$40 sps:$4 sm:$0xff]   ;;  %v20892_v39 = vld [vmem:[%s24208_s8 + $0x5f4] ss:$40 sps:$4 sm:$0xff]  }
 0x1a4   : > { %4851 = vmatpush1.bf16.msra.mxu0 %v20876_v28  ;;  %v20894_v40 = vld [vmem:[%s24208_s8 + $0xf0] ss:$40 sps:$4 sm:$0xff]   ;;  %v20896_v42 = vld [vmem:[%s24208_s8 + $0xa4] ss:$40 sps:$4 sm:$0xff]   ;;  %v20900_v44 = vld [vmem:[%s24208_s8 + $0xa0] ss:$40 sps:$4 sm:$0xff]  }
 0x1a5   : > { %4892 = vmatpush1.bf16.msra.mxu1 %v20877_v29  ;;  %4852 = vmatprep.subr.bf16.mxu0 %v20878_v30  ;;  %v20895_v41 = vld [vmem:[%s24208_s8 + $0x5f0] ss:$40 sps:$4 sm:$0xff]   ;;  %v20898_v43 = vld [vmem:[%s24208_s8 + $0x5a4] ss:$40 sps:$4 sm:$0xff]   ;;  %v20901_v45 = vld [vmem:[%s24208_s8 + $0x5a0] ss:$40 sps:$4 sm:$0xff]  }
 0x1a6   : > { %4893 = vmatprep.subr.bf16.mxu1 %v20880_v31  ;;  %v20902_v46 = vld [vmem:[%s24208_s8 + $0x54] ss:$40 sps:$4 sm:$0xff]   ;;  %v20906_v48 = vld [vmem:[%s24208_s8 + $0x50] ss:$40 sps:$4 sm:$0xff]   ;;  %v20908_v50 = vld [vmem:[%s24208_s8 + $0x4] ss:$40 sps:$4 sm:$0xff]  }
 0x1a7   : > { %v20904_v47 = vld [vmem:[%s24208_s8 + $0x554] ss:$40 sps:$4 sm:$0xff]   ;;  %v20907_v49 = vld [vmem:[%s24208_s8 + $0x550] ss:$40 sps:$4 sm:$0xff]   ;;  %v20910_v51 = vld [vmem:[%s24208_s8 + $0x504] ss:$40 sps:$4 sm:$0xff]  }
 0x1a8   : > { %4853 = vmatpush1.bf16.msra.mxu0 %v20882_v32  ;;  %v20912_v52 = vld [vmem:[%s24208_s8] ss:$40 sps:$4 sm:$0xff]   ;;  %v20914_v54 = vld [vmem:[%s24208_s8 + $0x4b4] ss:$40 sps:$4 sm:$0xff]   ;;  %v20918_v56 = vld [vmem:[%s24208_s8 + $0x4b0] ss:$40 sps:$4 sm:$0xff]  }
 0x1a9   : > { %4894 = vmatpush1.bf16.msra.mxu1 %v20883_v33  ;;  %4854 = vmatprep.subr.bf16.mxu0 %v20884_v34  ;;  %v20913_v53 = vld [vmem:[%s24208_s8 + $0x500] ss:$40 sps:$4 sm:$0xff]   ;;  %v20916_v55 = vld [vmem:[%s24208_s8 + $0x9b4] ss:$40 sps:$4 sm:$0xff]   ;;  %v20919_v57 = vld [vmem:[%s24208_s8 + $0x9b0] ss:$40 sps:$4 sm:$0xff]  }
 0x1aa   : > { %4895 = vmatprep.subr.bf16.mxu1 %v20886_v35  ;;  %v20920_v58 = vld [vmem:[%s24208_s8 + $0x464] ss:$40 sps:$4 sm:$0xff]   ;;  %v20924_v60 = vld [vmem:[%s24208_s8 + $0x460] ss:$40 sps:$4 sm:$0xff]   ;;  %v20926_v62 = vld [vmem:[%s24208_s8 + $0x414] ss:$40 sps:$4 sm:$0xff]  }
 0x1ab   : > { %v20922_v59 = vld [vmem:[%s24208_s8 + $0x964] ss:$40 sps:$4 sm:$0xff]   ;;  %v20925_v61 = vld [vmem:[%s24208_s8 + $0x960] ss:$40 sps:$4 sm:$0xff]   ;;  %v20928_v63 = vld [vmem:[%s24208_s8 + $0x914] ss:$40 sps:$4 sm:$0xff]  }
 0x1ac   : > { %4855 = vmatpush1.bf16.msra.mxu0 %v20888_v36  ;;  %v20930_v0 = vld [vmem:[%s24208_s8 + $0x410] ss:$40 sps:$4 sm:$0xff]   ;;  %v20932_v2 = vld [vmem:[%s24208_s8 + $0x3c4] ss:$40 sps:$4 sm:$0xff]   ;;  %v20936_v5 = vld [vmem:[%s24208_s8 + $0x3c0] ss:$40 sps:$4 sm:$0xff]  }
 0x1ad   : > { %4896 = vmatpush1.bf16.msra.mxu1 %v20889_v37  ;;  %4856 = vmatprep.subr.bf16.mxu0 %v20890_v38  ;;  %v20931_v1 = vld [vmem:[%s24208_s8 + $0x910] ss:$40 sps:$4 sm:$0xff]   ;;  %v20934_v3 = vld [vmem:[%s24208_s8 + $0x8c4] ss:$40 sps:$4 sm:$0xff]   ;;  %v20937_v6 = vld [vmem:[%s24208_s8 + $0x8c0] ss:$40 sps:$4 sm:$0xff]  }
 0x1ae   : > { %4897 = vmatprep.subr.bf16.mxu1 %v20892_v39  ;;  %v993_v4 = vld [vmem:[%s24201_s4 + $0x8] sm:$0xff]  ;;  %v995_v8 = vld [vmem:[%s24201_s4 + $0x18] sm:$0xff]  ;;  %v992_v26 = vld [vmem:[%s24201_s4] sm:$0xff] }
 0x1af   : > { %v24310_v7 = vpack.c.bf16 %v993_v4, %v993_v4  ;;  %v20938_v9 = vld [vmem:[%s24208_s8 + $0x374] ss:$40 sps:$4 sm:$0xff]   ;;  %v24314_v10 = vpack.c.bf16 %v995_v8, %v995_v8  ;;  %v20942_v12 = vld [vmem:[%s24208_s8 + $0x370] ss:$40 sps:$4 sm:$0xff]   ;;  %v20944_v14 = vld [vmem:[%s24208_s8 + $0x324] ss:$40 sps:$4 sm:$0xff]   ;;  %v24337_v30 = vpack.c.bf16 %v992_v26, %v992_v26 }
 0x1b0   : > { %4857 = vmatpush1.bf16.msra.mxu0 %v20894_v40  ;;  %v20940_v11 = vld [vmem:[%s24208_s8 + $0x874] ss:$40 sps:$4 sm:$0xff]   ;;  %v20943_v13 = vld [vmem:[%s24208_s8 + $0x870] ss:$40 sps:$4 sm:$0xff]   ;;  %v20946_v15 = vld [vmem:[%s24208_s8 + $0x824] ss:$40 sps:$4 sm:$0xff]  }
 0x1b1   : > { %4898 = vmatpush1.bf16.msra.mxu1 %v20895_v41  ;;  %4858 = vmatprep.subr.bf16.mxu0 %v20896_v42  ;;  %v20948_v16 = vld [vmem:[%s24208_s8 + $0x320] ss:$40 sps:$4 sm:$0xff]   ;;  %v20950_v18 = vld [vmem:[%s24208_s8 + $0x2d4] ss:$40 sps:$4 sm:$0xff]   ;;  %v20954_v20 = vld [vmem:[%s24208_s8 + $0x2d0] ss:$40 sps:$4 sm:$0xff]  }
 0x1b2   : > { %4899 = vmatprep.subr.bf16.mxu1 %v20898_v43  ;;  %4880 = vmatprep.mubr.bf16.mxu0 %v24310_v7  ;;  %v20949_v17 = vld [vmem:[%s24208_s8 + $0x820] ss:$40 sps:$4 sm:$0xff]   ;;  %v20952_v19 = vld [vmem:[%s24208_s8 + $0x7d4] ss:$40 sps:$4 sm:$0xff]   ;;  %v20955_v21 = vld [vmem:[%s24208_s8 + $0x7d0] ss:$40 sps:$4 sm:$0xff]  }
 0x1b3   : > { %4921 = vmatprep.mubr.bf16.mxu1 %v24314_v10  ;;  %v20956_v22 = vld [vmem:[%s24208_s8 + $0x284] ss:$40 sps:$4 sm:$0xff]   ;;  %v20960_v24 = vld [vmem:[%s24208_s8 + $0x280] ss:$40 sps:$4 sm:$0xff]   ;;  %v994_v27 = vld [vmem:[%s24201_s4 + $0x10] sm:$0xff] }
 0x1b4   : > { %4859 = vmatpush1.bf16.msra.mxu0 %v20900_v44  ;;  %v20958_v23 = vld [vmem:[%s24208_s8 + $0x784] ss:$40 sps:$4 sm:$0xff]   ;;  %v20961_v25 = vld [vmem:[%s24208_s8 + $0x780] ss:$40 sps:$4 sm:$0xff]   ;;  %v20964_v28 = vld [vmem:[%s24208_s8 + $0xc34] ss:$40 sps:$4 sm:$0xff]   ;;  %v24339_v31 = vpack.c.bf16 %v994_v27, %v994_v27 }
 0x1b5   : > { %4900 = vmatpush1.bf16.msra.mxu1 %v20901_v45  ;;  %4860 = vmatprep.subr.bf16.mxu0 %v20902_v46  ;;  %v20967_v29 = vld [vmem:[%s24208_s8 + $0x1134] ss:$40 sps:$4 sm:$0xff]   ;;  %v20962_v32 = vld [vmem:[%s24208_s8 + $0xc30] ss:$40 sps:$4 sm:$0xff]   ;;  %v20970_v34 = vld [vmem:[%s24208_s8 + $0xbe4] ss:$40 sps:$4 sm:$0xff]  }
 0x1b6   : > { %4901 = vmatprep.subr.bf16.mxu1 %v20904_v47  ;;  %v20965_v33 = vld [vmem:[%s24208_s8 + $0x1130] ss:$40 sps:$4 sm:$0xff]   ;;  %v20973_v35 = vld [vmem:[%s24208_s8 + $0x10e4] ss:$40 sps:$4 sm:$0xff]   ;;  %v20968_v36 = vld [vmem:[%s24208_s8 + $0xbe0] ss:$40 sps:$4 sm:$0xff]  }
 0x1b7   : > { %v20971_v37 = vld [vmem:[%s24208_s8 + $0x10e0] ss:$40 sps:$4 sm:$0xff]   ;;  %v20976_v38 = vld [vmem:[%s24208_s8 + $0xb94] ss:$40 sps:$4 sm:$0xff]   ;;  %v20974_v40 = vld [vmem:[%s24208_s8 + $0xb90] ss:$40 sps:$4 sm:$0xff]  }
 0x1b8   : > { %4861 = vmatpush1.bf16.msra.mxu0 %v20906_v48  ;;  %v20979_v39 = vld [vmem:[%s24208_s8 + $0x1094] ss:$40 sps:$4 sm:$0xff]   ;;  %v20977_v41 = vld [vmem:[%s24208_s8 + $0x1090] ss:$40 sps:$4 sm:$0xff]   ;;  %v20982_v42 = vld [vmem:[%s24208_s8 + $0xb44] ss:$40 sps:$4 sm:$0xff]  }
 0x1b9   : > { %4902 = vmatpush1.bf16.msra.mxu1 %v20907_v49  ;;  %4862 = vmatprep.subr.bf16.mxu0 %v20908_v50  ;;  %v20985_v43 = vld [vmem:[%s24208_s8 + $0x1044] ss:$40 sps:$4 sm:$0xff]   ;;  %v20980_v44 = vld [vmem:[%s24208_s8 + $0xb40] ss:$40 sps:$4 sm:$0xff]   ;;  %v20988_v46 = vld [vmem:[%s24208_s8 + $0xaf4] ss:$40 sps:$4 sm:$0xff]  }
 0x1ba   : > { %4903 = vmatprep.subr.bf16.mxu1 %v20910_v51  ;;  %v20983_v45 = vld [vmem:[%s24208_s8 + $0x1040] ss:$40 sps:$4 sm:$0xff]   ;;  %v20991_v47 = vld [vmem:[%s24208_s8 + $0xff4] ss:$40 sps:$4 sm:$0xff]   ;;  %v20986_v48 = vld [vmem:[%s24208_s8 + $0xaf0] ss:$40 sps:$4 sm:$0xff]  }
 0x1bb   : > { %v20989_v49 = vld [vmem:[%s24208_s8 + $0xff0] ss:$40 sps:$4 sm:$0xff]   ;;  %v20994_v50 = vld [vmem:[%s24208_s8 + $0xaa4] ss:$40 sps:$4 sm:$0xff]   ;;  %v21040_v26 = vld [vmem:[%s24208_s8 + $0xd20] ss:$40 sps:$4 sm:$0xff]  }
 0x1bc   : > { %4863 = vmatpush1.bf16.msra.mxu0 %v20912_v52  ;;  %v20997_v51 = vld [vmem:[%s24208_s8 + $0xfa4] ss:$40 sps:$4 sm:$0xff]   ;;  %v20992_v52 = vld [vmem:[%s24208_s8 + $0xaa0] ss:$40 sps:$4 sm:$0xff]   ;;  %v21010_v4 = vld [vmem:[%s24208_s8 + $0xeb0] ss:$40 sps:$4 sm:$0xff]  }
 0x1bd   : > { %4904 = vmatpush1.bf16.msra.mxu1 %v20913_v53  ;;  %4864 = vmatprep.subr.bf16.mxu0 %v20914_v54  ;;  %v20995_v53 = vld [vmem:[%s24208_s8 + $0xfa0] ss:$40 sps:$4 sm:$0xff]   ;;  %v21000_v54 = vld [vmem:[%s24208_s8 + $0xa54] ss:$40 sps:$4 sm:$0xff]   ;;  %v21021_v8 = vld [vmem:[%s24208_s8 + $0x1364] ss:$40 sps:$4 sm:$0xff]  }
 0x1be   : > { %4905 = vmatprep.subr.bf16.mxu1 %v20916_v55  ;;  %v21003_v55 = vld [vmem:[%s24208_s8 + $0xf54] ss:$40 sps:$4 sm:$0xff]   ;;  %v21043_v27 = vld [vmem:[%s24208_s8 + $0x1220] ss:$40 sps:$4 sm:$0xff]  }
 0x1c0   : > { %4865 = vmatpush2.bf16.msra.mxu0 %v20918_v56  ;;  %v997_v56 = vld [vmem:[%s24201_s4 + $0x28] sm:$0xff] }
 0x1c1   : > { %4906 = vmatpush2.bf16.msra.mxu1 %v20919_v57  ;;  %4866 = vmatprep.subr.bf16.mxu0 %v20920_v58  ;;  %v20998_v57 = vld [vmem:[%s24208_s8 + $0xa50] ss:$40 sps:$4 sm:$0xff]  }
 0x1c2   : > { %4907 = vmatprep.subr.bf16.mxu1 %v20922_v59  ;;  %v21001_v58 = vld [vmem:[%s24208_s8 + $0xf50] ss:$40 sps:$4 sm:$0xff]   ;;  %v24370_v59 = vpack.c.bf16 %v997_v56, %v997_v56 }
 0x1c3   : > { %v21076_v56 = vld [vmem:[%s24208_s8 + $0x148] ss:$40 sps:$4 sm:$0xff]  }
 0x1c4   : > { %4867 = vmatpush2.bf16.msra.mxu0 %v20924_v60  ;;  %v999_v60 = vld [vmem:[%s24201_s4 + $0x38] sm:$0xff] }
 0x1c5   : > { %4908 = vmatpush2.bf16.msra.mxu1 %v20925_v61  ;;  %4868 = vmatprep.subr.bf16.mxu0 %v20926_v62  ;;  %v21006_v61 = vld [vmem:[%s24208_s8 + $0xa04] ss:$40 sps:$4 sm:$0xff]   ;;  %v24374_v62 = vpack.c.bf16 %v999_v60, %v999_v60 }
 0x1c6   : > { %4909 = vmatprep.subr.bf16.mxu1 %v20928_v63  ;;  %v21009_v63 = vld [vmem:[%s24208_s8 + $0xf04] ss:$40 sps:$4 sm:$0xff]  }
 0x1c7   : > { %v21087_v60 = vld [vmem:[%s24208_s8 + $0x5fc] ss:$40 sps:$4 sm:$0xff]  }
 0x1c8   : > { %4869 = vmatpush2.bf16.msra.mxu0 %v20930_v0  ;;  %v21004_v0 = vld [vmem:[%s24208_s8 + $0xa00] ss:$40 sps:$4 sm:$0xff]  }
 0x1c9   : > { %4910 = vmatpush2.bf16.msra.mxu1 %v20931_v1  ;;  %4870 = vmatprep.subr.bf16.mxu0 %v20932_v2  ;;  %v21007_v1 = vld [vmem:[%s24208_s8 + $0xf00] ss:$40 sps:$4 sm:$0xff]   ;;  %v21012_v2 = vld [vmem:[%s24208_s8 + $0xeb4] ss:$40 sps:$4 sm:$0xff]  }
 0x1ca   : > { %4911 = vmatprep.subr.bf16.mxu1 %v20934_v3  ;;  %v21015_v3 = vld [vmem:[%s24208_s8 + $0x13b4] ss:$40 sps:$4 sm:$0xff]  }
 0x1cc   : > { %4871 = vmatpush2.bf16.msra.mxu0 %v20936_v5  ;;  %v21013_v5 = vld [vmem:[%s24208_s8 + $0x13b0] ss:$40 sps:$4 sm:$0xff]  }
 0x1cd   : > { %4912 = vmatpush2.bf16.msra.mxu1 %v20937_v6  ;;  %4872 = vmatprep.subr.bf16.mxu0 %v20938_v9  ;;  %v21018_v6 = vld [vmem:[%s24208_s8 + $0xe64] ss:$40 sps:$4 sm:$0xff]   ;;  %v21016_v9 = vld [vmem:[%s24208_s8 + $0xe60] ss:$40 sps:$4 sm:$0xff]  }
 0x1ce   : > { %4913 = vmatprep.subr.bf16.mxu1 %v20940_v11  ;;  %v21019_v11 = vld [vmem:[%s24208_s8 + $0x1360] ss:$40 sps:$4 sm:$0xff]  }
 0x1d0   : > { %4873 = vmatpush2.bf16.msra.mxu0 %v20942_v12  ;;  %v21024_v12 = vld [vmem:[%s24208_s8 + $0xe14] ss:$40 sps:$4 sm:$0xff]  }
 0x1d1   : > { %4914 = vmatpush2.bf16.msra.mxu1 %v20943_v13  ;;  %4874 = vmatprep.subr.bf16.mxu0 %v20944_v14  ;;  %v21027_v13 = vld [vmem:[%s24208_s8 + $0x1314] ss:$40 sps:$4 sm:$0xff]   ;;  %v21022_v14 = vld [vmem:[%s24208_s8 + $0xe10] ss:$40 sps:$4 sm:$0xff]  }
 0x1d2   : > { %4915 = vmatprep.subr.bf16.mxu1 %v20946_v15  ;;  %v21025_v15 = vld [vmem:[%s24208_s8 + $0x1310] ss:$40 sps:$4 sm:$0xff]  }
 0x1d4   : > { %4875 = vmatpush2.bf16.msra.mxu0 %v20948_v16  ;;  %v21030_v16 = vld [vmem:[%s24208_s8 + $0xdc4] ss:$40 sps:$4 sm:$0xff]  }
 0x1d5   : > { %4916 = vmatpush2.bf16.msra.mxu1 %v20949_v17  ;;  %4876 = vmatprep.subr.bf16.mxu0 %v20950_v18  ;;  %v21033_v17 = vld [vmem:[%s24208_s8 + $0x12c4] ss:$40 sps:$4 sm:$0xff]   ;;  %v21028_v18 = vld [vmem:[%s24208_s8 + $0xdc0] ss:$40 sps:$4 sm:$0xff]  }
 0x1d6   : > { %4917 = vmatprep.subr.bf16.mxu1 %v20952_v19  ;;  %v21031_v19 = vld [vmem:[%s24208_s8 + $0x12c0] ss:$40 sps:$4 sm:$0xff]  }
 0x1d8   : > { %4877 = vmatpush2.bf16.msra.mxu0 %v20954_v20  ;;  %v21036_v20 = vld [vmem:[%s24208_s8 + $0xd74] ss:$40 sps:$4 sm:$0xff]  }
 0x1d9   : > { %4918 = vmatpush2.bf16.msra.mxu1 %v20955_v21  ;;  %4878 = vmatprep.subr.bf16.mxu0 %v20956_v22  ;;  %v21039_v21 = vld [vmem:[%s24208_s8 + $0x1274] ss:$40 sps:$4 sm:$0xff]   ;;  %v21034_v22 = vld [vmem:[%s24208_s8 + $0xd70] ss:$40 sps:$4 sm:$0xff]  }
 0x1da   : > { %4919 = vmatprep.subr.bf16.mxu1 %v20958_v23  ;;  %v21037_v23 = vld [vmem:[%s24208_s8 + $0x1270] ss:$40 sps:$4 sm:$0xff]  }
 0x1dc   : > { %4879 = vmatpush2.bf16.msra.mxu0 %v20960_v24  ;;  %v21042_v24 = vld [vmem:[%s24208_s8 + $0xd24] ss:$40 sps:$4 sm:$0xff]  }
 0x1dd   : > { %4920 = vmatpush2.bf16.msra.mxu1 %v20961_v25  ;;  %4930 = vmatprep.subr.bf16.mxu0 %v20964_v28  ;;  %v21045_v25 = vld [vmem:[%s24208_s8 + $0x1224] ss:$40 sps:$4 sm:$0xff]   ;;  %v21048_v28 = vld [vmem:[%s24208_s8 + $0xcd4] ss:$40 sps:$4 sm:$0xff]  }
 0x1de   : > { %4971 = vmatprep.subr.bf16.mxu1 %v20967_v29  ;;  %v21051_v29 = vld [vmem:[%s24208_s8 + $0x11d4] ss:$40 sps:$4 sm:$0xff]  }
 0x1df   : > { %4881 = vmatmul.mubr.bf16.vlgmr.msra.gmra.mxu0 %v24337_v30 }
 0x1e0   : > { %4922 = vmatmul.mubr.bf16.vlgmr.msra.gmra.mxu1 %v24339_v31  ;;  %4931 = vmatpush1.bf16.msra.mxu0 %v20962_v32  ;;  %v21046_v32 = vld [vmem:[%s24208_s8 + $0xcd0] ss:$40 sps:$4 sm:$0xff]  }
 0x1e1   : > { %4972 = vmatpush1.bf16.msra.mxu1 %v20965_v33  ;;  %4932 = vmatprep.subr.bf16.mxu0 %v20970_v34  ;;  %v21049_v33 = vld [vmem:[%s24208_s8 + $0x11d0] ss:$40 sps:$4 sm:$0xff]   ;;  %v21054_v34 = vld [vmem:[%s24208_s8 + $0xc84] ss:$40 sps:$4 sm:$0xff]  }
 0x1e2   : > { %4973 = vmatprep.subr.bf16.mxu1 %v20973_v35  ;;  %4962 = vmatprep.mubr.bf16.mxu0 %v24370_v59  ;;  %v21057_v35 = vld [vmem:[%s24208_s8 + $0x1184] ss:$40 sps:$4 sm:$0xff]  }
 0x1e3   : > { %5003 = vmatprep.mubr.bf16.mxu1 %v24374_v62 }
 0x1e4   : > { %4933 = vmatpush1.bf16.msra.mxu0 %v20968_v36  ;;  %v21052_v36 = vld [vmem:[%s24208_s8 + $0xc80] ss:$40 sps:$4 sm:$0xff]  }
 0x1e5   : > { %4974 = vmatpush1.bf16.msra.mxu1 %v20971_v37  ;;  %4934 = vmatprep.subr.bf16.mxu0 %v20976_v38  ;;  %v21055_v37 = vld [vmem:[%s24208_s8 + $0x1180] ss:$40 sps:$4 sm:$0xff]  }
 0x1e6   : > { %4975 = vmatprep.subr.bf16.mxu1 %v20979_v39  ;;  %v996_v38 = vld [vmem:[%s24201_s4 + $0x20] sm:$0xff]  ;;  %v998_v39 = vld [vmem:[%s24201_s4 + $0x30] sm:$0xff] }
 0x1e8   : > { %4935 = vmatpush1.bf16.msra.mxu0 %v20974_v40  ;;  %v21060_v40 = vld [vmem:[%s24208_s8 + $0x23c] ss:$40 sps:$4 sm:$0xff]  }
 0x1e9   : > { %4976 = vmatpush1.bf16.msra.mxu1 %v20977_v41  ;;  %4936 = vmatprep.subr.bf16.mxu0 %v20982_v42  ;;  %v21063_v41 = vld [vmem:[%s24208_s8 + $0x73c] ss:$40 sps:$4 sm:$0xff]   ;;  %v24417_v42 = vpack.c.bf16 %v996_v38, %v996_v38  ;;  %v21136_v38 = vld [vmem:[%s24208_s8 + $0x328] ss:$40 sps:$4 sm:$0xff]  }
 0x1ea   : > { %4977 = vmatprep.subr.bf16.mxu1 %v20985_v43  ;;  %v24419_v43 = vpack.c.bf16 %v998_v39, %v998_v39  ;;  %v21139_v39 = vld [vmem:[%s24208_s8 + $0x828] ss:$40 sps:$4 sm:$0xff]  }
 0x1ec   : > { %4937 = vmatpush1.bf16.msra.mxu0 %v20980_v44  ;;  %v21058_v44 = vld [vmem:[%s24208_s8 + $0x238] ss:$40 sps:$4 sm:$0xff]  }
 0x1ed   : > { %4978 = vmatpush1.bf16.msra.mxu1 %v20983_v45  ;;  %4938 = vmatprep.subr.bf16.mxu0 %v20988_v46  ;;  %v21061_v45 = vld [vmem:[%s24208_s8 + $0x738] ss:$40 sps:$4 sm:$0xff]   ;;  %v21066_v46 = vld [vmem:[%s24208_s8 + $0x1ec] ss:$40 sps:$4 sm:$0xff]  }
 0x1ee   : > { %4979 = vmatprep.subr.bf16.mxu1 %v20991_v47  ;;  %v21069_v47 = vld [vmem:[%s24208_s8 + $0x6ec] ss:$40 sps:$4 sm:$0xff]  }
 0x1f0   : > { %4939 = vmatpush1.bf16.msra.mxu0 %v20986_v48  ;;  %v21064_v48 = vld [vmem:[%s24208_s8 + $0x1e8] ss:$40 sps:$4 sm:$0xff]  }
 0x1f1   : > { %4980 = vmatpush1.bf16.msra.mxu1 %v20989_v49  ;;  %4940 = vmatprep.subr.bf16.mxu0 %v20994_v50  ;;  %v21067_v49 = vld [vmem:[%s24208_s8 + $0x6e8] ss:$40 sps:$4 sm:$0xff]   ;;  %v21072_v50 = vld [vmem:[%s24208_s8 + $0x19c] ss:$40 sps:$4 sm:$0xff]  }
 0x1f2   : > { %4981 = vmatprep.subr.bf16.mxu1 %v20997_v51  ;;  %v21075_v51 = vld [vmem:[%s24208_s8 + $0x69c] ss:$40 sps:$4 sm:$0xff]  }
 0x1f4   : > { %4941 = vmatpush1.bf16.msra.mxu0 %v20992_v52  ;;  %v21070_v52 = vld [vmem:[%s24208_s8 + $0x198] ss:$40 sps:$4 sm:$0xff]  }
 0x1f5   : > { %4982 = vmatpush1.bf16.msra.mxu1 %v20995_v53  ;;  %4942 = vmatprep.subr.bf16.mxu0 %v21000_v54  ;;  %v21073_v53 = vld [vmem:[%s24208_s8 + $0x698] ss:$40 sps:$4 sm:$0xff]   ;;  %v21078_v54 = vld [vmem:[%s24208_s8 + $0x14c] ss:$40 sps:$4 sm:$0xff]  }
 0x1f6   : > { %4983 = vmatprep.subr.bf16.mxu1 %v21003_v55  ;;  %v21081_v55 = vld [vmem:[%s24208_s8 + $0x64c] ss:$40 sps:$4 sm:$0xff]  }
 0x1f8   : > { %4943 = vmatpush1.bf16.msra.mxu0 %v20998_v57  ;;  %v21079_v57 = vld [vmem:[%s24208_s8 + $0x648] ss:$40 sps:$4 sm:$0xff]  }
 0x1f9   : > { %4984 = vmatpush1.bf16.msra.mxu1 %v21001_v58  ;;  %4944 = vmatprep.subr.bf16.mxu0 %v21006_v61  ;;  %v21084_v58 = vld [vmem:[%s24208_s8 + $0xfc] ss:$40 sps:$4 sm:$0xff]   ;;  %v21082_v61 = vld [vmem:[%s24208_s8 + $0xf8] ss:$40 sps:$4 sm:$0xff]  }
 0x1fa   : > { %4985 = vmatprep.subr.bf16.mxu1 %v21009_v63  ;;  %v21085_v63 = vld [vmem:[%s24208_s8 + $0x5f8] ss:$40 sps:$4 sm:$0xff]  }
 0x1fc   : > { %4945 = vmatpush1.bf16.msra.mxu0 %v21004_v0  ;;  %v21090_v0 = vld [vmem:[%s24208_s8 + $0xac] ss:$40 sps:$4 sm:$0xff]  }
 0x1fd   : > { %4986 = vmatpush1.bf16.msra.mxu1 %v21007_v1  ;;  %4946 = vmatprep.subr.bf16.mxu0 %v21012_v2  ;;  %v21093_v1 = vld [vmem:[%s24208_s8 + $0x5ac] ss:$40 sps:$4 sm:$0xff]   ;;  %v21088_v2 = vld [vmem:[%s24208_s8 + $0xa8] ss:$40 sps:$4 sm:$0xff]  }
 0x1fe   : > { %4987 = vmatprep.subr.bf16.mxu1 %v21015_v3  ;;  %v21091_v3 = vld [vmem:[%s24208_s8 + $0x5a8] ss:$40 sps:$4 sm:$0xff]  }
 0x200   : > { %4947 = vmatpush2.bf16.msra.mxu0 %v21010_v4  ;;  %v21096_v4 = vld [vmem:[%s24208_s8 + $0x5c] ss:$40 sps:$4 sm:$0xff]  }
 0x201   : > { %4988 = vmatpush2.bf16.msra.mxu1 %v21013_v5  ;;  %4948 = vmatprep.subr.bf16.mxu0 %v21018_v6  ;;  %v21099_v5 = vld [vmem:[%s24208_s8 + $0x55c] ss:$40 sps:$4 sm:$0xff]   ;;  %v21094_v6 = vld [vmem:[%s24208_s8 + $0x58] ss:$40 sps:$4 sm:$0xff]  }
 0x202   : > { %4989 = vmatprep.subr.bf16.mxu1 %v21021_v8  ;;  %v21097_v8 = vld [vmem:[%s24208_s8 + $0x558] ss:$40 sps:$4 sm:$0xff]  }
 0x204   : > { %4949 = vmatpush2.bf16.msra.mxu0 %v21016_v9  ;;  %v21102_v9 = vld [vmem:[%s24208_s8 + $0xc] ss:$40 sps:$4 sm:$0xff]  }
 0x205   : > { %4990 = vmatpush2.bf16.msra.mxu1 %v21019_v11  ;;  %4950 = vmatprep.subr.bf16.mxu0 %v21024_v12  ;;  %v21105_v11 = vld [vmem:[%s24208_s8 + $0x50c] ss:$40 sps:$4 sm:$0xff]   ;;  %v21100_v12 = vld [vmem:[%s24208_s8 + $0x8] ss:$40 sps:$4 sm:$0xff]  }
 0x206   : > { %4991 = vmatprep.subr.bf16.mxu1 %v21027_v13  ;;  %v21103_v13 = vld [vmem:[%s24208_s8 + $0x508] ss:$40 sps:$4 sm:$0xff]  }
 0x208   : > { %4951 = vmatpush2.bf16.msra.mxu0 %v21022_v14  ;;  %v21108_v14 = vld [vmem:[%s24208_s8 + $0x4bc] ss:$40 sps:$4 sm:$0xff]  }
 0x209   : > { %4992 = vmatpush2.bf16.msra.mxu1 %v21025_v15  ;;  %4952 = vmatprep.subr.bf16.mxu0 %v21030_v16  ;;  %v21111_v15 = vld [vmem:[%s24208_s8 + $0x9bc] ss:$40 sps:$4 sm:$0xff]   ;;  %v21106_v16 = vld [vmem:[%s24208_s8 + $0x4b8] ss:$40 sps:$4 sm:$0xff]  }
 0x20a   : > { %4993 = vmatprep.subr.bf16.mxu1 %v21033_v17  ;;  %v21109_v17 = vld [vmem:[%s24208_s8 + $0x9b8] ss:$40 sps:$4 sm:$0xff]  }
 0x20c   : > { %4953 = vmatpush2.bf16.msra.mxu0 %v21028_v18  ;;  %v21114_v18 = vld [vmem:[%s24208_s8 + $0x46c] ss:$40 sps:$4 sm:$0xff]  }
 0x20d   : > { %4994 = vmatpush2.bf16.msra.mxu1 %v21031_v19  ;;  %4954 = vmatprep.subr.bf16.mxu0 %v21036_v20  ;;  %v21117_v19 = vld [vmem:[%s24208_s8 + $0x96c] ss:$40 sps:$4 sm:$0xff]   ;;  %v21112_v20 = vld [vmem:[%s24208_s8 + $0x468] ss:$40 sps:$4 sm:$0xff]  }
 0x20e   : > { %4995 = vmatprep.subr.bf16.mxu1 %v21039_v21  ;;  %v21115_v21 = vld [vmem:[%s24208_s8 + $0x968] ss:$40 sps:$4 sm:$0xff]  }
 0x210   : > { %4955 = vmatpush2.bf16.msra.mxu0 %v21034_v22  ;;  %v21120_v22 = vld [vmem:[%s24208_s8 + $0x41c] ss:$40 sps:$4 sm:$0xff]  }
 0x211   : > { %4996 = vmatpush2.bf16.msra.mxu1 %v21037_v23  ;;  %4956 = vmatprep.subr.bf16.mxu0 %v21042_v24  ;;  %v21123_v23 = vld [vmem:[%s24208_s8 + $0x91c] ss:$40 sps:$4 sm:$0xff]   ;;  %v21118_v24 = vld [vmem:[%s24208_s8 + $0x418] ss:$40 sps:$4 sm:$0xff]  }
 0x212   : > { %4997 = vmatprep.subr.bf16.mxu1 %v21045_v25  ;;  %v21121_v25 = vld [vmem:[%s24208_s8 + $0x918] ss:$40 sps:$4 sm:$0xff]  }
 0x214   : > { %4957 = vmatpush2.bf16.msra.mxu0 %v21040_v26  ;;  %v21126_v26 = vld [vmem:[%s24208_s8 + $0x3cc] ss:$40 sps:$4 sm:$0xff]  }
 0x215   : > { %4998 = vmatpush2.bf16.msra.mxu1 %v21043_v27  ;;  %4958 = vmatprep.subr.bf16.mxu0 %v21048_v28  ;;  %v21129_v27 = vld [vmem:[%s24208_s8 + $0x8cc] ss:$40 sps:$4 sm:$0xff]   ;;  %v21124_v28 = vld [vmem:[%s24208_s8 + $0x3c8] ss:$40 sps:$4 sm:$0xff]  }
 0x216   : > { %4999 = vmatprep.subr.bf16.mxu1 %v21051_v29  ;;  %v21127_v29 = vld [vmem:[%s24208_s8 + $0x8c8] ss:$40 sps:$4 sm:$0xff]  }
 0x218   : > { %4959 = vmatpush2.bf16.msra.mxu0 %v21046_v32  ;;  %v21132_v32 = vld [vmem:[%s24208_s8 + $0x37c] ss:$40 sps:$4 sm:$0xff]  }
 0x219   : > { %5000 = vmatpush2.bf16.msra.mxu1 %v21049_v33  ;;  %4960 = vmatprep.subr.bf16.mxu0 %v21054_v34  ;;  %v21135_v33 = vld [vmem:[%s24208_s8 + $0x87c] ss:$40 sps:$4 sm:$0xff]   ;;  %v21130_v34 = vld [vmem:[%s24208_s8 + $0x378] ss:$40 sps:$4 sm:$0xff]  }
 0x21a   : > { %5001 = vmatprep.subr.bf16.mxu1 %v21057_v35  ;;  %v21133_v35 = vld [vmem:[%s24208_s8 + $0x878] ss:$40 sps:$4 sm:$0xff]  }
 0x21c   : > { %4961 = vmatpush2.bf16.msra.mxu0 %v21052_v36  ;;  %v21138_v36 = vld [vmem:[%s24208_s8 + $0x32c] ss:$40 sps:$4 sm:$0xff]  }
 0x21d   : > { %5002 = vmatpush2.bf16.msra.mxu1 %v21055_v37  ;;  %5012 = vmatprep.subr.bf16.mxu0 %v21060_v40  ;;  %v21141_v37 = vld [vmem:[%s24208_s8 + $0x82c] ss:$40 sps:$4 sm:$0xff]   ;;  %v21144_v40 = vld [vmem:[%s24208_s8 + $0x2dc] ss:$40 sps:$4 sm:$0xff]  }
 0x21e   : > { %5053 = vmatprep.subr.bf16.mxu1 %v21063_v41  ;;  %v21147_v41 = vld [vmem:[%s24208_s8 + $0x7dc] ss:$40 sps:$4 sm:$0xff]  }
 0x21f   : > { %4963 = vmatmul.mubr.bf16.vlgmr.msra.gmra.mxu0 %v24417_v42 }
 0x220   : > { %5004 = vmatmul.mubr.bf16.vlgmr.msra.gmra.mxu1 %v24419_v43  ;;  %5013 = vmatpush1.bf16.msra.mxu0 %v21058_v44  ;;  %v21142_v44 = vld [vmem:[%s24208_s8 + $0x2d8] ss:$40 sps:$4 sm:$0xff]  }
 0x221   : > { %5054 = vmatpush1.bf16.msra.mxu1 %v21061_v45  ;;  %5014 = vmatprep.subr.bf16.mxu0 %v21066_v46  ;;  %v21145_v45 = vld [vmem:[%s24208_s8 + $0x7d8] ss:$40 sps:$4 sm:$0xff]   ;;  %v21150_v46 = vld [vmem:[%s24208_s8 + $0x28c] ss:$40 sps:$4 sm:$0xff]  }
 0x222   : > { %5055 = vmatprep.subr.bf16.mxu1 %v21069_v47  ;;  %5044 = vmatprep.mubr.bf16.mxu0 %v24310_v7  ;;  %v21153_v47 = vld [vmem:[%s24208_s8 + $0x78c] ss:$40 sps:$4 sm:$0xff]  }
 0x223   : > { %5085 = vmatprep.mubr.bf16.mxu1 %v24314_v10 }
 0x224   : > { %5015 = vmatpush1.bf16.msra.mxu0 %v21064_v48  ;;  %v21148_v48 = vld [vmem:[%s24208_s8 + $0x288] ss:$40 sps:$4 sm:$0xff]  }
 0x225   : > { %5056 = vmatpush1.bf16.msra.mxu1 %v21067_v49  ;;  %5016 = vmatprep.subr.bf16.mxu0 %v21072_v50  ;;  %v21151_v49 = vld [vmem:[%s24208_s8 + $0x788] ss:$40 sps:$4 sm:$0xff]   ;;  %v21156_v50 = vld [vmem:[%s24208_s8 + $0xc3c] ss:$40 sps:$4 sm:$0xff]  }
 0x226   : > { %5057 = vmatprep.subr.bf16.mxu1 %v21075_v51  ;;  %v21159_v51 = vld [vmem:[%s24208_s8 + $0x113c] ss:$40 sps:$4 sm:$0xff]  }
 0x228   : > { %5017 = vmatpush1.bf16.msra.mxu0 %v21070_v52  ;;  %v21154_v52 = vld [vmem:[%s24208_s8 + $0xc38] ss:$40 sps:$4 sm:$0xff]  }
 0x229   : > { %5058 = vmatpush1.bf16.msra.mxu1 %v21073_v53  ;;  %5018 = vmatprep.subr.bf16.mxu0 %v21078_v54  ;;  %v21157_v53 = vld [vmem:[%s24208_s8 + $0x1138] ss:$40 sps:$4 sm:$0xff]   ;;  %v21162_v54 = vld [vmem:[%s24208_s8 + $0xbec] ss:$40 sps:$4 sm:$0xff]  }
 0x22a   : > { %5059 = vmatprep.subr.bf16.mxu1 %v21081_v55  ;;  %v21165_v55 = vld [vmem:[%s24208_s8 + $0x10ec] ss:$40 sps:$4 sm:$0xff]  }
 0x22c   : > { %5019 = vmatpush1.bf16.msra.mxu0 %v21076_v56  ;;  %v21160_v56 = vld [vmem:[%s24208_s8 + $0xbe8] ss:$40 sps:$4 sm:$0xff]  }
 0x22d   : > { %5060 = vmatpush1.bf16.msra.mxu1 %v21079_v57  ;;  %5020 = vmatprep.subr.bf16.mxu0 %v21084_v58  ;;  %v21163_v57 = vld [vmem:[%s24208_s8 + $0x10e8] ss:$40 sps:$4 sm:$0xff]   ;;  %v21168_v58 = vld [vmem:[%s24208_s8 + $0xb9c] ss:$40 sps:$4 sm:$0xff]  }
 0x22e   : > { %5061 = vmatprep.subr.bf16.mxu1 %v21087_v60  ;;  %v21171_v60 = vld [vmem:[%s24208_s8 + $0x109c] ss:$40 sps:$4 sm:$0xff]  }
 0x230   : > { %5021 = vmatpush1.bf16.msra.mxu0 %v21082_v61  ;;  %v21166_v61 = vld [vmem:[%s24208_s8 + $0xb98] ss:$40 sps:$4 sm:$0xff]  }
 0x231   : > { %5062 = vmatpush1.bf16.msra.mxu1 %v21085_v63  ;;  %5022 = vmatprep.subr.bf16.mxu0 %v21090_v0  ;;  %v21169_v63 = vld [vmem:[%s24208_s8 + $0x1098] ss:$40 sps:$4 sm:$0xff]   ;;  %v21174_v0 = vld [vmem:[%s24208_s8 + $0xb4c] ss:$40 sps:$4 sm:$0xff]  }
 0x232   : > { %5063 = vmatprep.subr.bf16.mxu1 %v21093_v1  ;;  %v21177_v1 = vld [vmem:[%s24208_s8 + $0x104c] ss:$40 sps:$4 sm:$0xff]  }
 0x234   : > { %5023 = vmatpush1.bf16.msra.mxu0 %v21088_v2  ;;  %v21172_v2 = vld [vmem:[%s24208_s8 + $0xb48] ss:$40 sps:$4 sm:$0xff]  }
 0x235   : > { %5064 = vmatpush1.bf16.msra.mxu1 %v21091_v3  ;;  %5024 = vmatprep.subr.bf16.mxu0 %v21096_v4  ;;  %v21175_v3 = vld [vmem:[%s24208_s8 + $0x1048] ss:$40 sps:$4 sm:$0xff]   ;;  %v21180_v4 = vld [vmem:[%s24208_s8 + $0xafc] ss:$40 sps:$4 sm:$0xff]  }
 0x236   : > { %5065 = vmatprep.subr.bf16.mxu1 %v21099_v5  ;;  %v21183_v5 = vld [vmem:[%s24208_s8 + $0xffc] ss:$40 sps:$4 sm:$0xff]  }
 0x238   : > { %5025 = vmatpush1.bf16.msra.mxu0 %v21094_v6  ;;  %v21178_v6 = vld [vmem:[%s24208_s8 + $0xaf8] ss:$40 sps:$4 sm:$0xff]  }
 0x239   : > { %5066 = vmatpush1.bf16.msra.mxu1 %v21097_v8  ;;  %5026 = vmatprep.subr.bf16.mxu0 %v21102_v9  ;;  %v21181_v8 = vld [vmem:[%s24208_s8 + $0xff8] ss:$40 sps:$4 sm:$0xff]   ;;  %v21186_v9 = vld [vmem:[%s24208_s8 + $0xaac] ss:$40 sps:$4 sm:$0xff]  }
 0x23a   : > { %5067 = vmatprep.subr.bf16.mxu1 %v21105_v11  ;;  %v21189_v11 = vld [vmem:[%s24208_s8 + $0xfac] ss:$40 sps:$4 sm:$0xff]  }
 0x23c   : > { %5027 = vmatpush1.bf16.msra.mxu0 %v21100_v12  ;;  %v21184_v12 = vld [vmem:[%s24208_s8 + $0xaa8] ss:$40 sps:$4 sm:$0xff]  }
 0x23d   : > { %5068 = vmatpush1.bf16.msra.mxu1 %v21103_v13  ;;  %5028 = vmatprep.subr.bf16.mxu0 %v21108_v14  ;;  %v21187_v13 = vld [vmem:[%s24208_s8 + $0xfa8] ss:$40 sps:$4 sm:$0xff]   ;;  %v21192_v14 = vld [vmem:[%s24208_s8 + $0xa5c] ss:$40 sps:$4 sm:$0xff]  }
 0x23e   : > { %5069 = vmatprep.subr.bf16.mxu1 %v21111_v15  ;;  %v21195_v15 = vld [vmem:[%s24208_s8 + $0xf5c] ss:$40 sps:$4 sm:$0xff]  }
 0x240   : > { %5029 = vmatpush2.bf16.msra.mxu0 %v21106_v16  ;;  %v21190_v16 = vld [vmem:[%s24208_s8 + $0xa58] ss:$40 sps:$4 sm:$0xff]  }
 0x241   : > { %5070 = vmatpush2.bf16.msra.mxu1 %v21109_v17  ;;  %5030 = vmatprep.subr.bf16.mxu0 %v21114_v18  ;;  %v21193_v17 = vld [vmem:[%s24208_s8 + $0xf58] ss:$40 sps:$4 sm:$0xff]   ;;  %v21198_v18 = vld [vmem:[%s24208_s8 + $0xa0c] ss:$40 sps:$4 sm:$0xff]  }
 0x242   : > { %5071 = vmatprep.subr.bf16.mxu1 %v21117_v19  ;;  %v21201_v19 = vld [vmem:[%s24208_s8 + $0xf0c] ss:$40 sps:$4 sm:$0xff]  }
 0x244   : > { %5031 = vmatpush2.bf16.msra.mxu0 %v21112_v20  ;;  %v21196_v20 = vld [vmem:[%s24208_s8 + $0xa08] ss:$40 sps:$4 sm:$0xff]  }
 0x245   : > { %5072 = vmatpush2.bf16.msra.mxu1 %v21115_v21  ;;  %5032 = vmatprep.subr.bf16.mxu0 %v21120_v22  ;;  %v21199_v21 = vld [vmem:[%s24208_s8 + $0xf08] ss:$40 sps:$4 sm:$0xff]   ;;  %v21204_v22 = vld [vmem:[%s24208_s8 + $0xebc] ss:$40 sps:$4 sm:$0xff]  }
 0x246   : > { %5073 = vmatprep.subr.bf16.mxu1 %v21123_v23  ;;  %v21207_v23 = vld [vmem:[%s24208_s8 + $0x13bc] ss:$40 sps:$4 sm:$0xff]  }
 0x248   : > { %5033 = vmatpush2.bf16.msra.mxu0 %v21118_v24  ;;  %v21202_v24 = vld [vmem:[%s24208_s8 + $0xeb8] ss:$40 sps:$4 sm:$0xff]  }
 0x249   : > { %5074 = vmatpush2.bf16.msra.mxu1 %v21121_v25  ;;  %5034 = vmatprep.subr.bf16.mxu0 %v21126_v26  ;;  %v21205_v25 = vld [vmem:[%s24208_s8 + $0x13b8] ss:$40 sps:$4 sm:$0xff]   ;;  %v21210_v26 = vld [vmem:[%s24208_s8 + $0xe6c] ss:$40 sps:$4 sm:$0xff]  }
 0x24a   : > { %5075 = vmatprep.subr.bf16.mxu1 %v21129_v27  ;;  %v21213_v27 = vld [vmem:[%s24208_s8 + $0x136c] ss:$40 sps:$4 sm:$0xff]  }
 0x24c   : > { %5035 = vmatpush2.bf16.msra.mxu0 %v21124_v28  ;;  %v21208_v28 = vld [vmem:[%s24208_s8 + $0xe68] ss:$40 sps:$4 sm:$0xff]  }
 0x24d   : > { %5076 = vmatpush2.bf16.msra.mxu1 %v21127_v29  ;;  %5036 = vmatprep.subr.bf16.mxu0 %v21132_v32  ;;  %v21211_v29 = vld [vmem:[%s24208_s8 + $0x1368] ss:$40 sps:$4 sm:$0xff]   ;;  %v21216_v32 = vld [vmem:[%s24208_s8 + $0xe1c] ss:$40 sps:$4 sm:$0xff]  }
 0x24e   : > { %5077 = vmatprep.subr.bf16.mxu1 %v21135_v33  ;;  %v21219_v33 = vld [vmem:[%s24208_s8 + $0x131c] ss:$40 sps:$4 sm:$0xff]  }
 0x250   : > { %5037 = vmatpush2.bf16.msra.mxu0 %v21130_v34  ;;  %v21214_v34 = vld [vmem:[%s24208_s8 + $0xe18] ss:$40 sps:$4 sm:$0xff]  }
 0x251   : > { %5078 = vmatpush2.bf16.msra.mxu1 %v21133_v35  ;;  %5038 = vmatprep.subr.bf16.mxu0 %v21138_v36  ;;  %v21217_v35 = vld [vmem:[%s24208_s8 + $0x1318] ss:$40 sps:$4 sm:$0xff]   ;;  %v21222_v36 = vld [vmem:[%s24208_s8 + $0xdcc] ss:$40 sps:$4 sm:$0xff]  }
 0x252   : > { %5079 = vmatprep.subr.bf16.mxu1 %v21141_v37  ;;  %v21225_v37 = vld [vmem:[%s24208_s8 + $0x12cc] ss:$40 sps:$4 sm:$0xff]  }
 0x254   : > { %5039 = vmatpush2.bf16.msra.mxu0 %v21136_v38  ;;  %v21220_v38 = vld [vmem:[%s24208_s8 + $0xdc8] ss:$40 sps:$4 sm:$0xff]  }
 0x255   : > { %5080 = vmatpush2.bf16.msra.mxu1 %v21139_v39  ;;  %5040 = vmatprep.subr.bf16.mxu0 %v21144_v40  ;;  %v21223_v39 = vld [vmem:[%s24208_s8 + $0x12c8] ss:$40 sps:$4 sm:$0xff]   ;;  %v21228_v40 = vld [vmem:[%s24208_s8 + $0xd7c] ss:$40 sps:$4 sm:$0xff]  }
 0x256   : > { %5081 = vmatprep.subr.bf16.mxu1 %v21147_v41  ;;  %v21231_v41 = vld [vmem:[%s24208_s8 + $0x127c] ss:$40 sps:$4 sm:$0xff]  }
 0x258   : > { %5041 = vmatpush2.bf16.msra.mxu0 %v21142_v44  ;;  %v21226_v44 = vld [vmem:[%s24208_s8 + $0xd78] ss:$40 sps:$4 sm:$0xff]  }
 0x259   : > { %5082 = vmatpush2.bf16.msra.mxu1 %v21145_v45  ;;  %5042 = vmatprep.subr.bf16.mxu0 %v21150_v46  ;;  %v21229_v45 = vld [vmem:[%s24208_s8 + $0x1278] ss:$40 sps:$4 sm:$0xff]   ;;  %v21234_v46 = vld [vmem:[%s24208_s8 + $0xd2c] ss:$40 sps:$4 sm:$0xff]  }
 0x25a   : > { %5083 = vmatprep.subr.bf16.mxu1 %v21153_v47  ;;  %v21237_v47 = vld [vmem:[%s24208_s8 + $0x122c] ss:$40 sps:$4 sm:$0xff]  }
 0x25c   : > { %5043 = vmatpush2.bf16.msra.mxu0 %v21148_v48  ;;  %v21232_v48 = vld [vmem:[%s24208_s8 + $0xd28] ss:$40 sps:$4 sm:$0xff]  }
 0x25d   : > { %5084 = vmatpush2.bf16.msra.mxu1 %v21151_v49  ;;  %5094 = vmatprep.subr.bf16.mxu0 %v21156_v50  ;;  %v21235_v49 = vld [vmem:[%s24208_s8 + $0x1228] ss:$40 sps:$4 sm:$0xff]   ;;  %v21240_v50 = vld [vmem:[%s24208_s8 + $0xcdc] ss:$40 sps:$4 sm:$0xff]  }
 0x25e   : > { %5135 = vmatprep.subr.bf16.mxu1 %v21159_v51  ;;  %v21243_v51 = vld [vmem:[%s24208_s8 + $0x11dc] ss:$40 sps:$4 sm:$0xff]  }
 0x25f   : > { %5045 = vmatmul.mubr.bf16.vlgmr.msra.gmra.mxu0 %v24337_v30 }
 0x260   : > { %5086 = vmatmul.mubr.bf16.vlgmr.msra.gmra.mxu1 %v24339_v31  ;;  %5095 = vmatpush1.bf16.msra.mxu0 %v21154_v52  ;;  %v21238_v52 = vld [vmem:[%s24208_s8 + $0xcd8] ss:$40 sps:$4 sm:$0xff]  }
 0x261   : > { %5136 = vmatpush1.bf16.msra.mxu1 %v21157_v53  ;;  %5096 = vmatprep.subr.bf16.mxu0 %v21162_v54  ;;  %v21241_v53 = vld [vmem:[%s24208_s8 + $0x11d8] ss:$40 sps:$4 sm:$0xff]   ;;  %v21246_v54 = vld [vmem:[%s24208_s8 + $0xc8c] ss:$40 sps:$4 sm:$0xff]  }
 0x262   : > { %5137 = vmatprep.subr.bf16.mxu1 %v21165_v55  ;;  %5126 = vmatprep.mubr.bf16.mxu0 %v24370_v59  ;;  %v21249_v55 = vld [vmem:[%s24208_s8 + $0x118c] ss:$40 sps:$4 sm:$0xff]  }
 0x263   : > { %5167 = vmatprep.mubr.bf16.mxu1 %v24374_v62 }
 0x264   : > { %5097 = vmatpush1.bf16.msra.mxu0 %v21160_v56  ;;  %v21244_v56 = vld [vmem:[%s24208_s8 + $0xc88] ss:$40 sps:$4 sm:$0xff]  }
 0x265   : > { %5138 = vmatpush1.bf16.msra.mxu1 %v21163_v57  ;;  %5098 = vmatprep.subr.bf16.mxu0 %v21168_v58  ;;  %v21247_v57 = vld [vmem:[%s24208_s8 + $0x1188] ss:$40 sps:$4 sm:$0xff]   ;;  %v21252_v58 = vld [vmem:[%s24208_s8 + $0x244] ss:$40 sps:$4 sm:$0xff]  }
 0x266   : > { %5139 = vmatprep.subr.bf16.mxu1 %v21171_v60  ;;  %v21255_v60 = vld [vmem:[%s24208_s8 + $0x744] ss:$40 sps:$4 sm:$0xff]  }
 0x268   : > { %5099 = vmatpush1.bf16.msra.mxu0 %v21166_v61  ;;  %v21250_v61 = vld [vmem:[%s24208_s8 + $0x240] ss:$40 sps:$4 sm:$0xff]  }
 0x269   : > { %5140 = vmatpush1.bf16.msra.mxu1 %v21169_v63  ;;  %5100 = vmatprep.subr.bf16.mxu0 %v21174_v0  ;;  %v21253_v63 = vld [vmem:[%s24208_s8 + $0x740] ss:$40 sps:$4 sm:$0xff]   ;;  %v21258_v0 = vld [vmem:[%s24208_s8 + $0x1f4] ss:$40 sps:$4 sm:$0xff]  }
 0x26a   : > { %5141 = vmatprep.subr.bf16.mxu1 %v21177_v1  ;;  %v21261_v1 = vld [vmem:[%s24208_s8 + $0x6f4] ss:$40 sps:$4 sm:$0xff]  }
 0x26c   : > { %5101 = vmatpush1.bf16.msra.mxu0 %v21172_v2 }
 0x26d   : > { %5142 = vmatpush1.bf16.msra.mxu1 %v21175_v3  ;;  %5102 = vmatprep.subr.bf16.mxu0 %v21180_v4  ;;  %v21256_v4 = vld [vmem:[%s24208_s8 + $0x1f0] ss:$40 sps:$4 sm:$0xff]  }
 0x26e   : > { %5143 = vmatprep.subr.bf16.mxu1 %v21183_v5  ;;  %v21259_v5 = vld [vmem:[%s24208_s8 + $0x6f0] ss:$40 sps:$4 sm:$0xff]  }
 0x270   : > { %5103 = vmatpush1.bf16.msra.mxu0 %v21178_v6 }
 0x271   : > { %5144 = vmatpush1.bf16.msra.mxu1 %v21181_v8  ;;  %5104 = vmatprep.subr.bf16.mxu0 %v21186_v9  ;;  %v21264_v9 = vld [vmem:[%s24208_s8 + $0x1a4] ss:$40 sps:$4 sm:$0xff]  }
 0x272   : > { %5145 = vmatprep.subr.bf16.mxu1 %v21189_v11  ;;  %v21267_v11 = vld [vmem:[%s24208_s8 + $0x6a4] ss:$40 sps:$4 sm:$0xff]  }
 0x274   : > { %5105 = vmatpush1.bf16.msra.mxu0 %v21184_v12 }
 0x275   : > { %5146 = vmatpush1.bf16.msra.mxu1 %v21187_v13  ;;  %5106 = vmatprep.subr.bf16.mxu0 %v21192_v14  ;;  %v21262_v14 = vld [vmem:[%s24208_s8 + $0x1a0] ss:$40 sps:$4 sm:$0xff]  }
 0x276   : > { %5147 = vmatprep.subr.bf16.mxu1 %v21195_v15  ;;  %v21265_v15 = vld [vmem:[%s24208_s8 + $0x6a0] ss:$40 sps:$4 sm:$0xff]  }
 0x278   : > { %5107 = vmatpush1.bf16.msra.mxu0 %v21190_v16 }
 0x279   : > { %5148 = vmatpush1.bf16.msra.mxu1 %v21193_v17  ;;  %5108 = vmatprep.subr.bf16.mxu0 %v21198_v18  ;;  %v21270_v18 = vld [vmem:[%s24208_s8 + $0x154] ss:$40 sps:$4 sm:$0xff]  }
 0x27a   : > { %5149 = vmatprep.subr.bf16.mxu1 %v21201_v19  ;;  %v21273_v19 = vld [vmem:[%s24208_s8 + $0x654] ss:$40 sps:$4 sm:$0xff]  }
 0x27c   : > { %5109 = vmatpush1.bf16.msra.mxu0 %v21196_v20  ;;  %v21268_v20 = vld [vmem:[%s24208_s8 + $0x150] ss:$40 sps:$4 sm:$0xff]  }
 0x27d   : > { %5150 = vmatpush1.bf16.msra.mxu1 %v21199_v21  ;;  %5110 = vmatprep.subr.bf16.mxu0 %v21204_v22  ;;  %v21271_v21 = vld [vmem:[%s24208_s8 + $0x650] ss:$40 sps:$4 sm:$0xff]   ;;  %v21276_v22 = vld [vmem:[%s24208_s8 + $0x104] ss:$40 sps:$4 sm:$0xff]  }
 0x27e   : > { %5151 = vmatprep.subr.bf16.mxu1 %v21207_v23  ;;  %v21279_v23 = vld [vmem:[%s24208_s8 + $0x604] ss:$40 sps:$4 sm:$0xff]  }
 0x280   : > { %5111 = vmatpush2.bf16.msra.mxu0 %v21202_v24  ;;  %v21274_v24 = vld [vmem:[%s24208_s8 + $0x100] ss:$40 sps:$4 sm:$0xff]  }
 0x281   : > { %5152 = vmatpush2.bf16.msra.mxu1 %v21205_v25  ;;  %5112 = vmatprep.subr.bf16.mxu0 %v21210_v26  ;;  %v21277_v25 = vld [vmem:[%s24208_s8 + $0x600] ss:$40 sps:$4 sm:$0xff]   ;;  %v21282_v26 = vld [vmem:[%s24208_s8 + $0xb4] ss:$40 sps:$4 sm:$0xff]  }
 0x282   : > { %5153 = vmatprep.subr.bf16.mxu1 %v21213_v27  ;;  %v21285_v27 = vld [vmem:[%s24208_s8 + $0x5b4] ss:$40 sps:$4 sm:$0xff]  }
 0x284   : > { %5113 = vmatpush2.bf16.msra.mxu0 %v21208_v28  ;;  %v21280_v28 = vld [vmem:[%s24208_s8 + $0xb0] ss:$40 sps:$4 sm:$0xff]  }
 0x285   : > { %5154 = vmatpush2.bf16.msra.mxu1 %v21211_v29  ;;  %5114 = vmatprep.subr.bf16.mxu0 %v21216_v32  ;;  %v21283_v29 = vld [vmem:[%s24208_s8 + $0x5b0] ss:$40 sps:$4 sm:$0xff]   ;;  %v21288_v32 = vld [vmem:[%s24208_s8 + $0x64] ss:$40 sps:$4 sm:$0xff]  }
 0x286   : > { %5155 = vmatprep.subr.bf16.mxu1 %v21219_v33  ;;  %v21291_v33 = vld [vmem:[%s24208_s8 + $0x564] ss:$40 sps:$4 sm:$0xff]  }
 0x288   : > { %5115 = vmatpush2.bf16.msra.mxu0 %v21214_v34  ;;  %v21286_v34 = vld [vmem:[%s24208_s8 + $0x60] ss:$40 sps:$4 sm:$0xff]  }
 0x289   : > { %5156 = vmatpush2.bf16.msra.mxu1 %v21217_v35  ;;  %5116 = vmatprep.subr.bf16.mxu0 %v21222_v36  ;;  %v21289_v35 = vld [vmem:[%s24208_s8 + $0x560] ss:$40 sps:$4 sm:$0xff]   ;;  %v21294_v36 = vld [vmem:[%s24208_s8 + $0x14] ss:$40 sps:$4 sm:$0xff]  }
 0x28a   : > { %5157 = vmatprep.subr.bf16.mxu1 %v21225_v37  ;;  %v21297_v37 = vld [vmem:[%s24208_s8 + $0x514] ss:$40 sps:$4 sm:$0xff]  }
 0x28c   : > { %5117 = vmatpush2.bf16.msra.mxu0 %v21220_v38  ;;  %v21292_v38 = vld [vmem:[%s24208_s8 + $0x10] ss:$40 sps:$4 sm:$0xff]  }
 0x28d   : > { %5158 = vmatpush2.bf16.msra.mxu1 %v21223_v39  ;;  %5118 = vmatprep.subr.bf16.mxu0 %v21228_v40  ;;  %v21295_v39 = vld [vmem:[%s24208_s8 + $0x510] ss:$40 sps:$4 sm:$0xff]   ;;  %v21300_v40 = vld [vmem:[%s24208_s8 + $0x4c4] ss:$40 sps:$4 sm:$0xff]  }
 0x28e   : > { %5159 = vmatprep.subr.bf16.mxu1 %v21231_v41  ;;  %v21303_v41 = vld [vmem:[%s24208_s8 + $0x9c4] ss:$40 sps:$4 sm:$0xff]  }
 0x290   : > { %5119 = vmatpush2.bf16.msra.mxu0 %v21226_v44  ;;  %v21298_v44 = vld [vmem:[%s24208_s8 + $0x4c0] ss:$40 sps:$4 sm:$0xff]  }
 0x291   : > { %5160 = vmatpush2.bf16.msra.mxu1 %v21229_v45  ;;  %5120 = vmatprep.subr.bf16.mxu0 %v21234_v46  ;;  %v21301_v45 = vld [vmem:[%s24208_s8 + $0x9c0] ss:$40 sps:$4 sm:$0xff]   ;;  %v21306_v46 = vld [vmem:[%s24208_s8 + $0x474] ss:$40 sps:$4 sm:$0xff]  }
 0x292   : > { %5161 = vmatprep.subr.bf16.mxu1 %v21237_v47  ;;  %v21309_v47 = vld [vmem:[%s24208_s8 + $0x974] ss:$40 sps:$4 sm:$0xff]  }
 0x294   : > { %5121 = vmatpush2.bf16.msra.mxu0 %v21232_v48  ;;  %v21304_v48 = vld [vmem:[%s24208_s8 + $0x470] ss:$40 sps:$4 sm:$0xff]  }
 0x295   : > { %5162 = vmatpush2.bf16.msra.mxu1 %v21235_v49  ;;  %5122 = vmatprep.subr.bf16.mxu0 %v21240_v50  ;;  %v21307_v49 = vld [vmem:[%s24208_s8 + $0x970] ss:$40 sps:$4 sm:$0xff]   ;;  %v21312_v50 = vld [vmem:[%s24208_s8 + $0x424] ss:$40 sps:$4 sm:$0xff]  }
 0x296   : > { %5163 = vmatprep.subr.bf16.mxu1 %v21243_v51  ;;  %v21315_v51 = vld [vmem:[%s24208_s8 + $0x924] ss:$40 sps:$4 sm:$0xff]  }
 0x298   : > { %5123 = vmatpush2.bf16.msra.mxu0 %v21238_v52  ;;  %v21310_v52 = vld [vmem:[%s24208_s8 + $0x420] ss:$40 sps:$4 sm:$0xff]  }
 0x299   : > { %5164 = vmatpush2.bf16.msra.mxu1 %v21241_v53  ;;  %5124 = vmatprep.subr.bf16.mxu0 %v21246_v54  ;;  %v21313_v53 = vld [vmem:[%s24208_s8 + $0x920] ss:$40 sps:$4 sm:$0xff]   ;;  %v21318_v54 = vld [vmem:[%s24208_s8 + $0x3d4] ss:$40 sps:$4 sm:$0xff]  }
 0x29a   : > { %5165 = vmatprep.subr.bf16.mxu1 %v21249_v55  ;;  %v21321_v55 = vld [vmem:[%s24208_s8 + $0x8d4] ss:$40 sps:$4 sm:$0xff]  }
 0x29c   : > { %5125 = vmatpush2.bf16.msra.mxu0 %v21244_v56  ;;  %v21316_v56 = vld [vmem:[%s24208_s8 + $0x3d0] ss:$40 sps:$4 sm:$0xff]  }
 0x29d   : > { %5166 = vmatpush2.bf16.msra.mxu1 %v21247_v57  ;;  %5176 = vmatprep.subr.bf16.mxu0 %v21252_v58  ;;  %v21319_v57 = vld [vmem:[%s24208_s8 + $0x8d0] ss:$40 sps:$4 sm:$0xff]   ;;  %v21324_v58 = vld [vmem:[%s24208_s8 + $0x384] ss:$40 sps:$4 sm:$0xff]  }
 0x29e   : > { %5217 = vmatprep.subr.bf16.mxu1 %v21255_v60  ;;  %v21327_v60 = vld [vmem:[%s24208_s8 + $0x884] ss:$40 sps:$4 sm:$0xff]  }
 0x29f   : > { %v24561_v2 = vpop.f32.mrf.mxu0  ;;  %5127 = vmatmul.mubr.bf16.vlgmr.msra.gmra.mxu0 %v24417_v42 }
 0x2a0   : > { %v24563_v3 = vpop.f32.mrf.mxu1  ;;  %5168 = vmatmul.mubr.bf16.vlgmr.msra.gmra.mxu1 %v24419_v43  ;;  %5177 = vmatpush1.bf16.msra.mxu0 %v21250_v61  ;;  %v21322_v61 = vld [vmem:[%s24208_s8 + $0x380] ss:$40 sps:$4 sm:$0xff]  }
 0x2a1   : > { %5218 = vmatpush1.bf16.msra.mxu1 %v21253_v63  ;;  %v24569_v6 = vpop.f32.mrf.mxu0  ;;  %5178 = vmatprep.subr.bf16.mxu0 %v21258_v0  ;;  %v21325_v63 = vld [vmem:[%s24208_s8 + $0x880] ss:$40 sps:$4 sm:$0xff]   ;;  %v21330_v0 = vld [vmem:[%s24208_s8 + $0x334] ss:$40 sps:$4 sm:$0xff]  }
 0x2a2   : > { %v24571_v8 = vpop.f32.mrf.mxu1  ;;  %5219 = vmatprep.subr.bf16.mxu1 %v21261_v1  ;;  %5208 = vmatprep.mubr.bf16.mxu0 %v24310_v7  ;;  %v21333_v1 = vld [vmem:[%s24208_s8 + $0x834] ss:$40 sps:$4 sm:$0xff]  }
 0x2a3   : > { %5249 = vmatprep.mubr.bf16.mxu1 %v24314_v10  ;;  %v4886_v12 = vpop.f32.mrf.mxu0 }
 0x2a4   : > { %v4927_v13 = vpop.f32.mrf.mxu1  ;;  %5179 = vmatpush1.bf16.msra.mxu0 %v21256_v4  ;;  %v21328_v4 = vld [vmem:[%s24208_s8 + $0x330] ss:$40 sps:$4 sm:$0xff]   ;;  %v21334_v12 = vld [vmem:[%s24208_s8 + $0x2e0] ss:$40 sps:$4 sm:$0xff]  }
 0x2a5   : > { %5220 = vmatpush1.bf16.msra.mxu1 %v21259_v5  ;;  %v4887_v16 = vpop.f32.mrf.mxu0  ;;  %5180 = vmatprep.subr.bf16.mxu0 %v21264_v9  ;;  %v21331_v5 = vld [vmem:[%s24208_s8 + $0x830] ss:$40 sps:$4 sm:$0xff]   ;;  %v21336_v9 = vld [vmem:[%s24208_s8 + $0x2e4] ss:$40 sps:$4 sm:$0xff]   ;;  %v21337_v13 = vld [vmem:[%s24208_s8 + $0x7e0] ss:$40 sps:$4 sm:$0xff]  }
 0x2a6   : > { %v4928_v17 = vpop.f32.mrf.mxu1  ;;  %5221 = vmatprep.subr.bf16.mxu1 %v21267_v11  ;;  %v21339_v11 = vld [vmem:[%s24208_s8 + $0x7e4] ss:$40 sps:$4 sm:$0xff]   ;;  %v21340_v16 = vld [vmem:[%s24208_s8 + $0x290] ss:$40 sps:$4 sm:$0xff]  }
 0x2a7   : > { %v21343_v17 = vld [vmem:[%s24208_s8 + $0x790] ss:$40 sps:$4 sm:$0xff]  }
 0x2a8   : > { %5181 = vmatpush1.bf16.msra.mxu0 %v21262_v14  ;;  %v21342_v14 = vld [vmem:[%s24208_s8 + $0x294] ss:$40 sps:$4 sm:$0xff]  }
 0x2a9   : > { %5222 = vmatpush1.bf16.msra.mxu1 %v21265_v15  ;;  %5182 = vmatprep.subr.bf16.mxu0 %v21270_v18  ;;  %v21345_v15 = vld [vmem:[%s24208_s8 + $0x794] ss:$40 sps:$4 sm:$0xff]   ;;  %v21348_v18 = vld [vmem:[%s24208_s8 + $0xc44] ss:$40 sps:$4 sm:$0xff]  }
 0x2aa   : > { %5223 = vmatprep.subr.bf16.mxu1 %v21273_v19  ;;  %v21351_v19 = vld [vmem:[%s24208_s8 + $0x1144] ss:$40 sps:$4 sm:$0xff]  }
 0x2ac   : > { %5183 = vmatpush1.bf16.msra.mxu0 %v21268_v20  ;;  %v21346_v20 = vld [vmem:[%s24208_s8 + $0xc40] ss:$40 sps:$4 sm:$0xff]  }
 0x2ad   : > { %5224 = vmatpush1.bf16.msra.mxu1 %v21271_v21  ;;  %5184 = vmatprep.subr.bf16.mxu0 %v21276_v22  ;;  %v21349_v21 = vld [vmem:[%s24208_s8 + $0x1140] ss:$40 sps:$4 sm:$0xff]   ;;  %v21354_v22 = vld [vmem:[%s24208_s8 + $0xbf4] ss:$40 sps:$4 sm:$0xff]  }
 0x2ae   : > { %5225 = vmatprep.subr.bf16.mxu1 %v21279_v23  ;;  %v21357_v23 = vld [vmem:[%s24208_s8 + $0x10f4] ss:$40 sps:$4 sm:$0xff]  }
 0x2b0   : > { %5185 = vmatpush1.bf16.msra.mxu0 %v21274_v24  ;;  %v4924_v24 = vadd.f32 %v24563_v3, %v24561_v2  ;;  %v983_v3 = vld [vmem:[#allocation2] sm:$0xff] }
 0x2b1   : > { %5226 = vmatpush1.bf16.msra.mxu1 %v21277_v25  ;;  %5186 = vmatprep.subr.bf16.mxu0 %v21282_v26  ;;  %v21352_v25 = vld [vmem:[%s24208_s8 + $0xbf0] ss:$40 sps:$4 sm:$0xff]  }
 0x2b2   : > { %5227 = vmatprep.subr.bf16.mxu1 %v21285_v27  ;;  %v982_v27 = vld [vmem:[#allocation2 + $0x30] sm:$0xff] }
 0x2b4   : > { %5187 = vmatpush1.bf16.msra.mxu0 %v21280_v28 }
 0x2b5   : > { %5228 = vmatpush1.bf16.msra.mxu1 %v21283_v29  ;;  %5188 = vmatprep.subr.bf16.mxu0 %v21288_v32  ;;  %v4926_v29 = vadd.f32 %v24571_v8, %v24569_v6 }
 0x2b6   : > { %5229 = vmatprep.subr.bf16.mxu1 %v21291_v33  ;;  %v21355_v33 = vld [vmem:[%s24208_s8 + $0x10f0] ss:$40 sps:$4 sm:$0xff]  }
 0x2b8   : > { %5189 = vmatpush1.bf16.msra.mxu0 %v21286_v34 }
 0x2b9   : > { %5230 = vmatpush1.bf16.msra.mxu1 %v21289_v35  ;;  %5190 = vmatprep.subr.bf16.mxu0 %v21294_v36  ;;  %v21360_v35 = vld [vmem:[%s24208_s8 + $0xba4] ss:$40 sps:$4 sm:$0xff]  }
 0x2ba   : > { %5231 = vmatprep.subr.bf16.mxu1 %v21297_v37  ;;  %v21363_v36 = vld [vmem:[%s24208_s8 + $0x10a4] ss:$40 sps:$4 sm:$0xff]  }
 0x2bc   : > { %5191 = vmatpush1.bf16.msra.mxu0 %v21292_v38 }
 0x2bd   : > { %5232 = vmatpush1.bf16.msra.mxu1 %v21295_v39  ;;  %5192 = vmatprep.subr.bf16.mxu0 %v21300_v40  ;;  %v21358_v39 = vld [vmem:[%s24208_s8 + $0xba0] ss:$40 sps:$4 sm:$0xff]  }
 0x2be   : > { %5233 = vmatprep.subr.bf16.mxu1 %v21303_v41  ;;  %v21361_v40 = vld [vmem:[%s24208_s8 + $0x10a0] ss:$40 sps:$4 sm:$0xff]  }
 0x2c0   : > { %5193 = vmatpush2.bf16.msra.mxu0 %v21298_v44 }
 0x2c1   : > { %5234 = vmatpush2.bf16.msra.mxu1 %v21301_v45  ;;  %5194 = vmatprep.subr.bf16.mxu0 %v21306_v46 }
 0x2c2   : > { %5235 = vmatprep.subr.bf16.mxu1 %v21309_v47  ;;  %v21366_v47 = vld [vmem:[%s24208_s8 + $0xb54] ss:$40 sps:$4 sm:$0xff]  }
 0x2c4   : > { %5195 = vmatpush2.bf16.msra.mxu0 %v21304_v48  ;;  %v21369_v48 = vld [vmem:[%s24208_s8 + $0x1054] ss:$40 sps:$4 sm:$0xff]  }
 0x2c5   : > { %5236 = vmatpush2.bf16.msra.mxu1 %v21307_v49  ;;  %5196 = vmatprep.subr.bf16.mxu0 %v21312_v50  ;;  %v21364_v50 = vld [vmem:[%s24208_s8 + $0xb50] ss:$40 sps:$4 sm:$0xff]  }
 0x2c6   : > { %5237 = vmatprep.subr.bf16.mxu1 %v21315_v51  ;;  %v21367_v51 = vld [vmem:[%s24208_s8 + $0x1050] ss:$40 sps:$4 sm:$0xff]  }
 0x2c8   : > { %5197 = vmatpush2.bf16.msra.mxu0 %v21310_v52  ;;  %v21372_v52 = vld [vmem:[%s24208_s8 + $0xb04] ss:$40 sps:$4 sm:$0xff]  }
 0x2c9   : > { %5238 = vmatpush2.bf16.msra.mxu1 %v21313_v53  ;;  %5198 = vmatprep.subr.bf16.mxu0 %v21318_v54  ;;  %v21375_v53 = vld [vmem:[%s24208_s8 + $0x1004] ss:$40 sps:$4 sm:$0xff]   ;;  %v21370_v54 = vld [vmem:[%s24208_s8 + $0xb00] ss:$40 sps:$4 sm:$0xff]  }
 0x2ca   : > { %5239 = vmatprep.subr.bf16.mxu1 %v21321_v55  ;;  %v21373_v55 = vld [vmem:[%s24208_s8 + $0x1000] ss:$40 sps:$4 sm:$0xff]  }
 0x2cc   : > { %5199 = vmatpush2.bf16.msra.mxu0 %v21316_v56  ;;  %v21378_v56 = vld [vmem:[%s24208_s8 + $0xab4] ss:$40 sps:$4 sm:$0xff]  }
 0x2cd   : > { %5240 = vmatpush2.bf16.msra.mxu1 %v21319_v57  ;;  %5200 = vmatprep.subr.bf16.mxu0 %v21324_v58  ;;  %v21381_v57 = vld [vmem:[%s24208_s8 + $0xfb4] ss:$40 sps:$4 sm:$0xff]   ;;  %v21376_v58 = vld [vmem:[%s24208_s8 + $0xab0] ss:$40 sps:$4 sm:$0xff]  }
 0x2ce   : > { %5241 = vmatprep.subr.bf16.mxu1 %v21327_v60  ;;  %v21379_v60 = vld [vmem:[%s24208_s8 + $0xfb0] ss:$40 sps:$4 sm:$0xff]  }
 0x2d0   : > { %5201 = vmatpush2.bf16.msra.mxu0 %v21322_v61  ;;  %v21384_v61 = vld [vmem:[%s24208_s8 + $0xa64] ss:$40 sps:$4 sm:$0xff]  }
 0x2d1   : > { %5242 = vmatpush2.bf16.msra.mxu1 %v21325_v63  ;;  %5202 = vmatprep.subr.bf16.mxu0 %v21330_v0  ;;  %v21387_v63 = vld [vmem:[%s24208_s8 + $0xf64] ss:$40 sps:$4 sm:$0xff]   ;;  %v21382_v0 = vld [vmem:[%s24208_s8 + $0xa60] ss:$40 sps:$4 sm:$0xff]  }
 0x2d2   : > { %5243 = vmatprep.subr.bf16.mxu1 %v21333_v1  ;;  %v21385_v1 = vld [vmem:[%s24208_s8 + $0xf60] ss:$40 sps:$4 sm:$0xff]  }
 0x2d4   : > { %5203 = vmatpush2.bf16.msra.mxu0 %v21328_v4  ;;  %v21390_v4 = vld [vmem:[%s24208_s8 + $0xa14] ss:$40 sps:$4 sm:$0xff]  }
 0x2d5   : > { %5244 = vmatpush2.bf16.msra.mxu1 %v21331_v5  ;;  %5204 = vmatprep.subr.bf16.mxu0 %v21336_v9  ;;  %v21393_v5 = vld [vmem:[%s24208_s8 + $0xf14] ss:$40 sps:$4 sm:$0xff]   ;;  %v21388_v9 = vld [vmem:[%s24208_s8 + $0xa10] ss:$40 sps:$4 sm:$0xff]  }
 0x2d6   : > { %5245 = vmatprep.subr.bf16.mxu1 %v21339_v11  ;;  %v21391_v11 = vld [vmem:[%s24208_s8 + $0xf10] ss:$40 sps:$4 sm:$0xff]  }
 0x2d8   : > { %5205 = vmatpush2.bf16.msra.mxu0 %v21334_v12  ;;  %v21396_v12 = vld [vmem:[%s24208_s8 + $0xec4] ss:$40 sps:$4 sm:$0xff]  }
 0x2d9   : > { %5246 = vmatpush2.bf16.msra.mxu1 %v21337_v13  ;;  %5206 = vmatprep.subr.bf16.mxu0 %v21342_v14  ;;  %v21399_v13 = vld [vmem:[%s24208_s8 + $0x13c4] ss:$40 sps:$4 sm:$0xff]   ;;  %v21394_v14 = vld [vmem:[%s24208_s8 + $0xec0] ss:$40 sps:$4 sm:$0xff]  }
 0x2da   : > { %5247 = vmatprep.subr.bf16.mxu1 %v21345_v15  ;;  %v21397_v15 = vld [vmem:[%s24208_s8 + $0x13c0] ss:$40 sps:$4 sm:$0xff]  }
 0x2dc   : > { %5207 = vmatpush2.bf16.msra.mxu0 %v21340_v16  ;;  %v21402_v16 = vld [vmem:[%s24208_s8 + $0xe74] ss:$40 sps:$4 sm:$0xff]  }
 0x2dd   : > { %5248 = vmatpush2.bf16.msra.mxu1 %v21343_v17  ;;  %5258 = vmatprep.subr.bf16.mxu0 %v21348_v18  ;;  %v21405_v17 = vld [vmem:[%s24208_s8 + $0x1374] ss:$40 sps:$4 sm:$0xff]   ;;  %v21400_v18 = vld [vmem:[%s24208_s8 + $0xe70] ss:$40 sps:$4 sm:$0xff]  }
 0x2de   : > { %5299 = vmatprep.subr.bf16.mxu1 %v21351_v19  ;;  %v21403_v19 = vld [vmem:[%s24208_s8 + $0x1370] ss:$40 sps:$4 sm:$0xff]  }
 0x2df   : > { %v4964_v26 = vpop.f32.mrf.mxu0  ;;  %5209 = vmatmul.mubr.bf16.vlgmr.msra.gmra.mxu0 %v24337_v30 }
 0x2e0   : > { %v5005_v28 = vpop.f32.mrf.mxu1  ;;  %5250 = vmatmul.mubr.bf16.vlgmr.msra.gmra.mxu1 %v24339_v31  ;;  %v4965_v32 = vadd.f32 %v4964_v26, %v4924_v24  ;;  %5259 = vmatpush1.bf16.msra.mxu0 %v21346_v20  ;;  %v21408_v20 = vld [vmem:[%s24208_s8 + $0xe24] ss:$40 sps:$4 sm:$0xff]   ;;  %v21414_v24 = vld [vmem:[%s24208_s8 + $0xdd4] ss:$40 sps:$4 sm:$0xff]   ;;  %v21412_v26 = vld [vmem:[%s24208_s8 + $0xdd0] ss:$40 sps:$4 sm:$0xff]  }
 0x2e1   : > { %5300 = vmatpush1.bf16.msra.mxu1 %v21349_v21  ;;  %v4966_v2 = vpop.f32.mrf.mxu0  ;;  %5260 = vmatprep.subr.bf16.mxu0 %v21354_v22  ;;  %v21411_v21 = vld [vmem:[%s24208_s8 + $0x1324] ss:$40 sps:$4 sm:$0xff]   ;;  %v21406_v22 = vld [vmem:[%s24208_s8 + $0xe20] ss:$40 sps:$4 sm:$0xff]  }
 0x2e2   : > { %v5007_v34 = vpop.f32.mrf.mxu1  ;;  %5301 = vmatprep.subr.bf16.mxu1 %v21357_v23  ;;  %v5006_v37 = vadd.f32 %v5005_v28, %v4965_v32  ;;  %v4967_v38 = vadd.f32 %v4966_v2, %v4926_v29  ;;  %5290 = vmatprep.mubr.bf16.mxu0 %v24370_v59  ;;  %v21409_v23 = vld [vmem:[%s24208_s8 + $0x1320] ss:$40 sps:$4 sm:$0xff]   ;;  %v21420_v28 = vld [vmem:[%s24208_s8 + $0xd84] ss:$40 sps:$4 sm:$0xff]   ;;  %v21426_v2 = vld [vmem:[%s24208_s8 + $0xd34] ss:$40 sps:$4 sm:$0xff]  }
 0x2e3   : > { %5331 = vmatprep.mubr.bf16.mxu1 %v24374_v62  ;;  %v4968_v6 = vpop.f32.mrf.mxu0  ;;  %v21423_v29 = vld [vmem:[%s24208_s8 + $0x1284] ss:$40 sps:$4 sm:$0xff]   ;;  %v21418_v32 = vld [vmem:[%s24208_s8 + $0xd80] ss:$40 sps:$4 sm:$0xff]  }
 0x2e4   : > { %v5009_v8 = vpop.f32.mrf.mxu1  ;;  %v5668_v41 = vadd.f32 %v5006_v37, %v982_v27  ;;  %v5008_v44 = vadd.f32 %v5007_v34, %v4967_v38  ;;  %5261 = vmatpush1.bf16.msra.mxu0 %v21352_v25  ;;  %v21417_v25 = vld [vmem:[%s24208_s8 + $0x12d4] ss:$40 sps:$4 sm:$0xff]   ;;  %v21415_v27 = vld [vmem:[%s24208_s8 + $0x12d0] ss:$40 sps:$4 sm:$0xff]   ;;  %v21435_v37 = vld [vmem:[%s24208_s8 + $0x11e4] ss:$40 sps:$4 sm:$0xff]  }
 0x2e5   : > { %5302 = vmatpush1.bf16.msra.mxu1 %v21355_v33  ;;  %v4969_v45 = vpop.f32.mrf.mxu0  ;;  %5262 = vmatprep.subr.bf16.mxu0 %v21360_v35  ;;  %v21421_v33 = vld [vmem:[%s24208_s8 + $0x1280] ss:$40 sps:$4 sm:$0xff]   ;;  %v21424_v34 = vld [vmem:[%s24208_s8 + $0xd30] ss:$40 sps:$4 sm:$0xff]   ;;  %v21441_v6 = vld [vmem:[%s24208_s8 + $0x1194] ss:$40 sps:$4 sm:$0xff]  }
 0x2e6   : > { %v5010_v46 = vpop.f32.mrf.mxu1  ;;  %5303 = vmatprep.subr.bf16.mxu1 %v21363_v36  ;;  %5678 = vst [vmem:[#allocation2 + $0x30] sm:$0xff] %v5668_v41  ;;  %v5669_v49 = vadd.f32 %v5008_v44, %v983_v3  ;;  %v21429_v3 = vld [vmem:[%s24208_s8 + $0x1234] ss:$40 sps:$4 sm:$0xff]   ;;  %v21427_v35 = vld [vmem:[%s24208_s8 + $0x1230] ss:$40 sps:$4 sm:$0xff]  }
 0x2e7   : > { %v21432_v36 = vld [vmem:[%s24208_s8 + $0xce4] ss:$40 sps:$4 sm:$0xff]   ;;  %v21430_v38 = vld [vmem:[%s24208_s8 + $0xce0] ss:$40 sps:$4 sm:$0xff]   ;;  %v21436_v8 = vld [vmem:[%s24208_s8 + $0xc90] ss:$40 sps:$4 sm:$0xff]  }
 0x2e8   : > { %5679 = vst [vmem:[#allocation2] sm:$0xff] %v5669_v49  ;;  %5263 = vmatpush1.bf16.msra.mxu0 %v21358_v39  ;;  %v21433_v39 = vld [vmem:[%s24208_s8 + $0x11e0] ss:$40 sps:$4 sm:$0xff]   ;;  %v21439_v41 = vld [vmem:[%s24208_s8 + $0x1190] ss:$40 sps:$4 sm:$0xff]  }
 0x2e9   : > { %5304 = vmatpush1.bf16.msra.mxu1 %v21361_v40  ;;  %5264 = vmatprep.subr.bf16.mxu0 %v21366_v47  ;;  %v21438_v40 = vld [vmem:[%s24208_s8 + $0xc94] ss:$40 sps:$4 sm:$0xff]   ;;  %v21442_v46 = vld [vmem:[%s24208_s8 + $0x248] ss:$40 sps:$4 sm:$0xff]  }
 0x2ea   : > { %5305 = vmatprep.subr.bf16.mxu1 %v21369_v48  ;;  %v21444_v44 = vld [vmem:[%s24208_s8 + $0x24c] ss:$40 sps:$4 sm:$0xff]   ;;  %v21445_v47 = vld [vmem:[%s24208_s8 + $0x748] ss:$40 sps:$4 sm:$0xff]   ;;  %v21450_v48 = vld [vmem:[%s24208_s8 + $0x1fc] ss:$40 sps:$4 sm:$0xff]  }
 0x2eb   : > { %v21447_v45 = vld [vmem:[%s24208_s8 + $0x74c] ss:$40 sps:$4 sm:$0xff]   ;;  %v21453_v49 = vld [vmem:[%s24208_s8 + $0x6fc] ss:$40 sps:$4 sm:$0xff]  }
 0x2ec   : > { %5265 = vmatpush1.bf16.msra.mxu0 %v21364_v50  ;;  %v21448_v50 = vld [vmem:[%s24208_s8 + $0x1f8] ss:$40 sps:$4 sm:$0xff]  }
 0x2ed   : > { %5306 = vmatpush1.bf16.msra.mxu1 %v21367_v51  ;;  %5266 = vmatprep.subr.bf16.mxu0 %v21372_v52  ;;  %v21451_v51 = vld [vmem:[%s24208_s8 + $0x6f8] ss:$40 sps:$4 sm:$0xff]  }
 0x2ee   : > { %5307 = vmatprep.subr.bf16.mxu1 %v21375_v53 }
 0x2f0   : > { %5267 = vmatpush1.bf16.msra.mxu0 %v21370_v54 }
 0x2f1   : > { %5308 = vmatpush1.bf16.msra.mxu1 %v21373_v55  ;;  %5268 = vmatprep.subr.bf16.mxu0 %v21378_v56  ;;  %v21456_v56 = vld [vmem:[%s24208_s8 + $0x1ac] ss:$40 sps:$4 sm:$0xff]  }
 0x2f2   : > { %5309 = vmatprep.subr.bf16.mxu1 %v21381_v57  ;;  %v21459_v57 = vld [vmem:[%s24208_s8 + $0x6ac] ss:$40 sps:$4 sm:$0xff]  }
 0x2f4   : > { %5269 = vmatpush1.bf16.msra.mxu0 %v21376_v58 }
 0x2f5   : > { %5310 = vmatpush1.bf16.msra.mxu1 %v21379_v60  ;;  %5270 = vmatprep.subr.bf16.mxu0 %v21384_v61  ;;  %v21454_v61 = vld [vmem:[%s24208_s8 + $0x1a8] ss:$40 sps:$4 sm:$0xff]  }
 0x2f6   : > { %5311 = vmatprep.subr.bf16.mxu1 %v21387_v63  ;;  %v21457_v63 = vld [vmem:[%s24208_s8 + $0x6a8] ss:$40 sps:$4 sm:$0xff]  }
 0x2f8   : > { %5271 = vmatpush1.bf16.msra.mxu0 %v21382_v0 }
 0x2f9   : > { %5312 = vmatpush1.bf16.msra.mxu1 %v21385_v1  ;;  %5272 = vmatprep.subr.bf16.mxu0 %v21390_v4  ;;  %v21462_v4 = vld [vmem:[%s24208_s8 + $0x15c] ss:$40 sps:$4 sm:$0xff]  }
 0x2fa   : > { %5313 = vmatprep.subr.bf16.mxu1 %v21393_v5  ;;  %v21465_v5 = vld [vmem:[%s24208_s8 + $0x65c] ss:$40 sps:$4 sm:$0xff]  }
 0x2fc   : > { %5273 = vmatpush1.bf16.msra.mxu0 %v21388_v9  ;;  %v21460_v9 = vld [vmem:[%s24208_s8 + $0x158] ss:$40 sps:$4 sm:$0xff]  }
 0x2fd   : > { %5314 = vmatpush1.bf16.msra.mxu1 %v21391_v11  ;;  %5274 = vmatprep.subr.bf16.mxu0 %v21396_v12  ;;  %v21463_v11 = vld [vmem:[%s24208_s8 + $0x658] ss:$40 sps:$4 sm:$0xff]   ;;  %v21468_v12 = vld [vmem:[%s24208_s8 + $0x10c] ss:$40 sps:$4 sm:$0xff]  }
 0x2fe   : > { %5315 = vmatprep.subr.bf16.mxu1 %v21399_v13  ;;  %v21471_v13 = vld [vmem:[%s24208_s8 + $0x60c] ss:$40 sps:$4 sm:$0xff]  }
 0x300   : > { %5275 = vmatpush2.bf16.msra.mxu0 %v21394_v14  ;;  %v21466_v14 = vld [vmem:[%s24208_s8 + $0x108] ss:$40 sps:$4 sm:$0xff]  }
 0x301   : > { %5316 = vmatpush2.bf16.msra.mxu1 %v21397_v15  ;;  %5276 = vmatprep.subr.bf16.mxu0 %v21402_v16  ;;  %v21469_v15 = vld [vmem:[%s24208_s8 + $0x608] ss:$40 sps:$4 sm:$0xff]   ;;  %v21474_v16 = vld [vmem:[%s24208_s8 + $0xbc] ss:$40 sps:$4 sm:$0xff]  }
 0x302   : > { %5317 = vmatprep.subr.bf16.mxu1 %v21405_v17  ;;  %v21477_v17 = vld [vmem:[%s24208_s8 + $0x5bc] ss:$40 sps:$4 sm:$0xff]  }
 0x304   : > { %5277 = vmatpush2.bf16.msra.mxu0 %v21400_v18  ;;  %v21472_v18 = vld [vmem:[%s24208_s8 + $0xb8] ss:$40 sps:$4 sm:$0xff]  }
 0x305   : > { %5318 = vmatpush2.bf16.msra.mxu1 %v21403_v19  ;;  %5278 = vmatprep.subr.bf16.mxu0 %v21408_v20  ;;  %v21475_v19 = vld [vmem:[%s24208_s8 + $0x5b8] ss:$40 sps:$4 sm:$0xff]   ;;  %v21480_v20 = vld [vmem:[%s24208_s8 + $0x6c] ss:$40 sps:$4 sm:$0xff]  }
 0x306   : > { %5319 = vmatprep.subr.bf16.mxu1 %v21411_v21  ;;  %v21483_v21 = vld [vmem:[%s24208_s8 + $0x56c] ss:$40 sps:$4 sm:$0xff]  }
 0x308   : > { %5279 = vmatpush2.bf16.msra.mxu0 %v21406_v22  ;;  %v21478_v22 = vld [vmem:[%s24208_s8 + $0x68] ss:$40 sps:$4 sm:$0xff]  }
 0x309   : > { %5320 = vmatpush2.bf16.msra.mxu1 %v21409_v23  ;;  %5280 = vmatprep.subr.bf16.mxu0 %v21414_v24  ;;  %v21481_v23 = vld [vmem:[%s24208_s8 + $0x568] ss:$40 sps:$4 sm:$0xff]   ;;  %v21486_v24 = vld [vmem:[%s24208_s8 + $0x1c] ss:$40 sps:$4 sm:$0xff]  }
 0x30a   : > { %5321 = vmatprep.subr.bf16.mxu1 %v21417_v25  ;;  %v21489_v25 = vld [vmem:[%s24208_s8 + $0x51c] ss:$40 sps:$4 sm:$0xff]  }
 0x30c   : > { %5281 = vmatpush2.bf16.msra.mxu0 %v21412_v26  ;;  %v21484_v26 = vld [vmem:[%s24208_s8 + $0x18] ss:$40 sps:$4 sm:$0xff]  }
 0x30d   : > { %5322 = vmatpush2.bf16.msra.mxu1 %v21415_v27  ;;  %5282 = vmatprep.subr.bf16.mxu0 %v21420_v28  ;;  %v21487_v27 = vld [vmem:[%s24208_s8 + $0x518] ss:$40 sps:$4 sm:$0xff]   ;;  %v21492_v28 = vld [vmem:[%s24208_s8 + $0x4cc] ss:$40 sps:$4 sm:$0xff]  }
 0x30e   : > { %5323 = vmatprep.subr.bf16.mxu1 %v21423_v29  ;;  %v21495_v29 = vld [vmem:[%s24208_s8 + $0x9cc] ss:$40 sps:$4 sm:$0xff]  }
 0x310   : > { %5283 = vmatpush2.bf16.msra.mxu0 %v21418_v32  ;;  %v21490_v32 = vld [vmem:[%s24208_s8 + $0x4c8] ss:$40 sps:$4 sm:$0xff]  }
 0x311   : > { %5324 = vmatpush2.bf16.msra.mxu1 %v21421_v33  ;;  %5284 = vmatprep.subr.bf16.mxu0 %v21426_v2  ;;  %v21493_v33 = vld [vmem:[%s24208_s8 + $0x9c8] ss:$40 sps:$4 sm:$0xff]   ;;  %v21498_v2 = vld [vmem:[%s24208_s8 + $0x47c] ss:$40 sps:$4 sm:$0xff]  }
 0x312   : > { %5325 = vmatprep.subr.bf16.mxu1 %v21429_v3  ;;  %v21501_v3 = vld [vmem:[%s24208_s8 + $0x97c] ss:$40 sps:$4 sm:$0xff]  }
 0x314   : > { %5285 = vmatpush2.bf16.msra.mxu0 %v21424_v34  ;;  %v21496_v34 = vld [vmem:[%s24208_s8 + $0x478] ss:$40 sps:$4 sm:$0xff]  }
 0x315   : > { %5326 = vmatpush2.bf16.msra.mxu1 %v21427_v35  ;;  %5286 = vmatprep.subr.bf16.mxu0 %v21432_v36  ;;  %v21499_v35 = vld [vmem:[%s24208_s8 + $0x978] ss:$40 sps:$4 sm:$0xff]   ;;  %v21504_v36 = vld [vmem:[%s24208_s8 + $0x42c] ss:$40 sps:$4 sm:$0xff]  }
 0x316   : > { %5327 = vmatprep.subr.bf16.mxu1 %v21435_v37  ;;  %v21507_v37 = vld [vmem:[%s24208_s8 + $0x92c] ss:$40 sps:$4 sm:$0xff]  }
 0x318   : > { %5287 = vmatpush2.bf16.msra.mxu0 %v21430_v38  ;;  %v21502_v38 = vld [vmem:[%s24208_s8 + $0x428] ss:$40 sps:$4 sm:$0xff]  }
 0x319   : > { %5328 = vmatpush2.bf16.msra.mxu1 %v21433_v39  ;;  %5288 = vmatprep.subr.bf16.mxu0 %v21438_v40  ;;  %v21505_v39 = vld [vmem:[%s24208_s8 + $0x928] ss:$40 sps:$4 sm:$0xff]   ;;  %v21510_v40 = vld [vmem:[%s24208_s8 + $0x3dc] ss:$40 sps:$4 sm:$0xff]  }
 0x31a   : > { %5329 = vmatprep.subr.bf16.mxu1 %v21441_v6  ;;  %v21513_v6 = vld [vmem:[%s24208_s8 + $0x8dc] ss:$40 sps:$4 sm:$0xff]  }
 0x31c   : > { %5289 = vmatpush2.bf16.msra.mxu0 %v21436_v8  ;;  %v21508_v8 = vld [vmem:[%s24208_s8 + $0x3d8] ss:$40 sps:$4 sm:$0xff]  }
 0x31d   : > { %5330 = vmatpush2.bf16.msra.mxu1 %v21439_v41  ;;  %5340 = vmatprep.subr.bf16.mxu0 %v21444_v44  ;;  %v21511_v41 = vld [vmem:[%s24208_s8 + $0x8d8] ss:$40 sps:$4 sm:$0xff]   ;;  %v21516_v44 = vld [vmem:[%s24208_s8 + $0x38c] ss:$40 sps:$4 sm:$0xff]  }
 0x31e   : > { %5381 = vmatprep.subr.bf16.mxu1 %v21447_v45  ;;  %v21519_v45 = vld [vmem:[%s24208_s8 + $0x88c] ss:$40 sps:$4 sm:$0xff]  }
 0x31f   : > { %v24711_v52 = vpop.f32.mrf.mxu0  ;;  %5291 = vmatmul.mubr.bf16.vlgmr.msra.gmra.mxu0 %v24417_v42 }
 0x320   : > { %v24713_v53 = vpop.f32.mrf.mxu1  ;;  %5332 = vmatmul.mubr.bf16.vlgmr.msra.gmra.mxu1 %v24419_v43  ;;  %5341 = vmatpush1.bf16.msra.mxu0 %v21442_v46  ;;  %v21514_v46 = vld [vmem:[%s24208_s8 + $0x388] ss:$40 sps:$4 sm:$0xff]  }
 0x321   : > { %5382 = vmatpush1.bf16.msra.mxu1 %v21445_v47  ;;  %v24717_v54 = vpop.f32.mrf.mxu0  ;;  %5342 = vmatprep.subr.bf16.mxu0 %v21450_v48  ;;  %v21517_v47 = vld [vmem:[%s24208_s8 + $0x888] ss:$40 sps:$4 sm:$0xff]   ;;  %v21522_v48 = vld [vmem:[%s24208_s8 + $0x33c] ss:$40 sps:$4 sm:$0xff]  }
 0x322   : > { %v24719_v55 = vpop.f32.mrf.mxu1  ;;  %5383 = vmatprep.subr.bf16.mxu1 %v21453_v49  ;;  %5372 = vmatprep.mubr.bf16.mxu0 %v24310_v7  ;;  %v21525_v49 = vld [vmem:[%s24208_s8 + $0x83c] ss:$40 sps:$4 sm:$0xff]  }
 0x323   : > { %5413 = vmatprep.mubr.bf16.mxu1 %v24314_v10  ;;  %v5050_v58 = vpop.f32.mrf.mxu0 }
 0x324   : > { %v5091_v60 = vpop.f32.mrf.mxu1  ;;  %5343 = vmatpush1.bf16.msra.mxu0 %v21448_v50  ;;  %v21520_v50 = vld [vmem:[%s24208_s8 + $0x338] ss:$40 sps:$4 sm:$0xff]   ;;  %v21526_v58 = vld [vmem:[%s24208_s8 + $0x2e8] ss:$40 sps:$4 sm:$0xff]  }
 0x325   : > { %5384 = vmatpush1.bf16.msra.mxu1 %v21451_v51  ;;  %v5051_v0 = vpop.f32.mrf.mxu0  ;;  %5344 = vmatprep.subr.bf16.mxu0 %v21456_v56  ;;  %v21523_v51 = vld [vmem:[%s24208_s8 + $0x838] ss:$40 sps:$4 sm:$0xff]   ;;  %v21528_v56 = vld [vmem:[%s24208_s8 + $0x2ec] ss:$40 sps:$4 sm:$0xff]   ;;  %v21529_v60 = vld [vmem:[%s24208_s8 + $0x7e8] ss:$40 sps:$4 sm:$0xff]  }
 0x326   : > { %v5092_v1 = vpop.f32.mrf.mxu1  ;;  %5385 = vmatprep.subr.bf16.mxu1 %v21459_v57  ;;  %v21531_v57 = vld [vmem:[%s24208_s8 + $0x7ec] ss:$40 sps:$4 sm:$0xff]   ;;  %v21532_v0 = vld [vmem:[%s24208_s8 + $0x298] ss:$40 sps:$4 sm:$0xff]  }
 0x327   : > { %v21535_v1 = vld [vmem:[%s24208_s8 + $0x798] ss:$40 sps:$4 sm:$0xff]  }
 0x328   : > { %5345 = vmatpush1.bf16.msra.mxu0 %v21454_v61  ;;  %v21534_v61 = vld [vmem:[%s24208_s8 + $0x29c] ss:$40 sps:$4 sm:$0xff]  }
 0x329   : > { %5386 = vmatpush1.bf16.msra.mxu1 %v21457_v63  ;;  %5346 = vmatprep.subr.bf16.mxu0 %v21462_v4  ;;  %v21537_v63 = vld [vmem:[%s24208_s8 + $0x79c] ss:$40 sps:$4 sm:$0xff]   ;;  %v21540_v4 = vld [vmem:[%s24208_s8 + $0xc4c] ss:$40 sps:$4 sm:$0xff]  }
 0x32a   : > { %5387 = vmatprep.subr.bf16.mxu1 %v21465_v5  ;;  %v21543_v5 = vld [vmem:[%s24208_s8 + $0x114c] ss:$40 sps:$4 sm:$0xff]  }
 0x32c   : > { %5347 = vmatpush1.bf16.msra.mxu0 %v21460_v9  ;;  %v21538_v9 = vld [vmem:[%s24208_s8 + $0xc48] ss:$40 sps:$4 sm:$0xff]  }
 0x32d   : > { %5388 = vmatpush1.bf16.msra.mxu1 %v21463_v11  ;;  %5348 = vmatprep.subr.bf16.mxu0 %v21468_v12  ;;  %v21541_v11 = vld [vmem:[%s24208_s8 + $0x1148] ss:$40 sps:$4 sm:$0xff]   ;;  %v21546_v12 = vld [vmem:[%s24208_s8 + $0xbfc] ss:$40 sps:$4 sm:$0xff]  }
 0x32e   : > { %5389 = vmatprep.subr.bf16.mxu1 %v21471_v13  ;;  %v21549_v13 = vld [vmem:[%s24208_s8 + $0x10fc] ss:$40 sps:$4 sm:$0xff]  }
 0x330   : > { %5349 = vmatpush1.bf16.msra.mxu0 %v21466_v14  ;;  %v5088_v14 = vadd.f32 %v24713_v53, %v24711_v52  ;;  %v21552_v52 = vld [vmem:[%s24208_s8 + $0xbac] ss:$40 sps:$4 sm:$0xff]  }
 0x331   : > { %5390 = vmatpush1.bf16.msra.mxu1 %v21469_v15  ;;  %5350 = vmatprep.subr.bf16.mxu0 %v21474_v16  ;;  %v21555_v53 = vld [vmem:[%s24208_s8 + $0x10ac] ss:$40 sps:$4 sm:$0xff]  }
 0x332   : > { %5391 = vmatprep.subr.bf16.mxu1 %v21477_v17  ;;  %v5090_v17 = vadd.f32 %v24719_v55, %v24717_v54  ;;  %v985_v54 = vld [vmem:[#allocation2 + $0x10] sm:$0xff] }
 0x334   : > { %5351 = vmatpush1.bf16.msra.mxu0 %v21472_v18 }
 0x335   : > { %5392 = vmatpush1.bf16.msra.mxu1 %v21475_v19  ;;  %5352 = vmatprep.subr.bf16.mxu0 %v21480_v20  ;;  %v21544_v19 = vld [vmem:[%s24208_s8 + $0xbf8] ss:$40 sps:$4 sm:$0xff]  }
 0x336   : > { %5393 = vmatprep.subr.bf16.mxu1 %v21483_v21  ;;  %v21547_v20 = vld [vmem:[%s24208_s8 + $0x10f8] ss:$40 sps:$4 sm:$0xff]   ;;  %v984_v21 = vld [vmem:[#allocation2 + $0x18] sm:$0xff] }
 0x338   : > { %5353 = vmatpush1.bf16.msra.mxu0 %v21478_v22 }
 0x339   : > { %5394 = vmatpush1.bf16.msra.mxu1 %v21481_v23  ;;  %5354 = vmatprep.subr.bf16.mxu0 %v21486_v24 }
 0x33a   : > { %5395 = vmatprep.subr.bf16.mxu1 %v21489_v25 }
 0x33c   : > { %5355 = vmatpush1.bf16.msra.mxu0 %v21484_v26 }
 0x33d   : > { %5396 = vmatpush1.bf16.msra.mxu1 %v21487_v27  ;;  %5356 = vmatprep.subr.bf16.mxu0 %v21492_v28 }
 0x33e   : > { %5397 = vmatprep.subr.bf16.mxu1 %v21495_v29  ;;  %v21550_v29 = vld [vmem:[%s24208_s8 + $0xba8] ss:$40 sps:$4 sm:$0xff]  }
 0x340   : > { %5357 = vmatpush2.bf16.msra.mxu0 %v21490_v32  ;;  %v21553_v32 = vld [vmem:[%s24208_s8 + $0x10a8] ss:$40 sps:$4 sm:$0xff]  }
 0x341   : > { %5398 = vmatpush2.bf16.msra.mxu1 %v21493_v33  ;;  %5358 = vmatprep.subr.bf16.mxu0 %v21498_v2 }
 0x342   : > { %5399 = vmatprep.subr.bf16.mxu1 %v21501_v3  ;;  %v21558_v3 = vld [vmem:[%s24208_s8 + $0xb5c] ss:$40 sps:$4 sm:$0xff]  }
 0x344   : > { %5359 = vmatpush2.bf16.msra.mxu0 %v21496_v34  ;;  %v21561_v34 = vld [vmem:[%s24208_s8 + $0x105c] ss:$40 sps:$4 sm:$0xff]  }
 0x345   : > { %5400 = vmatpush2.bf16.msra.mxu1 %v21499_v35  ;;  %5360 = vmatprep.subr.bf16.mxu0 %v21504_v36  ;;  %v21556_v36 = vld [vmem:[%s24208_s8 + $0xb58] ss:$40 sps:$4 sm:$0xff]  }
 0x346   : > { %5401 = vmatprep.subr.bf16.mxu1 %v21507_v37  ;;  %v21559_v37 = vld [vmem:[%s24208_s8 + $0x1058] ss:$40 sps:$4 sm:$0xff]  }
 0x348   : > { %5361 = vmatpush2.bf16.msra.mxu0 %v21502_v38  ;;  %v21564_v38 = vld [vmem:[%s24208_s8 + $0xb0c] ss:$40 sps:$4 sm:$0xff]  }
 0x349   : > { %5402 = vmatpush2.bf16.msra.mxu1 %v21505_v39  ;;  %5362 = vmatprep.subr.bf16.mxu0 %v21510_v40  ;;  %v21567_v39 = vld [vmem:[%s24208_s8 + $0x100c] ss:$40 sps:$4 sm:$0xff]   ;;  %v21562_v40 = vld [vmem:[%s24208_s8 + $0xb08] ss:$40 sps:$4 sm:$0xff]  }
 0x34a   : > { %5403 = vmatprep.subr.bf16.mxu1 %v21513_v6  ;;  %v21565_v6 = vld [vmem:[%s24208_s8 + $0x1008] ss:$40 sps:$4 sm:$0xff]  }
 0x34c   : > { %5363 = vmatpush2.bf16.msra.mxu0 %v21508_v8  ;;  %v21570_v8 = vld [vmem:[%s24208_s8 + $0xabc] ss:$40 sps:$4 sm:$0xff]  }
 0x34d   : > { %5404 = vmatpush2.bf16.msra.mxu1 %v21511_v41  ;;  %5364 = vmatprep.subr.bf16.mxu0 %v21516_v44  ;;  %v21573_v41 = vld [vmem:[%s24208_s8 + $0xfbc] ss:$40 sps:$4 sm:$0xff]   ;;  %v21568_v44 = vld [vmem:[%s24208_s8 + $0xab8] ss:$40 sps:$4 sm:$0xff]  }
 0x34e   : > { %5405 = vmatprep.subr.bf16.mxu1 %v21519_v45  ;;  %v21571_v45 = vld [vmem:[%s24208_s8 + $0xfb8] ss:$40 sps:$4 sm:$0xff]  }
 0x350   : > { %5365 = vmatpush2.bf16.msra.mxu0 %v21514_v46  ;;  %v21576_v46 = vld [vmem:[%s24208_s8 + $0xa6c] ss:$40 sps:$4 sm:$0xff]  }
 0x351   : > { %5406 = vmatpush2.bf16.msra.mxu1 %v21517_v47  ;;  %5366 = vmatprep.subr.bf16.mxu0 %v21522_v48  ;;  %v21579_v47 = vld [vmem:[%s24208_s8 + $0xf6c] ss:$40 sps:$4 sm:$0xff]   ;;  %v21574_v48 = vld [vmem:[%s24208_s8 + $0xa68] ss:$40 sps:$4 sm:$0xff]  }
 0x352   : > { %5407 = vmatprep.subr.bf16.mxu1 %v21525_v49  ;;  %v21577_v49 = vld [vmem:[%s24208_s8 + $0xf68] ss:$40 sps:$4 sm:$0xff]  }
 0x354   : > { %5367 = vmatpush2.bf16.msra.mxu0 %v21520_v50  ;;  %v21582_v50 = vld [vmem:[%s24208_s8 + $0xa1c] ss:$40 sps:$4 sm:$0xff]  }
 0x355   : > { %5408 = vmatpush2.bf16.msra.mxu1 %v21523_v51  ;;  %5368 = vmatprep.subr.bf16.mxu0 %v21528_v56  ;;  %v21585_v51 = vld [vmem:[%s24208_s8 + $0xf1c] ss:$40 sps:$4 sm:$0xff]   ;;  %v21580_v56 = vld [vmem:[%s24208_s8 + $0xa18] ss:$40 sps:$4 sm:$0xff]  }
 0x356   : > { %5409 = vmatprep.subr.bf16.mxu1 %v21531_v57  ;;  %v21583_v57 = vld [vmem:[%s24208_s8 + $0xf18] ss:$40 sps:$4 sm:$0xff]  }
 0x358   : > { %5369 = vmatpush2.bf16.msra.mxu0 %v21526_v58  ;;  %v21588_v58 = vld [vmem:[%s24208_s8 + $0xecc] ss:$40 sps:$4 sm:$0xff]  }
 0x359   : > { %5410 = vmatpush2.bf16.msra.mxu1 %v21529_v60  ;;  %5370 = vmatprep.subr.bf16.mxu0 %v21534_v61  ;;  %v21591_v60 = vld [vmem:[%s24208_s8 + $0x13cc] ss:$40 sps:$4 sm:$0xff]   ;;  %v21586_v61 = vld [vmem:[%s24208_s8 + $0xec8] ss:$40 sps:$4 sm:$0xff]  }
 0x35a   : > { %5411 = vmatprep.subr.bf16.mxu1 %v21537_v63  ;;  %v21589_v63 = vld [vmem:[%s24208_s8 + $0x13c8] ss:$40 sps:$4 sm:$0xff]  }
 0x35c   : > { %5371 = vmatpush2.bf16.msra.mxu0 %v21532_v0  ;;  %v21594_v0 = vld [vmem:[%s24208_s8 + $0xe7c] ss:$40 sps:$4 sm:$0xff]  }
 0x35d   : > { %5412 = vmatpush2.bf16.msra.mxu1 %v21535_v1  ;;  %5422 = vmatprep.subr.bf16.mxu0 %v21540_v4  ;;  %v21597_v1 = vld [vmem:[%s24208_s8 + $0x137c] ss:$40 sps:$4 sm:$0xff]   ;;  %v21592_v4 = vld [vmem:[%s24208_s8 + $0xe78] ss:$40 sps:$4 sm:$0xff]  }
 0x35e   : > { %5463 = vmatprep.subr.bf16.mxu1 %v21543_v5  ;;  %v21595_v5 = vld [vmem:[%s24208_s8 + $0x1378] ss:$40 sps:$4 sm:$0xff]  }
 0x35f   : > { %v5128_v15 = vpop.f32.mrf.mxu0  ;;  %5373 = vmatmul.mubr.bf16.vlgmr.msra.gmra.mxu0 %v24337_v30 }
 0x360   : > { %v5169_v16 = vpop.f32.mrf.mxu1  ;;  %5414 = vmatmul.mubr.bf16.vlgmr.msra.gmra.mxu1 %v24339_v31  ;;  %v5129_v18 = vadd.f32 %v5128_v15, %v5088_v14  ;;  %5423 = vmatpush1.bf16.msra.mxu0 %v21538_v9  ;;  %v21600_v9 = vld [vmem:[%s24208_s8 + $0xe2c] ss:$40 sps:$4 sm:$0xff]   ;;  %v21606_v14 = vld [vmem:[%s24208_s8 + $0xddc] ss:$40 sps:$4 sm:$0xff]  }
 0x361   : > { %5464 = vmatpush1.bf16.msra.mxu1 %v21541_v11  ;;  %v5130_v22 = vpop.f32.mrf.mxu0  ;;  %5424 = vmatprep.subr.bf16.mxu0 %v21546_v12  ;;  %v21603_v11 = vld [vmem:[%s24208_s8 + $0x132c] ss:$40 sps:$4 sm:$0xff]   ;;  %v21598_v12 = vld [vmem:[%s24208_s8 + $0xe28] ss:$40 sps:$4 sm:$0xff]   ;;  %v21609_v15 = vld [vmem:[%s24208_s8 + $0x12dc] ss:$40 sps:$4 sm:$0xff]  }
 0x362   : > { %v5171_v23 = vpop.f32.mrf.mxu1  ;;  %5465 = vmatprep.subr.bf16.mxu1 %v21549_v13  ;;  %v5170_v24 = vadd.f32 %v5169_v16, %v5129_v18  ;;  %v5131_v25 = vadd.f32 %v5130_v22, %v5090_v17  ;;  %5454 = vmatprep.mubr.bf16.mxu0 %v24370_v59  ;;  %v21601_v13 = vld [vmem:[%s24208_s8 + $0x1328] ss:$40 sps:$4 sm:$0xff]   ;;  %v21604_v16 = vld [vmem:[%s24208_s8 + $0xdd8] ss:$40 sps:$4 sm:$0xff]   ;;  %v21612_v18 = vld [vmem:[%s24208_s8 + $0xd8c] ss:$40 sps:$4 sm:$0xff]  }
 0x363   : > { %5495 = vmatprep.mubr.bf16.mxu1 %v24374_v62  ;;  %v5132_v55 = vpop.f32.mrf.mxu0  ;;  %v21607_v17 = vld [vmem:[%s24208_s8 + $0x12d8] ss:$40 sps:$4 sm:$0xff]   ;;  %v21618_v22 = vld [vmem:[%s24208_s8 + $0xd3c] ss:$40 sps:$4 sm:$0xff]  }
 0x364   : > { %v5173_v26 = vpop.f32.mrf.mxu1  ;;  %v5670_v27 = vadd.f32 %v5170_v24, %v984_v21  ;;  %v5172_v28 = vadd.f32 %v5171_v23, %v5131_v25  ;;  %5425 = vmatpush1.bf16.msra.mxu0 %v21544_v19  ;;  %v21615_v19 = vld [vmem:[%s24208_s8 + $0x128c] ss:$40 sps:$4 sm:$0xff]   ;;  %v21613_v21 = vld [vmem:[%s24208_s8 + $0x1288] ss:$40 sps:$4 sm:$0xff]   ;;  %v21621_v23 = vld [vmem:[%s24208_s8 + $0x123c] ss:$40 sps:$4 sm:$0xff]  }
 0x365   : > { %5466 = vmatpush1.bf16.msra.mxu1 %v21547_v20  ;;  %v5133_v33 = vpop.f32.mrf.mxu0  ;;  %5426 = vmatprep.subr.bf16.mxu0 %v21552_v52  ;;  %v21610_v20 = vld [vmem:[%s24208_s8 + $0xd88] ss:$40 sps:$4 sm:$0xff]   ;;  %v21616_v52 = vld [vmem:[%s24208_s8 + $0xd38] ss:$40 sps:$4 sm:$0xff]   ;;  %v21624_v24 = vld [vmem:[%s24208_s8 + $0xcec] ss:$40 sps:$4 sm:$0xff]  }
 0x366   : > { %v5174_v2 = vpop.f32.mrf.mxu1  ;;  %5467 = vmatprep.subr.bf16.mxu1 %v21555_v53  ;;  %5680 = vst [vmem:[#allocation2 + $0x18] sm:$0xff] %v5670_v27  ;;  %v5671_v35 = vadd.f32 %v5172_v28, %v985_v54  ;;  %v21619_v53 = vld [vmem:[%s24208_s8 + $0x1238] ss:$40 sps:$4 sm:$0xff]   ;;  %v21627_v25 = vld [vmem:[%s24208_s8 + $0x11ec] ss:$40 sps:$4 sm:$0xff]  }
 0x367   : > { %v21622_v54 = vld [vmem:[%s24208_s8 + $0xce8] ss:$40 sps:$4 sm:$0xff]   ;;  %v21630_v26 = vld [vmem:[%s24208_s8 + $0xc9c] ss:$40 sps:$4 sm:$0xff]   ;;  %v21628_v28 = vld [vmem:[%s24208_s8 + $0xc98] ss:$40 sps:$4 sm:$0xff]  }
 0x368   : > { %5681 = vst [vmem:[#allocation2 + $0x10] sm:$0xff] %v5671_v35  ;;  %5427 = vmatpush1.bf16.msra.mxu0 %v21550_v29  ;;  %v21625_v55 = vld [vmem:[%s24208_s8 + $0x11e8] ss:$40 sps:$4 sm:$0xff]   ;;  %v21633_v27 = vld [vmem:[%s24208_s8 + $0x119c] ss:$40 sps:$4 sm:$0xff]  }
 0x369   : > { %5468 = vmatpush1.bf16.msra.mxu1 %v21553_v32  ;;  %5428 = vmatprep.subr.bf16.mxu0 %v21558_v3  ;;  %v21631_v29 = vld [vmem:[%s24208_s8 + $0x1198] ss:$40 sps:$4 sm:$0xff]   ;;  %v21636_v32 = vld [vmem:[%s24208_s8 + $0x254] ss:$40 sps:$4 sm:$0xff]   ;;  %v21645_v35 = vld [vmem:[%s24208_s8 + $0x704] ss:$40 sps:$4 sm:$0xff]  }
 0x36a   : > { %5469 = vmatprep.subr.bf16.mxu1 %v21561_v34  ;;  %v21639_v33 = vld [vmem:[%s24208_s8 + $0x754] ss:$40 sps:$4 sm:$0xff]   ;;  %v21634_v2 = vld [vmem:[%s24208_s8 + $0x250] ss:$40 sps:$4 sm:$0xff]   ;;  %v21642_v34 = vld [vmem:[%s24208_s8 + $0x204] ss:$40 sps:$4 sm:$0xff]  }
 0x36b   : > { %v21637_v3 = vld [vmem:[%s24208_s8 + $0x750] ss:$40 sps:$4 sm:$0xff]  }
 0x36c   : > { %5429 = vmatpush1.bf16.msra.mxu0 %v21556_v36 }
 0x36d   : > { %5470 = vmatpush1.bf16.msra.mxu1 %v21559_v37  ;;  %5430 = vmatprep.subr.bf16.mxu0 %v21564_v38  ;;  %v21640_v38 = vld [vmem:[%s24208_s8 + $0x200] ss:$40 sps:$4 sm:$0xff]  }
 0x36e   : > { %5471 = vmatprep.subr.bf16.mxu1 %v21567_v39  ;;  %v21643_v39 = vld [vmem:[%s24208_s8 + $0x700] ss:$40 sps:$4 sm:$0xff]  }
 0x370   : > { %5431 = vmatpush1.bf16.msra.mxu0 %v21562_v40 }
 0x371   : > { %5472 = vmatpush1.bf16.msra.mxu1 %v21565_v6  ;;  %5432 = vmatprep.subr.bf16.mxu0 %v21570_v8  ;;  %v21648_v8 = vld [vmem:[%s24208_s8 + $0x1b4] ss:$40 sps:$4 sm:$0xff]  }
 0x372   : > { %5473 = vmatprep.subr.bf16.mxu1 %v21573_v41  ;;  %v21651_v41 = vld [vmem:[%s24208_s8 + $0x6b4] ss:$40 sps:$4 sm:$0xff]  }
 0x374   : > { %5433 = vmatpush1.bf16.msra.mxu0 %v21568_v44 }
 0x375   : > { %5474 = vmatpush1.bf16.msra.mxu1 %v21571_v45  ;;  %5434 = vmatprep.subr.bf16.mxu0 %v21576_v46  ;;  %v21646_v46 = vld [vmem:[%s24208_s8 + $0x1b0] ss:$40 sps:$4 sm:$0xff]  }
 0x376   : > { %5475 = vmatprep.subr.bf16.mxu1 %v21579_v47  ;;  %v21649_v47 = vld [vmem:[%s24208_s8 + $0x6b0] ss:$40 sps:$4 sm:$0xff]  }
 0x378   : > { %5435 = vmatpush1.bf16.msra.mxu0 %v21574_v48 }
 0x379   : > { %5476 = vmatpush1.bf16.msra.mxu1 %v21577_v49  ;;  %5436 = vmatprep.subr.bf16.mxu0 %v21582_v50  ;;  %v21654_v50 = vld [vmem:[%s24208_s8 + $0x164] ss:$40 sps:$4 sm:$0xff]  }
 0x37a   : > { %5477 = vmatprep.subr.bf16.mxu1 %v21585_v51  ;;  %v21655_v51 = vld [vmem:[%s24208_s8 + $0x660] ss:$40 sps:$4 sm:$0xff]  }
 0x37c   : > { %5437 = vmatpush1.bf16.msra.mxu0 %v21580_v56  ;;  %v21660_v56 = vld [vmem:[%s24208_s8 + $0x114] ss:$40 sps:$4 sm:$0xff]  }
 0x37d   : > { %5478 = vmatpush1.bf16.msra.mxu1 %v21583_v57  ;;  %5438 = vmatprep.subr.bf16.mxu0 %v21588_v58  ;;  %v21663_v57 = vld [vmem:[%s24208_s8 + $0x614] ss:$40 sps:$4 sm:$0xff]   ;;  %v21658_v58 = vld [vmem:[%s24208_s8 + $0x110] ss:$40 sps:$4 sm:$0xff]  }
 0x37e   : > { %5479 = vmatprep.subr.bf16.mxu1 %v21591_v60  ;;  %v21661_v60 = vld [vmem:[%s24208_s8 + $0x610] ss:$40 sps:$4 sm:$0xff]  }
 0x380   : > { %5439 = vmatpush2.bf16.msra.mxu0 %v21586_v61  ;;  %v21666_v61 = vld [vmem:[%s24208_s8 + $0xc4] ss:$40 sps:$4 sm:$0xff]  }
 0x381   : > { %5480 = vmatpush2.bf16.msra.mxu1 %v21589_v63  ;;  %5440 = vmatprep.subr.bf16.mxu0 %v21594_v0  ;;  %v21669_v63 = vld [vmem:[%s24208_s8 + $0x5c4] ss:$40 sps:$4 sm:$0xff]   ;;  %v21664_v0 = vld [vmem:[%s24208_s8 + $0xc0] ss:$40 sps:$4 sm:$0xff]  }
 0x382   : > { %5481 = vmatprep.subr.bf16.mxu1 %v21597_v1  ;;  %v21667_v1 = vld [vmem:[%s24208_s8 + $0x5c0] ss:$40 sps:$4 sm:$0xff]  }
 0x384   : > { %5441 = vmatpush2.bf16.msra.mxu0 %v21592_v4  ;;  %v21672_v4 = vld [vmem:[%s24208_s8 + $0x74] ss:$40 sps:$4 sm:$0xff]  }
 0x385   : > { %5482 = vmatpush2.bf16.msra.mxu1 %v21595_v5  ;;  %5442 = vmatprep.subr.bf16.mxu0 %v21600_v9  ;;  %v21675_v5 = vld [vmem:[%s24208_s8 + $0x574] ss:$40 sps:$4 sm:$0xff]   ;;  %v21670_v9 = vld [vmem:[%s24208_s8 + $0x70] ss:$40 sps:$4 sm:$0xff]  }
 0x386   : > { %5483 = vmatprep.subr.bf16.mxu1 %v21603_v11  ;;  %v21673_v11 = vld [vmem:[%s24208_s8 + $0x570] ss:$40 sps:$4 sm:$0xff]  }
 0x388   : > { %5443 = vmatpush2.bf16.msra.mxu0 %v21598_v12  ;;  %v21678_v12 = vld [vmem:[%s24208_s8 + $0x24] ss:$40 sps:$4 sm:$0xff]  }
 0x389   : > { %5484 = vmatpush2.bf16.msra.mxu1 %v21601_v13  ;;  %5444 = vmatprep.subr.bf16.mxu0 %v21606_v14  ;;  %v21681_v13 = vld [vmem:[%s24208_s8 + $0x524] ss:$40 sps:$4 sm:$0xff]   ;;  %v21676_v14 = vld [vmem:[%s24208_s8 + $0x20] ss:$40 sps:$4 sm:$0xff]  }
 0x38a   : > { %5485 = vmatprep.subr.bf16.mxu1 %v21609_v15  ;;  %v21679_v15 = vld [vmem:[%s24208_s8 + $0x520] ss:$40 sps:$4 sm:$0xff]  }
 0x38c   : > { %5445 = vmatpush2.bf16.msra.mxu0 %v21604_v16  ;;  %v21684_v16 = vld [vmem:[%s24208_s8 + $0x4d4] ss:$40 sps:$4 sm:$0xff]  }
 0x38d   : > { %5486 = vmatpush2.bf16.msra.mxu1 %v21607_v17  ;;  %5446 = vmatprep.subr.bf16.mxu0 %v21612_v18  ;;  %v21687_v17 = vld [vmem:[%s24208_s8 + $0x9d4] ss:$40 sps:$4 sm:$0xff]   ;;  %v21682_v18 = vld [vmem:[%s24208_s8 + $0x4d0] ss:$40 sps:$4 sm:$0xff]  }
 0x38e   : > { %5487 = vmatprep.subr.bf16.mxu1 %v21615_v19  ;;  %v21685_v19 = vld [vmem:[%s24208_s8 + $0x9d0] ss:$40 sps:$4 sm:$0xff]  }
 0x390   : > { %5447 = vmatpush2.bf16.msra.mxu0 %v21610_v20  ;;  %v21690_v20 = vld [vmem:[%s24208_s8 + $0x484] ss:$40 sps:$4 sm:$0xff]  }
 0x391   : > { %5488 = vmatpush2.bf16.msra.mxu1 %v21613_v21  ;;  %5448 = vmatprep.subr.bf16.mxu0 %v21618_v22  ;;  %v21693_v21 = vld [vmem:[%s24208_s8 + $0x984] ss:$40 sps:$4 sm:$0xff]   ;;  %v21688_v22 = vld [vmem:[%s24208_s8 + $0x480] ss:$40 sps:$4 sm:$0xff]  }
 0x392   : > { %5489 = vmatprep.subr.bf16.mxu1 %v21621_v23  ;;  %v21691_v23 = vld [vmem:[%s24208_s8 + $0x980] ss:$40 sps:$4 sm:$0xff]  }
 0x394   : > { %5449 = vmatpush2.bf16.msra.mxu0 %v21616_v52  ;;  %v21696_v52 = vld [vmem:[%s24208_s8 + $0x434] ss:$40 sps:$4 sm:$0xff]  }
 0x395   : > { %5490 = vmatpush2.bf16.msra.mxu1 %v21619_v53  ;;  %5450 = vmatprep.subr.bf16.mxu0 %v21624_v24  ;;  %v21699_v53 = vld [vmem:[%s24208_s8 + $0x934] ss:$40 sps:$4 sm:$0xff]   ;;  %v21694_v24 = vld [vmem:[%s24208_s8 + $0x430] ss:$40 sps:$4 sm:$0xff]  }
 0x396   : > { %5491 = vmatprep.subr.bf16.mxu1 %v21627_v25  ;;  %v21697_v25 = vld [vmem:[%s24208_s8 + $0x930] ss:$40 sps:$4 sm:$0xff]  }
 0x398   : > { %5451 = vmatpush2.bf16.msra.mxu0 %v21622_v54  ;;  %v21702_v54 = vld [vmem:[%s24208_s8 + $0x3e4] ss:$40 sps:$4 sm:$0xff]  }
 0x399   : > { %5492 = vmatpush2.bf16.msra.mxu1 %v21625_v55  ;;  %5452 = vmatprep.subr.bf16.mxu0 %v21630_v26  ;;  %v21705_v55 = vld [vmem:[%s24208_s8 + $0x8e4] ss:$40 sps:$4 sm:$0xff]   ;;  %v21700_v26 = vld [vmem:[%s24208_s8 + $0x3e0] ss:$40 sps:$4 sm:$0xff]  }
 0x39a   : > { %5493 = vmatprep.subr.bf16.mxu1 %v21633_v27  ;;  %v21703_v27 = vld [vmem:[%s24208_s8 + $0x8e0] ss:$40 sps:$4 sm:$0xff]  }
 0x39c   : > { %5453 = vmatpush2.bf16.msra.mxu0 %v21628_v28  ;;  %v21708_v28 = vld [vmem:[%s24208_s8 + $0x394] ss:$40 sps:$4 sm:$0xff]  }
 0x39d   : > { %5494 = vmatpush2.bf16.msra.mxu1 %v21631_v29  ;;  %5504 = vmatprep.subr.bf16.mxu0 %v21636_v32  ;;  %v21711_v29 = vld [vmem:[%s24208_s8 + $0x894] ss:$40 sps:$4 sm:$0xff]   ;;  %v21706_v32 = vld [vmem:[%s24208_s8 + $0x390] ss:$40 sps:$4 sm:$0xff]  }
 0x39e   : > { %5545 = vmatprep.subr.bf16.mxu1 %v21639_v33  ;;  %v21709_v33 = vld [vmem:[%s24208_s8 + $0x890] ss:$40 sps:$4 sm:$0xff]  }
 0x39f   : > { %v24857_v36 = vpop.f32.mrf.mxu0  ;;  %5455 = vmatmul.mubr.bf16.vlgmr.msra.gmra.mxu0 %v24417_v42 }
 0x3a0   : > { %v24859_v37 = vpop.f32.mrf.mxu1  ;;  %5496 = vmatmul.mubr.bf16.vlgmr.msra.gmra.mxu1 %v24419_v43  ;;  %5505 = vmatpush1.bf16.msra.mxu0 %v21634_v2  ;;  %v21714_v2 = vld [vmem:[%s24208_s8 + $0x344] ss:$40 sps:$4 sm:$0xff]  }
 0x3a1   : > { %5546 = vmatpush1.bf16.msra.mxu1 %v21637_v3  ;;  %v24865_v40 = vpop.f32.mrf.mxu0  ;;  %5506 = vmatprep.subr.bf16.mxu0 %v21642_v34  ;;  %v21717_v3 = vld [vmem:[%s24208_s8 + $0x844] ss:$40 sps:$4 sm:$0xff]   ;;  %v21712_v34 = vld [vmem:[%s24208_s8 + $0x340] ss:$40 sps:$4 sm:$0xff]  }
 0x3a2   : > { %v24867_v6 = vpop.f32.mrf.mxu1  ;;  %5547 = vmatprep.subr.bf16.mxu1 %v21645_v35  ;;  %5536 = vmatprep.mubr.bf16.mxu0 %v24310_v7  ;;  %v21657_v7 = vld [vmem:[%s24208_s8 + $0x664] ss:$40 sps:$4 sm:$0xff]   ;;  %v21715_v35 = vld [vmem:[%s24208_s8 + $0x840] ss:$40 sps:$4 sm:$0xff]  }
 0x3a3   : > { %5577 = vmatprep.mubr.bf16.mxu1 %v24314_v10  ;;  %v5214_v44 = vpop.f32.mrf.mxu0  ;;  %v21652_v10 = vld [vmem:[%s24208_s8 + $0x160] ss:$40 sps:$4 sm:$0xff]  }
 0x3a4   : > { %v5255_v45 = vpop.f32.mrf.mxu1  ;;  %5507 = vmatpush1.bf16.msra.mxu0 %v21640_v38  ;;  %v21720_v38 = vld [vmem:[%s24208_s8 + $0x2f4] ss:$40 sps:$4 sm:$0xff]   ;;  %v21726_v44 = vld [vmem:[%s24208_s8 + $0x2a4] ss:$40 sps:$4 sm:$0xff]  }
 0x3a5   : > { %5548 = vmatpush1.bf16.msra.mxu1 %v21643_v39  ;;  %v5215_v48 = vpop.f32.mrf.mxu0  ;;  %5508 = vmatprep.subr.bf16.mxu0 %v21648_v8  ;;  %v21723_v39 = vld [vmem:[%s24208_s8 + $0x7f4] ss:$40 sps:$4 sm:$0xff]   ;;  %v21718_v8 = vld [vmem:[%s24208_s8 + $0x2f0] ss:$40 sps:$4 sm:$0xff]   ;;  %v21729_v45 = vld [vmem:[%s24208_s8 + $0x7a4] ss:$40 sps:$4 sm:$0xff]  }
 0x3a6   : > { %v5256_v49 = vpop.f32.mrf.mxu1  ;;  %5549 = vmatprep.subr.bf16.mxu1 %v21651_v41  ;;  %v21721_v41 = vld [vmem:[%s24208_s8 + $0x7f0] ss:$40 sps:$4 sm:$0xff]   ;;  %v21732_v48 = vld [vmem:[%s24208_s8 + $0xc54] ss:$40 sps:$4 sm:$0xff]  }
 0x3a7   : > { %v21735_v49 = vld [vmem:[%s24208_s8 + $0x1154] ss:$40 sps:$4 sm:$0xff]  }
 0x3a8   : > { %5509 = vmatpush1.bf16.msra.mxu0 %v21646_v46  ;;  %v21724_v46 = vld [vmem:[%s24208_s8 + $0x2a0] ss:$40 sps:$4 sm:$0xff]  }
 0x3a9   : > { %5550 = vmatpush1.bf16.msra.mxu1 %v21649_v47  ;;  %5510 = vmatprep.subr.bf16.mxu0 %v21654_v50  ;;  %v21727_v47 = vld [vmem:[%s24208_s8 + $0x7a0] ss:$40 sps:$4 sm:$0xff]   ;;  %v21730_v50 = vld [vmem:[%s24208_s8 + $0xc50] ss:$40 sps:$4 sm:$0xff]  }
 0x3aa   : > { %5551 = vmatprep.subr.bf16.mxu1 %v21657_v7  ;;  %v21733_v7 = vld [vmem:[%s24208_s8 + $0x1150] ss:$40 sps:$4 sm:$0xff]  }
 0x3ac   : > { %5511 = vmatpush1.bf16.msra.mxu0 %v21652_v10  ;;  %v21738_v10 = vld [vmem:[%s24208_s8 + $0xc04] ss:$40 sps:$4 sm:$0xff]  }
 0x3ad   : > { %5552 = vmatpush1.bf16.msra.mxu1 %v21655_v51  ;;  %5512 = vmatprep.subr.bf16.mxu0 %v21660_v56  ;;  %v21741_v51 = vld [vmem:[%s24208_s8 + $0x1104] ss:$40 sps:$4 sm:$0xff]   ;;  %v5252_v56 = vadd.f32 %v24859_v37, %v24857_v36  ;;  %v21744_v36 = vld [vmem:[%s24208_s8 + $0xbb4] ss:$40 sps:$4 sm:$0xff]  }
 0x3ae   : > { %5553 = vmatprep.subr.bf16.mxu1 %v21663_v57  ;;  %v21747_v37 = vld [vmem:[%s24208_s8 + $0x10b4] ss:$40 sps:$4 sm:$0xff]  }
 0x3b0   : > { %5513 = vmatpush1.bf16.msra.mxu0 %v21658_v58 }
 0x3b1   : > { %5554 = vmatpush1.bf16.msra.mxu1 %v21661_v60  ;;  %5514 = vmatprep.subr.bf16.mxu0 %v21666_v61  ;;  %v5254_v60 = vadd.f32 %v24867_v6, %v24865_v40 }
 0x3b2   : > { %5555 = vmatprep.subr.bf16.mxu1 %v21669_v63  ;;  %v21736_v63 = vld [vmem:[%s24208_s8 + $0xc00] ss:$40 sps:$4 sm:$0xff]  }
 0x3b4   : > { %5515 = vmatpush1.bf16.msra.mxu0 %v21664_v0  ;;  %v21739_v0 = vld [vmem:[%s24208_s8 + $0x1100] ss:$40 sps:$4 sm:$0xff]  }
 0x3b5   : > { %5556 = vmatpush1.bf16.msra.mxu1 %v21667_v1  ;;  %5516 = vmatprep.subr.bf16.mxu0 %v21672_v4  ;;  %v986_v1 = vld [vmem:[#allocation2 + $0x48] sm:$0xff] }
 0x3b6   : > { %5557 = vmatprep.subr.bf16.mxu1 %v21675_v5 }
 0x3b8   : > { %5517 = vmatpush1.bf16.msra.mxu0 %v21670_v9 }
 0x3b9   : > { %5558 = vmatpush1.bf16.msra.mxu1 %v21673_v11  ;;  %5518 = vmatprep.subr.bf16.mxu0 %v21678_v12 }
 0x3ba   : > { %5559 = vmatprep.subr.bf16.mxu1 %v21681_v13  ;;  %v21742_v13 = vld [vmem:[%s24208_s8 + $0xbb0] ss:$40 sps:$4 sm:$0xff]  }
 0x3bc   : > { %5519 = vmatpush1.bf16.msra.mxu0 %v21676_v14  ;;  %v21745_v14 = vld [vmem:[%s24208_s8 + $0x10b0] ss:$40 sps:$4 sm:$0xff]  }
 0x3bd   : > { %5560 = vmatpush1.bf16.msra.mxu1 %v21679_v15  ;;  %5520 = vmatprep.subr.bf16.mxu0 %v21684_v16 }
 0x3be   : > { %5561 = vmatprep.subr.bf16.mxu1 %v21687_v17 }
 0x3c0   : > { %5521 = vmatpush2.bf16.msra.mxu0 %v21682_v18  ;;  %v21748_v18 = vld [vmem:[%s24208_s8 + $0xb60] ss:$40 sps:$4 sm:$0xff]  }
 0x3c1   : > { %5562 = vmatpush2.bf16.msra.mxu1 %v21685_v19  ;;  %5522 = vmatprep.subr.bf16.mxu0 %v21690_v20  ;;  %v21751_v19 = vld [vmem:[%s24208_s8 + $0x1060] ss:$40 sps:$4 sm:$0xff]   ;;  %v21756_v20 = vld [vmem:[%s24208_s8 + $0xb14] ss:$40 sps:$4 sm:$0xff]  }
 0x3c2   : > { %5563 = vmatprep.subr.bf16.mxu1 %v21693_v21  ;;  %v21759_v21 = vld [vmem:[%s24208_s8 + $0x1014] ss:$40 sps:$4 sm:$0xff]  }
 0x3c4   : > { %5523 = vmatpush2.bf16.msra.mxu0 %v21688_v22  ;;  %v21754_v22 = vld [vmem:[%s24208_s8 + $0xb10] ss:$40 sps:$4 sm:$0xff]  }
 0x3c5   : > { %5564 = vmatpush2.bf16.msra.mxu1 %v21691_v23  ;;  %5524 = vmatprep.subr.bf16.mxu0 %v21696_v52  ;;  %v21757_v23 = vld [vmem:[%s24208_s8 + $0x1010] ss:$40 sps:$4 sm:$0xff]   ;;  %v21762_v52 = vld [vmem:[%s24208_s8 + $0xac4] ss:$40 sps:$4 sm:$0xff]  }
 0x3c6   : > { %5565 = vmatprep.subr.bf16.mxu1 %v21699_v53  ;;  %v21765_v53 = vld [vmem:[%s24208_s8 + $0xfc4] ss:$40 sps:$4 sm:$0xff]  }
 0x3c8   : > { %5525 = vmatpush2.bf16.msra.mxu0 %v21694_v24  ;;  %v21760_v24 = vld [vmem:[%s24208_s8 + $0xac0] ss:$40 sps:$4 sm:$0xff]  }
 0x3c9   : > { %5566 = vmatpush2.bf16.msra.mxu1 %v21697_v25  ;;  %5526 = vmatprep.subr.bf16.mxu0 %v21702_v54  ;;  %v21763_v25 = vld [vmem:[%s24208_s8 + $0xfc0] ss:$40 sps:$4 sm:$0xff]   ;;  %v21768_v54 = vld [vmem:[%s24208_s8 + $0xa74] ss:$40 sps:$4 sm:$0xff]  }
 0x3ca   : > { %5567 = vmatprep.subr.bf16.mxu1 %v21705_v55  ;;  %v21771_v55 = vld [vmem:[%s24208_s8 + $0xf74] ss:$40 sps:$4 sm:$0xff]  }
 0x3cc   : > { %5527 = vmatpush2.bf16.msra.mxu0 %v21700_v26  ;;  %v21766_v26 = vld [vmem:[%s24208_s8 + $0xa70] ss:$40 sps:$4 sm:$0xff]  }
 0x3cd   : > { %5568 = vmatpush2.bf16.msra.mxu1 %v21703_v27  ;;  %5528 = vmatprep.subr.bf16.mxu0 %v21708_v28  ;;  %v21769_v27 = vld [vmem:[%s24208_s8 + $0xf70] ss:$40 sps:$4 sm:$0xff]   ;;  %v21774_v28 = vld [vmem:[%s24208_s8 + $0xa24] ss:$40 sps:$4 sm:$0xff]  }
 0x3ce   : > { %5569 = vmatprep.subr.bf16.mxu1 %v21711_v29  ;;  %v21777_v29 = vld [vmem:[%s24208_s8 + $0xf24] ss:$40 sps:$4 sm:$0xff]  }
 0x3d0   : > { %5529 = vmatpush2.bf16.msra.mxu0 %v21706_v32  ;;  %v21772_v32 = vld [vmem:[%s24208_s8 + $0xa20] ss:$40 sps:$4 sm:$0xff]  }
 0x3d1   : > { %5570 = vmatpush2.bf16.msra.mxu1 %v21709_v33  ;;  %5530 = vmatprep.subr.bf16.mxu0 %v21714_v2  ;;  %v21775_v33 = vld [vmem:[%s24208_s8 + $0xf20] ss:$40 sps:$4 sm:$0xff]   ;;  %v21780_v2 = vld [vmem:[%s24208_s8 + $0xed4] ss:$40 sps:$4 sm:$0xff]  }
 0x3d2   : > { %5571 = vmatprep.subr.bf16.mxu1 %v21717_v3  ;;  %v21783_v3 = vld [vmem:[%s24208_s8 + $0x13d4] ss:$40 sps:$4 sm:$0xff]  }
 0x3d4   : > { %5531 = vmatpush2.bf16.msra.mxu0 %v21712_v34  ;;  %v21778_v34 = vld [vmem:[%s24208_s8 + $0xed0] ss:$40 sps:$4 sm:$0xff]  }
 0x3d5   : > { %5572 = vmatpush2.bf16.msra.mxu1 %v21715_v35  ;;  %5532 = vmatprep.subr.bf16.mxu0 %v21720_v38  ;;  %v21781_v35 = vld [vmem:[%s24208_s8 + $0x13d0] ss:$40 sps:$4 sm:$0xff]   ;;  %v21786_v38 = vld [vmem:[%s24208_s8 + $0xe84] ss:$40 sps:$4 sm:$0xff]  }
 0x3d6   : > { %5573 = vmatprep.subr.bf16.mxu1 %v21723_v39  ;;  %v21789_v39 = vld [vmem:[%s24208_s8 + $0x1384] ss:$40 sps:$4 sm:$0xff]  }
 0x3d8   : > { %5533 = vmatpush2.bf16.msra.mxu0 %v21718_v8  ;;  %v21784_v8 = vld [vmem:[%s24208_s8 + $0xe80] ss:$40 sps:$4 sm:$0xff]  }
 0x3d9   : > { %5574 = vmatpush2.bf16.msra.mxu1 %v21721_v41  ;;  %5534 = vmatprep.subr.bf16.mxu0 %v21726_v44  ;;  %v21787_v41 = vld [vmem:[%s24208_s8 + $0x1380] ss:$40 sps:$4 sm:$0xff]   ;;  %v21792_v44 = vld [vmem:[%s24208_s8 + $0xe34] ss:$40 sps:$4 sm:$0xff]  }
 0x3da   : > { %5575 = vmatprep.subr.bf16.mxu1 %v21729_v45  ;;  %v21795_v45 = vld [vmem:[%s24208_s8 + $0x1334] ss:$40 sps:$4 sm:$0xff]  }
 0x3dc   : > { %5535 = vmatpush2.bf16.msra.mxu0 %v21724_v46  ;;  %v21790_v46 = vld [vmem:[%s24208_s8 + $0xe30] ss:$40 sps:$4 sm:$0xff]  }
 0x3dd   : > { %5576 = vmatpush2.bf16.msra.mxu1 %v21727_v47  ;;  %5586 = vmatprep.subr.bf16.mxu0 %v21732_v48  ;;  %v21793_v47 = vld [vmem:[%s24208_s8 + $0x1330] ss:$40 sps:$4 sm:$0xff]   ;;  %v21798_v48 = vld [vmem:[%s24208_s8 + $0xde4] ss:$40 sps:$4 sm:$0xff]  }
 0x3de   : > { %5627 = vmatprep.subr.bf16.mxu1 %v21735_v49  ;;  %v21801_v49 = vld [vmem:[%s24208_s8 + $0x12e4] ss:$40 sps:$4 sm:$0xff]  }
 0x3df   : > { %v5292_v57 = vpop.f32.mrf.mxu0  ;;  %5537 = vmatmul.mubr.bf16.vlgmr.msra.gmra.mxu0 %v24337_v30 }
 0x3e0   : > { %v5333_v58 = vpop.f32.mrf.mxu1  ;;  %5578 = vmatmul.mubr.bf16.vlgmr.msra.gmra.mxu1 %v24339_v31  ;;  %v5293_v61 = vadd.f32 %v5292_v57, %v5252_v56  ;;  %5587 = vmatpush1.bf16.msra.mxu0 %v21730_v50  ;;  %v987_v31 = vld [vmem:[#allocation2 + $0x28] sm:$0xff]  ;;  %v21796_v50 = vld [vmem:[%s24208_s8 + $0xde0] ss:$40 sps:$4 sm:$0xff]  }
 0x3e1   : > { %5628 = vmatpush1.bf16.msra.mxu1 %v21733_v7  ;;  %v5294_v4 = vpop.f32.mrf.mxu0  ;;  %5588 = vmatprep.subr.bf16.mxu0 %v21738_v10  ;;  %v21799_v7 = vld [vmem:[%s24208_s8 + $0x12e0] ss:$40 sps:$4 sm:$0xff]   ;;  %v21804_v10 = vld [vmem:[%s24208_s8 + $0xd94] ss:$40 sps:$4 sm:$0xff]   ;;  %v21802_v56 = vld [vmem:[%s24208_s8 + $0xd90] ss:$40 sps:$4 sm:$0xff]  }
 0x3e2   : > { %v5335_v5 = vpop.f32.mrf.mxu1  ;;  %5629 = vmatprep.subr.bf16.mxu1 %v21741_v51  ;;  %v5334_v30 = vadd.f32 %v5333_v58, %v5293_v61  ;;  %v5295_v9 = vadd.f32 %v5294_v4, %v5254_v60  ;;  %5618 = vmatprep.mubr.bf16.mxu0 %v24370_v59  ;;  %v21750_v59 = vld [vmem:[%s24208_s8 + $0xb64] ss:$40 sps:$4 sm:$0xff]   ;;  %v21807_v51 = vld [vmem:[%s24208_s8 + $0x1294] ss:$40 sps:$4 sm:$0xff]   ;;  %v21805_v57 = vld [vmem:[%s24208_s8 + $0x1290] ss:$40 sps:$4 sm:$0xff]  }
 0x3e3   : > { %5659 = vmatprep.mubr.bf16.mxu1 %v24374_v62  ;;  %v5296_v40 = vpop.f32.mrf.mxu0  ;;  %v21753_v62 = vld [vmem:[%s24208_s8 + $0x1064] ss:$40 sps:$4 sm:$0xff]   ;;  %v21808_v61 = vld [vmem:[%s24208_s8 + $0xd40] ss:$40 sps:$4 sm:$0xff]   ;;  %v21814_v4 = vld [vmem:[%s24208_s8 + $0xcf0] ss:$40 sps:$4 sm:$0xff]  }
 0x3e4   : > { %v5337_v6 = vpop.f32.mrf.mxu1  ;;  %v5672_v11 = vadd.f32 %v5334_v30, %v986_v1  ;;  %v5336_v12 = vadd.f32 %v5335_v5, %v5295_v9  ;;  %5589 = vmatpush1.bf16.msra.mxu0 %v21736_v63  ;;  %v21810_v58 = vld [vmem:[%s24208_s8 + $0xd44] ss:$40 sps:$4 sm:$0xff]   ;;  %v21811_v63 = vld [vmem:[%s24208_s8 + $0x1240] ss:$40 sps:$4 sm:$0xff]   ;;  %v21819_v1 = vld [vmem:[%s24208_s8 + $0x11f4] ss:$40 sps:$4 sm:$0xff]  }
 0x3e5   : > { %5630 = vmatpush1.bf16.msra.mxu1 %v21739_v0  ;;  %v5297_v15 = vpop.f32.mrf.mxu0  ;;  %5590 = vmatprep.subr.bf16.mxu0 %v21744_v36  ;;  %v21813_v60 = vld [vmem:[%s24208_s8 + $0x1244] ss:$40 sps:$4 sm:$0xff]   ;;  %v21816_v0 = vld [vmem:[%s24208_s8 + $0xcf4] ss:$40 sps:$4 sm:$0xff]   ;;  %v21817_v5 = vld [vmem:[%s24208_s8 + $0x11f0] ss:$40 sps:$4 sm:$0xff]  }
 0x3e6   : > { %v5338_v16 = vpop.f32.mrf.mxu1  ;;  %5631 = vmatprep.subr.bf16.mxu1 %v21747_v37  ;;  %5682 = vst [vmem:[#allocation2 + $0x48] sm:$0xff] %v5672_v11  ;;  %v5673_v17 = vadd.f32 %v5336_v12, %v987_v31  ;;  %v21822_v36 = vld [vmem:[%s24208_s8 + $0xca4] ss:$40 sps:$4 sm:$0xff]   ;;  %v21820_v30 = vld [vmem:[%s24208_s8 + $0xca0] ss:$40 sps:$4 sm:$0xff]  }
 0x3e7   : > { %v21825_v37 = vld [vmem:[%s24208_s8 + $0x11a4] ss:$40 sps:$4 sm:$0xff]   ;;  %v21823_v9 = vld [vmem:[%s24208_s8 + $0x11a0] ss:$40 sps:$4 sm:$0xff]  }
 0x3e8   : > { %5683 = vst [vmem:[#allocation2 + $0x28] sm:$0xff] %v5673_v17  ;;  %5591 = vmatpush1.bf16.msra.mxu0 %v21742_v13 }
 0x3e9   : > { %5632 = vmatpush1.bf16.msra.mxu1 %v21745_v14  ;;  %5592 = vmatprep.subr.bf16.mxu0 %v21750_v59 }
 0x3ea   : > { %5633 = vmatprep.subr.bf16.mxu1 %v21753_v62 }
 0x3ec   : > { %5593 = vmatpush1.bf16.msra.mxu0 %v21748_v18 }
 0x3ed   : > { %5634 = vmatpush1.bf16.msra.mxu1 %v21751_v19  ;;  %5594 = vmatprep.subr.bf16.mxu0 %v21756_v20  ;;  %v988_v19 = vld [vmem:[#allocation2 + $0x8] sm:$0xff] }
 0x3ee   : > { %5635 = vmatprep.subr.bf16.mxu1 %v21759_v21 }
 0x3f0   : > { %5595 = vmatpush1.bf16.msra.mxu0 %v21754_v22 }
 0x3f1   : > { %5636 = vmatpush1.bf16.msra.mxu1 %v21757_v23  ;;  %5596 = vmatprep.subr.bf16.mxu0 %v21762_v52  ;;  %v989_v52 = vld [vmem:[#allocation2 + $0x20] sm:$0xff] }
 0x3f2   : > { %5637 = vmatprep.subr.bf16.mxu1 %v21765_v53 }
 0x3f4   : > { %5597 = vmatpush1.bf16.msra.mxu0 %v21760_v24 }
 0x3f5   : > { %5638 = vmatpush1.bf16.msra.mxu1 %v21763_v25  ;;  %5598 = vmatprep.subr.bf16.mxu0 %v21768_v54 }
 0x3f6   : > { %5639 = vmatprep.subr.bf16.mxu1 %v21771_v55 }
 0x3f8   : > { %5599 = vmatpush1.bf16.msra.mxu0 %v21766_v26 }
 0x3f9   : > { %5640 = vmatpush1.bf16.msra.mxu1 %v21769_v27  ;;  %5600 = vmatprep.subr.bf16.mxu0 %v21774_v28 }
 0x3fa   : > { %5641 = vmatprep.subr.bf16.mxu1 %v21777_v29 }
 0x3fc   : > { %5601 = vmatpush1.bf16.msra.mxu0 %v21772_v32 }
 0x3fd   : > { %5642 = vmatpush1.bf16.msra.mxu1 %v21775_v33  ;;  %5602 = vmatprep.subr.bf16.mxu0 %v21780_v2 }
 0x3fe   : > { %5643 = vmatprep.subr.bf16.mxu1 %v21783_v3 }
 0x400   : > { %5603 = vmatpush2.bf16.msra.mxu0 %v21778_v34 }
 0x401   : > { %5644 = vmatpush2.bf16.msra.mxu1 %v21781_v35  ;;  %5604 = vmatprep.subr.bf16.mxu0 %v21786_v38 }
 0x402   : > { %5645 = vmatprep.subr.bf16.mxu1 %v21789_v39 }
 0x404   : > { %5605 = vmatpush2.bf16.msra.mxu0 %v21784_v8 }
 0x405   : > { %5646 = vmatpush2.bf16.msra.mxu1 %v21787_v41  ;;  %5606 = vmatprep.subr.bf16.mxu0 %v21792_v44  ;;  %v990_v41 = vld [vmem:[#allocation2 + $0x40] sm:$0xff] }
 0x406   : > { %5647 = vmatprep.subr.bf16.mxu1 %v21795_v45 }
 0x408   : > { %5607 = vmatpush2.bf16.msra.mxu0 %v21790_v46 }
 0x409   : > { %5648 = vmatpush2.bf16.msra.mxu1 %v21793_v47  ;;  %5608 = vmatprep.subr.bf16.mxu0 %v21798_v48  ;;  %v991_v48 = vld [vmem:[#allocation2 + $0x38] sm:$0xff] }
 0x40a   : > { %5649 = vmatprep.subr.bf16.mxu1 %v21801_v49 }
 0x40c   : > { %5609 = vmatpush2.bf16.msra.mxu0 %v21796_v50 }
 0x40d   : > { %5650 = vmatpush2.bf16.msra.mxu1 %v21799_v7  ;;  %5610 = vmatprep.subr.bf16.mxu0 %v21804_v10 }
 0x40e   : > { %5651 = vmatprep.subr.bf16.mxu1 %v21807_v51 }
 0x410   : > { %5611 = vmatpush2.bf16.msra.mxu0 %v21802_v56 }
 0x411   : > { %5652 = vmatpush2.bf16.msra.mxu1 %v21805_v57  ;;  %5612 = vmatprep.subr.bf16.mxu0 %v21810_v58 }
 0x412   : > { %5653 = vmatprep.subr.bf16.mxu1 %v21813_v60 }
 0x414   : > { %5613 = vmatpush2.bf16.msra.mxu0 %v21808_v61 }
 0x415   : > { %5654 = vmatpush2.bf16.msra.mxu1 %v21811_v63  ;;  %5614 = vmatprep.subr.bf16.mxu0 %v21816_v0 }
 0x416   : > { %5655 = vmatprep.subr.bf16.mxu1 %v21819_v1 }
 0x418   : > { %5615 = vmatpush2.bf16.msra.mxu0 %v21814_v4 }
 0x419   : > { %5656 = vmatpush2.bf16.msra.mxu1 %v21817_v5  ;;  %5616 = vmatprep.subr.bf16.mxu0 %v21822_v36 }
 0x41a   : > { %5657 = vmatprep.subr.bf16.mxu1 %v21825_v37 }
 0x41c   : > { %5617 = vmatpush2.bf16.msra.mxu0 %v21820_v30 }
 0x41d   : > { %5658 = vmatpush2.bf16.msra.mxu1 %v21823_v9 }
 0x41f   : > { %v5374_v31 = vpop.f32.mrf.mxu0  ;;  %5619 = vmatmul.mubr.bf16.vlgmr.msra.gmra.mxu0 %v24417_v42 }
 0x420   : > { %v5415_v40 = vpop.f32.mrf.mxu1  ;;  %5660 = vmatmul.mubr.bf16.vlgmr.msra.gmra.mxu1 %v24419_v43 }
 0x421   : > { %v5376_v6 = vpop.f32.mrf.mxu0  ;;  %v5416_v16 = vadd.f32 %v5415_v40, %v5374_v31 }
 0x422   : > { %v5417_v11 = vpop.f32.mrf.mxu1 }
 0x423   : > { %v5378_v12 = vpop.f32.mrf.mxu0  ;;  %v5418_v17 = vadd.f32 %v5417_v11, %v5376_v6 }
 0x424   : > { %v5419_v13 = vpop.f32.mrf.mxu1 }
 0x425   : > { %v5379_v14 = vpop.f32.mrf.mxu0 }
 0x426   : > { %v5420_v15 = vpop.f32.mrf.mxu1 }
 0x45f   : > { %v5456_v59 = vpop.f32.mrf.mxu0 }
 0x460   : > { %v5497_v62 = vpop.f32.mrf.mxu1  ;;  %v5457_v18 = vadd.f32 %v5456_v59, %v5416_v16 }
 0x461   : > { %v5458_v20 = vpop.f32.mrf.mxu0 }
 0x462   : > { %v5499_v21 = vpop.f32.mrf.mxu1  ;;  %v5498_v22 = vadd.f32 %v5497_v62, %v5457_v18  ;;  %v5459_v23 = vadd.f32 %v5458_v20, %v5418_v17 }
 0x463   : > { %v5460_v42 = vpop.f32.mrf.mxu0 }
 0x464   : > { %v5501_v53 = vpop.f32.mrf.mxu1  ;;  %v5674_v43 = vadd.f32 %v5498_v22, %v988_v19  ;;  %v5500_v24 = vadd.f32 %v5499_v21, %v5459_v23 }
 0x465   : > { %v5461_v25 = vpop.f32.mrf.mxu0 }
 0x466   : > { %v5502_v54 = vpop.f32.mrf.mxu1  ;;  %5684 = vst [vmem:[#allocation2 + $0x8] sm:$0xff] %v5674_v43  ;;  %v5675_v55 = vadd.f32 %v5500_v24, %v989_v52 }
 0x468   : > { %5685 = vst [vmem:[#allocation2 + $0x20] sm:$0xff] %v5675_v55 }
 0x49f   : > { %v5538_v26 = vpop.f32.mrf.mxu0 }
 0x4a0   : > { %v5579_v27 = vpop.f32.mrf.mxu1 }
 0x4a1   : > { %v5540_v28 = vpop.f32.mrf.mxu0  ;;  %v5580_v34 = vadd.f32 %v5579_v27, %v5538_v26 }
 0x4a2   : > { %v5581_v29 = vpop.f32.mrf.mxu1 }
 0x4a3   : > { %v5542_v32 = vpop.f32.mrf.mxu0  ;;  %v5582_v39 = vadd.f32 %v5581_v29, %v5540_v28 }
 0x4a4   : > { %v5583_v33 = vpop.f32.mrf.mxu1 }
 0x4a5   : > { %v5543_v2 = vpop.f32.mrf.mxu0 }
 0x4a6   : > { %v5584_v3 = vpop.f32.mrf.mxu1 }
 0x4df   : > { %v5620_v35 = vpop.f32.mrf.mxu0 }
 0x4e0   : > { %v5661_v38 = vpop.f32.mrf.mxu1  ;;  %v5621_v8 = vadd.f32 %v5620_v35, %v5580_v34 }
 0x4e1   : > { %v5622_v44 = vpop.f32.mrf.mxu0 }
 0x4e2   : > { %v5663_v45 = vpop.f32.mrf.mxu1  ;;  %v5662_v46 = vadd.f32 %v5661_v38, %v5621_v8  ;;  %v5623_v47 = vadd.f32 %v5622_v44, %v5582_v39 }
 0x4e3   : > { %v5624_v49 = vpop.f32.mrf.mxu0 }
 0x4e4   : > { %v5665_v50 = vpop.f32.mrf.mxu1  ;;  %v5676_v7 = vadd.f32 %v5662_v46, %v990_v41  ;;  %v5664_v10 = vadd.f32 %v5663_v45, %v5623_v47 }
 0x4e5   : > { %v5625_v51 = vpop.f32.mrf.mxu0 }
 0x4e6   : > { %v5666_v56 = vpop.f32.mrf.mxu1  ;;  %5686 = vst [vmem:[#allocation2 + $0x40] sm:$0xff] %v5676_v7  ;;  %v5677_v57 = vadd.f32 %v5664_v10, %v991_v48 }
 0x4e8   : > { %5687 = vst [vmem:[#allocation2 + $0x38] sm:$0xff] %v5677_v57 }
 0x4e9 PF: > { %p18812_p5 = scmp.ne.s32.totalorder %s23832_s19, 3 }
 0x4eb   : > { %5691 = sbr.rel (%p18812_p5) target bundleno = 3233 (0xca1), region = 168 }
 0x4f0   : > { %v21826_v58 = vld [vmem:[#allocation9 + $0x11c] ss:$20 sps:$4 sm:$0xff]   ;;  %v21830_v61 = vld [vmem:[#allocation9 + $0x118] ss:$20 sps:$4 sm:$0xff]   ;;  %v21832_v0 = vld [vmem:[#allocation9 + $0xf4] ss:$20 sps:$4 sm:$0xff]  }
 0x4f1   : > { %v21828_v60 = vld [vmem:[#allocation9 + $0x39c] ss:$20 sps:$4 sm:$0xff]   ;;  %8309 = vmatprep.subr.bf16.mxu0 %v21826_v58  ;;  %v21831_v63 = vld [vmem:[#allocation9 + $0x398] ss:$20 sps:$4 sm:$0xff]   ;;  %v21834_v1 = vld [vmem:[#allocation9 + $0x374] ss:$20 sps:$4 sm:$0xff]  }
 0x4f2   : > { %8350 = vmatprep.subr.bf16.mxu1 %v21828_v60  ;;  %8310 = vmatpush1.bf16.msra.mxu0 %v21830_v61  ;;  %v21836_v4 = vld [vmem:[#allocation9 + $0xf0] ss:$20 sps:$4 sm:$0xff]   ;;  %v21838_v36 = vld [vmem:[#allocation9 + $0xcc] ss:$20 sps:$4 sm:$0xff]   ;;  %v21842_v30 = vld [vmem:[#allocation9 + $0xc8] ss:$20 sps:$4 sm:$0xff]  }
 0x4f3   : > { %8351 = vmatpush1.bf16.msra.mxu1 %v21831_v63  ;;  %8311 = vmatprep.subr.bf16.mxu0 %v21832_v0  ;;  %v21837_v5 = vld [vmem:[#allocation9 + $0x370] ss:$20 sps:$4 sm:$0xff]   ;;  %v21840_v37 = vld [vmem:[#allocation9 + $0x34c] ss:$20 sps:$4 sm:$0xff]   ;;  %v21843_v9 = vld [vmem:[#allocation9 + $0x348] ss:$20 sps:$4 sm:$0xff]  }
 0x4f4   : > { %8352 = vmatprep.subr.bf16.mxu1 %v21834_v1  ;;  %v21844_v31 = vld [vmem:[#allocation9 + $0xa4] ss:$20 sps:$4 sm:$0xff]   ;;  %v21848_v6 = vld [vmem:[#allocation9 + $0xa0] ss:$20 sps:$4 sm:$0xff]   ;;  %v21850_v12 = vld [vmem:[#allocation9 + $0x7c] ss:$20 sps:$4 sm:$0xff]  }
 0x4f5   : > { %v21846_v40 = vld [vmem:[#allocation9 + $0x324] ss:$20 sps:$4 sm:$0xff]   ;;  %v21849_v11 = vld [vmem:[#allocation9 + $0x320] ss:$20 sps:$4 sm:$0xff]   ;;  %v21852_v13 = vld [vmem:[#allocation9 + $0x2fc] ss:$20 sps:$4 sm:$0xff]  }
 0x4f6   : > { %8312 = vmatpush1.bf16.msra.mxu0 %v21836_v4  ;;  %v21854_v14 = vld [vmem:[#allocation9 + $0x78] ss:$20 sps:$4 sm:$0xff]   ;;  %v21856_v16 = vld [vmem:[#allocation9 + $0x54] ss:$20 sps:$4 sm:$0xff]   ;;  %v21860_v62 = vld [vmem:[#allocation9 + $0x50] ss:$20 sps:$4 sm:$0xff]  }
 0x4f7   : > { %8353 = vmatpush1.bf16.msra.mxu1 %v21837_v5  ;;  %8313 = vmatprep.subr.bf16.mxu0 %v21838_v36  ;;  %v21855_v15 = vld [vmem:[#allocation9 + $0x2f8] ss:$20 sps:$4 sm:$0xff]   ;;  %v21858_v59 = vld [vmem:[#allocation9 + $0x2d4] ss:$20 sps:$4 sm:$0xff]   ;;  %v21861_v17 = vld [vmem:[#allocation9 + $0x2d0] ss:$20 sps:$4 sm:$0xff]  }
 0x4f8   : > { %8354 = vmatprep.subr.bf16.mxu1 %v21840_v37  ;;  %v21862_v18 = vld [vmem:[#allocation9 + $0x2c] ss:$20 sps:$4 sm:$0xff]   ;;  %v21866_v20 = vld [vmem:[#allocation9 + $0x28] ss:$20 sps:$4 sm:$0xff]   ;;  %v21868_v22 = vld [vmem:[#allocation9 + $0x4] ss:$20 sps:$4 sm:$0xff]  }
 0x4f9   : > { %v21864_v19 = vld [vmem:[#allocation9 + $0x2ac] ss:$20 sps:$4 sm:$0xff]   ;;  %v21867_v21 = vld [vmem:[#allocation9 + $0x2a8] ss:$20 sps:$4 sm:$0xff]   ;;  %v21870_v23 = vld [vmem:[#allocation9 + $0x284] ss:$20 sps:$4 sm:$0xff]  }
 0x4fa   : > { %8314 = vmatpush1.bf16.msra.mxu0 %v21842_v30  ;;  %v21872_v52 = vld [vmem:[#allocation9] ss:$20 sps:$4 sm:$0xff]   ;;  %v21874_v53 = vld [vmem:[#allocation9 + $0x25c] ss:$20 sps:$4 sm:$0xff]   ;;  %v21878_v24 = vld [vmem:[#allocation9 + $0x258] ss:$20 sps:$4 sm:$0xff]  }
 0x4fb   : > { %8355 = vmatpush1.bf16.msra.mxu1 %v21843_v9  ;;  %8315 = vmatprep.subr.bf16.mxu0 %v21844_v31  ;;  %v21873_v42 = vld [vmem:[#allocation9 + $0x280] ss:$20 sps:$4 sm:$0xff]   ;;  %v21876_v43 = vld [vmem:[#allocation9 + $0x4dc] ss:$20 sps:$4 sm:$0xff]   ;;  %v21879_v25 = vld [vmem:[#allocation9 + $0x4d8] ss:$20 sps:$4 sm:$0xff]  }
 0x4fc   : > { %8356 = vmatprep.subr.bf16.mxu1 %v21846_v40  ;;  %v21880_v54 = vld [vmem:[#allocation9 + $0x234] ss:$20 sps:$4 sm:$0xff]   ;;  %v21884_v26 = vld [vmem:[#allocation9 + $0x230] ss:$20 sps:$4 sm:$0xff]   ;;  %v21886_v28 = vld [vmem:[#allocation9 + $0x20c] ss:$20 sps:$4 sm:$0xff]  }
 0x4fd   : > { %v21882_v55 = vld [vmem:[#allocation9 + $0x4b4] ss:$20 sps:$4 sm:$0xff]   ;;  %v21885_v27 = vld [vmem:[#allocation9 + $0x4b0] ss:$20 sps:$4 sm:$0xff]   ;;  %v21888_v29 = vld [vmem:[#allocation9 + $0x48c] ss:$20 sps:$4 sm:$0xff]  }
 0x4fe   : > { %8316 = vmatpush1.bf16.msra.mxu0 %v21848_v6  ;;  %v21890_v32 = vld [vmem:[#allocation9 + $0x208] ss:$20 sps:$4 sm:$0xff]   ;;  %v21892_v2 = vld [vmem:[#allocation9 + $0x1e4] ss:$20 sps:$4 sm:$0xff]   ;;  %v21896_v35 = vld [vmem:[#allocation9 + $0x1e0] ss:$20 sps:$4 sm:$0xff]  }
 0x4ff   : > { %8357 = vmatpush1.bf16.msra.mxu1 %v21849_v11  ;;  %8317 = vmatprep.subr.bf16.mxu0 %v21850_v12  ;;  %v21891_v33 = vld [vmem:[#allocation9 + $0x488] ss:$20 sps:$4 sm:$0xff]   ;;  %v21894_v3 = vld [vmem:[#allocation9 + $0x464] ss:$20 sps:$4 sm:$0xff]   ;;  %v21897_v8 = vld [vmem:[#allocation9 + $0x460] ss:$20 sps:$4 sm:$0xff]  }
 0x500   : > { %8358 = vmatprep.subr.bf16.mxu1 %v21852_v13  ;;  %v5693_v34 = vld [vmem:[#allocation2] sm:$0xff]  ;;  %v5695_v39 = vld [vmem:[#allocation2 + $0x10] sm:$0xff]  ;;  %v5694_v0 = vld [vmem:[#allocation2 + $0x18] sm:$0xff]  ;;  %vm23703_vm0 = vmmov 0  }
 0x501   : > { %v5703_v38 = vmax.f32 %v5693_v34, 0.0  ;;  %v5705_v41 = vmax.f32 %v5695_v39, 0.0  ;;  %v21898_v44 = vld [vmem:[#allocation9 + $0x1bc] ss:$20 sps:$4 sm:$0xff]   ;;  %v21902_v48 = vld [vmem:[#allocation9 + $0x1b8] ss:$20 sps:$4 sm:$0xff]  }
 0x502   : > { %8318 = vmatpush1.bf16.msra.mxu0 %v21854_v14  ;;  %v21900_v45 = vld [vmem:[#allocation9 + $0x43c] ss:$20 sps:$4 sm:$0xff]   ;;  %v21903_v49 = vld [vmem:[#allocation9 + $0x438] ss:$20 sps:$4 sm:$0xff]   ;;  %v21904_v50 = vld [vmem:[#allocation9 + $0x194] ss:$20 sps:$4 sm:$0xff]  }
 0x503   : > { %8359 = vmatpush1.bf16.msra.mxu1 %v21855_v15  ;;  %8319 = vmatprep.subr.bf16.mxu0 %v21856_v16  ;;  %v25002_v46 = vpack.c.bf16 %v5703_v38, %v5703_v38  ;;  %v25004_v47 = vpack.c.bf16 %v5705_v41, %v5705_v41  ;;  %v21906_v7 = vld [vmem:[#allocation9 + $0x414] ss:$20 sps:$4 sm:$0xff]   ;;  %v21908_v10 = vld [vmem:[#allocation9 + $0x190] ss:$20 sps:$4 sm:$0xff]   ;;  %v21910_v56 = vld [vmem:[#allocation9 + $0x16c] ss:$20 sps:$4 sm:$0xff]  }
 0x504   : > { %8360 = vmatprep.subr.bf16.mxu1 %v21858_v59  ;;  %v21909_v51 = vld [vmem:[#allocation9 + $0x410] ss:$20 sps:$4 sm:$0xff]   ;;  %v21912_v57 = vld [vmem:[#allocation9 + $0x3ec] ss:$20 sps:$4 sm:$0xff]   ;;  %v21914_v58 = vld [vmem:[#allocation9 + $0x168] ss:$20 sps:$4 sm:$0xff]  }
 0x505   : > { %8341 = vmatprep.mubr.bf16.mxu0 %v25002_v46  ;;  %8382 = vmatprep.mubr.bf16.mxu1 %v25004_v47  ;;  %v21915_v60 = vld [vmem:[#allocation9 + $0x3e8] ss:$20 sps:$4 sm:$0xff]   ;;  %v21916_v61 = vld [vmem:[#allocation9 + $0x144] ss:$20 sps:$4 sm:$0xff]   ;;  %v21920_v4 = vld [vmem:[#allocation9 + $0x140] ss:$20 sps:$4 sm:$0xff]  }
 0x506   : > { %8320 = vmatpush1.bf16.msra.mxu0 %v21860_v62  ;;  %v5692_v63 = vld [vmem:[#allocation2 + $0x30] sm:$0xff]  ;;  %v5704_v37 = vmax.f32 %v5694_v0, 0.0  ;;  %v21928_v14 = vld [vmem:[#allocation9 + $0x5f0] ss:$20 sps:$4 sm:$0xff]   ;;  %v21936_v16 = vld [vmem:[#allocation9 + $0x5cc] ss:$20 sps:$4 sm:$0xff]  }
 0x507   : > { %8361 = vmatpush1.bf16.msra.mxu1 %v21861_v17  ;;  %8321 = vmatprep.subr.bf16.mxu0 %v21862_v18  ;;  %v21918_v1 = vld [vmem:[#allocation9 + $0x3c4] ss:$20 sps:$4 sm:$0xff]   ;;  %v21921_v5 = vld [vmem:[#allocation9 + $0x3c0] ss:$20 sps:$4 sm:$0xff]   ;;  %v5702_v36 = vmax.f32 %v5692_v63, 0.0 }
 0x508   : > { %8362 = vmatprep.subr.bf16.mxu1 %v21864_v19  ;;  %v21924_v30 = vld [vmem:[#allocation9 + $0x61c] ss:$20 sps:$4 sm:$0xff]   ;;  %v21922_v40 = vld [vmem:[#allocation9 + $0x618] ss:$20 sps:$4 sm:$0xff]   ;;  %v25010_v11 = vpack.c.bf16 %v5704_v37, %v5704_v37  ;;  %v21930_v12 = vld [vmem:[#allocation9 + $0x5f4] ss:$20 sps:$4 sm:$0xff]  }
 0x509   : > { %v21927_v9 = vld [vmem:[#allocation9 + $0x89c] ss:$20 sps:$4 sm:$0xff]   ;;  %v25008_v31 = vpack.c.bf16 %v5702_v36, %v5702_v36  ;;  %v21925_v6 = vld [vmem:[#allocation9 + $0x898] ss:$20 sps:$4 sm:$0xff]   ;;  %v21933_v13 = vld [vmem:[#allocation9 + $0x874] ss:$20 sps:$4 sm:$0xff]  }
 0x50a   : > { %8322 = vmatpush1.bf16.msra.mxu0 %v21866_v20  ;;  %v21931_v15 = vld [vmem:[#allocation9 + $0x870] ss:$20 sps:$4 sm:$0xff]   ;;  %v21939_v59 = vld [vmem:[#allocation9 + $0x84c] ss:$20 sps:$4 sm:$0xff]   ;;  %v21934_v62 = vld [vmem:[#allocation9 + $0x5c8] ss:$20 sps:$4 sm:$0xff]  }
 0x50b   : > { %8363 = vmatpush1.bf16.msra.mxu1 %v21867_v21  ;;  %8323 = vmatprep.subr.bf16.mxu0 %v21868_v22  ;;  %v21937_v17 = vld [vmem:[#allocation9 + $0x848] ss:$20 sps:$4 sm:$0xff]   ;;  %v21942_v18 = vld [vmem:[#allocation9 + $0x5a4] ss:$20 sps:$4 sm:$0xff]   ;;  %v21940_v20 = vld [vmem:[#allocation9 + $0x5a0] ss:$20 sps:$4 sm:$0xff]  }
 0x50c   : > { %8364 = vmatprep.subr.bf16.mxu1 %v21870_v23  ;;  %v21945_v19 = vld [vmem:[#allocation9 + $0x824] ss:$20 sps:$4 sm:$0xff]   ;;  %v21943_v21 = vld [vmem:[#allocation9 + $0x820] ss:$20 sps:$4 sm:$0xff]   ;;  %v21948_v22 = vld [vmem:[#allocation9 + $0x57c] ss:$20 sps:$4 sm:$0xff]  }
 0x50d   : > { %v21951_v23 = vld [vmem:[#allocation9 + $0x7fc] ss:$20 sps:$4 sm:$0xff]   ;;  %v21964_v38 = vld [vmem:[#allocation9 + $0x500] ss:$20 sps:$4 sm:$0xff]  }
 0x50e   : > { %8324 = vmatpush1.bf16.msra.mxu0 %v21872_v52  ;;  %v21946_v52 = vld [vmem:[#allocation9 + $0x578] ss:$20 sps:$4 sm:$0xff]   ;;  %v21967_v39 = vld [vmem:[#allocation9 + $0x780] ss:$20 sps:$4 sm:$0xff]   ;;  %v21975_v41 = vld [vmem:[#allocation9 + $0x9dc] ss:$20 sps:$4 sm:$0xff]  }
 0x50f   : > { %8365 = vmatpush1.bf16.msra.mxu1 %v21873_v42  ;;  %8325 = vmatprep.subr.bf16.mxu0 %v21874_v53  ;;  %v21949_v42 = vld [vmem:[#allocation9 + $0x7f8] ss:$20 sps:$4 sm:$0xff]   ;;  %v21954_v53 = vld [vmem:[#allocation9 + $0x554] ss:$20 sps:$4 sm:$0xff]   ;;  %v21996_v0 = vld [vmem:[#allocation9 + $0x6bc] ss:$20 sps:$4 sm:$0xff]  }
 0x510   : > { %8366 = vmatprep.subr.bf16.mxu1 %v21876_v43  ;;  %v21957_v43 = vld [vmem:[#allocation9 + $0x7d4] ss:$20 sps:$4 sm:$0xff]  }
 0x511   : > { %v21991_v63 = vld [vmem:[#allocation9 + $0x960] ss:$20 sps:$4 sm:$0xff]  }
 0x512   : > { %8326 = vmatpush2.bf16.msra.mxu0 %v21878_v24  ;;  %v21952_v24 = vld [vmem:[#allocation9 + $0x550] ss:$20 sps:$4 sm:$0xff]   ;;  %v22002_v36 = vld [vmem:[#allocation9 + $0x694] ss:$20 sps:$4 sm:$0xff]  }
 0x513   : > { %8367 = vmatpush2.bf16.msra.mxu1 %v21879_v25  ;;  %8327 = vmatprep.subr.bf16.mxu0 %v21880_v54  ;;  %v21955_v25 = vld [vmem:[#allocation9 + $0x7d0] ss:$20 sps:$4 sm:$0xff]   ;;  %v21960_v54 = vld [vmem:[#allocation9 + $0x52c] ss:$20 sps:$4 sm:$0xff]   ;;  %v22005_v37 = vld [vmem:[#allocation9 + $0x914] ss:$20 sps:$4 sm:$0xff]  }
 0x514   : > { %8368 = vmatprep.subr.bf16.mxu1 %v21882_v55  ;;  %v21963_v55 = vld [vmem:[#allocation9 + $0x7ac] ss:$20 sps:$4 sm:$0xff]  }
 0x516   : > { %8328 = vmatpush2.bf16.msra.mxu0 %v21884_v26  ;;  %v5697_v26 = vld [vmem:[#allocation2 + $0x28] sm:$0xff] }
 0x517   : > { %8369 = vmatpush2.bf16.msra.mxu1 %v21885_v27  ;;  %8329 = vmatprep.subr.bf16.mxu0 %v21886_v28  ;;  %v21958_v27 = vld [vmem:[#allocation9 + $0x528] ss:$20 sps:$4 sm:$0xff]   ;;  %v5707_v28 = vmax.f32 %v5697_v26, 0.0  ;;  %v22032_v26 = vld [vmem:[#allocation9 + $0xacc] ss:$20 sps:$4 sm:$0xff]  }
 0x518   : > { %8370 = vmatprep.subr.bf16.mxu1 %v21888_v29  ;;  %v5699_v29 = vld [vmem:[#allocation2 + $0x20] sm:$0xff] }
 0x519   : > { %v25014_v34 = vpack.c.bf16 %v5707_v28, %v5707_v28 }
 0x51a   : > { %8330 = vmatpush2.bf16.msra.mxu0 %v21890_v32  ;;  %v21961_v32 = vld [vmem:[#allocation9 + $0x7a8] ss:$20 sps:$4 sm:$0xff]  }
 0x51b   : > { %8371 = vmatpush2.bf16.msra.mxu1 %v21891_v33  ;;  %8331 = vmatprep.subr.bf16.mxu0 %v21892_v2  ;;  %v5709_v33 = vmax.f32 %v5699_v29, 0.0  ;;  %v21966_v2 = vld [vmem:[#allocation9 + $0x504] ss:$20 sps:$4 sm:$0xff]   ;;  %v22030_v29 = vld [vmem:[#allocation9 + $0xac8] ss:$20 sps:$4 sm:$0xff]  }
 0x51c   : > { %8372 = vmatprep.subr.bf16.mxu1 %v21894_v3  ;;  %v21969_v3 = vld [vmem:[#allocation9 + $0x784] ss:$20 sps:$4 sm:$0xff]  }
 0x51e   : > { %8332 = vmatpush2.bf16.msra.mxu0 %v21896_v35  ;;  %v25016_v35 = vpack.c.bf16 %v5709_v33, %v5709_v33  ;;  %v22038_v33 = vld [vmem:[#allocation9 + $0xaa4] ss:$20 sps:$4 sm:$0xff]  }
 0x51f   : > { %8373 = vmatpush2.bf16.msra.mxu1 %v21897_v8  ;;  %8333 = vmatprep.subr.bf16.mxu0 %v21898_v44  ;;  %v21972_v8 = vld [vmem:[#allocation9 + $0x75c] ss:$20 sps:$4 sm:$0xff]   ;;  %v21970_v44 = vld [vmem:[#allocation9 + $0x758] ss:$20 sps:$4 sm:$0xff]  }
 0x520   : > { %8374 = vmatprep.subr.bf16.mxu1 %v21900_v45  ;;  %v21973_v45 = vld [vmem:[#allocation9 + $0x9d8] ss:$20 sps:$4 sm:$0xff]  }
 0x522   : > { %8334 = vmatpush2.bf16.msra.mxu0 %v21902_v48  ;;  %v21978_v48 = vld [vmem:[#allocation9 + $0x734] ss:$20 sps:$4 sm:$0xff]  }
 0x523   : > { %8375 = vmatpush2.bf16.msra.mxu1 %v21903_v49  ;;  %8335 = vmatprep.subr.bf16.mxu0 %v21904_v50  ;;  %v21981_v49 = vld [vmem:[#allocation9 + $0x9b4] ss:$20 sps:$4 sm:$0xff]   ;;  %v21976_v50 = vld [vmem:[#allocation9 + $0x730] ss:$20 sps:$4 sm:$0xff]  }
 0x524   : > { %8376 = vmatprep.subr.bf16.mxu1 %v21906_v7  ;;  %v21979_v7 = vld [vmem:[#allocation9 + $0x9b0] ss:$20 sps:$4 sm:$0xff]  }
 0x526   : > { %8336 = vmatpush2.bf16.msra.mxu0 %v21908_v10  ;;  %v21984_v10 = vld [vmem:[#allocation9 + $0x70c] ss:$20 sps:$4 sm:$0xff]  }
 0x527   : > { %8377 = vmatpush2.bf16.msra.mxu1 %v21909_v51  ;;  %8337 = vmatprep.subr.bf16.mxu0 %v21910_v56  ;;  %v21987_v51 = vld [vmem:[#allocation9 + $0x98c] ss:$20 sps:$4 sm:$0xff]   ;;  %v21982_v56 = vld [vmem:[#allocation9 + $0x708] ss:$20 sps:$4 sm:$0xff]  }
 0x528   : > { %8378 = vmatprep.subr.bf16.mxu1 %v21912_v57  ;;  %v21985_v57 = vld [vmem:[#allocation9 + $0x988] ss:$20 sps:$4 sm:$0xff]  }
 0x52a   : > { %8338 = vmatpush2.bf16.msra.mxu0 %v21914_v58  ;;  %v21990_v58 = vld [vmem:[#allocation9 + $0x6e4] ss:$20 sps:$4 sm:$0xff]  }
 0x52b   : > { %8379 = vmatpush2.bf16.msra.mxu1 %v21915_v60  ;;  %8339 = vmatprep.subr.bf16.mxu0 %v21916_v61  ;;  %v21993_v60 = vld [vmem:[#allocation9 + $0x964] ss:$20 sps:$4 sm:$0xff]   ;;  %v21988_v61 = vld [vmem:[#allocation9 + $0x6e0] ss:$20 sps:$4 sm:$0xff]  }
 0x52c   : > { %8380 = vmatprep.subr.bf16.mxu1 %v21918_v1  ;;  %v21999_v1 = vld [vmem:[#allocation9 + $0x93c] ss:$20 sps:$4 sm:$0xff]  }
 0x52e   : > { %8340 = vmatpush2.bf16.msra.mxu0 %v21920_v4  ;;  %v21994_v4 = vld [vmem:[#allocation9 + $0x6b8] ss:$20 sps:$4 sm:$0xff]  }
 0x52f   : > { %8381 = vmatpush2.bf16.msra.mxu1 %v21921_v5  ;;  %8391 = vmatprep.subr.bf16.mxu0 %v21924_v30  ;;  %v21997_v5 = vld [vmem:[#allocation9 + $0x938] ss:$20 sps:$4 sm:$0xff]   ;;  %v22000_v30 = vld [vmem:[#allocation9 + $0x690] ss:$20 sps:$4 sm:$0xff]  }
 0x530   : > { %8432 = vmatprep.subr.bf16.mxu1 %v21927_v9  ;;  %v22003_v9 = vld [vmem:[#allocation9 + $0x910] ss:$20 sps:$4 sm:$0xff]  }
 0x531   : > { %8342 = vmatmul.mubr.bf16.vlgmr.msra.gmra.mxu0 %v25008_v31 }
 0x532   : > { %8383 = vmatmul.mubr.bf16.vlgmr.msra.gmra.mxu1 %v25010_v11  ;;  %8392 = vmatpush1.bf16.msra.mxu0 %v21922_v40  ;;  %v22008_v40 = vld [vmem:[#allocation9 + $0x66c] ss:$20 sps:$4 sm:$0xff]  }
 0x533   : > { %8433 = vmatpush1.bf16.msra.mxu1 %v21925_v6  ;;  %8393 = vmatprep.subr.bf16.mxu0 %v21930_v12  ;;  %v22011_v6 = vld [vmem:[#allocation9 + $0x8ec] ss:$20 sps:$4 sm:$0xff]   ;;  %v22006_v12 = vld [vmem:[#allocation9 + $0x668] ss:$20 sps:$4 sm:$0xff]  }
 0x534   : > { %8434 = vmatprep.subr.bf16.mxu1 %v21933_v13  ;;  %8423 = vmatprep.mubr.bf16.mxu0 %v25014_v34  ;;  %v22009_v13 = vld [vmem:[#allocation9 + $0x8e8] ss:$20 sps:$4 sm:$0xff]  }
 0x535   : > { %8464 = vmatprep.mubr.bf16.mxu1 %v25016_v35 }
 0x536   : > { %8394 = vmatpush1.bf16.msra.mxu0 %v21928_v14  ;;  %v22014_v14 = vld [vmem:[#allocation9 + $0x644] ss:$20 sps:$4 sm:$0xff]  }
 0x537   : > { %8435 = vmatpush1.bf16.msra.mxu1 %v21931_v15  ;;  %8395 = vmatprep.subr.bf16.mxu0 %v21936_v16  ;;  %v5696_v15 = vld [vmem:[#allocation2 + $0x48] sm:$0xff] }
 0x538   : > { %8436 = vmatprep.subr.bf16.mxu1 %v21939_v59  ;;  %v5698_v16 = vld [vmem:[#allocation2 + $0x8] sm:$0xff]  ;;  %v22017_v59 = vld [vmem:[#allocation9 + $0x8c4] ss:$20 sps:$4 sm:$0xff]  }
 0x53a   : > { %8396 = vmatpush1.bf16.msra.mxu0 %v21934_v62  ;;  %v22012_v62 = vld [vmem:[#allocation9 + $0x640] ss:$20 sps:$4 sm:$0xff]  }
 0x53b   : > { %8437 = vmatpush1.bf16.msra.mxu1 %v21937_v17  ;;  %8397 = vmatprep.subr.bf16.mxu0 %v21942_v18  ;;  %v22015_v17 = vld [vmem:[#allocation9 + $0x8c0] ss:$20 sps:$4 sm:$0xff]   ;;  %v5706_v18 = vmax.f32 %v5696_v15, 0.0 }
 0x53c   : > { %8438 = vmatprep.subr.bf16.mxu1 %v21945_v19  ;;  %v5708_v19 = vmax.f32 %v5698_v16, 0.0  ;;  %v22084_v15 = vld [vmem:[#allocation9 + $0xbe0] ss:$20 sps:$4 sm:$0xff]   ;;  %v22087_v16 = vld [vmem:[#allocation9 + $0x1e8] ss:$20 sps:$4 sm:$0xff]  }
 0x53e   : > { %8398 = vmatpush1.bf16.msra.mxu0 %v21940_v20  ;;  %v22020_v20 = vld [vmem:[#allocation9 + $0xb1c] ss:$20 sps:$4 sm:$0xff]  }
 0x53f   : > { %8439 = vmatpush1.bf16.msra.mxu1 %v21943_v21  ;;  %8399 = vmatprep.subr.bf16.mxu0 %v21948_v22  ;;  %v22023_v21 = vld [vmem:[#allocation9 + $0x124] ss:$20 sps:$4 sm:$0xff]   ;;  %v25020_v22 = vpack.c.bf16 %v5706_v18, %v5706_v18  ;;  %v22093_v18 = vld [vmem:[#allocation9 + $0x1c0] ss:$20 sps:$4 sm:$0xff]  }
 0x540   : > { %8440 = vmatprep.subr.bf16.mxu1 %v21951_v23  ;;  %v22018_v23 = vld [vmem:[#allocation9 + $0xb18] ss:$20 sps:$4 sm:$0xff]  }
 0x542   : > { %8400 = vmatpush1.bf16.msra.mxu0 %v21946_v52  ;;  %v22021_v52 = vld [vmem:[#allocation9 + $0x120] ss:$20 sps:$4 sm:$0xff]  }
 0x543   : > { %8441 = vmatpush1.bf16.msra.mxu1 %v21949_v42  ;;  %8401 = vmatprep.subr.bf16.mxu0 %v21954_v53  ;;  %v25022_v42 = vpack.c.bf16 %v5708_v19, %v5708_v19  ;;  %v22026_v53 = vld [vmem:[#allocation9 + $0xaf4] ss:$20 sps:$4 sm:$0xff]  }
 0x544   : > { %8442 = vmatprep.subr.bf16.mxu1 %v21957_v43  ;;  %v22029_v43 = vld [vmem:[#allocation9 + $0xfc] ss:$20 sps:$4 sm:$0xff]   ;;  %v22098_v19 = vld [vmem:[#allocation9 + $0xb94] ss:$20 sps:$4 sm:$0xff]  }
 0x546   : > { %8402 = vmatpush1.bf16.msra.mxu0 %v21952_v24  ;;  %v5701_v24 = vld [vmem:[#allocation2 + $0x38] sm:$0xff] }
 0x547   : > { %8443 = vmatpush1.bf16.msra.mxu1 %v21955_v25  ;;  %8403 = vmatprep.subr.bf16.mxu0 %v21960_v54  ;;  %v5711_v25 = vmax.f32 %v5701_v24, 0.0  ;;  %v22024_v54 = vld [vmem:[#allocation9 + $0xaf0] ss:$20 sps:$4 sm:$0xff]  }
 0x548   : > { %8444 = vmatprep.subr.bf16.mxu1 %v21963_v55  ;;  %v22027_v55 = vld [vmem:[#allocation9 + $0xf8] ss:$20 sps:$4 sm:$0xff]   ;;  %v22105_v24 = vld [vmem:[#allocation9 + $0x170] ss:$20 sps:$4 sm:$0xff]  }
 0x549   : > { %v25026_v28 = vpack.c.bf16 %v5711_v25, %v5711_v25  ;;  %v22110_v25 = vld [vmem:[#allocation9 + $0xb44] ss:$20 sps:$4 sm:$0xff]  }
 0x54a   : > { %8404 = vmatpush1.bf16.msra.mxu0 %v21958_v27  ;;  %v22035_v27 = vld [vmem:[#allocation9 + $0xd4] ss:$20 sps:$4 sm:$0xff]  }
 0x54b   : > { %8445 = vmatpush1.bf16.msra.mxu1 %v21961_v32  ;;  %8405 = vmatprep.subr.bf16.mxu0 %v21966_v2  ;;  %v22033_v32 = vld [vmem:[#allocation9 + $0xd0] ss:$20 sps:$4 sm:$0xff]   ;;  %v22041_v2 = vld [vmem:[#allocation9 + $0xac] ss:$20 sps:$4 sm:$0xff]  }
 0x54c   : > { %8446 = vmatprep.subr.bf16.mxu1 %v21969_v3  ;;  %v22036_v3 = vld [vmem:[#allocation9 + $0xaa0] ss:$20 sps:$4 sm:$0xff]  }
 0x54e   : > { %8406 = vmatpush1.bf16.msra.mxu0 %v21964_v38  ;;  %v22039_v38 = vld [vmem:[#allocation9 + $0xa8] ss:$20 sps:$4 sm:$0xff]  }
 0x54f   : > { %8447 = vmatpush1.bf16.msra.mxu1 %v21967_v39  ;;  %8407 = vmatprep.subr.bf16.mxu0 %v21972_v8  ;;  %v22044_v39 = vld [vmem:[#allocation9 + $0xa7c] ss:$20 sps:$4 sm:$0xff]   ;;  %v22047_v8 = vld [vmem:[#allocation9 + $0x84] ss:$20 sps:$4 sm:$0xff]  }
 0x550   : > { %8448 = vmatprep.subr.bf16.mxu1 %v21975_v41  ;;  %v22042_v41 = vld [vmem:[#allocation9 + $0xa78] ss:$20 sps:$4 sm:$0xff]  }
 0x552   : > { %8408 = vmatpush2.bf16.msra.mxu0 %v21970_v44  ;;  %v22045_v44 = vld [vmem:[#allocation9 + $0x80] ss:$20 sps:$4 sm:$0xff]  }
 0x553   : > { %8449 = vmatpush2.bf16.msra.mxu1 %v21973_v45  ;;  %8409 = vmatprep.subr.bf16.mxu0 %v21978_v48  ;;  %v22050_v45 = vld [vmem:[#allocation9 + $0xa54] ss:$20 sps:$4 sm:$0xff]   ;;  %v22053_v48 = vld [vmem:[#allocation9 + $0x5c] ss:$20 sps:$4 sm:$0xff]  }
 0x554   : > { %8450 = vmatprep.subr.bf16.mxu1 %v21981_v49  ;;  %v22048_v49 = vld [vmem:[#allocation9 + $0xa50] ss:$20 sps:$4 sm:$0xff]  }
 0x556   : > { %8410 = vmatpush2.bf16.msra.mxu0 %v21976_v50  ;;  %v22051_v50 = vld [vmem:[#allocation9 + $0x58] ss:$20 sps:$4 sm:$0xff]  }
 0x557   : > { %8451 = vmatpush2.bf16.msra.mxu1 %v21979_v7  ;;  %8411 = vmatprep.subr.bf16.mxu0 %v21984_v10  ;;  %v22056_v7 = vld [vmem:[#allocation9 + $0xa2c] ss:$20 sps:$4 sm:$0xff]   ;;  %v22059_v10 = vld [vmem:[#allocation9 + $0x34] ss:$20 sps:$4 sm:$0xff]  }
 0x558   : > { %8452 = vmatprep.subr.bf16.mxu1 %v21987_v51  ;;  %v22054_v51 = vld [vmem:[#allocation9 + $0xa28] ss:$20 sps:$4 sm:$0xff]  }
 0x55a   : > { %8412 = vmatpush2.bf16.msra.mxu0 %v21982_v56  ;;  %v22057_v56 = vld [vmem:[#allocation9 + $0x30] ss:$20 sps:$4 sm:$0xff]  }
 0x55b   : > { %8453 = vmatpush2.bf16.msra.mxu1 %v21985_v57  ;;  %8413 = vmatprep.subr.bf16.mxu0 %v21990_v58  ;;  %v22062_v57 = vld [vmem:[#allocation9 + $0xa04] ss:$20 sps:$4 sm:$0xff]   ;;  %v22065_v58 = vld [vmem:[#allocation9 + $0xc] ss:$20 sps:$4 sm:$0xff]  }
 0x55c   : > { %8454 = vmatprep.subr.bf16.mxu1 %v21993_v60  ;;  %v22060_v60 = vld [vmem:[#allocation9 + $0xa00] ss:$20 sps:$4 sm:$0xff]  }
 0x55e   : > { %8414 = vmatpush2.bf16.msra.mxu0 %v21988_v61  ;;  %v22063_v61 = vld [vmem:[#allocation9 + $0x8] ss:$20 sps:$4 sm:$0xff]  }
 0x55f   : > { %8455 = vmatpush2.bf16.msra.mxu1 %v21991_v63  ;;  %8415 = vmatprep.subr.bf16.mxu0 %v21996_v0  ;;  %v22068_v63 = vld [vmem:[#allocation9 + $0xc5c] ss:$20 sps:$4 sm:$0xff]   ;;  %v22071_v0 = vld [vmem:[#allocation9 + $0x264] ss:$20 sps:$4 sm:$0xff]  }
 0x560   : > { %8456 = vmatprep.subr.bf16.mxu1 %v21999_v1  ;;  %v22066_v1 = vld [vmem:[#allocation9 + $0xc58] ss:$20 sps:$4 sm:$0xff]  }
 0x562   : > { %8416 = vmatpush2.bf16.msra.mxu0 %v21994_v4  ;;  %v22069_v4 = vld [vmem:[#allocation9 + $0x260] ss:$20 sps:$4 sm:$0xff]  }
 0x563   : > { %8457 = vmatpush2.bf16.msra.mxu1 %v21997_v5  ;;  %8417 = vmatprep.subr.bf16.mxu0 %v22002_v36  ;;  %v22074_v5 = vld [vmem:[#allocation9 + $0xc34] ss:$20 sps:$4 sm:$0xff]   ;;  %v22077_v36 = vld [vmem:[#allocation9 + $0x23c] ss:$20 sps:$4 sm:$0xff]  }
 0x564   : > { %8458 = vmatprep.subr.bf16.mxu1 %v22005_v37  ;;  %v22072_v37 = vld [vmem:[#allocation9 + $0xc30] ss:$20 sps:$4 sm:$0xff]  }
 0x566   : > { %8418 = vmatpush2.bf16.msra.mxu0 %v22000_v30  ;;  %v22075_v30 = vld [vmem:[#allocation9 + $0x238] ss:$20 sps:$4 sm:$0xff]  }
 0x567   : > { %8459 = vmatpush2.bf16.msra.mxu1 %v22003_v9  ;;  %8419 = vmatprep.subr.bf16.mxu0 %v22008_v40  ;;  %v22080_v9 = vld [vmem:[#allocation9 + $0xc0c] ss:$20 sps:$4 sm:$0xff]   ;;  %v22083_v40 = vld [vmem:[#allocation9 + $0x214] ss:$20 sps:$4 sm:$0xff]  }
 0x568   : > { %8460 = vmatprep.subr.bf16.mxu1 %v22011_v6  ;;  %v22078_v6 = vld [vmem:[#allocation9 + $0xc08] ss:$20 sps:$4 sm:$0xff]  }
 0x56a   : > { %8420 = vmatpush2.bf16.msra.mxu0 %v22006_v12  ;;  %v22081_v12 = vld [vmem:[#allocation9 + $0x210] ss:$20 sps:$4 sm:$0xff]  }
 0x56b   : > { %8461 = vmatpush2.bf16.msra.mxu1 %v22009_v13  ;;  %8421 = vmatprep.subr.bf16.mxu0 %v22014_v14  ;;  %v22086_v13 = vld [vmem:[#allocation9 + $0xbe4] ss:$20 sps:$4 sm:$0xff]   ;;  %v22089_v14 = vld [vmem:[#allocation9 + $0x1ec] ss:$20 sps:$4 sm:$0xff]  }
 0x56c   : > { %8462 = vmatprep.subr.bf16.mxu1 %v22017_v59  ;;  %v22092_v59 = vld [vmem:[#allocation9 + $0xbbc] ss:$20 sps:$4 sm:$0xff]  }
 0x56e   : > { %8422 = vmatpush2.bf16.msra.mxu0 %v22012_v62  ;;  %v22095_v62 = vld [vmem:[#allocation9 + $0x1c4] ss:$20 sps:$4 sm:$0xff]  }
 0x56f   : > { %8463 = vmatpush2.bf16.msra.mxu1 %v22015_v17  ;;  %8473 = vmatprep.subr.bf16.mxu0 %v22020_v20  ;;  %v22090_v17 = vld [vmem:[#allocation9 + $0xbb8] ss:$20 sps:$4 sm:$0xff]   ;;  %v22101_v20 = vld [vmem:[#allocation9 + $0x19c] ss:$20 sps:$4 sm:$0xff]  }
 0x570   : > { %8514 = vmatprep.subr.bf16.mxu1 %v22023_v21  ;;  %v22096_v21 = vld [vmem:[#allocation9 + $0xb90] ss:$20 sps:$4 sm:$0xff]  }
 0x571   : > { %8424 = vmatmul.mubr.bf16.vlgmr.msra.gmra.mxu0 %v25020_v22 }
 0x572   : > { %8465 = vmatmul.mubr.bf16.vlgmr.msra.gmra.mxu1 %v25022_v42  ;;  %8474 = vmatpush1.bf16.msra.mxu0 %v22018_v23  ;;  %v22099_v23 = vld [vmem:[#allocation9 + $0x198] ss:$20 sps:$4 sm:$0xff]  }
 0x573   : > { %8515 = vmatpush1.bf16.msra.mxu1 %v22021_v52  ;;  %8475 = vmatprep.subr.bf16.mxu0 %v22026_v53  ;;  %v22104_v52 = vld [vmem:[#allocation9 + $0xb6c] ss:$20 sps:$4 sm:$0xff]   ;;  %v22107_v53 = vld [vmem:[#allocation9 + $0x174] ss:$20 sps:$4 sm:$0xff]  }
 0x574   : > { %8516 = vmatprep.subr.bf16.mxu1 %v22029_v43  ;;  %8546 = vmatprep.mubr.bf16.mxu1 %v25002_v46  ;;  %v22102_v43 = vld [vmem:[#allocation9 + $0xb68] ss:$20 sps:$4 sm:$0xff]  }
 0x575   : > { %8505 = vmatprep.mubr.bf16.mxu0 %v25026_v28 }
 0x576   : > { %8476 = vmatpush1.bf16.msra.mxu0 %v22024_v54  ;;  %v5700_v54 = vld [vmem:[#allocation2 + $0x40] sm:$0xff] }
 0x577   : > { %8517 = vmatpush1.bf16.msra.mxu1 %v22027_v55  ;;  %8477 = vmatprep.subr.bf16.mxu0 %v22032_v26  ;;  %v22113_v55 = vld [vmem:[#allocation9 + $0x14c] ss:$20 sps:$4 sm:$0xff]  }
 0x578   : > { %8518 = vmatprep.subr.bf16.mxu1 %v22035_v27  ;;  %v22108_v26 = vld [vmem:[#allocation9 + $0xb40] ss:$20 sps:$4 sm:$0xff]   ;;  %v5710_v27 = vmax.f32 %v5700_v54, 0.0 }
 0x579   : > { %v22185_v54 = vld [vmem:[#allocation9 + $0x6ec] ss:$20 sps:$4 sm:$0xff]  }
 0x57a   : > { %8478 = vmatpush1.bf16.msra.mxu0 %v22030_v29  ;;  %v22111_v29 = vld [vmem:[#allocation9 + $0x148] ss:$20 sps:$4 sm:$0xff]  }
 0x57b   : > { %8519 = vmatpush1.bf16.msra.mxu1 %v22033_v32  ;;  %8479 = vmatprep.subr.bf16.mxu0 %v22038_v33  ;;  %v22116_v32 = vld [vmem:[#allocation9 + $0x3a4] ss:$20 sps:$4 sm:$0xff]  }
 0x57c   : > { %8520 = vmatprep.subr.bf16.mxu1 %v22041_v2  ;;  %v22119_v33 = vld [vmem:[#allocation9 + $0x624] ss:$20 sps:$4 sm:$0xff]   ;;  %v25030_v2 = vpack.c.bf16 %v5710_v27, %v5710_v27 }
 0x57d   : > { %v22188_v27 = vld [vmem:[#allocation9 + $0x444] ss:$20 sps:$4 sm:$0xff]  }
 0x57e   : > { %8480 = vmatpush1.bf16.msra.mxu0 %v22036_v3  ;;  %v22114_v3 = vld [vmem:[#allocation9 + $0x3a0] ss:$20 sps:$4 sm:$0xff]  }
 0x57f   : > { %8521 = vmatpush1.bf16.msra.mxu1 %v22039_v38  ;;  %8481 = vmatprep.subr.bf16.mxu0 %v22044_v39  ;;  %v22117_v38 = vld [vmem:[#allocation9 + $0x620] ss:$20 sps:$4 sm:$0xff]   ;;  %v22122_v39 = vld [vmem:[#allocation9 + $0x37c] ss:$20 sps:$4 sm:$0xff]  }
 0x580   : > { %8522 = vmatprep.subr.bf16.mxu1 %v22047_v8  ;;  %v22125_v8 = vld [vmem:[#allocation9 + $0x5fc] ss:$20 sps:$4 sm:$0xff]  }
 0x582   : > { %8482 = vmatpush1.bf16.msra.mxu0 %v22042_v41  ;;  %v22120_v41 = vld [vmem:[#allocation9 + $0x378] ss:$20 sps:$4 sm:$0xff]  }
 0x583   : > { %8523 = vmatpush1.bf16.msra.mxu1 %v22045_v44  ;;  %8483 = vmatprep.subr.bf16.mxu0 %v22050_v45  ;;  %v22123_v44 = vld [vmem:[#allocation9 + $0x5f8] ss:$20 sps:$4 sm:$0xff]   ;;  %v22128_v45 = vld [vmem:[#allocation9 + $0x354] ss:$20 sps:$4 sm:$0xff]  }
 0x584   : > { %8524 = vmatprep.subr.bf16.mxu1 %v22053_v48  ;;  %v22131_v48 = vld [vmem:[#allocation9 + $0x5d4] ss:$20 sps:$4 sm:$0xff]  }
 0x586   : > { %8484 = vmatpush1.bf16.msra.mxu0 %v22048_v49  ;;  %v22126_v49 = vld [vmem:[#allocation9 + $0x350] ss:$20 sps:$4 sm:$0xff]  }
 0x587   : > { %8525 = vmatpush1.bf16.msra.mxu1 %v22051_v50  ;;  %8485 = vmatprep.subr.bf16.mxu0 %v22056_v7  ;;  %v22129_v50 = vld [vmem:[#allocation9 + $0x5d0] ss:$20 sps:$4 sm:$0xff]   ;;  %v22134_v7 = vld [vmem:[#allocation9 + $0x32c] ss:$20 sps:$4 sm:$0xff]  }
 0x588   : > { %8526 = vmatprep.subr.bf16.mxu1 %v22059_v10  ;;  %v22137_v10 = vld [vmem:[#allocation9 + $0x5ac] ss:$20 sps:$4 sm:$0xff]  }
 0x58a   : > { %8486 = vmatpush1.bf16.msra.mxu0 %v22054_v51  ;;  %v22132_v51 = vld [vmem:[#allocation9 + $0x328] ss:$20 sps:$4 sm:$0xff]  }
 0x58b   : > { %8527 = vmatpush1.bf16.msra.mxu1 %v22057_v56  ;;  %8487 = vmatprep.subr.bf16.mxu0 %v22062_v57  ;;  %v22135_v56 = vld [vmem:[#allocation9 + $0x5a8] ss:$20 sps:$4 sm:$0xff]   ;;  %v22140_v57 = vld [vmem:[#allocation9 + $0x304] ss:$20 sps:$4 sm:$0xff]  }
 0x58c   : > { %8528 = vmatprep.subr.bf16.mxu1 %v22065_v58  ;;  %v22143_v58 = vld [vmem:[#allocation9 + $0x584] ss:$20 sps:$4 sm:$0xff]  }
 0x58e   : > { %8488 = vmatpush1.bf16.msra.mxu0 %v22060_v60  ;;  %v22138_v60 = vld [vmem:[#allocation9 + $0x300] ss:$20 sps:$4 sm:$0xff]  }
 0x58f   : > { %8529 = vmatpush1.bf16.msra.mxu1 %v22063_v61  ;;  %8489 = vmatprep.subr.bf16.mxu0 %v22068_v63  ;;  %v6204_v61 = vlaneseq  ;;  %v22141_v63 = vld [vmem:[#allocation9 + $0x580] ss:$20 sps:$4 sm:$0xff]  }
 0x590   : > { %8530 = vmatprep.subr.bf16.mxu1 %v22071_v0  ;;  %v22146_v0 = vld [vmem:[#allocation9 + $0x2dc] ss:$20 sps:$4 sm:$0xff]  }
 0x592   : > { %8490 = vmatpush2.bf16.msra.mxu0 %v22066_v1  ;;  %v22149_v1 = vld [vmem:[#allocation9 + $0x55c] ss:$20 sps:$4 sm:$0xff]  }
 0x593   : > { %8531 = vmatpush2.bf16.msra.mxu1 %v22069_v4  ;;  %8491 = vmatprep.subr.bf16.mxu0 %v22074_v5  ;;  %v22144_v4 = vld [vmem:[#allocation9 + $0x2d8] ss:$20 sps:$4 sm:$0xff]   ;;  %v25036_v5 = vshrl.u32 %v6204_v61, 7 }
 0x594   : > { %8532 = vmatprep.subr.bf16.mxu1 %v22077_v36  ;;  %v22147_v36 = vld [vmem:[#allocation9 + $0x558] ss:$20 sps:$4 sm:$0xff]  }
 0x596   : > { %8492 = vmatpush2.bf16.msra.mxu0 %v22072_v37  ;;  %v22152_v37 = vld [vmem:[#allocation9 + $0x2b4] ss:$20 sps:$4 sm:$0xff]  }
 0x597   : > { %8533 = vmatpush2.bf16.msra.mxu1 %v22075_v30  ;;  %8493 = vmatprep.subr.bf16.mxu0 %v22080_v9  ;;  %v22155_v30 = vld [vmem:[#allocation9 + $0x534] ss:$20 sps:$4 sm:$0xff]   ;;  %v22150_v9 = vld [vmem:[#allocation9 + $0x2b0] ss:$20 sps:$4 sm:$0xff]  }
 0x598   : > { %8534 = vmatprep.subr.bf16.mxu1 %v22083_v40  ;;  %v25039_v40 = vsub.s32 0, %v25036_v5 }
 0x59a   : > { %8494 = vmatpush2.bf16.msra.mxu0 %v22078_v6  ;;  %v22153_v6 = vld [vmem:[#allocation9 + $0x530] ss:$20 sps:$4 sm:$0xff]  }
 0x59b   : > { %8535 = vmatpush2.bf16.msra.mxu1 %v22081_v12  ;;  %8495 = vmatprep.subr.bf16.mxu0 %v22086_v13  ;;  %v22158_v12 = vld [vmem:[#allocation9 + $0x28c] ss:$20 sps:$4 sm:$0xff]   ;;  %v25042_v13 = vsub.s32 1, %v25036_v5 }
 0x59c   : > { %8536 = vmatprep.subr.bf16.mxu1 %v22089_v14  ;;  %v22161_v14 = vld [vmem:[#allocation9 + $0x50c] ss:$20 sps:$4 sm:$0xff]  }
 0x59e   : > { %8496 = vmatpush2.bf16.msra.mxu0 %v22084_v15  ;;  %v22156_v15 = vld [vmem:[#allocation9 + $0x288] ss:$20 sps:$4 sm:$0xff]  }
 0x59f   : > { %8537 = vmatpush2.bf16.msra.mxu1 %v22087_v16  ;;  %8497 = vmatprep.subr.bf16.mxu0 %v22092_v59  ;;  %v22159_v16 = vld [vmem:[#allocation9 + $0x508] ss:$20 sps:$4 sm:$0xff]   ;;  %v22164_v59 = vld [vmem:[#allocation9 + $0x4e4] ss:$20 sps:$4 sm:$0xff]  }
 0x5a0   : > { %8538 = vmatprep.subr.bf16.mxu1 %v22095_v62  ;;  %v22167_v62 = vld [vmem:[#allocation9 + $0x764] ss:$20 sps:$4 sm:$0xff]  }
 0x5a2   : > { %8498 = vmatpush2.bf16.msra.mxu0 %v22090_v17  ;;  %v22162_v17 = vld [vmem:[#allocation9 + $0x4e0] ss:$20 sps:$4 sm:$0xff]  }
 0x5a3   : > { %8539 = vmatpush2.bf16.msra.mxu1 %v22093_v18  ;;  %8499 = vmatprep.subr.bf16.mxu0 %v22098_v19  ;;  %v22165_v18 = vld [vmem:[#allocation9 + $0x760] ss:$20 sps:$4 sm:$0xff]   ;;  %v22170_v19 = vld [vmem:[#allocation9 + $0x4bc] ss:$20 sps:$4 sm:$0xff]  }
 0x5a4   : > { %8540 = vmatprep.subr.bf16.mxu1 %v22101_v20  ;;  %v22173_v20 = vld [vmem:[#allocation9 + $0x73c] ss:$20 sps:$4 sm:$0xff]  }
 0x5a6   : > { %8500 = vmatpush2.bf16.msra.mxu0 %v22096_v21  ;;  %v22168_v21 = vld [vmem:[#allocation9 + $0x4b8] ss:$20 sps:$4 sm:$0xff]  }
 0x5a7   : > { %8541 = vmatpush2.bf16.msra.mxu1 %v22099_v23  ;;  %8501 = vmatprep.subr.bf16.mxu0 %v22104_v52  ;;  %v22171_v23 = vld [vmem:[#allocation9 + $0x738] ss:$20 sps:$4 sm:$0xff]   ;;  %v22176_v52 = vld [vmem:[#allocation9 + $0x494] ss:$20 sps:$4 sm:$0xff]  }
 0x5a8   : > { %8542 = vmatprep.subr.bf16.mxu1 %v22107_v53  ;;  %v22179_v53 = vld [vmem:[#allocation9 + $0x714] ss:$20 sps:$4 sm:$0xff]  }
 0x5aa   : > { %8502 = vmatpush2.bf16.msra.mxu0 %v22102_v43  ;;  %v22174_v43 = vld [vmem:[#allocation9 + $0x490] ss:$20 sps:$4 sm:$0xff]  }
 0x5ab   : > { %8543 = vmatpush2.bf16.msra.mxu1 %v22105_v24  ;;  %8503 = vmatprep.subr.bf16.mxu0 %v22110_v25  ;;  %v22177_v24 = vld [vmem:[#allocation9 + $0x710] ss:$20 sps:$4 sm:$0xff]   ;;  %v22182_v25 = vld [vmem:[#allocation9 + $0x46c] ss:$20 sps:$4 sm:$0xff]  }
 0x5ac   : > { %8544 = vmatprep.subr.bf16.mxu1 %v22113_v55  ;;  %v22180_v55 = vld [vmem:[#allocation9 + $0x468] ss:$20 sps:$4 sm:$0xff]  }
 0x5ae   : > { %8504 = vmatpush2.bf16.msra.mxu0 %v22108_v26  ;;  %v22183_v26 = vld [vmem:[#allocation9 + $0x6e8] ss:$20 sps:$4 sm:$0xff]  }
 0x5af   : > { %8545 = vmatpush2.bf16.msra.mxu1 %v22111_v29  ;;  %8555 = vmatprep.subr.bf16.mxu0 %v22116_v32  ;;  %v22191_v29 = vld [vmem:[#allocation9 + $0x6c4] ss:$20 sps:$4 sm:$0xff]   ;;  %v22186_v32 = vld [vmem:[#allocation9 + $0x440] ss:$20 sps:$4 sm:$0xff]  }
 0x5b0   : > { %8596 = vmatprep.subr.bf16.mxu1 %v22119_v33  ;;  %v22189_v33 = vld [vmem:[#allocation9 + $0x6c0] ss:$20 sps:$4 sm:$0xff]  }
 0x5b1   : > { %8506 = vmatmul.mubr.bf16.vlgmr.msra.gmra.mxu0 %v25030_v2 }
 0x5b2   : > { %8547 = vmatmul.mubr.bf16.vlgmr.msra.gmra.mxu1 %v25008_v31  ;;  %8556 = vmatpush1.bf16.msra.mxu0 %v22114_v3  ;;  %v22194_v3 = vld [vmem:[#allocation9 + $0x41c] ss:$20 sps:$4 sm:$0xff]  }
 0x5b3   : > { %8597 = vmatpush1.bf16.msra.mxu1 %v22117_v38  ;;  %8557 = vmatprep.subr.bf16.mxu0 %v22122_v39  ;;  %v22197_v38 = vld [vmem:[#allocation9 + $0x69c] ss:$20 sps:$4 sm:$0xff]   ;;  %v22192_v39 = vld [vmem:[#allocation9 + $0x418] ss:$20 sps:$4 sm:$0xff]  }
 0x5b4   : > { %8598 = vmatprep.subr.bf16.mxu1 %v22125_v8  ;;  %8587 = vmatprep.mubr.bf16.mxu0 %v25004_v47  ;;  %v22195_v8 = vld [vmem:[#allocation9 + $0x698] ss:$20 sps:$4 sm:$0xff]  }
 0x5b5   : > { %8628 = vmatprep.mubr.bf16.mxu1 %v25014_v34 }
 0x5b6   : > { %8558 = vmatpush1.bf16.msra.mxu0 %v22120_v41  ;;  %v22200_v41 = vld [vmem:[#allocation9 + $0x3f4] ss:$20 sps:$4 sm:$0xff]  }
 0x5b7   : > { %8599 = vmatpush1.bf16.msra.mxu1 %v22123_v44  ;;  %8559 = vmatprep.subr.bf16.mxu0 %v22128_v45  ;;  %v22203_v44 = vld [vmem:[#allocation9 + $0x674] ss:$20 sps:$4 sm:$0xff]   ;;  %v22198_v45 = vld [vmem:[#allocation9 + $0x3f0] ss:$20 sps:$4 sm:$0xff]  }
 0x5b8   : > { %8600 = vmatprep.subr.bf16.mxu1 %v22131_v48  ;;  %v22201_v48 = vld [vmem:[#allocation9 + $0x670] ss:$20 sps:$4 sm:$0xff]  }
 0x5ba   : > { %8560 = vmatpush1.bf16.msra.mxu0 %v22126_v49  ;;  %v22206_v49 = vld [vmem:[#allocation9 + $0x3cc] ss:$20 sps:$4 sm:$0xff]  }
 0x5bb   : > { %8601 = vmatpush1.bf16.msra.mxu1 %v22129_v50  ;;  %8561 = vmatprep.subr.bf16.mxu0 %v22134_v7  ;;  %v22209_v50 = vld [vmem:[#allocation9 + $0x64c] ss:$20 sps:$4 sm:$0xff]   ;;  %v22204_v7 = vld [vmem:[#allocation9 + $0x3c8] ss:$20 sps:$4 sm:$0xff]  }
 0x5bc   : > { %8602 = vmatprep.subr.bf16.mxu1 %v22137_v10  ;;  %v22207_v10 = vld [vmem:[#allocation9 + $0x648] ss:$20 sps:$4 sm:$0xff]  }
 0x5be   : > { %8562 = vmatpush1.bf16.msra.mxu0 %v22132_v51  ;;  %v6192_v51 = vld [vmem:[#allocation11] sm:$0x1f] }
 0x5bf   : > { %8603 = vmatpush1.bf16.msra.mxu1 %v22135_v56  ;;  %8563 = vmatprep.subr.bf16.mxu0 %v22140_v57  ;;  %v22212_v56 = vld [vmem:[#allocation9 + $0x8a4] ss:$20 sps:$4 sm:$0xff]   ;;  %v6207_v61 = vrot.slane %v6192_v51, %v25039_v40 }
 0x5c0   : > { %8604 = vmatprep.subr.bf16.mxu1 %v22143_v58  ;;  %v22215_v57 = vld [vmem:[#allocation9 + $0xb24] ss:$20 sps:$4 sm:$0xff]   ;;  %v22210_v58 = vld [vmem:[#allocation9 + $0x8a0] ss:$20 sps:$4 sm:$0xff]  }
 0x5c2   : > { %8564 = vmatpush1.bf16.msra.mxu0 %v22138_v60  ;;  %v22213_v60 = vld [vmem:[#allocation9 + $0xb20] ss:$20 sps:$4 sm:$0xff]  }
 0x5c3   : > { %8605 = vmatpush1.bf16.msra.mxu1 %v22141_v63  ;;  %8565 = vmatprep.subr.bf16.mxu0 %v22146_v0  ;;  %v22218_v63 = vld [vmem:[#allocation9 + $0x87c] ss:$20 sps:$4 sm:$0xff]  }
 0x5c4   : > { %8606 = vmatprep.subr.bf16.mxu1 %v22149_v1  ;;  %v22221_v0 = vld [vmem:[#allocation9 + $0xafc] ss:$20 sps:$4 sm:$0xff]   ;;  %v6211_v1 = vrot.slane %v6192_v51, %v25042_v13 }
 0x5c5   : > { %v22266_v51 = vld [vmem:[#allocation9 + $0x9bc] ss:$20 sps:$4 sm:$0xff]  }
 0x5c6   : > { %8566 = vmatpush1.bf16.msra.mxu0 %v22144_v4  ;;  %v22216_v4 = vld [vmem:[#allocation9 + $0x878] ss:$20 sps:$4 sm:$0xff]  }
 0x5c7   : > { %8607 = vmatpush1.bf16.msra.mxu1 %v22147_v36  ;;  %8567 = vmatprep.subr.bf16.mxu0 %v22152_v37 }
 0x5c8   : > { %8608 = vmatprep.subr.bf16.mxu1 %v22155_v30  ;;  %v22219_v30 = vld [vmem:[#allocation9 + $0xaf8] ss:$20 sps:$4 sm:$0xff]  }
 0x5ca   : > { %8568 = vmatpush1.bf16.msra.mxu0 %v22150_v9 }
 0x5cb   : > { %8609 = vmatpush1.bf16.msra.mxu1 %v22153_v6  ;;  %8569 = vmatprep.subr.bf16.mxu0 %v22158_v12  ;;  %v22224_v6 = vld [vmem:[#allocation9 + $0x854] ss:$20 sps:$4 sm:$0xff]  }
 0x5cc   : > { %8610 = vmatprep.subr.bf16.mxu1 %v22161_v14 }
 0x5ce   : > { %8570 = vmatpush1.bf16.msra.mxu0 %v22156_v15  ;;  %v22227_v15 = vld [vmem:[#allocation9 + $0xad4] ss:$20 sps:$4 sm:$0xff]  }
 0x5cf   : > { %8611 = vmatpush1.bf16.msra.mxu1 %v22159_v16  ;;  %8571 = vmatprep.subr.bf16.mxu0 %v22164_v59 }
 0x5d0   : > { %8612 = vmatprep.subr.bf16.mxu1 %v22167_v62  ;;  %v22222_v62 = vld [vmem:[#allocation9 + $0x850] ss:$20 sps:$4 sm:$0xff]  }
 0x5d2   : > { %8572 = vmatpush2.bf16.msra.mxu0 %v22162_v17 }
 0x5d3   : > { %8613 = vmatpush2.bf16.msra.mxu1 %v22165_v18  ;;  %8573 = vmatprep.subr.bf16.mxu0 %v22170_v19  ;;  %v22225_v18 = vld [vmem:[#allocation9 + $0xad0] ss:$20 sps:$4 sm:$0xff]  }
 0x5d4   : > { %8614 = vmatprep.subr.bf16.mxu1 %v22173_v20 }
 0x5d6   : > { %8574 = vmatpush2.bf16.msra.mxu0 %v22168_v21  ;;  %v22230_v21 = vld [vmem:[#allocation9 + $0x82c] ss:$20 sps:$4 sm:$0xff]  }
 0x5d7   : > { %8615 = vmatpush2.bf16.msra.mxu1 %v22171_v23  ;;  %8575 = vmatprep.subr.bf16.mxu0 %v22176_v52  ;;  %v22233_v52 = vld [vmem:[#allocation9 + $0xaac] ss:$20 sps:$4 sm:$0xff]  }
 0x5d8   : > { %8616 = vmatprep.subr.bf16.mxu1 %v22179_v53 }
 0x5da   : > { %8576 = vmatpush2.bf16.msra.mxu0 %v22174_v43  ;;  %v22228_v43 = vld [vmem:[#allocation9 + $0x828] ss:$20 sps:$4 sm:$0xff]  }
 0x5db   : > { %8617 = vmatpush2.bf16.msra.mxu1 %v22177_v24  ;;  %8577 = vmatprep.subr.bf16.mxu0 %v22182_v25  ;;  %v22231_v24 = vld [vmem:[#allocation9 + $0xaa8] ss:$20 sps:$4 sm:$0xff]   ;;  %v22236_v25 = vld [vmem:[#allocation9 + $0x804] ss:$20 sps:$4 sm:$0xff]  }
 0x5dc   : > { %8618 = vmatprep.subr.bf16.mxu1 %v22185_v54  ;;  %v22239_v54 = vld [vmem:[#allocation9 + $0xa84] ss:$20 sps:$4 sm:$0xff]  }
 0x5de   : > { %8578 = vmatpush2.bf16.msra.mxu0 %v22180_v55  ;;  %v22234_v55 = vld [vmem:[#allocation9 + $0x800] ss:$20 sps:$4 sm:$0xff]  }
 0x5df   : > { %8619 = vmatpush2.bf16.msra.mxu1 %v22183_v26  ;;  %8579 = vmatprep.subr.bf16.mxu0 %v22188_v27  ;;  %v22237_v26 = vld [vmem:[#allocation9 + $0xa80] ss:$20 sps:$4 sm:$0xff]   ;;  %v22242_v27 = vld [vmem:[#allocation9 + $0x7dc] ss:$20 sps:$4 sm:$0xff]  }
 0x5e0   : > { %8620 = vmatprep.subr.bf16.mxu1 %v22191_v29  ;;  %v22245_v29 = vld [vmem:[#allocation9 + $0xa5c] ss:$20 sps:$4 sm:$0xff]  }
 0x5e2   : > { %8580 = vmatpush2.bf16.msra.mxu0 %v22186_v32  ;;  %v22240_v32 = vld [vmem:[#allocation9 + $0x7d8] ss:$20 sps:$4 sm:$0xff]  }
 0x5e3   : > { %8621 = vmatpush2.bf16.msra.mxu1 %v22189_v33  ;;  %8581 = vmatprep.subr.bf16.mxu0 %v22194_v3  ;;  %v22243_v33 = vld [vmem:[#allocation9 + $0xa58] ss:$20 sps:$4 sm:$0xff]   ;;  %v22248_v3 = vld [vmem:[#allocation9 + $0x7b4] ss:$20 sps:$4 sm:$0xff]  }
 0x5e4   : > { %8622 = vmatprep.subr.bf16.mxu1 %v22197_v38  ;;  %v22251_v38 = vld [vmem:[#allocation9 + $0xa34] ss:$20 sps:$4 sm:$0xff]  }
 0x5e6   : > { %8582 = vmatpush2.bf16.msra.mxu0 %v22192_v39  ;;  %v22246_v39 = vld [vmem:[#allocation9 + $0x7b0] ss:$20 sps:$4 sm:$0xff]  }
 0x5e7   : > { %8623 = vmatpush2.bf16.msra.mxu1 %v22195_v8  ;;  %8583 = vmatprep.subr.bf16.mxu0 %v22200_v41  ;;  %v22249_v8 = vld [vmem:[#allocation9 + $0xa30] ss:$20 sps:$4 sm:$0xff]   ;;  %v22254_v41 = vld [vmem:[#allocation9 + $0x78c] ss:$20 sps:$4 sm:$0xff]  }
 0x5e8   : > { %8624 = vmatprep.subr.bf16.mxu1 %v22203_v44  ;;  %v22257_v44 = vld [vmem:[#allocation9 + $0xa0c] ss:$20 sps:$4 sm:$0xff]  }
 0x5ea   : > { %8584 = vmatpush2.bf16.msra.mxu0 %v22198_v45  ;;  %v22252_v45 = vld [vmem:[#allocation9 + $0x788] ss:$20 sps:$4 sm:$0xff]  }
 0x5eb   : > { %8625 = vmatpush2.bf16.msra.mxu1 %v22201_v48  ;;  %8585 = vmatprep.subr.bf16.mxu0 %v22206_v49  ;;  %v22255_v48 = vld [vmem:[#allocation9 + $0xa08] ss:$20 sps:$4 sm:$0xff]   ;;  %v22260_v49 = vld [vmem:[#allocation9 + $0x9e4] ss:$20 sps:$4 sm:$0xff]  }
 0x5ec   : > { %8626 = vmatprep.subr.bf16.mxu1 %v22209_v50  ;;  %v22263_v50 = vld [vmem:[#allocation9 + $0xc64] ss:$20 sps:$4 sm:$0xff]  }
 0x5ee   : > { %8586 = vmatpush2.bf16.msra.mxu0 %v22204_v7  ;;  %v22258_v7 = vld [vmem:[#allocation9 + $0x9e0] ss:$20 sps:$4 sm:$0xff]  }
 0x5ef   : > { %8627 = vmatpush2.bf16.msra.mxu1 %v22207_v10  ;;  %8637 = vmatprep.subr.bf16.mxu0 %v22212_v56  ;;  %v22261_v10 = vld [vmem:[#allocation9 + $0xc60] ss:$20 sps:$4 sm:$0xff]   ;;  %v22269_v56 = vld [vmem:[#allocation9 + $0xc3c] ss:$20 sps:$4 sm:$0xff]  }
 0x5f0   : > { %8678 = vmatprep.subr.bf16.mxu1 %v22215_v57  ;;  %v22264_v57 = vld [vmem:[#allocation9 + $0x9b8] ss:$20 sps:$4 sm:$0xff]  }
 0x5f1   : > { %v8343_v36 = vpop.f32.mrf.mxu0  ;;  %8588 = vmatmul.mubr.bf16.vlgmr.msra.gmra.mxu0 %v25010_v11 }
 0x5f2   : > { %8629 = vmatmul.mubr.bf16.vlgmr.msra.gmra.mxu1 %v25020_v22  ;;  %v8384_v37 = vpop.f32.mrf.mxu1  ;;  %v8344_v9 = vadd.f32 %v8343_v36, %v6207_v61  ;;  %8638 = vmatpush1.bf16.msra.mxu0 %v22210_v58  ;;  %v22267_v58 = vld [vmem:[#allocation9 + $0xc38] ss:$20 sps:$4 sm:$0xff]   ;;  %v22275_v61 = vld [vmem:[#allocation9 + $0xc14] ss:$20 sps:$4 sm:$0xff]  }
 0x5f3   : > { %8679 = vmatpush1.bf16.msra.mxu1 %v22213_v60  ;;  %v8345_v12 = vpop.f32.mrf.mxu0  ;;  %8639 = vmatprep.subr.bf16.mxu0 %v22218_v63  ;;  %v22272_v60 = vld [vmem:[#allocation9 + $0x994] ss:$20 sps:$4 sm:$0xff]   ;;  %v22270_v63 = vld [vmem:[#allocation9 + $0x990] ss:$20 sps:$4 sm:$0xff]  }
 0x5f4   : > { %v8386_v14 = vpop.f32.mrf.mxu1  ;;  %8680 = vmatprep.subr.bf16.mxu1 %v22221_v0  ;;  %v8346_v16 = vadd.f32 %v8345_v12, %v6211_v1  ;;  %v25048_v59 = vadd.f32 %v8384_v37, %v8344_v9  ;;  %8669 = vmatprep.mubr.bf16.mxu0 %v25016_v35  ;;  %v22273_v0 = vld [vmem:[#allocation9 + $0xc10] ss:$20 sps:$4 sm:$0xff]   ;;  %v22278_v1 = vld [vmem:[#allocation9 + $0x96c] ss:$20 sps:$4 sm:$0xff]   ;;  %v22276_v36 = vld [vmem:[#allocation9 + $0x968] ss:$20 sps:$4 sm:$0xff]  }
 0x5f5   : > { %8710 = vmatprep.mubr.bf16.mxu1 %v25026_v28  ;;  %v8347_v17 = vpop.f32.mrf.mxu0  ;;  %v22279_v37 = vld [vmem:[#allocation9 + $0xbe8] ss:$20 sps:$4 sm:$0xff]   ;;  %v22287_v9 = vld [vmem:[#allocation9 + $0xbc4] ss:$20 sps:$4 sm:$0xff]   ;;  %v22285_v12 = vld [vmem:[#allocation9 + $0xbc0] ss:$20 sps:$4 sm:$0xff]  }
 0x5f6   : > { %v8388_v19 = vpop.f32.mrf.mxu1  ;;  %v25052_v20 = vadd.f32 %v8386_v14, %v8346_v16  ;;  %8640 = vmatpush1.bf16.msra.mxu0 %v22216_v4  ;;  %v22281_v4 = vld [vmem:[#allocation9 + $0xbec] ss:$20 sps:$4 sm:$0xff]   ;;  %v22290_v14 = vld [vmem:[#allocation9 + $0x91c] ss:$20 sps:$4 sm:$0xff]   ;;  %v22296_v17 = vld [vmem:[#allocation9 + $0x8f4] ss:$20 sps:$4 sm:$0xff]  }
 0x5f7   : > { %8681 = vmatpush1.bf16.msra.mxu1 %v22219_v30  ;;  %v8348_v23 = vpop.f32.mrf.mxu0  ;;  %8641 = vmatprep.subr.bf16.mxu0 %v22224_v6  ;;  %v22284_v30 = vld [vmem:[#allocation9 + $0x944] ss:$20 sps:$4 sm:$0xff]   ;;  %v22282_v6 = vld [vmem:[#allocation9 + $0x940] ss:$20 sps:$4 sm:$0xff]  }
 0x5f8   : > { %8682 = vmatprep.subr.bf16.mxu1 %v22227_v15  ;;  %v8389_v53 = vpop.f32.mrf.mxu1  ;;  %v22293_v15 = vld [vmem:[#allocation9 + $0xb9c] ss:$20 sps:$4 sm:$0xff]   ;;  %v22288_v16 = vld [vmem:[#allocation9 + $0x918] ss:$20 sps:$4 sm:$0xff]  }
 0x5f9   : > { %v22294_v19 = vld [vmem:[#allocation9 + $0x8f0] ss:$20 sps:$4 sm:$0xff]   ;;  %v22302_v23 = vld [vmem:[#allocation9 + $0x8cc] ss:$20 sps:$4 sm:$0xff]   ;;  %v22300_v53 = vld [vmem:[#allocation9 + $0x8c8] ss:$20 sps:$4 sm:$0xff]  }
 0x5fa   : > { %8642 = vmatpush1.bf16.msra.mxu0 %v22222_v62  ;;  %v22291_v62 = vld [vmem:[#allocation9 + $0xb98] ss:$20 sps:$4 sm:$0xff]  }
 0x5fb   : > { %8683 = vmatpush1.bf16.msra.mxu1 %v22225_v18  ;;  %8643 = vmatprep.subr.bf16.mxu0 %v22230_v21  ;;  %v22299_v18 = vld [vmem:[#allocation9 + $0xb74] ss:$20 sps:$4 sm:$0xff]   ;;  %v22297_v21 = vld [vmem:[#allocation9 + $0xb70] ss:$20 sps:$4 sm:$0xff]  }
 0x5fc   : > { %8684 = vmatprep.subr.bf16.mxu1 %v22233_v52  ;;  %v22305_v52 = vld [vmem:[#allocation9 + $0xb4c] ss:$20 sps:$4 sm:$0xff]  }
 0x5fe   : > { %8644 = vmatpush1.bf16.msra.mxu0 %v22228_v43  ;;  %v22303_v43 = vld [vmem:[#allocation9 + $0xb48] ss:$20 sps:$4 sm:$0xff]  }
 0x5ff   : > { %8685 = vmatpush1.bf16.msra.mxu1 %v22231_v24  ;;  %8645 = vmatprep.subr.bf16.mxu0 %v22236_v25  ;;  %v22306_v24 = vld [vmem:[#allocation9 + $0x268] ss:$20 sps:$4 sm:$0xff]  }
 0x600   : > { %8686 = vmatprep.subr.bf16.mxu1 %v22239_v54  ;;  %v22307_v25 = vld [vmem:[#allocation9 + $0x4e8] ss:$20 sps:$4 sm:$0xff]  }
 0x601   : > { %v22308_v54 = vld [vmem:[#allocation9 + $0x128] ss:$20 sps:$4 sm:$0xff]  }
 0x602   : > { %8646 = vmatpush1.bf16.msra.mxu0 %v22234_v55  ;;  %v22309_v55 = vld [vmem:[#allocation9 + $0x3a8] ss:$20 sps:$4 sm:$0xff]  }
 0x603   : > { %8687 = vmatpush1.bf16.msra.mxu1 %v22237_v26  ;;  %8647 = vmatprep.subr.bf16.mxu0 %v22242_v27  ;;  %v22310_v26 = vld [vmem:[#allocation9 + $0x240] ss:$20 sps:$4 sm:$0xff]  }
 0x604   : > { %8688 = vmatprep.subr.bf16.mxu1 %v22245_v29  ;;  %v22311_v27 = vld [vmem:[#allocation9 + $0x4c0] ss:$20 sps:$4 sm:$0xff]  }
 0x605   : > { %v22312_v29 = vld [vmem:[#allocation9 + $0x100] ss:$20 sps:$4 sm:$0xff]  }
 0x606   : > { %8648 = vmatpush1.bf16.msra.mxu0 %v22240_v32  ;;  %v22313_v32 = vld [vmem:[#allocation9 + $0x380] ss:$20 sps:$4 sm:$0xff]  }
 0x607   : > { %8689 = vmatpush1.bf16.msra.mxu1 %v22243_v33  ;;  %8649 = vmatprep.subr.bf16.mxu0 %v22248_v3 }
 0x608   : > { %8690 = vmatprep.subr.bf16.mxu1 %v22251_v38  ;;  %v22314_v38 = vld [vmem:[#allocation9 + $0x218] ss:$20 sps:$4 sm:$0xff]  }
 0x60a   : > { %8650 = vmatpush1.bf16.msra.mxu0 %v22246_v39  ;;  %v22315_v39 = vld [vmem:[#allocation9 + $0x498] ss:$20 sps:$4 sm:$0xff]  }
 0x60b   : > { %8691 = vmatpush1.bf16.msra.mxu1 %v22249_v8  ;;  %8651 = vmatprep.subr.bf16.mxu0 %v22254_v41 }
 0x60c   : > { %8692 = vmatprep.subr.bf16.mxu1 %v22257_v44 }
 0x60e   : > { %8652 = vmatpush1.bf16.msra.mxu0 %v22252_v45 }
 0x60f   : > { %8693 = vmatpush1.bf16.msra.mxu1 %v22255_v48  ;;  %8653 = vmatprep.subr.bf16.mxu0 %v22260_v49  ;;  %v22316_v48 = vld [vmem:[#allocation9 + $0xd8] ss:$20 sps:$4 sm:$0xff]  }
 0x610   : > { %8694 = vmatprep.subr.bf16.mxu1 %v22263_v50  ;;  %v22317_v49 = vld [vmem:[#allocation9 + $0x358] ss:$20 sps:$4 sm:$0xff]  }
 0x612   : > { %8654 = vmatpush2.bf16.msra.mxu0 %v22258_v7 }
 0x613   : > { %8695 = vmatpush2.bf16.msra.mxu1 %v22261_v10  ;;  %8655 = vmatprep.subr.bf16.mxu0 %v22266_v51  ;;  %v22318_v10 = vld [vmem:[#allocation9 + $0x1f0] ss:$20 sps:$4 sm:$0xff]  }
 0x614   : > { %8696 = vmatprep.subr.bf16.mxu1 %v22269_v56  ;;  %v22319_v51 = vld [vmem:[#allocation9 + $0x470] ss:$20 sps:$4 sm:$0xff]  }
 0x616   : > { %8656 = vmatpush2.bf16.msra.mxu0 %v22264_v57  ;;  %v22320_v57 = vld [vmem:[#allocation9 + $0xb0] ss:$20 sps:$4 sm:$0xff]  }
 0x617   : > { %8697 = vmatpush2.bf16.msra.mxu1 %v22267_v58  ;;  %8657 = vmatprep.subr.bf16.mxu0 %v22272_v60  ;;  %v22321_v58 = vld [vmem:[#allocation9 + $0x330] ss:$20 sps:$4 sm:$0xff]   ;;  %v22322_v60 = vld [vmem:[#allocation9 + $0x1c8] ss:$20 sps:$4 sm:$0xff]  }
 0x618   : > { %8698 = vmatprep.subr.bf16.mxu1 %v22275_v61  ;;  %v22323_v61 = vld [vmem:[#allocation9 + $0x448] ss:$20 sps:$4 sm:$0xff]  }
 0x61a   : > { %8658 = vmatpush2.bf16.msra.mxu0 %v22270_v63  ;;  %v22326_v63 = vld [vmem:[#allocation9 + $0x1a0] ss:$20 sps:$4 sm:$0xff]  }
 0x61b   : > { %8699 = vmatpush2.bf16.msra.mxu1 %v22273_v0  ;;  %8659 = vmatprep.subr.bf16.mxu0 %v22278_v1  ;;  %v22327_v0 = vld [vmem:[#allocation9 + $0x420] ss:$20 sps:$4 sm:$0xff]  }
 0x61c   : > { %8700 = vmatprep.subr.bf16.mxu1 %v22281_v4  ;;  %v22328_v1 = vld [vmem:[#allocation9 + $0x60] ss:$20 sps:$4 sm:$0xff]  }
 0x61d   : > { %v22329_v4 = vld [vmem:[#allocation9 + $0x2e0] ss:$20 sps:$4 sm:$0xff]  }
 0x61e   : > { %8660 = vmatpush2.bf16.msra.mxu0 %v22276_v36  ;;  %v22330_v36 = vld [vmem:[#allocation9 + $0x178] ss:$20 sps:$4 sm:$0xff]  }
 0x61f   : > { %8701 = vmatpush2.bf16.msra.mxu1 %v22279_v37  ;;  %8661 = vmatprep.subr.bf16.mxu0 %v22284_v30  ;;  %v22331_v37 = vld [vmem:[#allocation9 + $0x3f8] ss:$20 sps:$4 sm:$0xff]  }
 0x620   : > { %8702 = vmatprep.subr.bf16.mxu1 %v22287_v9  ;;  %v22332_v30 = vld [vmem:[#allocation9 + $0x38] ss:$20 sps:$4 sm:$0xff]  }
 0x621   : > { %v22333_v9 = vld [vmem:[#allocation9 + $0x2b8] ss:$20 sps:$4 sm:$0xff]  }
 0x622   : > { %8662 = vmatpush2.bf16.msra.mxu0 %v22282_v6  ;;  %v22334_v6 = vld [vmem:[#allocation9 + $0x150] ss:$20 sps:$4 sm:$0xff]  }
 0x623   : > { %8703 = vmatpush2.bf16.msra.mxu1 %v22285_v12  ;;  %8663 = vmatprep.subr.bf16.mxu0 %v22290_v14  ;;  %v22335_v12 = vld [vmem:[#allocation9 + $0x3d0] ss:$20 sps:$4 sm:$0xff]  }
 0x624   : > { %8704 = vmatprep.subr.bf16.mxu1 %v22293_v15  ;;  %v22336_v14 = vld [vmem:[#allocation9 + $0x10] ss:$20 sps:$4 sm:$0xff]  }
 0x625   : > { %v22337_v15 = vld [vmem:[#allocation9 + $0x290] ss:$20 sps:$4 sm:$0xff]  }
 0x626   : > { %8664 = vmatpush2.bf16.msra.mxu0 %v22288_v16  ;;  %v22338_v16 = vld [vmem:[#allocation9 + $0x768] ss:$20 sps:$4 sm:$0xff]  }
 0x627   : > { %8705 = vmatpush2.bf16.msra.mxu1 %v22291_v62  ;;  %8665 = vmatprep.subr.bf16.mxu0 %v22296_v17  ;;  %v22339_v62 = vld [vmem:[#allocation9 + $0x9e8] ss:$20 sps:$4 sm:$0xff]  }
 0x628   : > { %8706 = vmatprep.subr.bf16.mxu1 %v22299_v18  ;;  %v22340_v17 = vld [vmem:[#allocation9 + $0x628] ss:$20 sps:$4 sm:$0xff]  }
 0x629   : > { %v22341_v18 = vld [vmem:[#allocation9 + $0x8a8] ss:$20 sps:$4 sm:$0xff]  }
 0x62a   : > { %8666 = vmatpush2.bf16.msra.mxu0 %v22294_v19  ;;  %v22342_v19 = vld [vmem:[#allocation9 + $0x740] ss:$20 sps:$4 sm:$0xff]  }
 0x62b   : > { %8707 = vmatpush2.bf16.msra.mxu1 %v22297_v21  ;;  %8667 = vmatprep.subr.bf16.mxu0 %v22302_v23  ;;  %v22343_v21 = vld [vmem:[#allocation9 + $0x9c0] ss:$20 sps:$4 sm:$0xff]  }
 0x62c   : > { %8708 = vmatprep.subr.bf16.mxu1 %v22305_v52  ;;  %v22344_v23 = vld [vmem:[#allocation9 + $0x600] ss:$20 sps:$4 sm:$0xff]  }
 0x62d   : > { %v22345_v52 = vld [vmem:[#allocation9 + $0x880] ss:$20 sps:$4 sm:$0xff]  }
 0x62e   : > { %8668 = vmatpush2.bf16.msra.mxu0 %v22300_v53  ;;  %v22346_v53 = vld [vmem:[#allocation9 + $0x718] ss:$20 sps:$4 sm:$0xff]  }
 0x62f   : > { %8709 = vmatpush2.bf16.msra.mxu1 %v22303_v43  ;;  %20363 = vmatprep.subr.bf16.mxu0 %v22306_v24  ;;  %v22347_v43 = vld [vmem:[#allocation9 + $0x998] ss:$20 sps:$4 sm:$0xff]  }
 0x630   : > { %20385 = vmatprep.subr.bf16.mxu1 %v22307_v25  ;;  %v22348_v24 = vld [vmem:[#allocation9 + $0x5d8] ss:$20 sps:$4 sm:$0xff]  }
 0x631   : > { %v8425_v33 = vpop.f32.mrf.mxu0  ;;  %8670 = vmatmul.mubr.bf16.vlgmr.msra.gmra.mxu0 %v25022_v42  ;;  %v22349_v25 = vld [vmem:[#allocation9 + $0x858] ss:$20 sps:$4 sm:$0xff]  }
 0x632   : > { %8711 = vmatmul.mubr.bf16.vlgmr.msra.gmra.mxu1 %v25030_v2  ;;  %v8466_v3 = vpop.f32.mrf.mxu1  ;;  %v8426_v8 = vadd.f32 %v8425_v33, %v25048_v59  ;;  %20364 = vmatpush3.bf16.msra.mxu0 %v22308_v54  ;;  %v22350_v54 = vld [vmem:[#allocation9 + $0x6f0] ss:$20 sps:$4 sm:$0xff]   ;;  %v22358_v33 = vld [vmem:[#allocation9 + $0x6a0] ss:$20 sps:$4 sm:$0xff]  }
 0x633   : > { %20386 = vmatpush3.bf16.msra.mxu1 %v22309_v55  ;;  %v25057_v41 = vpop.f32.mrf.mxu0  ;;  %20365 = vmatprep.subr.bf16.mxu0 %v22310_v26  ;;  %v22351_v55 = vld [vmem:[#allocation9 + $0x970] ss:$20 sps:$4 sm:$0xff]   ;;  %v22354_v26 = vld [vmem:[#allocation9 + $0x6c8] ss:$20 sps:$4 sm:$0xff]  }
 0x634   : > { %v25059_v44 = vpop.f32.mrf.mxu1  ;;  %20387 = vmatprep.subr.bf16.mxu1 %v22311_v27  ;;  %v25061_v45 = vadd.f32 %v8466_v3, %v8426_v8  ;;  %8751 = vmatprep.mubr.bf16.mxu0 %v25002_v46  ;;  %v22324_v46 = vld [vmem:[#allocation9 + $0x88] ss:$20 sps:$4 sm:$0xff]   ;;  %v22361_v3 = vld [vmem:[#allocation9 + $0x7e0] ss:$20 sps:$4 sm:$0xff]   ;;  %v22364_v8 = vld [vmem:[#allocation9 + $0x538] ss:$20 sps:$4 sm:$0xff]  }
 0x635   : > { %8791 = vmatprep.mubr.bf16.mxu1 %v25004_v47  ;;  %v8429_v50 = vpop.f32.mrf.mxu0  ;;  %v22325_v47 = vld [vmem:[#allocation9 + $0x308] ss:$20 sps:$4 sm:$0xff]  }
 0x636   : > { %v8470_v7 = vpop.f32.mrf.mxu1  ;;  %20366 = vmatpush3.bf16.msra.mxu0 %v22312_v29  ;;  %v22355_v27 = vld [vmem:[#allocation9 + $0x948] ss:$20 sps:$4 sm:$0xff]   ;;  %v22367_v50 = vld [vmem:[#allocation9 + $0x8d0] ss:$20 sps:$4 sm:$0xff]  }
 0x637   : > { %20388 = vmatpush3.bf16.msra.mxu1 %v22313_v32  ;;  %v8430_v59 = vpop.f32.mrf.mxu0  ;;  %20367 = vmatprep.subr.bf16.mxu0 %v22314_v38  ;;  %v22356_v29 = vld [vmem:[#allocation9 + $0x588] ss:$20 sps:$4 sm:$0xff]   ;;  %v22362_v38 = vld [vmem:[#allocation9 + $0x678] ss:$20 sps:$4 sm:$0xff]   ;;  %v22368_v7 = vld [vmem:[#allocation9 + $0x510] ss:$20 sps:$4 sm:$0xff]  }
 0x638   : > { %20389 = vmatprep.subr.bf16.mxu1 %v22315_v39  ;;  %v8471_v56 = vpop.f32.mrf.mxu1  ;;  %v22357_v32 = vld [vmem:[#allocation9 + $0x808] ss:$20 sps:$4 sm:$0xff]   ;;  %v22363_v39 = vld [vmem:[#allocation9 + $0x8f8] ss:$20 sps:$4 sm:$0xff]   ;;  %v22369_v59 = vld [vmem:[#allocation9 + $0x790] ss:$20 sps:$4 sm:$0xff]  }
 0x639   : > { %v22372_v56 = vld [vmem:[#allocation9 + $0xb28] ss:$20 sps:$4 sm:$0xff]  }
 0x63a   : > { %20368 = vmatpush3.bf16.msra.mxu0 %v22316_v48  ;;  %v22365_v48 = vld [vmem:[#allocation9 + $0x7b8] ss:$20 sps:$4 sm:$0xff]  }
 0x63b   : > { %20390 = vmatpush3.bf16.msra.mxu1 %v22317_v49  ;;  %20369 = vmatprep.subr.bf16.mxu0 %v22318_v10  ;;  %v22366_v49 = vld [vmem:[#allocation9 + $0x650] ss:$20 sps:$4 sm:$0xff]   ;;  %v22370_v10 = vld [vmem:[#allocation9 + $0xc68] ss:$20 sps:$4 sm:$0xff]  }
 0x63c   : > { %20391 = vmatprep.subr.bf16.mxu1 %v22319_v51  ;;  %v22371_v51 = vld [vmem:[#allocation12 + $0x78] sm:$0xff]  }
 0x63e   : > { %20370 = vmatpush3.bf16.msra.mxu0 %v22320_v57  ;;  %v22373_v57 = vld [vmem:[#allocation12 + $0x38] sm:$0xff]  }
 0x63f   : > { %20392 = vmatpush3.bf16.msra.mxu1 %v22321_v58  ;;  %20371 = vmatprep.subr.bf16.mxu0 %v22322_v60  ;;  %v22374_v58 = vld [vmem:[#allocation9 + $0xc40] ss:$20 sps:$4 sm:$0xff]  }
 0x640   : > { %20393 = vmatprep.subr.bf16.mxu1 %v22323_v61  ;;  %v22375_v60 = vld [vmem:[#allocation12 + $0x70] sm:$0xff]   ;;  %v8428_v61 = vadd.f32 %v25057_v41, %v25052_v20 }
 0x642   : > { %20372 = vmatpush3.bf16.msra.mxu0 %v22324_v46  ;;  %v22376_v46 = vld [vmem:[#allocation9 + $0xb00] ss:$20 sps:$4 sm:$0xff]  }
 0x643   : > { %20394 = vmatpush3.bf16.msra.mxu1 %v22325_v47  ;;  %20373 = vmatprep.subr.bf16.mxu0 %v22326_v63  ;;  %v22377_v47 = vld [vmem:[#allocation12 + $0x30] sm:$0xff]  }
 0x644   : > { %20395 = vmatprep.subr.bf16.mxu1 %v22327_v0  ;;  %v22378_v0 = vld [vmem:[#allocation9 + $0xc18] ss:$20 sps:$4 sm:$0xff]  }
 0x646   : > { %20374 = vmatpush3.bf16.msra.mxu0 %v22328_v1  ;;  %v22379_v1 = vld [vmem:[#allocation12 + $0x68] sm:$0xff]  }
 0x647   : > { %20396 = vmatpush3.bf16.msra.mxu1 %v22329_v4  ;;  %20375 = vmatprep.subr.bf16.mxu0 %v22330_v36  ;;  %v8469_v36 = vadd.f32 %v25059_v44, %v8428_v61 }
 0x648   : > { %20397 = vmatprep.subr.bf16.mxu1 %v22331_v37 }
 0x64a   : > { %20376 = vmatpush3.bf16.msra.mxu0 %v22332_v30  ;;  %v22380_v30 = vld [vmem:[#allocation9 + $0xad8] ss:$20 sps:$4 sm:$0xff]  }
 0x64b   : > { %20398 = vmatpush3.bf16.msra.mxu1 %v22333_v9  ;;  %20377 = vmatprep.subr.bf16.mxu0 %v22334_v6  ;;  %v22381_v9 = vld [vmem:[#allocation12 + $0x28] sm:$0xff]  }
 0x64c   : > { %20399 = vmatprep.subr.bf16.mxu1 %v22335_v12 }
 0x64e   : > { %20378 = vmatpush3.bf16.msra.mxu0 %v22336_v14  ;;  %v22383_v14 = vld [vmem:[#allocation12 + $0x60] sm:$0xff]  }
 0x64f   : > { %20400 = vmatpush3.bf16.msra.mxu1 %v22337_v15  ;;  %20407 = vmatprep.subr.bf16.mxu0 %v22338_v16 }
 0x650   : > { %20429 = vmatprep.subr.bf16.mxu1 %v22339_v62  ;;  %v22384_v62 = vld [vmem:[#allocation9 + $0xab0] ss:$20 sps:$4 sm:$0xff]  }
 0x651   : > { %8752 = vmatmul.mubr.bf16.vlgmr.msra.gmra.mxu0 %v25008_v31  ;;  %v22352_v31 = vld [vmem:[#allocation9 + $0x5b0] ss:$20 sps:$4 sm:$0xff]  }
 0x652   : > { %8792 = vmatmul.mubr.bf16.vlgmr.msra.gmra.mxu1 %v25010_v11  ;;  %20408 = vmatpush3.bf16.msra.mxu0 %v22340_v17  ;;  %v22353_v11 = vld [vmem:[#allocation9 + $0x830] ss:$20 sps:$4 sm:$0xff]  }
 0x653   : > { %20430 = vmatpush3.bf16.msra.mxu1 %v22341_v18  ;;  %20409 = vmatprep.subr.bf16.mxu0 %v22342_v19  ;;  %v22385_v17 = vld [vmem:[#allocation12 + $0x20] sm:$0xff]   ;;  %v22387_v19 = vld [vmem:[#allocation12 + $0x58] sm:$0xff]  }
 0x654   : > { %20431 = vmatprep.subr.bf16.mxu1 %v22343_v21  ;;  %8831 = vmatprep.mubr.bf16.mxu0 %v25014_v34  ;;  %v22359_v34 = vld [vmem:[#allocation9 + $0x920] ss:$20 sps:$4 sm:$0xff]   ;;  %v22386_v18 = vld [vmem:[#allocation9 + $0xbc8] ss:$20 sps:$4 sm:$0xff]  }
 0x655   : > { %8871 = vmatprep.mubr.bf16.mxu1 %v25016_v35  ;;  %v22360_v35 = vld [vmem:[#allocation9 + $0x560] ss:$20 sps:$4 sm:$0xff]  }
 0x656   : > { %20410 = vmatpush3.bf16.msra.mxu0 %v22344_v23  ;;  %v22389_v21 = vld [vmem:[#allocation12 + $0x18] sm:$0xff]  }
 0x657   : > { %20432 = vmatpush3.bf16.msra.mxu1 %v22345_v52  ;;  %20411 = vmatprep.subr.bf16.mxu0 %v22346_v53  ;;  %v22390_v23 = vld [vmem:[#allocation9 + $0xba0] ss:$20 sps:$4 sm:$0xff]  }
 0x658   : > { %20433 = vmatprep.subr.bf16.mxu1 %v22347_v43  ;;  %v22391_v52 = vld [vmem:[#allocation12 + $0x50] sm:$0xff]  }
 0x659   : > { %v22392_v53 = vld [vmem:[#allocation9 + $0xa60] ss:$20 sps:$4 sm:$0xff]  }
 0x65a   : > { %20412 = vmatpush3.bf16.msra.mxu0 %v22348_v24  ;;  %v22393_v43 = vld [vmem:[#allocation12 + $0x10] sm:$0xff]  }
 0x65b   : > { %20434 = vmatpush3.bf16.msra.mxu1 %v22349_v25  ;;  %20413 = vmatprep.subr.bf16.mxu0 %v22350_v54  ;;  %v22394_v24 = vld [vmem:[#allocation9 + $0xb78] ss:$20 sps:$4 sm:$0xff]  }
 0x65c   : > { %20435 = vmatprep.subr.bf16.mxu1 %v22351_v55  ;;  %v22395_v25 = vld [vmem:[#allocation12 + $0x48] sm:$0xff]  }
 0x65d   : > { %v22396_v54 = vld [vmem:[#allocation9 + $0xa38] ss:$20 sps:$4 sm:$0xff]  }
 0x65e   : > { %20414 = vmatpush3.bf16.msra.mxu0 %v22352_v31  ;;  %v22397_v55 = vld [vmem:[#allocation12 + $0x8] sm:$0xff]  }
 0x65f   : > { %20436 = vmatpush3.bf16.msra.mxu1 %v22353_v11  ;;  %20415 = vmatprep.subr.bf16.mxu0 %v22354_v26  ;;  %v22398_v31 = vld [vmem:[#allocation9 + $0xb50] ss:$20 sps:$4 sm:$0xff]  }
 0x660   : > { %20437 = vmatprep.subr.bf16.mxu1 %v22355_v27  ;;  %v22399_v11 = vld [vmem:[#allocation12 + $0x40] sm:$0xff]  }
 0x661   : > { %v22400_v27 = vld [vmem:[#allocation9 + $0xa10] ss:$20 sps:$4 sm:$0xff]  }
 0x662   : > { %20416 = vmatpush3.bf16.msra.mxu0 %v22356_v29  ;;  %v22401_v29 = vld [vmem:[#allocation12] sm:$0xff]  }
 0x663   : > { %20438 = vmatpush3.bf16.msra.mxu1 %v22357_v32  ;;  %20417 = vmatprep.subr.bf16.mxu0 %v22358_v33  ;;  %v22402_v32 = vld [vmem:[#allocation12 + $0xf8] sm:$0xff]  }
 0x664   : > { %20439 = vmatprep.subr.bf16.mxu1 %v22359_v34  ;;  %v22403_v34 = vld [vmem:[#allocation12 + $0xb8] sm:$0xff]  }
 0x666   : > { %20418 = vmatpush3.bf16.msra.mxu0 %v22360_v35  ;;  %v22404_v35 = vld [vmem:[#allocation12 + $0xf0] sm:$0xff]  }
 0x667   : > { %20440 = vmatpush3.bf16.msra.mxu1 %v22361_v3  ;;  %20419 = vmatprep.subr.bf16.mxu0 %v22362_v38  ;;  %v22405_v38 = vld [vmem:[#allocation12 + $0xb0] sm:$0xff]  }
 0x668   : > { %20441 = vmatprep.subr.bf16.mxu1 %v22363_v39  ;;  %v22407_v39 = vld [vmem:[#allocation12 + $0xa8] sm:$0xff]  }
 0x66a   : > { %20420 = vmatpush3.bf16.msra.mxu0 %v22364_v8  ;;  %v22408_v8 = vld [vmem:[#allocation12 + $0xe0] sm:$0xff]  }
 0x66b   : > { %20442 = vmatpush3.bf16.msra.mxu1 %v22365_v48  ;;  %20421 = vmatprep.subr.bf16.mxu0 %v22366_v49  ;;  %v22409_v48 = vld [vmem:[#allocation12 + $0xa0] sm:$0xff]   ;;  %v22410_v49 = vld [vmem:[#allocation12 + $0xd8] sm:$0xff]  }
 0x66c   : > { %20443 = vmatprep.subr.bf16.mxu1 %v22367_v50  ;;  %v22411_v50 = vld [vmem:[#allocation12 + $0x98] sm:$0xff]  }
 0x66e   : > { %20422 = vmatpush3.bf16.msra.mxu0 %v22368_v7  ;;  %v22412_v7 = vld [vmem:[#allocation12 + $0xd0] sm:$0xff]  }
 0x66f   : > { %20444 = vmatpush3.bf16.msra.mxu1 %v22369_v59  ;;  %20451 = vmatprep.subr.bf16.mxu0 %v22370_v10  ;;  %v22413_v59 = vld [vmem:[#allocation12 + $0x90] sm:$0xff]   ;;  %v22414_v10 = vld [vmem:[#allocation12 + $0xc8] sm:$0xff]  }
 0x670   : > { %20473 = vmatprep.subr.bf16.mxu1 %v22371_v51  ;;  %v22416_v51 = vld [vmem:[#allocation12 + $0xc0] sm:$0xff]  }
 0x671   : > { %v8507_v63 = vpop.f32.mrf.mxu0  ;;  %8832 = vmatmul.mubr.bf16.vlgmr.msra.gmra.mxu0 %v25020_v22 }
 0x672   : > { %8872 = vmatmul.mubr.bf16.vlgmr.msra.gmra.mxu1 %v25022_v42  ;;  %v25073_v4 = vpop.f32.mrf.mxu1  ;;  %20452 = vmatpush3.bf16.msra.mxu0 %v22372_v56  ;;  %v22382_v42 = vld [vmem:[#allocation9 + $0xbf0] ss:$20 sps:$4 sm:$0xff]   ;;  %v8508_v26 = vadd.f32 %v8507_v63, %v25061_v45  ;;  %v25082_v56 = vsub.s32 2, %v25036_v5 }
 0x673   : > { %20474 = vmatpush3.bf16.msra.mxu1 %v22373_v57  ;;  %v8509_v20 = vpop.f32.mrf.mxu0  ;;  %20453 = vmatprep.subr.bf16.mxu0 %v22374_v58  ;;  %v22406_v45 = vld [vmem:[#allocation12 + $0xe8] sm:$0xff]   ;;  %v22417_v57 = vld [vmem:[#allocation12 + $0x80] sm:$0xff]   ;;  %v25084_v58 = vld [vmem:[#allocation11] sm:$0x1f] }
 0x674   : > { %20475 = vmatprep.subr.bf16.mxu1 %v22375_v60  ;;  %v25076_v41 = vpop.f32.mrf.mxu1  ;;  %v8510_v37 = vadd.f32 %v8509_v20, %v8469_v36  ;;  %8911 = vmatprep.mubr.bf16.mxu0 %v25026_v28  ;;  %v22388_v28 = vld [vmem:[#allocation9 + $0xa88] ss:$20 sps:$4 sm:$0xff]   ;;  %v8919_v33 = vmax.f32 %v8508_v26, 0.0  ;;  %v6215_v60 = vrot.slane %v25084_v58, %v25082_v56 }
 0x675   : > { %v8511_v22 = vpop.f32.mrf.mxu0 }
 0x676   : > { %v8552_v6 = vpop.f32.mrf.mxu1  ;;  %v8920_v12 = vmax.f32 %v8510_v37, 0.0  ;;  %20454 = vmatpush3.bf16.msra.mxu0 %v22376_v46  ;;  %v9005_v3 = vpack.c.bf16 %v8919_v33, %v8919_v33  ;;  %v8549_v61 = vadd.f32 %v25073_v4, %v6215_v60  ;;  %v22418_v22 = vld [vmem:[#allocation12 + $0x138] sm:$0xff]   ;;  %v22420_v4 = vld [vmem:[#allocation12 + $0x128] sm:$0xff]  }
 0x677   : > { %20476 = vmatpush3.bf16.msra.mxu1 %v22377_v47  ;;  %v8512_v44 = vpop.f32.mrf.mxu0  ;;  %20455 = vmatprep.subr.bf16.mxu0 %v22378_v0  ;;  %v22419_v6 = vld [vmem:[#allocation12 + $0x130] sm:$0xff]   ;;  %v22426_v60 = vld [vmem:[#allocation15 + $0x38] sm:$0xff]  }
 0x678   : > { %20477 = vmatprep.subr.bf16.mxu1 %v22379_v1  ;;  %v8553_v15 = vpop.f32.mrf.mxu1  ;;  %v9006_v16 = vpack.c.bf16 %v8920_v12, %v8920_v12  ;;  %v22421_v12 = vld [vmem:[#allocation12 + $0x120] sm:$0xff]   ;;  %v22423_v44 = vld [vmem:[#allocation12 + $0x110] sm:$0xff]  }
 0x679   : > { %v22424_v15 = vld [vmem:[#allocation12 + $0x108] sm:$0xff]  }
 0x67a   : > { %20456 = vmatpush3.bf16.msra.mxu0 %v22380_v30  ;;  %9288 = vmatprep.mubr.bf16.mxu1 %v9006_v16  ;;  %v22425_v16 = vld [vmem:[#allocation12 + $0x100] sm:$0xff]  }
 0x67b   : > { %20478 = vmatpush3.bf16.msra.mxu1 %v22381_v9  ;;  %20457 = vmatprep.subr.bf16.mxu0 %v22382_v42  ;;  %v23702_v42 = vmov 0.0  }
 0x67c   : > { %20479 = vmatprep.subr.bf16.mxu1 %v22383_v14  ;;  %v22422_v14 = vld [vmem:[#allocation12 + $0x118] sm:$0xff]  }
 0x67e   : > { %20458 = vmatpush3.bf16.msra.mxu0 %v22384_v62  ;;  %v25102_v62 = vsub.s32 3, %v25036_v5 }
 0x67f   : > { %20480 = vmatpush3.bf16.msra.mxu1 %v22385_v17  ;;  %20459 = vmatprep.subr.bf16.mxu0 %v22386_v18 }
 0x680   : > { %20481 = vmatprep.subr.bf16.mxu1 %v22387_v19  ;;  %v6219_v17 = vrot.slane %v25084_v58, %v25102_v62 }
 0x682   : > { %20460 = vmatpush3.bf16.msra.mxu0 %v22388_v28  ;;  %v8551_v18 = vadd.f32 %v25076_v41, %v6219_v17 }
 0x683   : > { %20482 = vmatpush3.bf16.msra.mxu1 %v22389_v21  ;;  %20461 = vmatprep.subr.bf16.mxu0 %v22390_v23 }
 0x684   : > { %20483 = vmatprep.subr.bf16.mxu1 %v22391_v52 }
 0x686   : > { %20462 = vmatpush3.bf16.msra.mxu0 %v22392_v53 }
 0x687   : > { %20484 = vmatpush3.bf16.msra.mxu1 %v22393_v43  ;;  %20463 = vmatprep.subr.bf16.mxu0 %v22394_v24 }
 0x688   : > { %20485 = vmatprep.subr.bf16.mxu1 %v22395_v25 }
 0x68a   : > { %20464 = vmatpush3.bf16.msra.mxu0 %v22396_v54 }
 0x68b   : > { %20486 = vmatpush3.bf16.msra.mxu1 %v22397_v55  ;;  %20465 = vmatprep.subr.bf16.mxu0 %v22398_v31 }
 0x68c   : > { %20487 = vmatprep.subr.bf16.mxu1 %v22399_v11 }
 0x68e   : > { %20466 = vmatpush3.bf16.msra.mxu0 %v22400_v27 }
 0x68f   : > { %20488 = vmatpush3.bf16.msra.mxu1 %v22401_v29  ;;  %20495 = vmatprep.subr.bf16.mxu0 %v22402_v32 }
 0x690   : > { %20553 = vmatprep.subr.bf16.mxu1 %v23702_v42 }
 0x691   : > { %8912 = vmatmul.mubr.bf16.vlgmr.msra.gmra.mxu0 %v25030_v2  ;;  %v22415_v2 = vld [vmem:[#allocation12 + $0x88] sm:$0xff]  }
 0x692   : > { %9289 = vmatmul.mubr.bf16.vlgmr.msra.gmra.mxu1 %v9005_v3  ;;  %20496 = vmatpush3.bf16.msra.mxu0 %v22403_v34 }
 0x693   : > { %20497 = vmatprep.subr.bf16.mxu0 %v22404_v35  ;;  %20554 = vmatpush3.bf16.msra.mxu1 %v22418_v22 }
 0x694   : > { %20555 = vmatprep.subr.bf16.mxu1 %v23702_v42  ;;  %20569 = vmatprep.mubr.msk.bf16.mxu1 %vm23703_vm0, %v23702_v42 }
 0x696   : > { %20498 = vmatpush3.bf16.msra.mxu0 %v22405_v38 }
 0x697   : > { %20499 = vmatprep.subr.bf16.mxu0 %v22406_v45  ;;  %20556 = vmatpush3.bf16.msra.mxu1 %v22419_v6 }
 0x698   : > { %20557 = vmatprep.subr.bf16.mxu1 %v23702_v42 }
 0x69a   : > { %20500 = vmatpush3.bf16.msra.mxu0 %v22407_v39 }
 0x69b   : > { %20501 = vmatprep.subr.bf16.mxu0 %v22408_v8  ;;  %20558 = vmatpush3.bf16.msra.mxu1 %v22420_v4 }
 0x69c   : > { %20559 = vmatprep.subr.bf16.mxu1 %v23702_v42 }
 0x69e   : > { %20502 = vmatpush3.bf16.msra.mxu0 %v22409_v48 }
 0x69f   : > { %20503 = vmatprep.subr.bf16.mxu0 %v22410_v49  ;;  %20560 = vmatpush3.bf16.msra.mxu1 %v22421_v12 }
 0x6a0   : > { %20561 = vmatprep.subr.bf16.mxu1 %v23702_v42 }
 0x6a2   : > { %20504 = vmatpush3.bf16.msra.mxu0 %v22411_v50 }
 0x6a3   : > { %20505 = vmatprep.subr.bf16.mxu0 %v22412_v7  ;;  %20562 = vmatpush3.bf16.msra.mxu1 %v22422_v14 }
 0x6a4   : > { %20563 = vmatprep.subr.bf16.mxu1 %v23702_v42 }
 0x6a6   : > { %20506 = vmatpush3.bf16.msra.mxu0 %v22413_v59 }
 0x6a7   : > { %20507 = vmatprep.subr.bf16.mxu0 %v22414_v10  ;;  %20564 = vmatpush3.bf16.msra.mxu1 %v22423_v44 }
 0x6a8   : > { %20565 = vmatprep.subr.bf16.mxu1 %v23702_v42 }
 0x6aa   : > { %20508 = vmatpush3.bf16.msra.mxu0 %v22415_v2 }
 0x6ab   : > { %20509 = vmatprep.subr.bf16.mxu0 %v22416_v51  ;;  %20566 = vmatpush3.bf16.msra.mxu1 %v22424_v15 }
 0x6ac   : > { %20567 = vmatprep.subr.bf16.mxu1 %v23702_v42 }
 0x6ae   : > { %20510 = vmatpush3.bf16.msra.mxu0 %v22417_v57  ;;  %v25110_v57 = vsub.s32 4, %v25036_v5 }
 0x6af   : > { %20573 = vmatprep.subr.bf16.mxu0 %v23702_v42  ;;  %20568 = vmatpush3.bf16.msra.mxu1 %v22425_v16 }
 0x6b0   : > { %20593 = vmatprep.subr.bf16.mxu1 %v23702_v42 }
 0x6b1   : > { %v8589_v46 = vpop.f32.mrf.mxu0 }
 0x6b2   : > { %v8630_v47 = vpop.f32.mrf.mxu1  ;;  %v8590_v63 = vadd.f32 %v8589_v46, %v8549_v61  ;;  %v22427_v61 = vld [vmem:[#allocation15 + $0x30] sm:$0xff]   ;;  %v6223_v46 = vrot.slane %v25084_v58, %v25110_v57  ;;  %v22430_v58 = vld [vmem:[#allocation15 + $0x18] sm:$0xff]  }
 0x6b3   : > { %v8591_v0 = vpop.f32.mrf.mxu0 }
 0x6b4   : > { %v8632_v1 = vpop.f32.mrf.mxu1  ;;  %v8631_v36 = vadd.f32 %v8630_v47, %v8590_v63  ;;  %v8592_v19 = vadd.f32 %v8591_v0, %v8551_v18  ;;  %v22428_v63 = vld [vmem:[#allocation15 + $0x28] sm:$0xff]   ;;  %v22431_v18 = vld [vmem:[#allocation15 + $0x10] sm:$0xff]  }
 0x6b5   : > { %v8593_v20 = vpop.f32.mrf.mxu0 }
 0x6b6   : > { %v8634_v37 = vpop.f32.mrf.mxu1  ;;  %v8633_v23 = vadd.f32 %v8632_v1, %v8592_v19  ;;  %v22429_v20 = vld [vmem:[#allocation15 + $0x20] sm:$0xff]  }
 0x6b7   : > { %v8594_v30 = vpop.f32.mrf.mxu0 }
 0x6b8   : > { %v8635_v9 = vpop.f32.mrf.mxu1 }
 0x6f1   : > { %v8671_v28 = vpop.f32.mrf.mxu0 }
 0x6f2   : > { %v8712_v21 = vpop.f32.mrf.mxu1  ;;  %v8672_v52 = vadd.f32 %v8671_v28, %v8631_v36 }
 0x6f3   : > { %v8673_v53 = vpop.f32.mrf.mxu0 }
 0x6f4   : > { %v8714_v43 = vpop.f32.mrf.mxu1  ;;  %v8674_v24 = vadd.f32 %v8673_v53, %v8633_v23  ;;  %v8713_v25 = vadd.f32 %v8712_v21, %v8672_v52  ;;  %v22432_v53 = vld [vmem:[#allocation15 + $0x8] sm:$0xff]  }
 0x6f5   : > { %v8675_v54 = vpop.f32.mrf.mxu0 }
 0x6f6   : > { %v8716_v55 = vpop.f32.mrf.mxu1  ;;  %v8715_v31 = vadd.f32 %v8714_v43, %v8674_v24  ;;  %v8921_v11 = vmax.f32 %v8713_v25, 0.0  ;;  %v22433_v43 = vld [vmem:[#allocation15] sm:$0xff]   ;;  %v22435_v25 = vld [vmem:[#allocation18 + $0x30] sm:$0xff]   ;;  %v22436_v54 = vld [vmem:[#allocation18 + $0x28] sm:$0xff]  }
 0x6f7   : > { %v8676_v26 = vpop.f32.mrf.mxu0  ;;  %v22434_v24 = vld [vmem:[#allocation18 + $0x38] sm:$0xff]   ;;  %v22437_v55 = vld [vmem:[#allocation18 + $0x20] sm:$0xff]  }
 0x6f8   : > { %v8717_v27 = vpop.f32.mrf.mxu1  ;;  %v8922_v29 = vmax.f32 %v8715_v31, 0.0  ;;  %v9007_v33 = vpack.c.bf16 %v8921_v11, %v8921_v11  ;;  %v22438_v31 = vld [vmem:[#allocation18 + $0x18] sm:$0xff]   ;;  %v22439_v11 = vld [vmem:[#allocation18 + $0x10] sm:$0xff]   ;;  %v22440_v26 = vld [vmem:[#allocation18 + $0x8] sm:$0xff]  }
 0x6f9   : > { %v19213_v27 = vld [vmem:[#allocation14] ss:$0 sm:$0xff] }
 0x6fa   : > { %v9008_v32 = vpack.c.bf16 %v8922_v29, %v8922_v29 }
 0x6fc   : > { %9328 = vmatprep.mubr.bf16.mxu0 %v9008_v32 }
 0x6fd   : > { %9329 = vmatmul.mubr.bf16.vlgmr.msra.gmra.mxu0 %v9007_v33 }
 0x6fe   : > { %20589 = vmatprep.mubr.msk.bf16.mxu0 %vm23703_vm0, %v23702_v42  ;;  %20574 = vmatpush3.bf16.msra.mxu0 %v22426_v60  ;;  %v22448_v60 = vld [vmem:[#allocation21 + $0xf0] ss:$20 sps:$4 sm:$0xff]  }
 0x6ff   : > { %20575 = vmatprep.subr.bf16.mxu0 %v23702_v42 }
 0x702   : > { %20576 = vmatpush3.bf16.msra.mxu0 %v22427_v61  ;;  %v22456_v61 = vld [vmem:[#allocation21 + $0xcc] ss:$20 sps:$4 sm:$0xff]  }
 0x703   : > { %20577 = vmatprep.subr.bf16.mxu0 %v23702_v42 }
 0x706   : > { %20578 = vmatpush3.bf16.msra.mxu0 %v22428_v63  ;;  %v22460_v63 = vld [vmem:[#allocation21 + $0xa0] ss:$20 sps:$4 sm:$0xff]  }
 0x707   : > { %20579 = vmatprep.subr.bf16.mxu0 %v23702_v42 }
 0x70a   : > { %20580 = vmatpush3.bf16.msra.mxu0 %v22429_v20  ;;  %v22472_v20 = vld [vmem:[#allocation21 + $0x50] ss:$20 sps:$4 sm:$0xff]  }
 0x70b   : > { %20581 = vmatprep.subr.bf16.mxu0 %v23702_v42 }
 0x70e   : > { %20582 = vmatpush3.bf16.msra.mxu0 %v22430_v58 }
 0x70f   : > { %20583 = vmatprep.subr.bf16.mxu0 %v23702_v42 }
 0x711   : > { %v20379_v41 = vpop.f32.mrf.mxu0 }
 0x712   : > { %v20401_v34 = vpop.f32.mrf.mxu1  ;;  %20584 = vmatpush3.bf16.msra.mxu0 %v22431_v18  ;;  %v22457_v18 = vld [vmem:[#allocation21 + $0xd0] ss:$20 sps:$4 sm:$0xff]  }
 0x713   : > { %v20380_v35 = vpop.f32.mrf.mxu0  ;;  %20585 = vmatprep.subr.bf16.mxu0 %v23702_v42 }
 0x714   : > { %v20402_v3 = vpop.f32.mrf.mxu1  ;;  %v20381_v47 = vadd.f32 %v20380_v35, %v20379_v41 }
 0x715   : > { %v20382_v38 = vpop.f32.mrf.mxu0  ;;  %v20403_v1 = vadd.f32 %v20402_v3, %v20401_v34 }
 0x716   : > { %v20404_v45 = vpop.f32.mrf.mxu1  ;;  %v8754_v0 = vadd.f32 %v20381_v47, %v6223_v46  ;;  %20586 = vmatpush3.bf16.msra.mxu0 %v22432_v53  ;;  %v22454_v46 = vld [vmem:[#allocation21 + $0xc8] ss:$20 sps:$4 sm:$0xff]   ;;  %v22462_v47 = vld [vmem:[#allocation21 + $0xa4] ss:$20 sps:$4 sm:$0xff]  }
 0x717   : > { %v20383_v39 = vpop.f32.mrf.mxu0  ;;  %20587 = vmatprep.subr.bf16.mxu0 %v23702_v42  ;;  %v22475_v53 = vld [vmem:[#allocation21 + $0x58] ss:$20 sps:$4 sm:$0xff]  }
 0x718   : > { %v20405_v8 = vpop.f32.mrf.mxu1  ;;  %v8794_v37 = vadd.f32 %v20403_v1, %v8754_v0  ;;  %v22468_v0 = vld [vmem:[#allocation21 + $0x7c] ss:$20 sps:$4 sm:$0xff]   ;;  %v22466_v1 = vld [vmem:[#allocation21 + $0x78] ss:$20 sps:$4 sm:$0xff]  }
 0x71a   : > { %20588 = vmatpush3.bf16.msra.mxu0 %v22433_v43  ;;  %v22483_v43 = vld [vmem:[#allocation21 + $0x34] ss:$20 sps:$4 sm:$0xff]  }
 0x731   : > { %v20423_v48 = vpop.f32.mrf.mxu0 }
 0x732   : > { %v20445_v49 = vpop.f32.mrf.mxu1 }
 0x733   : > { %v20424_v50 = vpop.f32.mrf.mxu0 }
 0x734   : > { %v20446_v7 = vpop.f32.mrf.mxu1  ;;  %v20425_v36 = vadd.f32 %v20424_v50, %v20423_v48 }
 0x735   : > { %v20426_v59 = vpop.f32.mrf.mxu0  ;;  %v20447_v9 = vadd.f32 %v20446_v7, %v20445_v49  ;;  %v22441_v7 = vld [vmem:[#allocation18] sm:$0xff]  }
 0x736   : > { %v20448_v10 = vpop.f32.mrf.mxu1  ;;  %v8834_v30 = vadd.f32 %v20425_v36, %v8794_v37  ;;  %v22442_v59 = vld [vmem:[#allocation21 + $0x118] ss:$20 sps:$4 sm:$0xff]   ;;  %v22474_v36 = vld [vmem:[#allocation21 + $0x54] ss:$20 sps:$4 sm:$0xff]  }
 0x737   : > { %v20427_v2 = vpop.f32.mrf.mxu0  ;;  %v22444_v10 = vld [vmem:[#allocation21 + $0x11c] ss:$20 sps:$4 sm:$0xff]   ;;  %v22480_v37 = vld [vmem:[#allocation21 + $0x2c] ss:$20 sps:$4 sm:$0xff]  }
 0x738   : > { %v20449_v51 = vpop.f32.mrf.mxu1  ;;  %v8874_v14 = vadd.f32 %v20447_v9, %v8834_v30  ;;  %v22447_v2 = vld [vmem:[#allocation21 + $0x124] ss:$20 sps:$4 sm:$0xff]   ;;  %9886 = vmatprep.subr.bf16.mxu0 %v22444_v10  ;;  %v22478_v30 = vld [vmem:[#allocation21 + $0x28] ss:$20 sps:$4 sm:$0xff]  }
 0x739   : > { %v22450_v51 = vld [vmem:[#allocation21 + $0xf4] ss:$20 sps:$4 sm:$0xff]   ;;  %v19254_v9 = vld [vmem:[#allocation17] ss:$0 sm:$0xff]  ;;  %v22493_v10 = vld [vmem:[#allocation21 + $0xb0] ss:$20 sps:$4 sm:$0xff]  }
 0x751   : > { %v20467_v22 = vpop.f32.mrf.mxu0 }
 0x752   : > { %v20489_v6 = vpop.f32.mrf.mxu1 }
 0x753   : > { %v20468_v4 = vpop.f32.mrf.mxu0 }
 0x754   : > { %v20490_v12 = vpop.f32.mrf.mxu1  ;;  %v20469_v44 = vadd.f32 %v20468_v4, %v20467_v22  ;;  %v22445_v4 = vld [vmem:[#allocation21 + $0x120] ss:$20 sps:$4 sm:$0xff]  }
 0x755   : > { %v20491_v15 = vadd.f32 %v20490_v12, %v20489_v6  ;;  %v20470_v16 = vpop.f32.mrf.mxu0 }
 0x756   : > { %v20492_v17 = vpop.f32.mrf.mxu1  ;;  %v8914_v19 = vadd.f32 %v20469_v44, %v8874_v14  ;;  %v22453_v14 = vld [vmem:[#allocation21 + $0xfc] ss:$20 sps:$4 sm:$0xff]   ;;  %v22451_v16 = vld [vmem:[#allocation21 + $0xf8] ss:$20 sps:$4 sm:$0xff]  }
 0x757   : > { %v20471_v28 = vpop.f32.mrf.mxu0  ;;  %v9291_v33 = vadd.f32 %v20491_v15, %v19213_v27  ;;  %v22459_v17 = vld [vmem:[#allocation21 + $0xd4] ss:$20 sps:$4 sm:$0xff]   ;;  %v19263_v27 = vld [vmem:[#allocation20] ss:$0 sm:$0xff] }
 0x758   : > { %v20493_v21 = vpop.f32.mrf.mxu1  ;;  %v8923_v23 = vmax.f32 %v8914_v19, 0.0  ;;  %v22465_v19 = vld [vmem:[#allocation21 + $0xac] ss:$20 sps:$4 sm:$0xff]   ;;  %v22463_v28 = vld [vmem:[#allocation21 + $0xa8] ss:$20 sps:$4 sm:$0xff]  }
 0x759   : > { %v22471_v21 = vld [vmem:[#allocation21 + $0x84] ss:$20 sps:$4 sm:$0xff]  }
 0x75a   : > { %v9009_v52 = vpack.c.bf16 %v8923_v23, %v8923_v23  ;;  %v22469_v23 = vld [vmem:[#allocation21 + $0x80] ss:$20 sps:$4 sm:$0xff]  }
 0x75c   : > { %20570 = vmatmul.mubr.bf16.vlgmr.msra.gmra.mxu1 %v9009_v52  ;;  %v22477_v52 = vld [vmem:[#allocation21 + $0x5c] ss:$20 sps:$4 sm:$0xff]  }
 0x75d   : > { %20609 = vmatprep.mubr.msk.bf16.mxu1 %vm23703_vm0, %v23702_v42  ;;  %20594 = vmatpush3.bf16.msra.mxu1 %v22434_v24  ;;  %v22481_v24 = vld [vmem:[#allocation21 + $0x30] ss:$20 sps:$4 sm:$0xff]  }
 0x75e   : > { %20595 = vmatprep.subr.bf16.mxu1 %v23702_v42 }
 0x761   : > { %20596 = vmatpush3.bf16.msra.mxu1 %v22435_v25  ;;  %v22486_v25 = vld [vmem:[#allocation21 + $0x4] ss:$20 sps:$4 sm:$0xff]  }
 0x762   : > { %20597 = vmatprep.subr.bf16.mxu1 %v23702_v42 }
 0x765   : > { %20598 = vmatpush3.bf16.msra.mxu1 %v22436_v54  ;;  %v22484_v54 = vld [vmem:[#allocation21] ss:$20 sps:$4 sm:$0xff]  }
 0x766   : > { %20599 = vmatprep.subr.bf16.mxu1 %v23702_v42 }
 0x769   : > { %20600 = vmatpush3.bf16.msra.mxu1 %v22437_v55  ;;  %v22489_v55 = vld [vmem:[#allocation21 + $0xc] ss:$20 sps:$4 sm:$0xff]  }
 0x76a   : > { %20601 = vmatprep.subr.bf16.mxu1 %v23702_v42 }
 0x76d   : > { %20602 = vmatpush3.bf16.msra.mxu1 %v22438_v31  ;;  %v22487_v31 = vld [vmem:[#allocation21 + $0x8] ss:$20 sps:$4 sm:$0xff]  }
 0x76e   : > { %20603 = vmatprep.subr.bf16.mxu1 %v23702_v42 }
 0x771   : > { %20604 = vmatpush3.bf16.msra.mxu1 %v22439_v11  ;;  %v23704_v11 = vmov 0  }
 0x772   : > { %20605 = vmatprep.subr.bf16.mxu1 %v23702_v42 }
 0x775   : > { %20606 = vmatpush3.bf16.msra.mxu1 %v22440_v26  ;;  %v22500_v26 = vld [vmem:[#allocation24 + $0x234] ss:$40 sps:$4 sm:$0xff]  }
 0x776   : > { %20607 = vmatprep.subr.bf16.mxu1 %v23702_v42 }
 0x779   : > { %20608 = vmatpush3.bf16.msra.mxu1 %v22441_v7  ;;  %v22510_v7 = vld [vmem:[#allocation24 + $0x190] ss:$40 sps:$4 sm:$0xff]  }
 0x77a   : > { %9927 = vmatprep.subr.bf16.mxu1 %v22447_v2  ;;  %v22516_v2 = vld [vmem:[#allocation24 + $0x140] ss:$40 sps:$4 sm:$0xff]  }
 0x7bd   : > { %v20511_v29 = vpop.f32.mrf.mxu0 }
 0x7bf   : > { %v20512_v32 = vpop.f32.mrf.mxu0 }
 0x7c0   : > { %v20513_v41 = vadd.f32 %v20512_v32, %v20511_v29 }
 0x7c1   : > { %v20514_v34 = vpop.f32.mrf.mxu0 }
 0x7c2   : > { %v9331_v35 = vadd.f32 %v20513_v41, %v9291_v33 }
 0x7c3   : > { %v20515_v3 = vpop.f32.mrf.mxu0 }
 0x81c   : > { %v9370_v38 = vpop.f32.mrf.mxu1 }
 0x81d   : > { %v9371_v45 = vadd.f32 %v9370_v38, %v9331_v35  ;;  %v22490_v35 = vld [vmem:[#allocation21 + $0x128] ss:$20 sps:$4 sm:$0xff]  }
 0x81e   : > { %v20571_v39 = vpop.f32.mrf.mxu1  ;;  %v22498_v38 = vld [vmem:[#allocation24 + $0x230] ss:$40 sps:$4 sm:$0xff]  }
 0x81f   : > { %v9376_v8 = vmax.f32 %v9371_v45, 0.0  ;;  %v22506_v39 = vld [vmem:[#allocation24 + $0x1e4] ss:$40 sps:$4 sm:$0xff]  }
 0x820   : > { %v9373_v48 = vpop.f32.mrf.mxu1 }
 0x821   : > { %v9394_v49 = vpack.c.bf16 %v9376_v8, %v9376_v8  ;;  %v22491_v8 = vld [vmem:[#allocation21 + $0x100] ss:$20 sps:$4 sm:$0xff]   ;;  %v22504_v48 = vld [vmem:[#allocation24 + $0x1e0] ss:$40 sps:$4 sm:$0xff]  }
 0x822   : > { %v20572_v50 = vpop.f32.mrf.mxu1 }
 0x823   : > { %20590 = vmatmul.mubr.bf16.vlgmr.msra.gmra.mxu0 %v9394_v49  ;;  %v22512_v49 = vld [vmem:[#allocation24 + $0x194] ss:$40 sps:$4 sm:$0xff]  }
 0x824   : > { %9887 = vmatpush1.bf16.msra.mxu0 %v22442_v59  ;;  %9918 = vmatprep.mubr.bf16.mxu0 %v23704_v11  ;;  %v22492_v50 = vld [vmem:[#allocation21 + $0xd8] ss:$20 sps:$4 sm:$0xff]  }
 0x825   : > { %9888 = vmatprep.subr.bf16.mxu0 %v22450_v51  ;;  %v22518_v59 = vld [vmem:[#allocation24 + $0x144] ss:$40 sps:$4 sm:$0xff]   ;;  %v22524_v51 = vld [vmem:[#allocation24 + $0xf4] ss:$40 sps:$4 sm:$0xff]  }
 0x828   : > { %9889 = vmatpush1.bf16.msra.mxu0 %v22448_v60  ;;  %v22494_v60 = vld [vmem:[#allocation21 + $0x88] ss:$20 sps:$4 sm:$0xff]  }
 0x829   : > { %9890 = vmatprep.subr.bf16.mxu0 %v22456_v61  ;;  %v22522_v61 = vld [vmem:[#allocation24 + $0xf0] ss:$40 sps:$4 sm:$0xff]  }
 0x82c   : > { %9891 = vmatpush1.bf16.msra.mxu0 %v22454_v46  ;;  %v22530_v46 = vld [vmem:[#allocation24 + $0xa4] ss:$40 sps:$4 sm:$0xff]  }
 0x82d   : > { %9892 = vmatprep.subr.bf16.mxu0 %v22462_v47  ;;  %v22495_v47 = vld [vmem:[#allocation21 + $0x60] ss:$20 sps:$4 sm:$0xff]  }
 0x830   : > { %9893 = vmatpush1.bf16.msra.mxu0 %v22460_v63  ;;  %v22528_v63 = vld [vmem:[#allocation24 + $0xa0] ss:$40 sps:$4 sm:$0xff]  }
 0x831   : > { %9894 = vmatprep.subr.bf16.mxu0 %v22468_v0  ;;  %v22536_v0 = vld [vmem:[#allocation24 + $0x54] ss:$40 sps:$4 sm:$0xff]  }
 0x834   : > { %9895 = vmatpush1.bf16.msra.mxu0 %v22466_v1  ;;  %v22496_v1 = vld [vmem:[#allocation21 + $0x38] ss:$20 sps:$4 sm:$0xff]  }
 0x835   : > { %9896 = vmatprep.subr.bf16.mxu0 %v22474_v36  ;;  %v22534_v36 = vld [vmem:[#allocation24 + $0x50] ss:$40 sps:$4 sm:$0xff]  }
 0x838   : > { %9897 = vmatpush1.bf16.msra.mxu0 %v22472_v20  ;;  %v22542_v20 = vld [vmem:[#allocation24 + $0x4] ss:$40 sps:$4 sm:$0xff]  }
 0x839   : > { %9898 = vmatprep.subr.bf16.mxu0 %v22480_v37  ;;  %v22497_v37 = vld [vmem:[#allocation21 + $0x10] ss:$20 sps:$4 sm:$0xff]  }
 0x83c   : > { %9899 = vmatpush1.bf16.msra.mxu0 %v22478_v30  ;;  %v22503_v30 = vld [vmem:[#allocation24 + $0x734] ss:$40 sps:$4 sm:$0xff]  }
 0x83d   : > { %9900 = vmatprep.subr.bf16.mxu0 %v22486_v25  ;;  %v22578_v25 = vld [vmem:[#allocation24 + $0x324] ss:$40 sps:$4 sm:$0xff]  }
 0x840   : > { %9901 = vmatpush1.bf16.msra.mxu0 %v22484_v54  ;;  %v22531_v54 = vld [vmem:[#allocation24 + $0x5a0] ss:$40 sps:$4 sm:$0xff]  }
 0x841   : > { %20613 = vmatprep.subr.bf16.mxu0 %v23702_v42 }
 0x8e3   : > { %v9483_v22 = vpop.f32.mrf.mxu0 }
 0x8e4   : > { %v9484_v6 = vadd.f32 %v19254_v9, %v9483_v22  ;;  %v22540_v9 = vld [vmem:[#allocation24] ss:$40 sps:$4 sm:$0xff]   ;;  %v22548_v22 = vld [vmem:[#allocation24 + $0x4b4] ss:$40 sps:$4 sm:$0xff]  }
 0x8e5   : > { %v20591_v58 = vpop.f32.mrf.mxu0 }
 0x8e6   : > { %v9506_v12 = vpack.c.bf16 %v9484_v6, %v9484_v6  ;;  %v22501_v6 = vld [vmem:[#allocation24 + $0x730] ss:$40 sps:$4 sm:$0xff]   ;;  %v22509_v58 = vld [vmem:[#allocation24 + $0x6e4] ss:$40 sps:$4 sm:$0xff]  }
 0x8e7   : > { %v9486_v44 = vpop.f32.mrf.mxu0 }
 0x8e8   : > { %20610 = vmatmul.mubr.bf16.vlgmr.msra.gmra.mxu1 %v9506_v12  ;;  %v22554_v12 = vld [vmem:[#allocation24 + $0x464] ss:$40 sps:$4 sm:$0xff]   ;;  %v22515_v44 = vld [vmem:[#allocation24 + $0x694] ss:$40 sps:$4 sm:$0xff]  }
 0x8e9   : > { %v20592_v15 = vpop.f32.mrf.mxu0  ;;  %9928 = vmatpush1.bf16.msra.mxu1 %v22445_v4  ;;  %9959 = vmatprep.mubr.bf16.mxu1 %v23704_v11  ;;  %v22546_v4 = vld [vmem:[#allocation24 + $0x4b0] ss:$40 sps:$4 sm:$0xff]  }
 0x8ea   : > { %9929 = vmatprep.subr.bf16.mxu1 %v22453_v14  ;;  %v22507_v14 = vld [vmem:[#allocation24 + $0x6e0] ss:$40 sps:$4 sm:$0xff]   ;;  %v22560_v15 = vld [vmem:[#allocation24 + $0x414] ss:$40 sps:$4 sm:$0xff]  }
 0x8ed   : > { %9930 = vmatpush1.bf16.msra.mxu1 %v22451_v16  ;;  %v22513_v16 = vld [vmem:[#allocation24 + $0x690] ss:$40 sps:$4 sm:$0xff]  }
 0x8ee   : > { %9931 = vmatprep.subr.bf16.mxu1 %v22459_v17  ;;  %v22521_v17 = vld [vmem:[#allocation24 + $0x644] ss:$40 sps:$4 sm:$0xff]  }
 0x8f1   : > { %9932 = vmatpush1.bf16.msra.mxu1 %v22457_v18  ;;  %v22558_v18 = vld [vmem:[#allocation24 + $0x410] ss:$40 sps:$4 sm:$0xff]  }
 0x8f2   : > { %9933 = vmatprep.subr.bf16.mxu1 %v22465_v19  ;;  %v22566_v19 = vld [vmem:[#allocation24 + $0x3c4] ss:$40 sps:$4 sm:$0xff]  }
 0x8f5   : > { %9934 = vmatpush1.bf16.msra.mxu1 %v22463_v28  ;;  %v22519_v28 = vld [vmem:[#allocation24 + $0x640] ss:$40 sps:$4 sm:$0xff]  }
 0x8f6   : > { %9935 = vmatprep.subr.bf16.mxu1 %v22471_v21  ;;  %v22527_v21 = vld [vmem:[#allocation24 + $0x5f4] ss:$40 sps:$4 sm:$0xff]  }
 0x8f9   : > { %9936 = vmatpush1.bf16.msra.mxu1 %v22469_v23  ;;  %v22564_v23 = vld [vmem:[#allocation24 + $0x3c0] ss:$40 sps:$4 sm:$0xff]  }
 0x8fa   : > { %9937 = vmatprep.subr.bf16.mxu1 %v22477_v52  ;;  %v22572_v52 = vld [vmem:[#allocation24 + $0x374] ss:$40 sps:$4 sm:$0xff]  }
 0x8fd   : > { %9938 = vmatpush1.bf16.msra.mxu1 %v22475_v53  ;;  %v22525_v53 = vld [vmem:[#allocation24 + $0x5f0] ss:$40 sps:$4 sm:$0xff]  }
 0x8fe   : > { %9939 = vmatprep.subr.bf16.mxu1 %v22483_v43  ;;  %v22533_v43 = vld [vmem:[#allocation24 + $0x5a4] ss:$40 sps:$4 sm:$0xff]  }
 0x901   : > { %9940 = vmatpush1.bf16.msra.mxu1 %v22481_v24  ;;  %v22570_v24 = vld [vmem:[#allocation24 + $0x370] ss:$40 sps:$4 sm:$0xff]  }
 0x902   : > { %9941 = vmatprep.subr.bf16.mxu1 %v22489_v55  ;;  %v22539_v55 = vld [vmem:[#allocation24 + $0x554] ss:$40 sps:$4 sm:$0xff]  }
 0x905   : > { %9942 = vmatpush1.bf16.msra.mxu1 %v22487_v31  ;;  %v22576_v31 = vld [vmem:[#allocation24 + $0x320] ss:$40 sps:$4 sm:$0xff]  }
 0x906   : > { %12472 = vmatprep.subr.bf16.mxu1 %v22500_v26  ;;  %v22537_v26 = vld [vmem:[#allocation24 + $0x550] ss:$40 sps:$4 sm:$0xff]  }
 0x9a8   : > { %v9595_v29 = vpop.f32.mrf.mxu1 }
 0x9a9   : > { %v9596_v32 = vadd.f32 %v19263_v27, %v9595_v29  ;;  %v22545_v27 = vld [vmem:[#allocation24 + $0x504] ss:$40 sps:$4 sm:$0xff]   ;;  %v22543_v29 = vld [vmem:[#allocation24 + $0x500] ss:$40 sps:$4 sm:$0xff]  }
 0x9aa   : > { %v20611_v33 = vpop.f32.mrf.mxu1 }
 0x9ab   : > { %v9601_v41 = vmax.f32 %v9596_v32, 0.0  ;;  %v22551_v32 = vld [vmem:[#allocation24 + $0x9b4] ss:$40 sps:$4 sm:$0xff]   ;;  %v22549_v33 = vld [vmem:[#allocation24 + $0x9b0] ss:$40 sps:$4 sm:$0xff]  }
 0x9ac   : > { %v9598_v34 = vpop.f32.mrf.mxu1 }
 0x9ad   : > { %v25133_v3 = vpack.c.bf16 %v9601_v41, %v9601_v41  ;;  %v22557_v41 = vld [vmem:[#allocation24 + $0x964] ss:$40 sps:$4 sm:$0xff]   ;;  %v22584_v34 = vld [vmem:[#allocation24 + $0x2d4] ss:$40 sps:$4 sm:$0xff]  }
 0x9ae   : > { %v20612_v45 = vpop.f32.mrf.mxu1 }
 0x9af   : > { %9919 = vmatmul.mubr.bf16.vlgmr.msra.gmra.mxu0 %v25133_v3  ;;  %9960 = vmatmul.mubr.bf16.vlgmr.msra.gmra.mxu1 %v25133_v3  ;;  %v22590_v45 = vld [vmem:[#allocation24 + $0x284] ss:$40 sps:$4 sm:$0xff]  }
 0x9b0   : > { %20614 = vmatpush3.bf16.msra.mxu0 %v22490_v35  ;;  %20629 = vmatprep.mubr.msk.bf16.mxu0 %vm23703_vm0, %v23702_v42  ;;  %v22555_v35 = vld [vmem:[#allocation24 + $0x960] ss:$40 sps:$4 sm:$0xff]  }
 0x9b1   : > { %20615 = vmatprep.subr.bf16.mxu0 %v23702_v42  ;;  %12473 = vmatpush1.bf16.msra.mxu1 %v22498_v38  ;;  %v22563_v38 = vld [vmem:[#allocation24 + $0x914] ss:$40 sps:$4 sm:$0xff]  }
 0x9b2   : > { %12474 = vmatprep.subr.bf16.mxu1 %v22506_v39  ;;  %v22561_v39 = vld [vmem:[#allocation24 + $0x910] ss:$40 sps:$4 sm:$0xff]  }
 0x9b4   : > { %20616 = vmatpush3.bf16.msra.mxu0 %v22491_v8  ;;  %v22588_v8 = vld [vmem:[#allocation24 + $0x280] ss:$40 sps:$4 sm:$0xff]  }
 0x9b5   : > { %20617 = vmatprep.subr.bf16.mxu0 %v23702_v42  ;;  %12475 = vmatpush1.bf16.msra.mxu1 %v22504_v48  ;;  %v22569_v48 = vld [vmem:[#allocation24 + $0x8c4] ss:$40 sps:$4 sm:$0xff]  }
 0x9b6   : > { %12476 = vmatprep.subr.bf16.mxu1 %v22512_v49  ;;  %v22596_v49 = vld [vmem:[#allocation24 + $0xc34] ss:$40 sps:$4 sm:$0xff]  }
 0x9b8   : > { %20618 = vmatpush3.bf16.msra.mxu0 %v22492_v50  ;;  %v22567_v50 = vld [vmem:[#allocation24 + $0x8c0] ss:$40 sps:$4 sm:$0xff]  }
 0x9b9   : > { %20619 = vmatprep.subr.bf16.mxu0 %v23702_v42  ;;  %12477 = vmatpush1.bf16.msra.mxu1 %v22510_v7  ;;  %v22575_v7 = vld [vmem:[#allocation24 + $0x874] ss:$40 sps:$4 sm:$0xff]  }
 0x9ba   : > { %12478 = vmatprep.subr.bf16.mxu1 %v22518_v59  ;;  %v22573_v59 = vld [vmem:[#allocation24 + $0x870] ss:$40 sps:$4 sm:$0xff]  }
 0x9bc   : > { %20620 = vmatpush3.bf16.msra.mxu0 %v22493_v10  ;;  %v22581_v10 = vld [vmem:[#allocation24 + $0x824] ss:$40 sps:$4 sm:$0xff]  }
 0x9bd   : > { %20621 = vmatprep.subr.bf16.mxu0 %v23702_v42  ;;  %12479 = vmatpush1.bf16.msra.mxu1 %v22516_v2  ;;  %v22579_v2 = vld [vmem:[#allocation24 + $0x820] ss:$40 sps:$4 sm:$0xff]  }
 0x9be   : > { %12480 = vmatprep.subr.bf16.mxu1 %v22524_v51  ;;  %v22587_v51 = vld [vmem:[#allocation24 + $0x7d4] ss:$40 sps:$4 sm:$0xff]  }
 0x9c0   : > { %20622 = vmatpush3.bf16.msra.mxu0 %v22494_v60  ;;  %v22585_v60 = vld [vmem:[#allocation24 + $0x7d0] ss:$40 sps:$4 sm:$0xff]  }
 0x9c1   : > { %20623 = vmatprep.subr.bf16.mxu0 %v23702_v42  ;;  %12481 = vmatpush1.bf16.msra.mxu1 %v22522_v61  ;;  %v22593_v61 = vld [vmem:[#allocation24 + $0x784] ss:$40 sps:$4 sm:$0xff]  }
 0x9c2   : > { %12482 = vmatprep.subr.bf16.mxu1 %v22530_v46  ;;  %v22591_v46 = vld [vmem:[#allocation24 + $0x780] ss:$40 sps:$4 sm:$0xff]  }
 0x9c4   : > { %20624 = vmatpush3.bf16.msra.mxu0 %v22495_v47  ;;  %v22599_v47 = vld [vmem:[#allocation24 + $0x23c] ss:$40 sps:$4 sm:$0xff]  }
 0x9c5   : > { %20625 = vmatprep.subr.bf16.mxu0 %v23702_v42  ;;  %12483 = vmatpush1.bf16.msra.mxu1 %v22528_v63  ;;  %v25147_v63 = vld [vmem:[#allocation23] sm:$0x1f] }
 0x9c6   : > { %12484 = vmatprep.subr.bf16.mxu1 %v22536_v0  ;;  %v9656_v0 = vrot.slane %v25147_v63, %v25039_v40 }
 0x9c8   : > { %20626 = vmatpush3.bf16.msra.mxu0 %v22496_v1  ;;  %v9664_v1 = vrot.slane %v25147_v63, %v25082_v56 }
 0x9c9   : > { %20627 = vmatprep.subr.bf16.mxu0 %v23702_v42  ;;  %12485 = vmatpush1.bf16.msra.mxu1 %v22534_v36  ;;  %v22552_v42 = vld [vmem:[#allocation24 + $0x460] ss:$40 sps:$4 sm:$0xff]   ;;  %v9660_v36 = vrot.slane %v25147_v63, %v25042_v13 }
 0x9ca   : > { %12486 = vmatprep.subr.bf16.mxu1 %v22542_v20  ;;  %v9668_v20 = vrot.slane %v25147_v63, %v25102_v62 }
 0x9cc   : > { %20628 = vmatpush3.bf16.msra.mxu0 %v22497_v37 }
 0x9cd   : > { %12513 = vmatprep.subr.bf16.mxu0 %v22503_v30  ;;  %12487 = vmatpush1.bf16.msra.mxu1 %v22540_v9 }
 0x9ce   : > { %12488 = vmatprep.subr.bf16.mxu1 %v22548_v22 }
 0x9cf   : > { %20630 = vmatmul.mubr.bf16.vlgmr.msra.gmra.mxu0 %v25133_v3  ;;  %v22582_v3 = vld [vmem:[#allocation24 + $0x2d0] ss:$40 sps:$4 sm:$0xff]  }
 0x9d0   : > { %12514 = vmatpush1.bf16.msra.mxu0 %v22501_v6 }
 0x9d1   : > { %12515 = vmatprep.subr.bf16.mxu0 %v22509_v58  ;;  %12489 = vmatpush2.bf16.msra.mxu1 %v22546_v4 }
 0x9d2   : > { %12490 = vmatprep.subr.bf16.mxu1 %v22554_v12 }
 0x9d4   : > { %12516 = vmatpush1.bf16.msra.mxu0 %v22507_v14 }
 0x9d5   : > { %12517 = vmatprep.subr.bf16.mxu0 %v22515_v44  ;;  %12491 = vmatpush2.bf16.msra.mxu1 %v22552_v42 }
 0x9d6   : > { %12492 = vmatprep.subr.bf16.mxu1 %v22560_v15 }
 0x9d8   : > { %12518 = vmatpush1.bf16.msra.mxu0 %v22513_v16 }
 0x9d9   : > { %12519 = vmatprep.subr.bf16.mxu0 %v22521_v17  ;;  %12493 = vmatpush2.bf16.msra.mxu1 %v22558_v18 }
 0x9da   : > { %12494 = vmatprep.subr.bf16.mxu1 %v22566_v19 }
 0x9dc   : > { %12520 = vmatpush1.bf16.msra.mxu0 %v22519_v28 }
 0x9dd   : > { %12521 = vmatprep.subr.bf16.mxu0 %v22527_v21  ;;  %12495 = vmatpush2.bf16.msra.mxu1 %v22564_v23  ;;  %v22594_v23 = vld [vmem:[#allocation24 + $0xc30] ss:$40 sps:$4 sm:$0xff]  }
 0x9de   : > { %12496 = vmatprep.subr.bf16.mxu1 %v22572_v52  ;;  %v22597_v52 = vld [vmem:[#allocation24 + $0x238] ss:$40 sps:$4 sm:$0xff]  }
 0x9e0   : > { %12522 = vmatpush1.bf16.msra.mxu0 %v22525_v53 }
 0x9e1   : > { %12523 = vmatprep.subr.bf16.mxu0 %v22533_v43  ;;  %12497 = vmatpush2.bf16.msra.mxu1 %v22570_v24  ;;  %v22602_v24 = vld [vmem:[#allocation24 + $0xbe4] ss:$40 sps:$4 sm:$0xff]  }
 0x9e2   : > { %12498 = vmatprep.subr.bf16.mxu1 %v22578_v25  ;;  %v22605_v25 = vld [vmem:[#allocation24 + $0x1ec] ss:$40 sps:$4 sm:$0xff]  }
 0x9e4   : > { %12524 = vmatpush1.bf16.msra.mxu0 %v22531_v54  ;;  %v22600_v54 = vld [vmem:[#allocation24 + $0xbe0] ss:$40 sps:$4 sm:$0xff]  }
 0x9e5   : > { %12525 = vmatprep.subr.bf16.mxu0 %v22539_v55  ;;  %12499 = vmatpush2.bf16.msra.mxu1 %v22576_v31  ;;  %v22603_v55 = vld [vmem:[#allocation24 + $0x1e8] ss:$40 sps:$4 sm:$0xff]   ;;  %v22608_v31 = vld [vmem:[#allocation24 + $0xb94] ss:$40 sps:$4 sm:$0xff]  }
 0x9e6   : > { %12500 = vmatprep.subr.bf16.mxu1 %v22584_v34  ;;  %v22615_v34 = vld [vmem:[#allocation24 + $0x148] ss:$40 sps:$4 sm:$0xff]  }
 0x9e8   : > { %12526 = vmatpush1.bf16.msra.mxu0 %v22537_v26  ;;  %v22611_v26 = vld [vmem:[#allocation24 + $0x19c] ss:$40 sps:$4 sm:$0xff]  }
 0x9e9   : > { %12527 = vmatprep.subr.bf16.mxu0 %v22545_v27  ;;  %12501 = vmatpush2.bf16.msra.mxu1 %v22582_v3  ;;  %v22606_v27 = vld [vmem:[#allocation24 + $0xb90] ss:$40 sps:$4 sm:$0xff]   ;;  %v22623_v3 = vld [vmem:[#allocation24 + $0xfc] ss:$40 sps:$4 sm:$0xff]  }
 0x9ea   : > { %12502 = vmatprep.subr.bf16.mxu1 %v22590_v45  ;;  %v22621_v45 = vld [vmem:[#allocation24 + $0xf8] ss:$40 sps:$4 sm:$0xff]  }
 0x9ec   : > { %12528 = vmatpush1.bf16.msra.mxu0 %v22543_v29  ;;  %v22609_v29 = vld [vmem:[#allocation24 + $0x198] ss:$40 sps:$4 sm:$0xff]  }
 0x9ed   : > { %12529 = vmatprep.subr.bf16.mxu0 %v22551_v32  ;;  %12503 = vmatpush2.bf16.msra.mxu1 %v22588_v8  ;;  %v22614_v32 = vld [vmem:[#allocation24 + $0xb44] ss:$40 sps:$4 sm:$0xff]  }
 0x9ee   : > { %12554 = vmatprep.subr.bf16.mxu1 %v22596_v49  ;;  %v22629_v8 = vld [vmem:[#allocation24 + $0xac] ss:$40 sps:$4 sm:$0xff]   ;;  %v22627_v49 = vld [vmem:[#allocation24 + $0xa8] ss:$40 sps:$4 sm:$0xff]  }
 0x9f0   : > { %12530 = vmatpush2.bf16.msra.mxu0 %v22549_v33  ;;  %v22617_v33 = vld [vmem:[#allocation24 + $0x14c] ss:$40 sps:$4 sm:$0xff]  }
 0x9f1   : > { %12531 = vmatprep.subr.bf16.mxu0 %v22557_v41  ;;  %v22612_v41 = vld [vmem:[#allocation24 + $0xb40] ss:$40 sps:$4 sm:$0xff]  }
 0x9f4   : > { %12532 = vmatpush2.bf16.msra.mxu0 %v22555_v35  ;;  %v22620_v35 = vld [vmem:[#allocation24 + $0xaf4] ss:$40 sps:$4 sm:$0xff]  }
 0x9f5   : > { %12533 = vmatprep.subr.bf16.mxu0 %v22563_v38  ;;  %v22618_v38 = vld [vmem:[#allocation24 + $0xaf0] ss:$40 sps:$4 sm:$0xff]  }
 0x9f8   : > { %12534 = vmatpush2.bf16.msra.mxu0 %v22561_v39  ;;  %v22626_v39 = vld [vmem:[#allocation24 + $0xaa4] ss:$40 sps:$4 sm:$0xff]  }
 0x9f9   : > { %12535 = vmatprep.subr.bf16.mxu0 %v22569_v48  ;;  %v22624_v48 = vld [vmem:[#allocation24 + $0xaa0] ss:$40 sps:$4 sm:$0xff]  }
 0x9fc   : > { %12536 = vmatpush2.bf16.msra.mxu0 %v22567_v50  ;;  %v22632_v50 = vld [vmem:[#allocation24 + $0xa54] ss:$40 sps:$4 sm:$0xff]  }
 0x9fd   : > { %12537 = vmatprep.subr.bf16.mxu0 %v22575_v7  ;;  %v22635_v7 = vld [vmem:[#allocation24 + $0x5c] ss:$40 sps:$4 sm:$0xff]  }
 0xa00   : > { %12538 = vmatpush2.bf16.msra.mxu0 %v22573_v59  ;;  %v9672_v59 = vrot.slane %v25147_v63, %v25110_v57  ;;  %v22644_v63 = vld [vmem:[#allocation24 + $0x4bc] ss:$40 sps:$4 sm:$0xff]  }
 0xa01   : > { %12539 = vmatprep.subr.bf16.mxu0 %v22581_v10  ;;  %v22630_v10 = vld [vmem:[#allocation24 + $0xa50] ss:$40 sps:$4 sm:$0xff]  }
 0xa04   : > { %12540 = vmatpush2.bf16.msra.mxu0 %v22579_v2  ;;  %v22633_v2 = vld [vmem:[#allocation24 + $0x58] ss:$40 sps:$4 sm:$0xff]  }
 0xa05   : > { %12541 = vmatprep.subr.bf16.mxu0 %v22587_v51 }
 0xa08   : > { %12542 = vmatpush2.bf16.msra.mxu0 %v22585_v60  ;;  %v22638_v60 = vld [vmem:[#allocation24 + $0xa04] ss:$40 sps:$4 sm:$0xff]  }
 0xa09   : > { %12543 = vmatprep.subr.bf16.mxu0 %v22593_v61  ;;  %v22641_v61 = vld [vmem:[#allocation24 + $0xc] ss:$40 sps:$4 sm:$0xff]  }
 0xa0c   : > { %12544 = vmatpush2.bf16.msra.mxu0 %v22591_v46 }
 0xa0d   : > { %12595 = vmatprep.subr.bf16.mxu0 %v22599_v47 }
 0xa6f   : > { %v9920_v37 = vpop.f32.mrf.mxu0  ;;  %v9961_v30 = vpop.f32.mrf.mxu1 }
 0xa70   : > { %v9921_v9 = vadd.f32 %v9920_v37, %v9656_v0  ;;  %v9962_v22 = vadd.f32 %v9961_v30, %v9664_v1  ;;  %v22636_v0 = vld [vmem:[#allocation24 + $0xa00] ss:$40 sps:$4 sm:$0xff]   ;;  %v22647_v37 = vld [vmem:[#allocation24 + $0x73c] ss:$40 sps:$4 sm:$0xff]  }
 0xa71   : > { %v9922_v6 = vpop.f32.mrf.mxu0  ;;  %v9963_v58 = vpop.f32.mrf.mxu1  ;;  %v22639_v1 = vld [vmem:[#allocation24 + $0x8] ss:$40 sps:$4 sm:$0xff]  }
 0xa72   : > { %v9923_v4 = vadd.f32 %v9922_v6, %v9660_v36  ;;  %v9964_v12 = vadd.f32 %v9963_v58, %v9668_v20  ;;  %v10008_v14 = vmax.f32 %v9921_v9, 0.0  ;;  %v10010_v44 = vmax.f32 %v9962_v22, 0.0  ;;  %v22642_v9 = vld [vmem:[#allocation24 + $0x4b8] ss:$40 sps:$4 sm:$0xff]   ;;  %v22650_v58 = vld [vmem:[#allocation24 + $0x46c] ss:$40 sps:$4 sm:$0xff]  }
 0xa73   : > { %v9924_v42 = vpop.f32.mrf.mxu0  ;;  %v9965_v15 = vpop.f32.mrf.mxu1  ;;  %v22645_v22 = vld [vmem:[#allocation24 + $0x738] ss:$40 sps:$4 sm:$0xff]  }
 0xa74   : > { %v10009_v16 = vmax.f32 %v9923_v4, 0.0  ;;  %v10011_v17 = vmax.f32 %v9964_v12, 0.0  ;;  %v25161_v53 = vpack.c.bf16 %v10008_v14, %v10008_v14  ;;  %v25163_v43 = vpack.c.bf16 %v10010_v44, %v10010_v44  ;;  %v22653_v4 = vld [vmem:[#allocation24 + $0x6ec] ss:$40 sps:$4 sm:$0xff]   ;;  %v22648_v12 = vld [vmem:[#allocation24 + $0x468] ss:$40 sps:$4 sm:$0xff]  }
 0xa75   : > { %v9925_v18 = vpop.f32.mrf.mxu0  ;;  %v9966_v19 = vpop.f32.mrf.mxu1  ;;  %v22651_v14 = vld [vmem:[#allocation24 + $0x6e8] ss:$40 sps:$4 sm:$0xff]   ;;  %v22656_v44 = vld [vmem:[#allocation24 + $0x41c] ss:$40 sps:$4 sm:$0xff]   ;;  %v22654_v15 = vld [vmem:[#allocation24 + $0x418] ss:$40 sps:$4 sm:$0xff]  }
 0xa76   : > { %v25157_v28 = vpack.c.bf16 %v10009_v16, %v10009_v16  ;;  %v25159_v21 = vpack.c.bf16 %v10011_v17, %v10011_v17  ;;  %v22659_v42 = vld [vmem:[#allocation24 + $0x69c] ss:$40 sps:$4 sm:$0xff]   ;;  %v22657_v16 = vld [vmem:[#allocation24 + $0x698] ss:$40 sps:$4 sm:$0xff]   ;;  %v22662_v17 = vld [vmem:[#allocation24 + $0x3cc] ss:$40 sps:$4 sm:$0xff]  }
 0xa77   : > { %v22665_v18 = vld [vmem:[#allocation24 + $0x64c] ss:$40 sps:$4 sm:$0xff]   ;;  %v22660_v19 = vld [vmem:[#allocation24 + $0x3c8] ss:$40 sps:$4 sm:$0xff]  }
 0xa78   : > { %12504 = vmatprep.mubr.bf16.mxu1 %v25157_v28  ;;  %12545 = vmatprep.mubr.bf16.mxu0 %v25159_v21 }
 0xa79   : > { %12505 = vmatmul.mubr.bf16.vlgmr.msra.gmra.mxu1 %v25161_v53  ;;  %12546 = vmatmul.mubr.bf16.vlgmr.msra.gmra.mxu0 %v25163_v43 }
 0xa7a   : > { %12555 = vmatpush1.bf16.msra.mxu1 %v22594_v23  ;;  %12596 = vmatpush1.bf16.msra.mxu0 %v22597_v52  ;;  %v22663_v23 = vld [vmem:[#allocation24 + $0x648] ss:$40 sps:$4 sm:$0xff]   ;;  %v22668_v52 = vld [vmem:[#allocation24 + $0x37c] ss:$40 sps:$4 sm:$0xff]  }
 0xa7b   : > { %12627 = vmatprep.mubr.bf16.mxu0 %v25157_v28  ;;  %12556 = vmatprep.subr.bf16.mxu1 %v22602_v24  ;;  %v22671_v24 = vld [vmem:[#allocation24 + $0x5fc] ss:$40 sps:$4 sm:$0xff]  }
 0xa7c   : > { %12597 = vmatprep.subr.bf16.mxu0 %v22605_v25  ;;  %12586 = vmatprep.mubr.bf16.mxu1 %v23704_v11  ;;  %v22666_v25 = vld [vmem:[#allocation24 + $0x378] ss:$40 sps:$4 sm:$0xff]  }
 0xa7e   : > { %12557 = vmatpush1.bf16.msra.mxu1 %v22600_v54  ;;  %12598 = vmatpush1.bf16.msra.mxu0 %v22603_v55  ;;  %v22669_v54 = vld [vmem:[#allocation24 + $0x5f8] ss:$40 sps:$4 sm:$0xff]   ;;  %v22674_v55 = vld [vmem:[#allocation24 + $0x32c] ss:$40 sps:$4 sm:$0xff]  }
 0xa7f   : > { %12558 = vmatprep.subr.bf16.mxu1 %v22608_v31  ;;  %12599 = vmatprep.subr.bf16.mxu0 %v22611_v26  ;;  %v22677_v31 = vld [vmem:[#allocation24 + $0x5ac] ss:$40 sps:$4 sm:$0xff]   ;;  %v22672_v26 = vld [vmem:[#allocation24 + $0x328] ss:$40 sps:$4 sm:$0xff]  }
 0xa82   : > { %12559 = vmatpush1.bf16.msra.mxu1 %v22606_v27  ;;  %12600 = vmatpush1.bf16.msra.mxu0 %v22609_v29  ;;  %v22675_v27 = vld [vmem:[#allocation24 + $0x5a8] ss:$40 sps:$4 sm:$0xff]   ;;  %v22680_v29 = vld [vmem:[#allocation24 + $0x2dc] ss:$40 sps:$4 sm:$0xff]  }
 0xa83   : > { %12560 = vmatprep.subr.bf16.mxu1 %v22614_v32  ;;  %12601 = vmatprep.subr.bf16.mxu0 %v22617_v33  ;;  %v22683_v32 = vld [vmem:[#allocation24 + $0x55c] ss:$40 sps:$4 sm:$0xff]   ;;  %v22678_v33 = vld [vmem:[#allocation24 + $0x2d8] ss:$40 sps:$4 sm:$0xff]  }
 0xa86   : > { %12561 = vmatpush1.bf16.msra.mxu1 %v22612_v41  ;;  %12602 = vmatpush1.bf16.msra.mxu0 %v22615_v34  ;;  %v22681_v41 = vld [vmem:[#allocation24 + $0x558] ss:$40 sps:$4 sm:$0xff]   ;;  %v22686_v34 = vld [vmem:[#allocation24 + $0x28c] ss:$40 sps:$4 sm:$0xff]  }
 0xa87   : > { %12562 = vmatprep.subr.bf16.mxu1 %v22620_v35  ;;  %12603 = vmatprep.subr.bf16.mxu0 %v22623_v3  ;;  %v22689_v35 = vld [vmem:[#allocation24 + $0x50c] ss:$40 sps:$4 sm:$0xff]   ;;  %v22684_v3 = vld [vmem:[#allocation24 + $0x288] ss:$40 sps:$4 sm:$0xff]  }
 0xa8a   : > { %12563 = vmatpush1.bf16.msra.mxu1 %v22618_v38  ;;  %12604 = vmatpush1.bf16.msra.mxu0 %v22621_v45  ;;  %v22687_v38 = vld [vmem:[#allocation24 + $0x508] ss:$40 sps:$4 sm:$0xff]   ;;  %v22692_v45 = vld [vmem:[#allocation24 + $0x9bc] ss:$40 sps:$4 sm:$0xff]  }
 0xa8b   : > { %12564 = vmatprep.subr.bf16.mxu1 %v22626_v39  ;;  %12605 = vmatprep.subr.bf16.mxu0 %v22629_v8  ;;  %v22695_v39 = vld [vmem:[#allocation24 + $0xc3c] ss:$40 sps:$4 sm:$0xff]   ;;  %v22690_v8 = vld [vmem:[#allocation24 + $0x9b8] ss:$40 sps:$4 sm:$0xff]  }
 0xa8e   : > { %12565 = vmatpush1.bf16.msra.mxu1 %v22624_v48  ;;  %12606 = vmatpush1.bf16.msra.mxu0 %v22627_v49  ;;  %v22693_v48 = vld [vmem:[#allocation24 + $0xc38] ss:$40 sps:$4 sm:$0xff]   ;;  %v22698_v49 = vld [vmem:[#allocation24 + $0x96c] ss:$40 sps:$4 sm:$0xff]  }
 0xa8f   : > { %v10002_v51 = vpop.f32.mrf.mxu0  ;;  %12566 = vmatprep.subr.bf16.mxu1 %v22632_v50  ;;  %12607 = vmatprep.subr.bf16.mxu0 %v22635_v7  ;;  %v22701_v50 = vld [vmem:[#allocation24 + $0xbec] ss:$40 sps:$4 sm:$0xff]   ;;  %v22696_v7 = vld [vmem:[#allocation24 + $0x968] ss:$40 sps:$4 sm:$0xff]  }
 0xa90   : > { %v10003_v46 = vadd.f32 %v10002_v51, %v9672_v59  ;;  %v22699_v59 = vld [vmem:[#allocation24 + $0xbe8] ss:$40 sps:$4 sm:$0xff]   ;;  %v22702_v51 = vld [vmem:[#allocation24 + $0x918] ss:$40 sps:$4 sm:$0xff]  }
 0xa91   : > { %v20631_v47 = vpop.f32.mrf.mxu0 }
 0xa92   : > { %12567 = vmatpush1.bf16.msra.mxu1 %v22630_v10  ;;  %12608 = vmatpush1.bf16.msra.mxu0 %v22633_v2  ;;  %v10012_v36 = vmax.f32 %v10003_v46, 0.0  ;;  %v22704_v10 = vld [vmem:[#allocation24 + $0x91c] ss:$40 sps:$4 sm:$0xff]   ;;  %v22713_v46 = vld [vmem:[#allocation24 + $0xb4c] ss:$40 sps:$4 sm:$0xff]  }
 0xa93   : > { %v10005_v20 = vpop.f32.mrf.mxu0  ;;  %12568 = vmatprep.subr.bf16.mxu1 %v22638_v60  ;;  %12609 = vmatprep.subr.bf16.mxu0 %v22641_v61  ;;  %v22707_v2 = vld [vmem:[#allocation24 + $0xb9c] ss:$40 sps:$4 sm:$0xff]   ;;  %v22705_v60 = vld [vmem:[#allocation24 + $0xb98] ss:$40 sps:$4 sm:$0xff]   ;;  %v22710_v61 = vld [vmem:[#allocation24 + $0x8cc] ss:$40 sps:$4 sm:$0xff]  }
 0xa94   : > { %v25173_v6 = vpack.c.bf16 %v10012_v36, %v10012_v36  ;;  %v22708_v47 = vld [vmem:[#allocation24 + $0x8c8] ss:$40 sps:$4 sm:$0xff]   ;;  %v22719_v36 = vld [vmem:[#allocation24 + $0xafc] ss:$40 sps:$4 sm:$0xff]   ;;  %v22714_v20 = vld [vmem:[#allocation24 + $0x878] ss:$40 sps:$4 sm:$0xff]  }
 0xa95   : > { %v20632_v30 = vpop.f32.mrf.mxu0 }
 0xa96   : > { %12569 = vmatpush1.bf16.msra.mxu1 %v22636_v0  ;;  %12610 = vmatpush1.bf16.msra.mxu0 %v22639_v1  ;;  %v22711_v0 = vld [vmem:[#allocation24 + $0xb48] ss:$40 sps:$4 sm:$0xff]   ;;  %v22716_v1 = vld [vmem:[#allocation24 + $0x87c] ss:$40 sps:$4 sm:$0xff]   ;;  %v22725_v30 = vld [vmem:[#allocation24 + $0xaac] ss:$40 sps:$4 sm:$0xff]  }
 0xa97   : > { %12611 = vmatprep.subr.bf16.mxu0 %v22644_v63  ;;  %12636 = vmatprep.subr.bf16.mxu1 %v22647_v37  ;;  %v22717_v63 = vld [vmem:[#allocation24 + $0xaf8] ss:$40 sps:$4 sm:$0xff]   ;;  %v22722_v37 = vld [vmem:[#allocation24 + $0x82c] ss:$40 sps:$4 sm:$0xff]  }
 0xa99   : > { %12587 = vmatmul.mubr.bf16.vlgmr.msra.gmra.mxu1 %v25173_v6 }
 0xa9a   : > { %12612 = vmatpush2.bf16.msra.mxu0 %v22642_v9  ;;  %12637 = vmatpush1.bf16.msra.mxu1 %v22645_v22  ;;  %v22720_v9 = vld [vmem:[#allocation24 + $0x828] ss:$40 sps:$4 sm:$0xff]  }
 0xa9b   : > { %12668 = vmatprep.mubr.bf16.mxu1 %v25159_v21  ;;  %12613 = vmatprep.subr.bf16.mxu0 %v22650_v58  ;;  %v22723_v22 = vld [vmem:[#allocation24 + $0xaa8] ss:$40 sps:$4 sm:$0xff]   ;;  %v22728_v58 = vld [vmem:[#allocation24 + $0x7dc] ss:$40 sps:$4 sm:$0xff]  }
 0xa9c   : > { %12638 = vmatprep.subr.bf16.mxu1 %v22653_v4  ;;  %v22731_v4 = vld [vmem:[#allocation24 + $0xa5c] ss:$40 sps:$4 sm:$0xff]  }
 0xa9e   : > { %12614 = vmatpush2.bf16.msra.mxu0 %v22648_v12  ;;  %12639 = vmatpush1.bf16.msra.mxu1 %v22651_v14  ;;  %v22726_v12 = vld [vmem:[#allocation24 + $0x7d8] ss:$40 sps:$4 sm:$0xff]  }
 0xa9f   : > { %12615 = vmatprep.subr.bf16.mxu0 %v22656_v44  ;;  %12640 = vmatprep.subr.bf16.mxu1 %v22659_v42  ;;  %v22729_v14 = vld [vmem:[#allocation24 + $0xa58] ss:$40 sps:$4 sm:$0xff]   ;;  %v22734_v44 = vld [vmem:[#allocation24 + $0x78c] ss:$40 sps:$4 sm:$0xff]  }
 0xaa0   : > { %v22737_v42 = vld [vmem:[#allocation24 + $0xa0c] ss:$40 sps:$4 sm:$0xff]  }
 0xaa2   : > { %12616 = vmatpush2.bf16.msra.mxu0 %v22654_v15  ;;  %12641 = vmatpush1.bf16.msra.mxu1 %v22657_v16  ;;  %v22732_v15 = vld [vmem:[#allocation24 + $0x788] ss:$40 sps:$4 sm:$0xff]  }
 0xaa3   : > { %12617 = vmatprep.subr.bf16.mxu0 %v22662_v17  ;;  %12642 = vmatprep.subr.bf16.mxu1 %v22665_v18  ;;  %v22735_v16 = vld [vmem:[#allocation24 + $0xa08] ss:$40 sps:$4 sm:$0xff]   ;;  %v22740_v17 = vld [vmem:[#allocation24 + $0x244] ss:$40 sps:$4 sm:$0xff]  }
 0xaa4   : > { %v22743_v18 = vld [vmem:[#allocation24 + $0x744] ss:$40 sps:$4 sm:$0xff]  }
 0xaa6   : > { %12618 = vmatpush2.bf16.msra.mxu0 %v22660_v19  ;;  %12643 = vmatpush1.bf16.msra.mxu1 %v22663_v23  ;;  %v22738_v19 = vld [vmem:[#allocation24 + $0x240] ss:$40 sps:$4 sm:$0xff]  }
 0xaa7   : > { %12619 = vmatprep.subr.bf16.mxu0 %v22668_v52  ;;  %12644 = vmatprep.subr.bf16.mxu1 %v22671_v24  ;;  %v22741_v23 = vld [vmem:[#allocation24 + $0x740] ss:$40 sps:$4 sm:$0xff]   ;;  %v22746_v52 = vld [vmem:[#allocation24 + $0x1f4] ss:$40 sps:$4 sm:$0xff]  }
 0xaa8   : > { %v22749_v24 = vld [vmem:[#allocation24 + $0x6f4] ss:$40 sps:$4 sm:$0xff]  }
 0xaaa   : > { %12620 = vmatpush2.bf16.msra.mxu0 %v22666_v25  ;;  %12645 = vmatpush1.bf16.msra.mxu1 %v22669_v54  ;;  %v22744_v25 = vld [vmem:[#allocation24 + $0x1f0] ss:$40 sps:$4 sm:$0xff]  }
 0xaab   : > { %12621 = vmatprep.subr.bf16.mxu0 %v22674_v55  ;;  %12646 = vmatprep.subr.bf16.mxu1 %v22677_v31  ;;  %v22747_v54 = vld [vmem:[#allocation24 + $0x6f0] ss:$40 sps:$4 sm:$0xff]   ;;  %v22752_v55 = vld [vmem:[#allocation24 + $0x1a4] ss:$40 sps:$4 sm:$0xff]  }
 0xaac   : > { %v22755_v31 = vld [vmem:[#allocation24 + $0x6a4] ss:$40 sps:$4 sm:$0xff]  }
 0xaae   : > { %12622 = vmatpush2.bf16.msra.mxu0 %v22672_v26  ;;  %12647 = vmatpush1.bf16.msra.mxu1 %v22675_v27  ;;  %v22750_v26 = vld [vmem:[#allocation24 + $0x1a0] ss:$40 sps:$4 sm:$0xff]  }
 0xaaf   : > { %12623 = vmatprep.subr.bf16.mxu0 %v22680_v29  ;;  %12648 = vmatprep.subr.bf16.mxu1 %v22683_v32  ;;  %v22753_v27 = vld [vmem:[#allocation24 + $0x6a0] ss:$40 sps:$4 sm:$0xff]   ;;  %v22758_v29 = vld [vmem:[#allocation24 + $0x154] ss:$40 sps:$4 sm:$0xff]  }
 0xab0   : > { %v22761_v32 = vld [vmem:[#allocation24 + $0x654] ss:$40 sps:$4 sm:$0xff]  }
 0xab2   : > { %12624 = vmatpush2.bf16.msra.mxu0 %v22678_v33  ;;  %12649 = vmatpush1.bf16.msra.mxu1 %v22681_v41  ;;  %v22756_v33 = vld [vmem:[#allocation24 + $0x150] ss:$40 sps:$4 sm:$0xff]  }
 0xab3   : > { %12625 = vmatprep.subr.bf16.mxu0 %v22686_v34  ;;  %12650 = vmatprep.subr.bf16.mxu1 %v22689_v35  ;;  %v22759_v41 = vld [vmem:[#allocation24 + $0x650] ss:$40 sps:$4 sm:$0xff]   ;;  %v22764_v34 = vld [vmem:[#allocation24 + $0x104] ss:$40 sps:$4 sm:$0xff]  }
 0xab4   : > { %v22767_v35 = vld [vmem:[#allocation24 + $0x604] ss:$40 sps:$4 sm:$0xff]  }
 0xab6   : > { %12626 = vmatpush2.bf16.msra.mxu0 %v22684_v3  ;;  %12651 = vmatpush1.bf16.msra.mxu1 %v22687_v38  ;;  %v22762_v3 = vld [vmem:[#allocation24 + $0x100] ss:$40 sps:$4 sm:$0xff]  }
 0xab7   : > { %12652 = vmatprep.subr.bf16.mxu1 %v22692_v45  ;;  %12677 = vmatprep.subr.bf16.mxu0 %v22695_v39  ;;  %v22765_v38 = vld [vmem:[#allocation24 + $0x600] ss:$40 sps:$4 sm:$0xff]   ;;  %v22770_v45 = vld [vmem:[#allocation24 + $0xb4] ss:$40 sps:$4 sm:$0xff]  }
 0xab8   : > { %v22773_v39 = vld [vmem:[#allocation24 + $0x5b4] ss:$40 sps:$4 sm:$0xff]  }
 0xab9   : > { %12628 = vmatmul.mubr.bf16.vlgmr.msra.gmra.mxu0 %v25161_v53 }
 0xaba   : > { %12653 = vmatpush2.bf16.msra.mxu1 %v22690_v8  ;;  %12678 = vmatpush1.bf16.msra.mxu0 %v22693_v48  ;;  %v22768_v8 = vld [vmem:[#allocation24 + $0xb0] ss:$40 sps:$4 sm:$0xff]  }
 0xabb   : > { %12654 = vmatprep.subr.bf16.mxu1 %v22698_v49  ;;  %12679 = vmatprep.subr.bf16.mxu0 %v22701_v50  ;;  %v22771_v48 = vld [vmem:[#allocation24 + $0x5b0] ss:$40 sps:$4 sm:$0xff]   ;;  %v22776_v49 = vld [vmem:[#allocation24 + $0x64] ss:$40 sps:$4 sm:$0xff]  }
 0xabc   : > { %12709 = vmatprep.mubr.bf16.mxu0 %v23704_v11  ;;  %v22779_v50 = vld [vmem:[#allocation24 + $0x564] ss:$40 sps:$4 sm:$0xff]  }
 0xabe   : > { %12655 = vmatpush2.bf16.msra.mxu1 %v22696_v7  ;;  %12680 = vmatpush1.bf16.msra.mxu0 %v22699_v59  ;;  %v22774_v7 = vld [vmem:[#allocation24 + $0x60] ss:$40 sps:$4 sm:$0xff]  }
 0xabf   : > { %12656 = vmatprep.subr.bf16.mxu1 %v22704_v10  ;;  %12681 = vmatprep.subr.bf16.mxu0 %v22707_v2  ;;  %v22777_v59 = vld [vmem:[#allocation24 + $0x560] ss:$40 sps:$4 sm:$0xff]   ;;  %v22782_v10 = vld [vmem:[#allocation24 + $0x14] ss:$40 sps:$4 sm:$0xff]  }
 0xac0   : > { %v22785_v2 = vld [vmem:[#allocation24 + $0x514] ss:$40 sps:$4 sm:$0xff]  }
 0xac2   : > { %12657 = vmatpush2.bf16.msra.mxu1 %v22702_v51  ;;  %12682 = vmatpush1.bf16.msra.mxu0 %v22705_v60  ;;  %v22780_v51 = vld [vmem:[#allocation24 + $0x10] ss:$40 sps:$4 sm:$0xff]  }
 0xac3   : > { %12658 = vmatprep.subr.bf16.mxu1 %v22710_v61  ;;  %12683 = vmatprep.subr.bf16.mxu0 %v22713_v46  ;;  %v22783_v60 = vld [vmem:[#allocation24 + $0x510] ss:$40 sps:$4 sm:$0xff]   ;;  %v22788_v61 = vld [vmem:[#allocation24 + $0x4c4] ss:$40 sps:$4 sm:$0xff]  }
 0xac4   : > { %v22791_v46 = vld [vmem:[#allocation24 + $0x9c4] ss:$40 sps:$4 sm:$0xff]  }
 0xac6   : > { %12659 = vmatpush2.bf16.msra.mxu1 %v22708_v47  ;;  %12684 = vmatpush1.bf16.msra.mxu0 %v22711_v0  ;;  %v22786_v47 = vld [vmem:[#allocation24 + $0x4c0] ss:$40 sps:$4 sm:$0xff]  }
 0xac7   : > { %12660 = vmatprep.subr.bf16.mxu1 %v22716_v1  ;;  %12685 = vmatprep.subr.bf16.mxu0 %v22719_v36  ;;  %v22789_v0 = vld [vmem:[#allocation24 + $0x9c0] ss:$40 sps:$4 sm:$0xff]   ;;  %v22794_v1 = vld [vmem:[#allocation24 + $0x474] ss:$40 sps:$4 sm:$0xff]  }
 0xac8   : > { %v22797_v36 = vld [vmem:[#allocation24 + $0x974] ss:$40 sps:$4 sm:$0xff]  }
 0xaca   : > { %12661 = vmatpush2.bf16.msra.mxu1 %v22714_v20  ;;  %12686 = vmatpush1.bf16.msra.mxu0 %v22717_v63  ;;  %v22792_v20 = vld [vmem:[#allocation24 + $0x470] ss:$40 sps:$4 sm:$0xff]  }
 0xacb   : > { %12662 = vmatprep.subr.bf16.mxu1 %v22722_v37  ;;  %12687 = vmatprep.subr.bf16.mxu0 %v22725_v30  ;;  %v22795_v63 = vld [vmem:[#allocation24 + $0x970] ss:$40 sps:$4 sm:$0xff]   ;;  %v22800_v37 = vld [vmem:[#allocation24 + $0x424] ss:$40 sps:$4 sm:$0xff]  }
 0xacc   : > { %v22803_v30 = vld [vmem:[#allocation24 + $0x924] ss:$40 sps:$4 sm:$0xff]  }
 0xace   : > { %12663 = vmatpush2.bf16.msra.mxu1 %v22720_v9  ;;  %12688 = vmatpush1.bf16.msra.mxu0 %v22723_v22  ;;  %v22798_v9 = vld [vmem:[#allocation24 + $0x420] ss:$40 sps:$4 sm:$0xff]  }
 0xacf   : > { %12664 = vmatprep.subr.bf16.mxu1 %v22728_v58  ;;  %12689 = vmatprep.subr.bf16.mxu0 %v22731_v4  ;;  %v22801_v22 = vld [vmem:[#allocation24 + $0x920] ss:$40 sps:$4 sm:$0xff]   ;;  %v22806_v58 = vld [vmem:[#allocation24 + $0x3d4] ss:$40 sps:$4 sm:$0xff]  }
 0xad0   : > { %v22809_v4 = vld [vmem:[#allocation24 + $0x8d4] ss:$40 sps:$4 sm:$0xff]  }
 0xad2   : > { %12665 = vmatpush2.bf16.msra.mxu1 %v22726_v12  ;;  %12690 = vmatpush1.bf16.msra.mxu0 %v22729_v14  ;;  %v22804_v12 = vld [vmem:[#allocation24 + $0x3d0] ss:$40 sps:$4 sm:$0xff]  }
 0xad3   : > { %12666 = vmatprep.subr.bf16.mxu1 %v22734_v44  ;;  %12691 = vmatprep.subr.bf16.mxu0 %v22737_v42  ;;  %v22807_v14 = vld [vmem:[#allocation24 + $0x8d0] ss:$40 sps:$4 sm:$0xff]   ;;  %v22812_v44 = vld [vmem:[#allocation24 + $0x384] ss:$40 sps:$4 sm:$0xff]  }
 0xad4   : > { %v22815_v42 = vld [vmem:[#allocation24 + $0x884] ss:$40 sps:$4 sm:$0xff]  }
 0xad6   : > { %12667 = vmatpush2.bf16.msra.mxu1 %v22732_v15  ;;  %12692 = vmatpush1.bf16.msra.mxu0 %v22735_v16  ;;  %v22810_v15 = vld [vmem:[#allocation24 + $0x380] ss:$40 sps:$4 sm:$0xff]  }
 0xad7   : > { %12718 = vmatprep.subr.bf16.mxu1 %v22740_v17  ;;  %12759 = vmatprep.subr.bf16.mxu0 %v22743_v18  ;;  %v22813_v16 = vld [vmem:[#allocation24 + $0x880] ss:$40 sps:$4 sm:$0xff]   ;;  %v22818_v17 = vld [vmem:[#allocation24 + $0x334] ss:$40 sps:$4 sm:$0xff]  }
 0xad8   : > { %v22821_v18 = vld [vmem:[#allocation24 + $0x834] ss:$40 sps:$4 sm:$0xff]  }
 0xad9   : > { %12669 = vmatmul.mubr.bf16.vlgmr.msra.gmra.mxu1 %v25163_v43  ;;  %12710 = vmatmul.mubr.bf16.vlgmr.msra.gmra.mxu0 %v25173_v6 }
 0xada   : > { %12719 = vmatpush1.bf16.msra.mxu1 %v22738_v19  ;;  %12750 = vmatprep.mubr.bf16.mxu1 %v25157_v28  ;;  %v22816_v19 = vld [vmem:[#allocation24 + $0x330] ss:$40 sps:$4 sm:$0xff]  }
 0xadb   : > { %12760 = vmatpush1.bf16.msra.mxu0 %v22741_v23  ;;  %12791 = vmatprep.mubr.bf16.mxu0 %v25159_v21  ;;  %v22819_v23 = vld [vmem:[#allocation24 + $0x830] ss:$40 sps:$4 sm:$0xff]  }
 0xadc   : > { %12720 = vmatprep.subr.bf16.mxu1 %v22746_v52  ;;  %12761 = vmatprep.subr.bf16.mxu0 %v22749_v24  ;;  %v22824_v52 = vld [vmem:[#allocation24 + $0x2e4] ss:$40 sps:$4 sm:$0xff]  }
 0xadd   : > { %v22827_v24 = vld [vmem:[#allocation24 + $0x7e4] ss:$40 sps:$4 sm:$0xff]  }
 0xade   : > { %12721 = vmatpush1.bf16.msra.mxu1 %v22744_v25  ;;  %v22822_v25 = vld [vmem:[#allocation24 + $0x2e0] ss:$40 sps:$4 sm:$0xff]  }
 0xadf   : > { %12762 = vmatpush1.bf16.msra.mxu0 %v22747_v54  ;;  %12722 = vmatprep.subr.bf16.mxu1 %v22752_v55  ;;  %v22825_v54 = vld [vmem:[#allocation24 + $0x7e0] ss:$40 sps:$4 sm:$0xff]   ;;  %v22830_v55 = vld [vmem:[#allocation24 + $0x294] ss:$40 sps:$4 sm:$0xff]  }
 0xae0   : > { %12763 = vmatprep.subr.bf16.mxu0 %v22755_v31  ;;  %v22833_v31 = vld [vmem:[#allocation24 + $0x794] ss:$40 sps:$4 sm:$0xff]  }
 0xae2   : > { %12723 = vmatpush1.bf16.msra.mxu1 %v22750_v26  ;;  %v22828_v26 = vld [vmem:[#allocation24 + $0x290] ss:$40 sps:$4 sm:$0xff]  }
 0xae3   : > { %12764 = vmatpush1.bf16.msra.mxu0 %v22753_v27  ;;  %12724 = vmatprep.subr.bf16.mxu1 %v22758_v29  ;;  %v22831_v27 = vld [vmem:[#allocation24 + $0x790] ss:$40 sps:$4 sm:$0xff]   ;;  %v22836_v29 = vld [vmem:[#allocation24 + $0xc44] ss:$40 sps:$4 sm:$0xff]  }
 0xae4   : > { %12765 = vmatprep.subr.bf16.mxu0 %v22761_v32  ;;  %v22839_v32 = vld [vmem:[#allocation24 + $0x24c] ss:$40 sps:$4 sm:$0xff]  }
 0xae6   : > { %12725 = vmatpush1.bf16.msra.mxu1 %v22756_v33  ;;  %v22834_v33 = vld [vmem:[#allocation24 + $0xc40] ss:$40 sps:$4 sm:$0xff]  }
 0xae7   : > { %12766 = vmatpush1.bf16.msra.mxu0 %v22759_v41  ;;  %12726 = vmatprep.subr.bf16.mxu1 %v22764_v34  ;;  %v22837_v41 = vld [vmem:[#allocation24 + $0x248] ss:$40 sps:$4 sm:$0xff]   ;;  %v22842_v34 = vld [vmem:[#allocation24 + $0xbf4] ss:$40 sps:$4 sm:$0xff]  }
 0xae8   : > { %12767 = vmatprep.subr.bf16.mxu0 %v22767_v35  ;;  %v22845_v35 = vld [vmem:[#allocation24 + $0x1fc] ss:$40 sps:$4 sm:$0xff]  }
 0xaea   : > { %12727 = vmatpush1.bf16.msra.mxu1 %v22762_v3  ;;  %v22840_v3 = vld [vmem:[#allocation24 + $0xbf0] ss:$40 sps:$4 sm:$0xff]  }
 0xaeb   : > { %12768 = vmatpush1.bf16.msra.mxu0 %v22765_v38  ;;  %12728 = vmatprep.subr.bf16.mxu1 %v22770_v45  ;;  %v22843_v38 = vld [vmem:[#allocation24 + $0x1f8] ss:$40 sps:$4 sm:$0xff]   ;;  %v22848_v45 = vld [vmem:[#allocation24 + $0xba4] ss:$40 sps:$4 sm:$0xff]  }
 0xaec   : > { %12769 = vmatprep.subr.bf16.mxu0 %v22773_v39  ;;  %v22851_v39 = vld [vmem:[#allocation24 + $0x1ac] ss:$40 sps:$4 sm:$0xff]  }
 0xaee   : > { %12729 = vmatpush1.bf16.msra.mxu1 %v22768_v8  ;;  %v22846_v8 = vld [vmem:[#allocation24 + $0xba0] ss:$40 sps:$4 sm:$0xff]  }
 0xaef   : > { %12770 = vmatpush1.bf16.msra.mxu0 %v22771_v48  ;;  %12730 = vmatprep.subr.bf16.mxu1 %v22776_v49  ;;  %v22849_v48 = vld [vmem:[#allocation24 + $0x1a8] ss:$40 sps:$4 sm:$0xff]   ;;  %v22854_v49 = vld [vmem:[#allocation24 + $0xb54] ss:$40 sps:$4 sm:$0xff]  }
 0xaf0   : > { %12771 = vmatprep.subr.bf16.mxu0 %v22779_v50  ;;  %v22857_v50 = vld [vmem:[#allocation24 + $0x15c] ss:$40 sps:$4 sm:$0xff]  }
 0xaf2   : > { %12731 = vmatpush1.bf16.msra.mxu1 %v22774_v7  ;;  %v22852_v7 = vld [vmem:[#allocation24 + $0xb50] ss:$40 sps:$4 sm:$0xff]  }
 0xaf3   : > { %12772 = vmatpush1.bf16.msra.mxu0 %v22777_v59  ;;  %12732 = vmatprep.subr.bf16.mxu1 %v22782_v10  ;;  %v22855_v59 = vld [vmem:[#allocation24 + $0x158] ss:$40 sps:$4 sm:$0xff]   ;;  %v22860_v10 = vld [vmem:[#allocation24 + $0xb04] ss:$40 sps:$4 sm:$0xff]  }
 0xaf4   : > { %12773 = vmatprep.subr.bf16.mxu0 %v22785_v2  ;;  %v22863_v2 = vld [vmem:[#allocation24 + $0x10c] ss:$40 sps:$4 sm:$0xff]  }
 0xaf6   : > { %12733 = vmatpush1.bf16.msra.mxu1 %v22780_v51  ;;  %v22858_v51 = vld [vmem:[#allocation24 + $0xb00] ss:$40 sps:$4 sm:$0xff]  }
 0xaf7   : > { %12774 = vmatpush1.bf16.msra.mxu0 %v22783_v60  ;;  %12734 = vmatprep.subr.bf16.mxu1 %v22788_v61  ;;  %v22861_v60 = vld [vmem:[#allocation24 + $0x108] ss:$40 sps:$4 sm:$0xff]   ;;  %v22866_v61 = vld [vmem:[#allocation24 + $0xab4] ss:$40 sps:$4 sm:$0xff]  }
 0xaf8   : > { %12775 = vmatprep.subr.bf16.mxu0 %v22791_v46  ;;  %v22869_v46 = vld [vmem:[#allocation24 + $0xbc] ss:$40 sps:$4 sm:$0xff]  }
 0xafa   : > { %12735 = vmatpush2.bf16.msra.mxu1 %v22786_v47  ;;  %v22864_v47 = vld [vmem:[#allocation24 + $0xab0] ss:$40 sps:$4 sm:$0xff]  }
 0xafb   : > { %12776 = vmatpush2.bf16.msra.mxu0 %v22789_v0  ;;  %12736 = vmatprep.subr.bf16.mxu1 %v22794_v1  ;;  %v22867_v0 = vld [vmem:[#allocation24 + $0xb8] ss:$40 sps:$4 sm:$0xff]   ;;  %v22872_v1 = vld [vmem:[#allocation24 + $0xa64] ss:$40 sps:$4 sm:$0xff]  }
 0xafc   : > { %12777 = vmatprep.subr.bf16.mxu0 %v22797_v36  ;;  %v22875_v36 = vld [vmem:[#allocation24 + $0x6c] ss:$40 sps:$4 sm:$0xff]  }
 0xafe   : > { %12737 = vmatpush2.bf16.msra.mxu1 %v22792_v20  ;;  %v22870_v20 = vld [vmem:[#allocation24 + $0xa60] ss:$40 sps:$4 sm:$0xff]  }
 0xaff   : > { %12778 = vmatpush2.bf16.msra.mxu0 %v22795_v63  ;;  %12738 = vmatprep.subr.bf16.mxu1 %v22800_v37  ;;  %v22873_v63 = vld [vmem:[#allocation24 + $0x68] ss:$40 sps:$4 sm:$0xff]   ;;  %v22878_v37 = vld [vmem:[#allocation24 + $0xa14] ss:$40 sps:$4 sm:$0xff]  }
 0xb00   : > { %12779 = vmatprep.subr.bf16.mxu0 %v22803_v30  ;;  %v22881_v30 = vld [vmem:[#allocation24 + $0x1c] ss:$40 sps:$4 sm:$0xff]  }
 0xb02   : > { %12739 = vmatpush2.bf16.msra.mxu1 %v22798_v9  ;;  %v22876_v9 = vld [vmem:[#allocation24 + $0xa10] ss:$40 sps:$4 sm:$0xff]  }
 0xb03   : > { %12780 = vmatpush2.bf16.msra.mxu0 %v22801_v22  ;;  %12740 = vmatprep.subr.bf16.mxu1 %v22806_v58  ;;  %v22879_v22 = vld [vmem:[#allocation24 + $0x18] ss:$40 sps:$4 sm:$0xff]   ;;  %v22887_v58 = vld [vmem:[#allocation24 + $0x74c] ss:$40 sps:$4 sm:$0xff]  }
 0xb04   : > { %12781 = vmatprep.subr.bf16.mxu0 %v22809_v4  ;;  %v22884_v4 = vld [vmem:[#allocation24 + $0x4cc] ss:$40 sps:$4 sm:$0xff]  }
 0xb06   : > { %12741 = vmatpush2.bf16.msra.mxu1 %v22804_v12  ;;  %v22885_v12 = vld [vmem:[#allocation24 + $0x748] ss:$40 sps:$4 sm:$0xff]  }
 0xb07   : > { %12782 = vmatpush2.bf16.msra.mxu0 %v22807_v14  ;;  %12742 = vmatprep.subr.bf16.mxu1 %v22812_v44  ;;  %v22882_v14 = vld [vmem:[#allocation24 + $0x4c8] ss:$40 sps:$4 sm:$0xff]   ;;  %v22893_v44 = vld [vmem:[#allocation24 + $0x6fc] ss:$40 sps:$4 sm:$0xff]  }
 0xb08   : > { %12783 = vmatprep.subr.bf16.mxu0 %v22815_v42  ;;  %v22890_v42 = vld [vmem:[#allocation24 + $0x47c] ss:$40 sps:$4 sm:$0xff]  }
 0xb0a   : > { %12743 = vmatpush2.bf16.msra.mxu1 %v22810_v15 }
 0xb0b   : > { %12784 = vmatpush2.bf16.msra.mxu0 %v22813_v16  ;;  %12744 = vmatprep.subr.bf16.mxu1 %v22818_v17  ;;  %v22891_v17 = vld [vmem:[#allocation24 + $0x6f8] ss:$40 sps:$4 sm:$0xff]  }
 0xb0c   : > { %12785 = vmatprep.subr.bf16.mxu0 %v22821_v18 }
 0xb0e   : > { %12745 = vmatpush2.bf16.msra.mxu1 %v22816_v19 }
 0xb0f   : > { %12786 = vmatpush2.bf16.msra.mxu0 %v22819_v23  ;;  %12746 = vmatprep.subr.bf16.mxu1 %v22824_v52  ;;  %v22888_v23 = vld [vmem:[#allocation24 + $0x478] ss:$40 sps:$4 sm:$0xff]   ;;  %v22899_v52 = vld [vmem:[#allocation24 + $0x6ac] ss:$40 sps:$4 sm:$0xff]  }
 0xb10   : > { %12787 = vmatprep.subr.bf16.mxu0 %v22827_v24  ;;  %v22896_v24 = vld [vmem:[#allocation24 + $0x42c] ss:$40 sps:$4 sm:$0xff]  }
 0xb12   : > { %12747 = vmatpush2.bf16.msra.mxu1 %v22822_v25 }
 0xb13   : > { %12788 = vmatpush2.bf16.msra.mxu0 %v22825_v54  ;;  %12748 = vmatprep.subr.bf16.mxu1 %v22830_v55  ;;  %v22897_v55 = vld [vmem:[#allocation24 + $0x6a8] ss:$40 sps:$4 sm:$0xff]  }
 0xb14   : > { %12789 = vmatprep.subr.bf16.mxu0 %v22833_v31 }
 0xb16   : > { %12749 = vmatpush2.bf16.msra.mxu1 %v22828_v26 }
 0xb17   : > { %12790 = vmatpush2.bf16.msra.mxu0 %v22831_v27  ;;  %12800 = vmatprep.subr.bf16.mxu1 %v22836_v29  ;;  %v22894_v27 = vld [vmem:[#allocation24 + $0x428] ss:$40 sps:$4 sm:$0xff]   ;;  %v22905_v29 = vld [vmem:[#allocation24 + $0x65c] ss:$40 sps:$4 sm:$0xff]  }
 0xb18   : > { %12841 = vmatprep.subr.bf16.mxu0 %v22839_v32  ;;  %v22902_v32 = vld [vmem:[#allocation24 + $0x3dc] ss:$40 sps:$4 sm:$0xff]  }
 0xb19   : > { %12751 = vmatmul.mubr.bf16.vlgmr.msra.gmra.mxu1 %v25161_v53 }
 0xb1a   : > { %12792 = vmatmul.mubr.bf16.vlgmr.msra.gmra.mxu0 %v25163_v43  ;;  %12801 = vmatpush1.bf16.msra.mxu1 %v22834_v33  ;;  %v22903_v33 = vld [vmem:[#allocation24 + $0x658] ss:$40 sps:$4 sm:$0xff]  }
 0xb1b   : > { %12842 = vmatpush1.bf16.msra.mxu0 %v22837_v41  ;;  %12873 = vmatprep.mubr.bf16.mxu0 %v25157_v28  ;;  %v22900_v41 = vld [vmem:[#allocation24 + $0x3d8] ss:$40 sps:$4 sm:$0xff]  }
 0xb1c   : > { %12802 = vmatprep.subr.bf16.mxu1 %v22842_v34  ;;  %12843 = vmatprep.subr.bf16.mxu0 %v22845_v35  ;;  %v22911_v34 = vld [vmem:[#allocation24 + $0x60c] ss:$40 sps:$4 sm:$0xff]  }
 0xb1d   : > { %12832 = vmatprep.mubr.bf16.mxu1 %v23704_v11  ;;  %v22908_v35 = vld [vmem:[#allocation24 + $0x38c] ss:$40 sps:$4 sm:$0xff]  }
 0xb1e   : > { %12803 = vmatpush1.bf16.msra.mxu1 %v22840_v3  ;;  %v22909_v3 = vld [vmem:[#allocation24 + $0x608] ss:$40 sps:$4 sm:$0xff]  }
 0xb1f   : > { %12844 = vmatpush1.bf16.msra.mxu0 %v22843_v38  ;;  %12804 = vmatprep.subr.bf16.mxu1 %v22848_v45  ;;  %v22906_v38 = vld [vmem:[#allocation24 + $0x388] ss:$40 sps:$4 sm:$0xff]   ;;  %v22917_v45 = vld [vmem:[#allocation24 + $0x5bc] ss:$40 sps:$4 sm:$0xff]  }
 0xb20   : > { %12845 = vmatprep.subr.bf16.mxu0 %v22851_v39  ;;  %v22914_v39 = vld [vmem:[#allocation24 + $0x33c] ss:$40 sps:$4 sm:$0xff]  }
 0xb22   : > { %12805 = vmatpush1.bf16.msra.mxu1 %v22846_v8  ;;  %v22915_v8 = vld [vmem:[#allocation24 + $0x5b8] ss:$40 sps:$4 sm:$0xff]  }
 0xb23   : > { %12846 = vmatpush1.bf16.msra.mxu0 %v22849_v48  ;;  %12806 = vmatprep.subr.bf16.mxu1 %v22854_v49  ;;  %v22912_v48 = vld [vmem:[#allocation24 + $0x338] ss:$40 sps:$4 sm:$0xff]   ;;  %v22923_v49 = vld [vmem:[#allocation24 + $0x56c] ss:$40 sps:$4 sm:$0xff]  }
 0xb24   : > { %12847 = vmatprep.subr.bf16.mxu0 %v22857_v50  ;;  %v22920_v50 = vld [vmem:[#allocation24 + $0x2ec] ss:$40 sps:$4 sm:$0xff]  }
 0xb26   : > { %12807 = vmatpush1.bf16.msra.mxu1 %v22852_v7  ;;  %v25197_v7 = vld [vmem:[#allocation26] sm:$0xff] }
 0xb27   : > { %12848 = vmatpush1.bf16.msra.mxu0 %v22855_v59  ;;  %12808 = vmatprep.subr.bf16.mxu1 %v22860_v10  ;;  %v22921_v59 = vld [vmem:[#allocation24 + $0x568] ss:$40 sps:$4 sm:$0xff]  }
 0xb28   : > { %12849 = vmatprep.subr.bf16.mxu0 %v22863_v2  ;;  %v22918_v10 = vld [vmem:[#allocation24 + $0x2e8] ss:$40 sps:$4 sm:$0xff]   ;;  %v22929_v2 = vld [vmem:[#allocation24 + $0x51c] ss:$40 sps:$4 sm:$0xff]  }
 0xb2a   : > { %12809 = vmatpush1.bf16.msra.mxu1 %v22858_v51  ;;  %v10425_v51 = vrot.slane %v25197_v7, %v25039_v40 }
 0xb2b   : > { %12850 = vmatpush1.bf16.msra.mxu0 %v22861_v60  ;;  %12810 = vmatprep.subr.bf16.mxu1 %v22866_v61  ;;  %v22926_v60 = vld [vmem:[#allocation24 + $0x29c] ss:$40 sps:$4 sm:$0xff]   ;;  %v10429_v61 = vrot.slane %v25197_v7, %v25042_v13 }
 0xb2c   : > { %12851 = vmatprep.subr.bf16.mxu0 %v22869_v46  ;;  %v22927_v46 = vld [vmem:[#allocation24 + $0x518] ss:$40 sps:$4 sm:$0xff]  }
 0xb2e   : > { %12811 = vmatpush1.bf16.msra.mxu1 %v22864_v47  ;;  %v22924_v47 = vld [vmem:[#allocation24 + $0x298] ss:$40 sps:$4 sm:$0xff]  }
 0xb2f   : > { %12852 = vmatpush1.bf16.msra.mxu0 %v22867_v0  ;;  %12812 = vmatprep.subr.bf16.mxu1 %v22872_v1  ;;  %v22932_v0 = vld [vmem:[#allocation24 + $0x9cc] ss:$40 sps:$4 sm:$0xff]  }
 0xb30   : > { %12853 = vmatprep.subr.bf16.mxu0 %v22875_v36  ;;  %v22935_v36 = vld [vmem:[#allocation24 + $0xc4c] ss:$40 sps:$4 sm:$0xff]  }
 0xb32   : > { %12813 = vmatpush1.bf16.msra.mxu1 %v22870_v20 }
 0xb33   : > { %12854 = vmatpush1.bf16.msra.mxu0 %v22873_v63  ;;  %12814 = vmatprep.subr.bf16.mxu1 %v22878_v37  ;;  %v22930_v63 = vld [vmem:[#allocation24 + $0x9c8] ss:$40 sps:$4 sm:$0xff]  }
 0xb34   : > { %12855 = vmatprep.subr.bf16.mxu0 %v22881_v30  ;;  %v22933_v37 = vld [vmem:[#allocation24 + $0xc48] ss:$40 sps:$4 sm:$0xff]   ;;  %v22938_v30 = vld [vmem:[#allocation24 + $0x97c] ss:$40 sps:$4 sm:$0xff]  }
 0xb36   : > { %12815 = vmatpush1.bf16.msra.mxu1 %v22876_v9 }
 0xb37   : > { %12856 = vmatpush1.bf16.msra.mxu0 %v22879_v22  ;;  %12882 = vmatprep.subr.bf16.mxu1 %v22887_v58  ;;  %v22941_v22 = vld [vmem:[#allocation24 + $0xbfc] ss:$40 sps:$4 sm:$0xff]  }
 0xb38   : > { %12857 = vmatprep.subr.bf16.mxu0 %v22884_v4 }
 0xb39   : > { %12833 = vmatmul.mubr.bf16.vlgmr.msra.gmra.mxu1 %v25173_v6  ;;  %v25188_v15 = vpop.f32.mrf.mxu1  ;;  %v25190_v16 = vpop.f32.mrf.mxu0 }
 0xb3a   : > { %12883 = vmatpush1.bf16.msra.mxu1 %v22885_v12  ;;  %12914 = vmatprep.mubr.bf16.mxu1 %v25159_v21  ;;  %v12507_v1 = vadd.f32 %v25188_v15, %v10425_v51  ;;  %v22944_v15 = vld [vmem:[#allocation24 + $0x92c] ss:$40 sps:$4 sm:$0xff]   ;;  %v22978_v51 = vld [vmem:[#allocation24 + $0x250] ss:$40 sps:$4 sm:$0xff]  }
 0xb3b   : > { %12858 = vmatpush2.bf16.msra.mxu0 %v22882_v14  ;;  %v25193_v18 = vpop.f32.mrf.mxu1  ;;  %v25195_v19 = vpop.f32.mrf.mxu0  ;;  %12884 = vmatprep.subr.bf16.mxu1 %v22893_v44  ;;  %v22936_v14 = vld [vmem:[#allocation24 + $0x978] ss:$40 sps:$4 sm:$0xff]  }
 0xb3c   : > { %12859 = vmatprep.subr.bf16.mxu0 %v22890_v42  ;;  %v12509_v20 = vadd.f32 %v25193_v18, %v10429_v61  ;;  %v12548_v9 = vadd.f32 %v25190_v16, %v12507_v1  ;;  %v22939_v42 = vld [vmem:[#allocation24 + $0xbf8] ss:$40 sps:$4 sm:$0xff]   ;;  %v22986_v61 = vld [vmem:[#allocation24 + $0x204] ss:$40 sps:$4 sm:$0xff]  }
 0xb3d   : > { %v12510_v25 = vpop.f32.mrf.mxu1  ;;  %v12551_v54 = vpop.f32.mrf.mxu0 }
 0xb3e   : > { %12885 = vmatpush1.bf16.msra.mxu1 %v22891_v17  ;;  %v12550_v4 = vadd.f32 %v25195_v19, %v12509_v20  ;;  %v22942_v19 = vld [vmem:[#allocation24 + $0x928] ss:$40 sps:$4 sm:$0xff]   ;;  %v22950_v54 = vld [vmem:[#allocation24 + $0x8dc] ss:$40 sps:$4 sm:$0xff]  }
 0xb3f   : > { %12860 = vmatpush2.bf16.msra.mxu0 %v22888_v23  ;;  %v12511_v31 = vpop.f32.mrf.mxu1  ;;  %v12552_v26 = vpop.f32.mrf.mxu0  ;;  %12886 = vmatprep.subr.bf16.mxu1 %v22899_v52  ;;  %v22947_v23 = vld [vmem:[#allocation24 + $0xbac] ss:$40 sps:$4 sm:$0xff]   ;;  %v22945_v25 = vld [vmem:[#allocation24 + $0xba8] ss:$40 sps:$4 sm:$0xff]  }
 0xb40   : > { %12861 = vmatprep.subr.bf16.mxu0 %v22896_v24  ;;  %v22948_v31 = vld [vmem:[#allocation24 + $0x8d8] ss:$40 sps:$4 sm:$0xff]   ;;  %v22992_v20 = vld [vmem:[#allocation24 + $0x1b4] ss:$40 sps:$4 sm:$0xff]  }
 0xb41   : > { %v22951_v26 = vld [vmem:[#allocation24 + $0xb58] ss:$40 sps:$4 sm:$0xff]  }
 0xb42   : > { %12887 = vmatpush1.bf16.msra.mxu1 %v22897_v55  ;;  %v22953_v55 = vld [vmem:[#allocation24 + $0xb5c] ss:$40 sps:$4 sm:$0xff]  }
 0xb43   : > { %12862 = vmatpush2.bf16.msra.mxu0 %v22894_v27  ;;  %12888 = vmatprep.subr.bf16.mxu1 %v22905_v29  ;;  %v22956_v27 = vld [vmem:[#allocation24 + $0x88c] ss:$40 sps:$4 sm:$0xff]  }
 0xb44   : > { %12863 = vmatprep.subr.bf16.mxu0 %v22902_v32  ;;  %v22959_v29 = vld [vmem:[#allocation24 + $0xb0c] ss:$40 sps:$4 sm:$0xff]   ;;  %v22954_v32 = vld [vmem:[#allocation24 + $0x888] ss:$40 sps:$4 sm:$0xff]  }
 0xb46   : > { %12889 = vmatpush1.bf16.msra.mxu1 %v22903_v33  ;;  %v22957_v33 = vld [vmem:[#allocation24 + $0xb08] ss:$40 sps:$4 sm:$0xff]  }
 0xb47   : > { %12864 = vmatpush2.bf16.msra.mxu0 %v22900_v41  ;;  %12890 = vmatprep.subr.bf16.mxu1 %v22911_v34  ;;  %v22962_v41 = vld [vmem:[#allocation24 + $0x83c] ss:$40 sps:$4 sm:$0xff]  }
 0xb48   : > { %12865 = vmatprep.subr.bf16.mxu0 %v22908_v35  ;;  %v22965_v34 = vld [vmem:[#allocation24 + $0xabc] ss:$40 sps:$4 sm:$0xff]   ;;  %v22960_v35 = vld [vmem:[#allocation24 + $0x838] ss:$40 sps:$4 sm:$0xff]  }
 0xb4a   : > { %12891 = vmatpush1.bf16.msra.mxu1 %v22909_v3  ;;  %v22963_v3 = vld [vmem:[#allocation24 + $0xab8] ss:$40 sps:$4 sm:$0xff]  }
 0xb4b   : > { %12866 = vmatpush2.bf16.msra.mxu0 %v22906_v38  ;;  %12892 = vmatprep.subr.bf16.mxu1 %v22917_v45  ;;  %v22968_v38 = vld [vmem:[#allocation24 + $0x7ec] ss:$40 sps:$4 sm:$0xff]  }
 0xb4c   : > { %12867 = vmatprep.subr.bf16.mxu0 %v22914_v39  ;;  %v22971_v45 = vld [vmem:[#allocation24 + $0xa6c] ss:$40 sps:$4 sm:$0xff]   ;;  %v22966_v39 = vld [vmem:[#allocation24 + $0x7e8] ss:$40 sps:$4 sm:$0xff]  }
 0xb4e   : > { %12893 = vmatpush1.bf16.msra.mxu1 %v22915_v8  ;;  %v22969_v8 = vld [vmem:[#allocation24 + $0xa68] ss:$40 sps:$4 sm:$0xff]  }
 0xb4f   : > { %12868 = vmatpush2.bf16.msra.mxu0 %v22912_v48  ;;  %12894 = vmatprep.subr.bf16.mxu1 %v22923_v49  ;;  %v22974_v48 = vld [vmem:[#allocation24 + $0x79c] ss:$40 sps:$4 sm:$0xff]  }
 0xb50   : > { %12869 = vmatprep.subr.bf16.mxu0 %v22920_v50  ;;  %v22977_v49 = vld [vmem:[#allocation24 + $0xa1c] ss:$40 sps:$4 sm:$0xff]   ;;  %v22972_v50 = vld [vmem:[#allocation24 + $0x798] ss:$40 sps:$4 sm:$0xff]  }
 0xb52   : > { %12895 = vmatpush1.bf16.msra.mxu1 %v22921_v59  ;;  %v22975_v59 = vld [vmem:[#allocation24 + $0xa18] ss:$40 sps:$4 sm:$0xff]  }
 0xb53   : > { %12870 = vmatpush2.bf16.msra.mxu0 %v22918_v10  ;;  %12896 = vmatprep.subr.bf16.mxu1 %v22929_v2  ;;  %v22980_v10 = vld [vmem:[#allocation24 + $0x254] ss:$40 sps:$4 sm:$0xff]  }
 0xb54   : > { %12871 = vmatprep.subr.bf16.mxu0 %v22926_v60  ;;  %v22983_v2 = vld [vmem:[#allocation24 + $0x754] ss:$40 sps:$4 sm:$0xff]   ;;  %v22981_v60 = vld [vmem:[#allocation24 + $0x750] ss:$40 sps:$4 sm:$0xff]  }
 0xb56   : > { %12897 = vmatpush1.bf16.msra.mxu1 %v22927_v46 }
 0xb57   : > { %12872 = vmatpush2.bf16.msra.mxu0 %v22924_v47  ;;  %12898 = vmatprep.subr.bf16.mxu1 %v22932_v0  ;;  %v22989_v47 = vld [vmem:[#allocation24 + $0x704] ss:$40 sps:$4 sm:$0xff]   ;;  %v22984_v0 = vld [vmem:[#allocation24 + $0x200] ss:$40 sps:$4 sm:$0xff]  }
 0xb58   : > { %12923 = vmatprep.subr.bf16.mxu0 %v22935_v36  ;;  %v22987_v36 = vld [vmem:[#allocation24 + $0x700] ss:$40 sps:$4 sm:$0xff]  }
 0xb59   : > { %v12588_v58 = vpop.f32.mrf.mxu1 }
 0xb5a   : > { %v12589_v12 = vadd.f32 %v12588_v58, %v12548_v9  ;;  %12874 = vmatmul.mubr.bf16.vlgmr.msra.gmra.mxu0 %v25161_v53  ;;  %12899 = vmatpush2.bf16.msra.mxu1 %v22930_v63  ;;  %v22995_v63 = vld [vmem:[#allocation24 + $0x6b4] ss:$40 sps:$4 sm:$0xff]   ;;  %v22998_v58 = vld [vmem:[#allocation24 + $0x164] ss:$40 sps:$4 sm:$0xff]  }
 0xb5b   : > { %12924 = vmatpush1.bf16.msra.mxu0 %v22933_v37  ;;  %v12590_v44 = vpop.f32.mrf.mxu1  ;;  %12900 = vmatprep.subr.bf16.mxu1 %v22938_v30  ;;  %v22990_v30 = vld [vmem:[#allocation24 + $0x1b0] ss:$40 sps:$4 sm:$0xff]  }
 0xb5c   : > { %v13087_v17 = vmax.f32 %v12589_v12, 0.0  ;;  %v12591_v18 = vadd.f32 %v12590_v44, %v12550_v4  ;;  %12925 = vmatprep.subr.bf16.mxu0 %v22941_v22  ;;  %12955 = vmatprep.mubr.bf16.mxu0 %v23704_v11  ;;  %v22993_v22 = vld [vmem:[#allocation24 + $0x6b0] ss:$40 sps:$4 sm:$0xff]   ;;  %v22996_v4 = vld [vmem:[#allocation24 + $0x160] ss:$40 sps:$4 sm:$0xff]  }
 0xb5d   : > { %v12592_v16 = vpop.f32.mrf.mxu1  ;;  %v22999_v12 = vld [vmem:[#allocation24 + $0x660] ss:$40 sps:$4 sm:$0xff]   ;;  %v23002_v44 = vld [vmem:[#allocation24 + $0x110] ss:$40 sps:$4 sm:$0xff]  }
 0xb5e   : > { %13097 = vst [vmem:[#allocation2 + $0x30] sm:$0xff] %v13087_v17  ;;  %v13088_v52 = vmax.f32 %v12591_v18, 0.0  ;;  %12901 = vmatpush2.bf16.msra.mxu1 %v22936_v14  ;;  %v23004_v14 = vld [vmem:[#allocation24 + $0x114] ss:$40 sps:$4 sm:$0xff]   ;;  %v23013_v17 = vld [vmem:[#allocation24 + $0x5c4] ss:$40 sps:$4 sm:$0xff]  }
 0xb5f   : > { %12926 = vmatpush1.bf16.msra.mxu0 %v22939_v42  ;;  %v12593_v24 = vpop.f32.mrf.mxu1  ;;  %12902 = vmatprep.subr.bf16.mxu1 %v22944_v15  ;;  %v23005_v42 = vld [vmem:[#allocation24 + $0x610] ss:$40 sps:$4 sm:$0xff]   ;;  %v23010_v15 = vld [vmem:[#allocation24 + $0xc4] ss:$40 sps:$4 sm:$0xff]   ;;  %v23008_v18 = vld [vmem:[#allocation24 + $0xc0] ss:$40 sps:$4 sm:$0xff]  }
 0xb60   : > { %13098 = vst [vmem:[#allocation2] sm:$0xff] %v13088_v52  ;;  %12927 = vmatprep.subr.bf16.mxu0 %v22947_v23  ;;  %v23011_v23 = vld [vmem:[#allocation24 + $0x5c0] ss:$40 sps:$4 sm:$0xff]   ;;  %v23016_v16 = vld [vmem:[#allocation24 + $0x74] ss:$40 sps:$4 sm:$0xff]  }
 0xb61   : > { %v23019_v52 = vld [vmem:[#allocation24 + $0x574] ss:$40 sps:$4 sm:$0xff]   ;;  %v23017_v24 = vld [vmem:[#allocation24 + $0x570] ss:$40 sps:$4 sm:$0xff]  }
 0xb62   : > { %12903 = vmatpush2.bf16.msra.mxu1 %v22942_v19  ;;  %v23014_v19 = vld [vmem:[#allocation24 + $0x70] ss:$40 sps:$4 sm:$0xff]  }
 0xb63   : > { %12928 = vmatpush1.bf16.msra.mxu0 %v22945_v25  ;;  %12904 = vmatprep.subr.bf16.mxu1 %v22950_v54  ;;  %v23022_v25 = vld [vmem:[#allocation24 + $0x24] ss:$40 sps:$4 sm:$0xff]  }
 0xb64   : > { %12929 = vmatprep.subr.bf16.mxu0 %v22953_v55  ;;  %v23025_v54 = vld [vmem:[#allocation24 + $0x524] ss:$40 sps:$4 sm:$0xff]   ;;  %v23020_v55 = vld [vmem:[#allocation24 + $0x20] ss:$40 sps:$4 sm:$0xff]  }
 0xb66   : > { %12905 = vmatpush2.bf16.msra.mxu1 %v22948_v31  ;;  %v23023_v31 = vld [vmem:[#allocation24 + $0x520] ss:$40 sps:$4 sm:$0xff]  }
 0xb67   : > { %12930 = vmatpush1.bf16.msra.mxu0 %v22951_v26  ;;  %12906 = vmatprep.subr.bf16.mxu1 %v22956_v27  ;;  %v23028_v26 = vld [vmem:[#allocation24 + $0x4d4] ss:$40 sps:$4 sm:$0xff]   ;;  %v10433_v27 = vrot.slane %v25197_v7, %v25082_v56 }
 0xb68   : > { %12931 = vmatprep.subr.bf16.mxu0 %v22959_v29  ;;  %v23031_v29 = vld [vmem:[#allocation24 + $0x9d4] ss:$40 sps:$4 sm:$0xff]  }
 0xb6a   : > { %12907 = vmatpush2.bf16.msra.mxu1 %v22954_v32  ;;  %v10437_v32 = vrot.slane %v25197_v7, %v25102_v62 }
 0xb6b   : > { %12932 = vmatpush1.bf16.msra.mxu0 %v22957_v33  ;;  %12908 = vmatprep.subr.bf16.mxu1 %v22962_v41  ;;  %v23026_v33 = vld [vmem:[#allocation24 + $0x4d0] ss:$40 sps:$4 sm:$0xff]  }
 0xb6c   : > { %12933 = vmatprep.subr.bf16.mxu0 %v22965_v34  ;;  %v23029_v41 = vld [vmem:[#allocation24 + $0x9d0] ss:$40 sps:$4 sm:$0xff]   ;;  %v23034_v34 = vld [vmem:[#allocation24 + $0x484] ss:$40 sps:$4 sm:$0xff]  }
 0xb6e   : > { %12909 = vmatpush2.bf16.msra.mxu1 %v22960_v35 }
 0xb6f   : > { %12934 = vmatpush1.bf16.msra.mxu0 %v22963_v3  ;;  %12910 = vmatprep.subr.bf16.mxu1 %v22968_v38  ;;  %v23037_v3 = vld [vmem:[#allocation24 + $0x984] ss:$40 sps:$4 sm:$0xff]  }
 0xb70   : > { %12935 = vmatprep.subr.bf16.mxu0 %v22971_v45 }
 0xb72   : > { %12911 = vmatpush2.bf16.msra.mxu1 %v22966_v39 }
 0xb73   : > { %12936 = vmatpush1.bf16.msra.mxu0 %v22969_v8  ;;  %12912 = vmatprep.subr.bf16.mxu1 %v22974_v48  ;;  %v23032_v8 = vld [vmem:[#allocation24 + $0x480] ss:$40 sps:$4 sm:$0xff]  }
 0xb74   : > { %12937 = vmatprep.subr.bf16.mxu0 %v22977_v49  ;;  %v23035_v49 = vld [vmem:[#allocation24 + $0x980] ss:$40 sps:$4 sm:$0xff]  }
 0xb76   : > { %12913 = vmatpush2.bf16.msra.mxu1 %v22972_v50  ;;  %v23040_v50 = vld [vmem:[#allocation24 + $0x434] ss:$40 sps:$4 sm:$0xff]  }
 0xb77   : > { %12938 = vmatpush1.bf16.msra.mxu0 %v22975_v59  ;;  %12964 = vmatprep.subr.bf16.mxu1 %v22980_v10 }
 0xb78   : > { %13005 = vmatprep.subr.bf16.mxu0 %v22983_v2  ;;  %v23043_v2 = vld [vmem:[#allocation24 + $0x934] ss:$40 sps:$4 sm:$0xff]  }
 0xb79   : > { %v25209_v46 = vpop.f32.mrf.mxu0  ;;  %12915 = vmatmul.mubr.bf16.vlgmr.msra.gmra.mxu1 %v25163_v43 }
 0xb7a   : > { %12956 = vmatmul.mubr.bf16.vlgmr.msra.gmra.mxu0 %v25173_v6  ;;  %12965 = vmatpush1.bf16.msra.mxu1 %v22978_v51  ;;  %v12630_v35 = vadd.f32 %v25209_v46, %v10433_v27  ;;  %v23085_v27 = vld [vmem:[#allocation24 + $0xb64] ss:$40 sps:$4 sm:$0xff]  }
 0xb7b   : > { %12996 = vmatprep.mubr.bf16.mxu1 %v25157_v28  ;;  %13006 = vmatpush1.bf16.msra.mxu0 %v22981_v60  ;;  %v25214_v1 = vpop.f32.mrf.mxu0  ;;  %v23001_v28 = vld [vmem:[#allocation24 + $0x664] ss:$40 sps:$4 sm:$0xff]  }
 0xb7c   : > { %13037 = vmatprep.mubr.bf16.mxu0 %v25159_v21  ;;  %12966 = vmatprep.subr.bf16.mxu1 %v22986_v61  ;;  %v23007_v21 = vld [vmem:[#allocation24 + $0x614] ss:$40 sps:$4 sm:$0xff]   ;;  %v12632_v39 = vadd.f32 %v25214_v1, %v10437_v32 }
 0xb7d   : > { %v12633_v37 = vpop.f32.mrf.mxu0  ;;  %13007 = vmatprep.subr.bf16.mxu0 %v22989_v47  ;;  %v23038_v47 = vld [vmem:[#allocation24 + $0x430] ss:$40 sps:$4 sm:$0xff]   ;;  %v23088_v32 = vld [vmem:[#allocation24 + $0xb14] ss:$40 sps:$4 sm:$0xff]  }
 0xb7e   : > { %12967 = vmatpush1.bf16.msra.mxu1 %v22984_v0  ;;  %v23049_v37 = vld [vmem:[#allocation24 + $0x8e4] ss:$40 sps:$4 sm:$0xff]  }
 0xb7f   : > { %13008 = vmatpush1.bf16.msra.mxu0 %v22987_v36  ;;  %v12634_v9 = vpop.f32.mrf.mxu0  ;;  %12968 = vmatprep.subr.bf16.mxu1 %v22992_v20  ;;  %v23041_v36 = vld [vmem:[#allocation24 + $0x930] ss:$40 sps:$4 sm:$0xff]   ;;  %v23046_v20 = vld [vmem:[#allocation24 + $0x3e4] ss:$40 sps:$4 sm:$0xff]  }
 0xb80   : > { %13009 = vmatprep.subr.bf16.mxu0 %v22995_v63  ;;  %v23047_v9 = vld [vmem:[#allocation24 + $0x8e0] ss:$40 sps:$4 sm:$0xff]  }
 0xb82   : > { %12969 = vmatpush1.bf16.msra.mxu1 %v22990_v30  ;;  %v23044_v30 = vld [vmem:[#allocation24 + $0x3e0] ss:$40 sps:$4 sm:$0xff]  }
 0xb83   : > { %13010 = vmatpush1.bf16.msra.mxu0 %v22993_v22  ;;  %12970 = vmatprep.subr.bf16.mxu1 %v22998_v58  ;;  %v23052_v22 = vld [vmem:[#allocation24 + $0x394] ss:$40 sps:$4 sm:$0xff]  }
 0xb84   : > { %13011 = vmatprep.subr.bf16.mxu0 %v23001_v28  ;;  %v23055_v58 = vld [vmem:[#allocation24 + $0x894] ss:$40 sps:$4 sm:$0xff]   ;;  %v23050_v28 = vld [vmem:[#allocation24 + $0x390] ss:$40 sps:$4 sm:$0xff]  }
 0xb86   : > { %12971 = vmatpush1.bf16.msra.mxu1 %v22996_v4  ;;  %v23053_v4 = vld [vmem:[#allocation24 + $0x890] ss:$40 sps:$4 sm:$0xff]  }
 0xb87   : > { %13012 = vmatpush1.bf16.msra.mxu0 %v22999_v12  ;;  %12972 = vmatprep.subr.bf16.mxu1 %v23004_v14  ;;  %v23058_v12 = vld [vmem:[#allocation24 + $0x344] ss:$40 sps:$4 sm:$0xff]  }
 0xb88   : > { %13013 = vmatprep.subr.bf16.mxu0 %v23007_v21  ;;  %v23061_v14 = vld [vmem:[#allocation24 + $0x844] ss:$40 sps:$4 sm:$0xff]   ;;  %v23056_v21 = vld [vmem:[#allocation24 + $0x340] ss:$40 sps:$4 sm:$0xff]  }
 0xb8a   : > { %12973 = vmatpush1.bf16.msra.mxu1 %v23002_v44  ;;  %v23059_v44 = vld [vmem:[#allocation24 + $0x840] ss:$40 sps:$4 sm:$0xff]  }
 0xb8b   : > { %13014 = vmatpush1.bf16.msra.mxu0 %v23005_v42  ;;  %12974 = vmatprep.subr.bf16.mxu1 %v23010_v15  ;;  %v23064_v42 = vld [vmem:[#allocation24 + $0x2f4] ss:$40 sps:$4 sm:$0xff]  }
 0xb8c   : > { %13015 = vmatprep.subr.bf16.mxu0 %v23013_v17  ;;  %v23067_v15 = vld [vmem:[#allocation24 + $0x7f4] ss:$40 sps:$4 sm:$0xff]   ;;  %v23062_v17 = vld [vmem:[#allocation24 + $0x2f0] ss:$40 sps:$4 sm:$0xff]  }
 0xb8e   : > { %12975 = vmatpush1.bf16.msra.mxu1 %v23008_v18  ;;  %v23065_v18 = vld [vmem:[#allocation24 + $0x7f0] ss:$40 sps:$4 sm:$0xff]  }
 0xb8f   : > { %13016 = vmatpush1.bf16.msra.mxu0 %v23011_v23  ;;  %12976 = vmatprep.subr.bf16.mxu1 %v23016_v16  ;;  %v23070_v23 = vld [vmem:[#allocation24 + $0x2a4] ss:$40 sps:$4 sm:$0xff]  }
 0xb90   : > { %13017 = vmatprep.subr.bf16.mxu0 %v23019_v52  ;;  %v23073_v16 = vld [vmem:[#allocation24 + $0x7a4] ss:$40 sps:$4 sm:$0xff]   ;;  %v23068_v52 = vld [vmem:[#allocation24 + $0x2a0] ss:$40 sps:$4 sm:$0xff]  }
 0xb92   : > { %12977 = vmatpush1.bf16.msra.mxu1 %v23014_v19  ;;  %v23071_v19 = vld [vmem:[#allocation24 + $0x7a0] ss:$40 sps:$4 sm:$0xff]  }
 0xb93   : > { %13018 = vmatpush1.bf16.msra.mxu0 %v23017_v24  ;;  %12978 = vmatprep.subr.bf16.mxu1 %v23022_v25  ;;  %v23076_v24 = vld [vmem:[#allocation24 + $0xc54] ss:$40 sps:$4 sm:$0xff]   ;;  %v23074_v25 = vld [vmem:[#allocation24 + $0xc50] ss:$40 sps:$4 sm:$0xff]  }
 0xb94   : > { %13019 = vmatprep.subr.bf16.mxu0 %v23025_v54  ;;  %v23079_v54 = vld [vmem:[#allocation24 + $0xc04] ss:$40 sps:$4 sm:$0xff]  }
 0xb96   : > { %12979 = vmatpush1.bf16.msra.mxu1 %v23020_v55  ;;  %v23077_v55 = vld [vmem:[#allocation24 + $0xc00] ss:$40 sps:$4 sm:$0xff]  }
 0xb97   : > { %13020 = vmatpush1.bf16.msra.mxu0 %v23023_v31  ;;  %12980 = vmatprep.subr.bf16.mxu1 %v23028_v26  ;;  %v23082_v31 = vld [vmem:[#allocation24 + $0xbb4] ss:$40 sps:$4 sm:$0xff]   ;;  %v23080_v26 = vld [vmem:[#allocation24 + $0xbb0] ss:$40 sps:$4 sm:$0xff]  }
 0xb98   : > { %13021 = vmatprep.subr.bf16.mxu0 %v23031_v29  ;;  %v23083_v29 = vld [vmem:[#allocation24 + $0xb60] ss:$40 sps:$4 sm:$0xff]  }
 0xb99   : > { %v12670_v38 = vpop.f32.mrf.mxu1  ;;  %v12711_v45 = vpop.f32.mrf.mxu0 }
 0xb9a   : > { %v12671_v56 = vadd.f32 %v12670_v38, %v12630_v35  ;;  %12981 = vmatpush2.bf16.msra.mxu1 %v23026_v33  ;;  %v23086_v33 = vld [vmem:[#allocation24 + $0xb10] ss:$40 sps:$4 sm:$0xff]   ;;  %v23095_v35 = vld [vmem:[#allocation24 + $0xa20] ss:$40 sps:$4 sm:$0xff]  }
 0xb9b   : > { %13022 = vmatpush2.bf16.msra.mxu0 %v23029_v41  ;;  %v12672_v48 = vpop.f32.mrf.mxu1  ;;  %v12713_v62 = vpop.f32.mrf.mxu0  ;;  %12982 = vmatprep.subr.bf16.mxu1 %v23034_v34  ;;  %v23094_v41 = vld [vmem:[#allocation24 + $0xa74] ss:$40 sps:$4 sm:$0xff]   ;;  %v23092_v34 = vld [vmem:[#allocation24 + $0xa70] ss:$40 sps:$4 sm:$0xff]  }
 0xb9c   : > { %v12712_v59 = vadd.f32 %v12711_v45, %v12671_v56  ;;  %v12673_v10 = vadd.f32 %v12672_v48, %v12632_v39  ;;  %13023 = vmatprep.subr.bf16.mxu0 %v23037_v3 }
 0xb9d   : > { %v12674_v51 = vpop.f32.mrf.mxu1  ;;  %v12715_v60 = vpop.f32.mrf.mxu0 }
 0xb9e   : > { %v13089_v61 = vmax.f32 %v12712_v59, 0.0  ;;  %v12714_v46 = vadd.f32 %v12713_v62, %v12673_v10  ;;  %12983 = vmatpush2.bf16.msra.mxu1 %v23032_v8 }
 0xb9f   : > { %13024 = vmatpush2.bf16.msra.mxu0 %v23035_v49  ;;  %v12675_v0 = vpop.f32.mrf.mxu1  ;;  %v12716_v1 = vpop.f32.mrf.mxu0  ;;  %12984 = vmatprep.subr.bf16.mxu1 %v23040_v50  ;;  %v10444_v49 = vsub.s32 5, %v25036_v5  ;;  %v10441_v50 = vrot.slane %v25197_v7, %v25110_v57 }
 0xba0   : > { %13099 = vst [vmem:[#allocation2 + $0x18] sm:$0xff] %v13089_v61  ;;  %v13090_v63 = vmax.f32 %v12714_v46, 0.0  ;;  %13025 = vmatprep.subr.bf16.mxu0 %v23043_v2 }
 0xba1   : > { %v10445_v59 = vrot.slane %v25197_v7, %v10444_v49 }
 0xba2   : > { %13100 = vst [vmem:[#allocation2 + $0x10] sm:$0xff] %v13090_v63  ;;  %12985 = vmatpush2.bf16.msra.mxu1 %v23038_v47 }
 0xba3   : > { %13026 = vmatpush2.bf16.msra.mxu0 %v23041_v36  ;;  %12986 = vmatprep.subr.bf16.mxu1 %v23046_v20 }
 0xba4   : > { %13027 = vmatprep.subr.bf16.mxu0 %v23049_v37 }
 0xba6   : > { %12987 = vmatpush2.bf16.msra.mxu1 %v23044_v30 }
 0xba7   : > { %13028 = vmatpush2.bf16.msra.mxu0 %v23047_v9  ;;  %12988 = vmatprep.subr.bf16.mxu1 %v23052_v22  ;;  %v10448_v9 = vsub.s32 6, %v25036_v5  ;;  %v10452_v22 = vsub.s32 7, %v25036_v5 }
 0xba8   : > { %13029 = vmatprep.subr.bf16.mxu0 %v23055_v58 }
 0xba9   : > { %v10449_v58 = vrot.slane %v25197_v7, %v10448_v9 }
 0xbaa   : > { %12989 = vmatpush2.bf16.msra.mxu1 %v23050_v28  ;;  %v10453_v28 = vrot.slane %v25197_v7, %v10452_v22 }
 0xbab   : > { %13030 = vmatpush2.bf16.msra.mxu0 %v23053_v4  ;;  %12990 = vmatprep.subr.bf16.mxu1 %v23058_v12 }
 0xbac   : > { %13031 = vmatprep.subr.bf16.mxu0 %v23061_v14 }
 0xbae   : > { %12991 = vmatpush2.bf16.msra.mxu1 %v23056_v21 }
 0xbaf   : > { %13032 = vmatpush2.bf16.msra.mxu0 %v23059_v44  ;;  %12992 = vmatprep.subr.bf16.mxu1 %v23064_v42 }
 0xbb0   : > { %13033 = vmatprep.subr.bf16.mxu0 %v23067_v15 }
 0xbb2   : > { %12993 = vmatpush2.bf16.msra.mxu1 %v23062_v17 }
 0xbb3   : > { %13034 = vmatpush2.bf16.msra.mxu0 %v23065_v18  ;;  %12994 = vmatprep.subr.bf16.mxu1 %v23070_v23 }
 0xbb4   : > { %13035 = vmatprep.subr.bf16.mxu0 %v23073_v16 }
 0xbb6   : > { %12995 = vmatpush2.bf16.msra.mxu1 %v23068_v52 }
 0xbb7   : > { %13036 = vmatpush2.bf16.msra.mxu0 %v23071_v19  ;;  %13046 = vmatprep.subr.bf16.mxu1 %v23076_v24 }
 0xbb9   : > { %12997 = vmatmul.mubr.bf16.vlgmr.msra.gmra.mxu1 %v25161_v53  ;;  %v23091_v53 = vld [vmem:[#allocation24 + $0xac4] ss:$40 sps:$4 sm:$0xff]  }
 0xbba   : > { %13038 = vmatmul.mubr.bf16.vlgmr.msra.gmra.mxu0 %v25163_v43  ;;  %13047 = vmatpush1.bf16.msra.mxu1 %v23074_v25  ;;  %v23089_v43 = vld [vmem:[#allocation24 + $0xac0] ss:$40 sps:$4 sm:$0xff]  }
 0xbbb   : > { %13048 = vmatprep.subr.bf16.mxu1 %v23079_v54  ;;  %13078 = vmatprep.mubr.bf16.mxu1 %v23704_v11  ;;  %v23097_v11 = vld [vmem:[#allocation24 + $0xa24] ss:$40 sps:$4 sm:$0xff]  }
 0xbbe   : > { %13049 = vmatpush1.bf16.msra.mxu1 %v23077_v55 }
 0xbbf   : > { %13050 = vmatprep.subr.bf16.mxu1 %v23082_v31 }
 0xbc2   : > { %13051 = vmatpush1.bf16.msra.mxu1 %v23080_v26 }
 0xbc3   : > { %13052 = vmatprep.subr.bf16.mxu1 %v23085_v27 }
 0xbc6   : > { %13053 = vmatpush1.bf16.msra.mxu1 %v23083_v29 }
 0xbc7   : > { %13054 = vmatprep.subr.bf16.mxu1 %v23088_v32 }
 0xbca   : > { %13055 = vmatpush1.bf16.msra.mxu1 %v23086_v33  ;;  %v10414_v33 = vld [vmem:[#allocation26 + $0x8] sm:$0x3] }
 0xbcb   : > { %13056 = vmatprep.subr.bf16.mxu1 %v23091_v53  ;;  %v10457_v53 = vrot.slane %v10414_v33, %v25039_v40 }
 0xbce   : > { %13057 = vmatpush1.bf16.msra.mxu1 %v23089_v43  ;;  %v10461_v43 = vrot.slane %v10414_v33, %v25042_v13 }
 0xbcf   : > { %13058 = vmatprep.subr.bf16.mxu1 %v23094_v41 }
 0xbd2   : > { %13059 = vmatpush1.bf16.msra.mxu1 %v23092_v34 }
 0xbd3   : > { %13060 = vmatprep.subr.bf16.mxu1 %v23097_v11 }
 0xbd6   : > { %13061 = vmatpush1.bf16.msra.mxu1 %v23095_v35 }
 0xbd9   : > { %v12752_v3 = vpop.f32.mrf.mxu1  ;;  %13079 = vmatmul.mubr.bf16.vlgmr.msra.gmra.mxu1 %v25173_v6 }
 0xbda   : > { %v12793_v38 = vpop.f32.mrf.mxu0  ;;  %v12753_v10 = vadd.f32 %v12752_v3, %v10441_v50 }
 0xbdb   : > { %v12754_v45 = vpop.f32.mrf.mxu1 }
 0xbdc   : > { %v12795_v39 = vpop.f32.mrf.mxu0  ;;  %v12755_v2 = vadd.f32 %v12754_v45, %v10445_v59  ;;  %v12794_v51 = vadd.f32 %v12793_v38, %v12753_v10 }
 0xbdd   : > { %v12756_v56 = vpop.f32.mrf.mxu1 }
 0xbde   : > { %v12797_v8 = vpop.f32.mrf.mxu0  ;;  %v12796_v61 = vadd.f32 %v12795_v39, %v12755_v2 }
 0xbdf   : > { %v12757_v48 = vpop.f32.mrf.mxu1 }
 0xbe0   : > { %v12798_v62 = vpop.f32.mrf.mxu0 }
 0xbf9   : > { %v12834_v60 = vpop.f32.mrf.mxu1 }
 0xbfa   : > { %v12835_v6 = vadd.f32 %v12834_v60, %v12794_v51 }
 0xbfb   : > { %v12836_v46 = vpop.f32.mrf.mxu1 }
 0xbfc   : > { %v13091_v47 = vmax.f32 %v12835_v6, 0.0  ;;  %v12837_v0 = vadd.f32 %v12836_v46, %v12796_v61 }
 0xbfd   : > { %v12838_v1 = vpop.f32.mrf.mxu1 }
 0xbfe   : > { %13101 = vst [vmem:[#allocation2 + $0x48] sm:$0xff] %v13091_v47  ;;  %v13092_v36 = vmax.f32 %v12837_v0, 0.0 }
 0xbff   : > { %v12839_v20 = vpop.f32.mrf.mxu1 }
 0xc00   : > { %13102 = vst [vmem:[#allocation2 + $0x28] sm:$0xff] %v13092_v36 }
 0xc1a   : > { %v12875_v63 = vpop.f32.mrf.mxu0 }
 0xc1b   : > { %v12876_v4 = vadd.f32 %v12875_v63, %v10449_v58 }
 0xc1c   : > { %v12877_v37 = vpop.f32.mrf.mxu0 }
 0xc1d   : > { %v12878_v14 = vadd.f32 %v12877_v37, %v10453_v28 }
 0xc1e   : > { %v12879_v30 = vpop.f32.mrf.mxu0 }
 0xc20   : > { %v12880_v57 = vpop.f32.mrf.mxu0 }
 0xc39   : > { %v12916_v12 = vpop.f32.mrf.mxu1 }
 0xc3a   : > { %v12917_v21 = vadd.f32 %v12916_v12, %v12876_v4  ;;  %v12957_v44 = vpop.f32.mrf.mxu0 }
 0xc3b   : > { %v12918_v42 = vpop.f32.mrf.mxu1 }
 0xc3c   : > { %v12958_v15 = vadd.f32 %v12957_v44, %v12917_v21  ;;  %v12919_v17 = vadd.f32 %v12918_v42, %v12878_v14  ;;  %v12959_v18 = vpop.f32.mrf.mxu0 }
 0xc3d   : > { %v12920_v23 = vpop.f32.mrf.mxu1 }
 0xc3e   : > { %v13093_v16 = vmax.f32 %v12958_v15, 0.0  ;;  %v12960_v52 = vadd.f32 %v12959_v18, %v12919_v17  ;;  %v12961_v19 = vpop.f32.mrf.mxu0 }
 0xc3f   : > { %v12921_v24 = vpop.f32.mrf.mxu1 }
 0xc40   : > { %13103 = vst [vmem:[#allocation2 + $0x8] sm:$0xff] %v13093_v16  ;;  %v13094_v5 = vmax.f32 %v12960_v52, 0.0  ;;  %v12962_v25 = vpop.f32.mrf.mxu0 }
 0xc42   : > { %13104 = vst [vmem:[#allocation2 + $0x20] sm:$0xff] %v13094_v5 }
 0xc79   : > { %v12998_v54 = vpop.f32.mrf.mxu1 }
 0xc7a   : > { %v13039_v7 = vpop.f32.mrf.mxu0  ;;  %v12999_v41 = vadd.f32 %v12998_v54, %v10457_v53 }
 0xc7b   : > { %v13000_v55 = vpop.f32.mrf.mxu1 }
 0xc7c   : > { %v13041_v31 = vpop.f32.mrf.mxu0  ;;  %v13001_v34 = vadd.f32 %v13000_v55, %v10461_v43  ;;  %v13040_v11 = vadd.f32 %v13039_v7, %v12999_v41 }
 0xc7d   : > { %v13002_v26 = vpop.f32.mrf.mxu1 }
 0xc7e   : > { %v13043_v27 = vpop.f32.mrf.mxu0  ;;  %v13042_v3 = vadd.f32 %v13041_v31, %v13001_v34 }
 0xc7f   : > { %v13003_v29 = vpop.f32.mrf.mxu1 }
 0xc80   : > { %v13044_v32 = vpop.f32.mrf.mxu0 }
 0xc99   : > { %v13080_v35 = vpop.f32.mrf.mxu1 }
 0xc9a   : > { %v13081_v38 = vadd.f32 %v13080_v35, %v13040_v11 }
 0xc9b   : > { %v13082_v45 = vpop.f32.mrf.mxu1 }
 0xc9c   : > { %v13095_v39 = vmax.f32 %v13081_v38, 0.0  ;;  %v13083_v56 = vadd.f32 %v13082_v45, %v13042_v3 }
 0xc9d   : > { %v13084_v8 = vpop.f32.mrf.mxu1 }
 0xc9e   : > { %13105 = vst [vmem:[#allocation2 + $0x40] sm:$0xff] %v13095_v39  ;;  %v13096_v48 = vmax.f32 %v13083_v56, 0.0 }
 0xc9f   : > { %v13085_v62 = vpop.f32.mrf.mxu1 }
 0xca0   : > { %13106 = vst [vmem:[#allocation2 + $0x38] sm:$0xff] %v13096_v48 }
 0xca1 PF: > { %p19712_p0 = scmp.le.s32.totalorder %s23832_s19, 3 }
 0xca3   : > { %13110 = sbr.rel (%p19712_p0) target bundleno = 4088 (0xff8), region = 172 }
 0xca8   : > { %v13187_v40 = vld [vmem:[%s24246_s17 + $0x1c0] sm:$0xff]  ;;  %v13112_v34 = vld [vmem:[#allocation2] sm:$0xff] }
 0xca9   : > { %v13191_v13 = vld [vmem:[%s24246_s17 + $0x1e0] sm:$0xff]  ;;  %v25268_v45 = vpack.c.bf16 %v13112_v34, %v13112_v34 }
 0xcaa   : > { %v13315_v49 = vld [vmem:[%s24246_s17 + $0x5c0] sm:$0xff]  ;;  %v19770_v50 = vcombine.high %v13187_v40, %v13191_v13  ;;  %v19769_v10 = vcombine.low %v13187_v40, %v13191_v13 }
 0xcab   : > { %v13319_v59 = vld [vmem:[%s24246_s17 + $0x5e0] sm:$0xff]  ;;  %17045 = vmatprep.mubr.bf16.mxu0 %v25268_v45 }
 0xcac   : > { %v13179_v2 = vld [vmem:[%s24246_s17 + $0x180] sm:$0xff]  ;;  %v19898_v60 = vcombine.high %v13315_v49, %v13319_v59  ;;  %v19897_v61 = vcombine.low %v13315_v49, %v13319_v59  ;;  %17013 = vmatprep.subr.bf16.mxu0 %v19770_v50 }
 0xcad   : > { %v13183_v51 = vld [vmem:[%s24246_s17 + $0x1a0] sm:$0xff]  ;;  %17014 = vmatpush1.bf16.msra.mxu0 %v19769_v10 }
 0xcae   : > { %v19762_v6 = vcombine.high %v13179_v2, %v13183_v51  ;;  %v13307_v46 = vld [vmem:[%s24246_s17 + $0x580] sm:$0xff]  ;;  %17054 = vmatprep.subr.bf16.mxu1 %v19898_v60  ;;  %v19761_v37 = vcombine.low %v13179_v2, %v13183_v51 }
 0xcaf   : > { %v13311_v47 = vld [vmem:[%s24246_s17 + $0x5a0] sm:$0xff]  ;;  %17055 = vmatpush1.bf16.msra.mxu1 %v19897_v61 }
 0xcb0   : > { %v13171_v0 = vld [vmem:[%s24246_s17 + $0x140] sm:$0xff]  ;;  %v19890_v1 = vcombine.high %v13307_v46, %v13311_v47  ;;  %17015 = vmatprep.subr.bf16.mxu0 %v19762_v6  ;;  %v19889_v30 = vcombine.low %v13307_v46, %v13311_v47 }
 0xcb1   : > { %v13175_v36 = vld [vmem:[%s24246_s17 + $0x160] sm:$0xff]  ;;  %17016 = vmatpush1.bf16.msra.mxu0 %v19761_v37 }
 0xcb2   : > { %v13299_v20 = vld [vmem:[%s24246_s17 + $0x540] sm:$0xff]  ;;  %v19754_v57 = vcombine.high %v13171_v0, %v13175_v36  ;;  %17056 = vmatprep.subr.bf16.mxu1 %v19890_v1  ;;  %v19753_v12 = vcombine.low %v13171_v0, %v13175_v36 }
 0xcb3   : > { %v13303_v63 = vld [vmem:[%s24246_s17 + $0x560] sm:$0xff]  ;;  %17057 = vmatpush1.bf16.msra.mxu1 %v19889_v30 }
 0xcb4   : > { %v19882_v9 = vcombine.high %v13299_v20, %v13303_v63  ;;  %v13163_v22 = vld [vmem:[%s24246_s17 + $0x100] sm:$0xff]  ;;  %17017 = vmatprep.subr.bf16.mxu0 %v19754_v57  ;;  %v19881_v14 = vcombine.low %v13299_v20, %v13303_v63 }
 0xcb5   : > { %v13167_v58 = vld [vmem:[%s24246_s17 + $0x120] sm:$0xff]  ;;  %17018 = vmatpush1.bf16.msra.mxu0 %v19753_v12 }
 0xcb6   : > { %v13291_v28 = vld [vmem:[%s24246_s17 + $0x500] sm:$0xff]  ;;  %v19746_v21 = vcombine.high %v13163_v22, %v13167_v58  ;;  %17058 = vmatprep.subr.bf16.mxu1 %v19882_v9  ;;  %v19745_v23 = vcombine.low %v13163_v22, %v13167_v58 }
 0xcb7   : > { %v13295_v4 = vld [vmem:[%s24246_s17 + $0x520] sm:$0xff]  ;;  %17059 = vmatpush1.bf16.msra.mxu1 %v19881_v14 }
 0xcb8   : > { %v19874_v44 = vcombine.high %v13291_v28, %v13295_v4  ;;  %v13155_v42 = vld [vmem:[%s24246_s17 + $0xc0] sm:$0xff]  ;;  %17019 = vmatprep.subr.bf16.mxu0 %v19746_v21  ;;  %v19873_v16 = vcombine.low %v13291_v28, %v13295_v4 }
 0xcb9   : > { %v13159_v15 = vld [vmem:[%s24246_s17 + $0xe0] sm:$0xff]  ;;  %17020 = vmatpush1.bf16.msra.mxu0 %v19745_v23 }
 0xcba   : > { %v13283_v17 = vld [vmem:[%s24246_s17 + $0x4c0] sm:$0xff]  ;;  %v19738_v52 = vcombine.high %v13155_v42, %v13159_v15  ;;  %17060 = vmatprep.subr.bf16.mxu1 %v19874_v44  ;;  %v19737_v7 = vcombine.low %v13155_v42, %v13159_v15 }
 0xcbb   : > { %v13287_v18 = vld [vmem:[%s24246_s17 + $0x4e0] sm:$0xff]  ;;  %17061 = vmatpush1.bf16.msra.mxu1 %v19873_v16 }
 0xcbc   : > { %v19866_v19 = vcombine.high %v13283_v17, %v13287_v18  ;;  %v13147_v24 = vld [vmem:[%s24246_s17 + $0x80] sm:$0xff]  ;;  %17021 = vmatprep.subr.bf16.mxu0 %v19738_v52  ;;  %v19865_v55 = vcombine.low %v13283_v17, %v13287_v18 }
 0xcbd   : > { %v13151_v5 = vld [vmem:[%s24246_s17 + $0xa0] sm:$0xff]  ;;  %17022 = vmatpush1.bf16.msra.mxu0 %v19737_v7 }
 0xcbe   : > { %v13275_v25 = vld [vmem:[%s24246_s17 + $0x480] sm:$0xff]  ;;  %v19730_v31 = vcombine.high %v13147_v24, %v13151_v5  ;;  %17062 = vmatprep.subr.bf16.mxu1 %v19866_v19  ;;  %v19729_v53 = vcombine.low %v13147_v24, %v13151_v5 }
 0xcbf   : > { %v13279_v54 = vld [vmem:[%s24246_s17 + $0x4a0] sm:$0xff]  ;;  %17063 = vmatpush1.bf16.msra.mxu1 %v19865_v55 }
 0xcc0   : > { %v19858_v26 = vcombine.high %v13275_v25, %v13279_v54  ;;  %v13139_v27 = vld [vmem:[%s24246_s17 + $0x40] sm:$0xff]  ;;  %17023 = vmatprep.subr.bf16.mxu0 %v19730_v31  ;;  %v19857_v43 = vcombine.low %v13275_v25, %v13279_v54 }
 0xcc1   : > { %v13143_v29 = vld [vmem:[%s24246_s17 + $0x60] sm:$0xff]  ;;  %17024 = vmatpush1.bf16.msra.mxu0 %v19729_v53 }
 0xcc2   : > { %v13267_v32 = vld [vmem:[%s24246_s17 + $0x440] sm:$0xff]  ;;  %v19722_v41 = vcombine.high %v13139_v27, %v13143_v29  ;;  %17064 = vmatprep.subr.bf16.mxu1 %v19858_v26  ;;  %v19721_v48 = vcombine.low %v13139_v27, %v13143_v29 }
 0xcc3   : > { %v13271_v33 = vld [vmem:[%s24246_s17 + $0x460] sm:$0xff]  ;;  %17065 = vmatpush1.bf16.msra.mxu1 %v19857_v43 }
 0xcc4   : > { %v13114_v11 = vld [vmem:[#allocation2 + $0x10] sm:$0xff]  ;;  %v19850_v35 = vcombine.high %v13267_v32, %v13271_v33  ;;  %17025 = vmatprep.subr.bf16.mxu0 %v19722_v41  ;;  %v19849_v62 = vcombine.low %v13267_v32, %v13271_v33 }
 0xcc5   : > { %v13131_v3 = vld [vmem:[%s24246_s17] sm:$0xff]  ;;  %v25270_v39 = vpack.c.bf16 %v13114_v11, %v13114_v11  ;;  %17026 = vmatpush1.bf16.msra.mxu0 %v19721_v48 }
 0xcc6   : > { %v13135_v38 = vld [vmem:[%s24246_s17 + $0x20] sm:$0xff]  ;;  %17066 = vmatprep.subr.bf16.mxu1 %v19850_v35 }
 0xcc7   : > { %v13259_v56 = vld [vmem:[%s24246_s17 + $0x400] sm:$0xff]  ;;  %v19714_v40 = vcombine.high %v13131_v3, %v13135_v38  ;;  %17086 = vmatprep.mubr.bf16.mxu1 %v25270_v39  ;;  %v19713_v2 = vcombine.low %v13131_v3, %v13135_v38  ;;  %17067 = vmatpush1.bf16.msra.mxu1 %v19849_v62 }
 0xcc8   : > { %v13263_v8 = vld [vmem:[%s24246_s17 + $0x420] sm:$0xff] }
 0xcc9   : > { %v19842_v13 = vcombine.high %v13259_v56, %v13263_v8  ;;  %v13251_v49 = vld [vmem:[%s24246_s17 + $0x3c0] sm:$0xff]  ;;  %17027 = vmatprep.subr.bf16.mxu0 %v19714_v40  ;;  %v19841_v51 = vcombine.low %v13259_v56, %v13263_v8 }
 0xcca   : > { %v13255_v50 = vld [vmem:[%s24246_s17 + $0x3e0] sm:$0xff]  ;;  %17028 = vmatpush1.bf16.msra.mxu0 %v19713_v2 }
 0xccb   : > { %v13379_v59 = vld [vmem:[%s24246_s17 + $0x7c0] sm:$0xff]  ;;  %v19834_v60 = vcombine.high %v13251_v49, %v13255_v50  ;;  %17068 = vmatprep.subr.bf16.mxu1 %v19842_v13  ;;  %v19833_v1 = vcombine.low %v13251_v49, %v13255_v50 }
 0xccc   : > { %v13383_v10 = vld [vmem:[%s24246_s17 + $0x7e0] sm:$0xff]  ;;  %17069 = vmatpush1.bf16.msra.mxu1 %v19841_v51 }
 0xccd   : > { %v19962_v61 = vcombine.high %v13379_v59, %v13383_v10  ;;  %v13243_v6 = vld [vmem:[%s24246_s17 + $0x380] sm:$0xff]  ;;  %17029 = vmatprep.subr.bf16.mxu0 %v19834_v60  ;;  %v19961_v36 = vcombine.low %v13379_v59, %v13383_v10 }
 0xcce   : > { %v13247_v46 = vld [vmem:[%s24246_s17 + $0x3a0] sm:$0xff]  ;;  %17030 = vmatpush2.bf16.msra.mxu0 %v19833_v1 }
 0xccf   : > { %v13371_v47 = vld [vmem:[%s24246_s17 + $0x780] sm:$0xff]  ;;  %v19826_v20 = vcombine.high %v13243_v6, %v13247_v46  ;;  %17070 = vmatprep.subr.bf16.mxu1 %v19962_v61  ;;  %v19825_v22 = vcombine.low %v13243_v6, %v13247_v46 }
 0xcd0   : > { %v13375_v0 = vld [vmem:[%s24246_s17 + $0x7a0] sm:$0xff]  ;;  %17071 = vmatpush2.bf16.msra.mxu1 %v19961_v36 }
 0xcd1   : > { %v19954_v63 = vcombine.high %v13371_v47, %v13375_v0  ;;  %v13235_v37 = vld [vmem:[%s24246_s17 + $0x340] sm:$0xff]  ;;  %17031 = vmatprep.subr.bf16.mxu0 %v19826_v20  ;;  %v19953_v58 = vcombine.low %v13371_v47, %v13375_v0 }
 0xcd2   : > { %v13239_v30 = vld [vmem:[%s24246_s17 + $0x360] sm:$0xff]  ;;  %17032 = vmatpush2.bf16.msra.mxu0 %v19825_v22  ;;  %v13118_v22 = vld [vmem:[#allocation2 + $0x20] sm:$0xff] }
 0xcd3   : > { %v13363_v57 = vld [vmem:[%s24246_s17 + $0x740] sm:$0xff]  ;;  %v19818_v28 = vcombine.high %v13235_v37, %v13239_v30  ;;  %17072 = vmatprep.subr.bf16.mxu1 %v19954_v63  ;;  %v19817_v42 = vcombine.low %v13235_v37, %v13239_v30  ;;  %v13116_v30 = vld [vmem:[#allocation2 + $0x28] sm:$0xff] }
 0xcd4   : > { %v13367_v9 = vld [vmem:[%s24246_s17 + $0x760] sm:$0xff]  ;;  %17073 = vmatpush2.bf16.msra.mxu1 %v19953_v58 }
 0xcd5   : > { %v19946_v4 = vcombine.high %v13363_v57, %v13367_v9  ;;  %v13227_v12 = vld [vmem:[%s24246_s17 + $0x300] sm:$0xff]  ;;  %17033 = vmatprep.subr.bf16.mxu0 %v19818_v28  ;;  %v19945_v15 = vcombine.low %v13363_v57, %v13367_v9 }
 0xcd6   : > { %v13231_v14 = vld [vmem:[%s24246_s17 + $0x320] sm:$0xff]  ;;  %17034 = vmatpush2.bf16.msra.mxu0 %v19817_v42 }
 0xcd7   : > { %v13355_v21 = vld [vmem:[%s24246_s17 + $0x700] sm:$0xff]  ;;  %v19810_v17 = vcombine.high %v13227_v12, %v13231_v14  ;;  %17074 = vmatprep.subr.bf16.mxu1 %v19946_v4  ;;  %v19809_v24 = vcombine.low %v13227_v12, %v13231_v14 }
 0xcd8   : > { %v13359_v44 = vld [vmem:[%s24246_s17 + $0x720] sm:$0xff]  ;;  %17075 = vmatpush2.bf16.msra.mxu1 %v19945_v15  ;;  %v25327_v15 = vpack.c.bf16 %v13118_v22, %v13118_v22 }
 0xcd9   : > { %v19938_v18 = vcombine.high %v13355_v21, %v13359_v44  ;;  %v13219_v23 = vld [vmem:[%s24246_s17 + $0x2c0] sm:$0xff]  ;;  %17035 = vmatprep.subr.bf16.mxu0 %v19810_v17  ;;  %v19937_v5 = vcombine.low %v13355_v21, %v13359_v44  ;;  %v25322_v21 = vpack.c.bf16 %v13116_v30, %v13116_v30 }
 0xcda   : > { %v13223_v16 = vld [vmem:[%s24246_s17 + $0x2e0] sm:$0xff]  ;;  %17036 = vmatpush2.bf16.msra.mxu0 %v19809_v24 }
 0xcdb   : > { %v13347_v52 = vld [vmem:[%s24246_s17 + $0x6c0] sm:$0xff]  ;;  %v19802_v25 = vcombine.high %v13219_v23, %v13223_v16  ;;  %17076 = vmatprep.subr.bf16.mxu1 %v19938_v18  ;;  %v19801_v27 = vcombine.low %v13219_v23, %v13223_v16 }
 0xcdc   : > { %v13351_v19 = vld [vmem:[%s24246_s17 + $0x6e0] sm:$0xff]  ;;  %17077 = vmatpush2.bf16.msra.mxu1 %v19937_v5 }
 0xcdd   : > { %v19930_v54 = vcombine.high %v13347_v52, %v13351_v19  ;;  %v13211_v7 = vld [vmem:[%s24246_s17 + $0x280] sm:$0xff]  ;;  %17037 = vmatprep.subr.bf16.mxu0 %v19802_v25  ;;  %v19929_v29 = vcombine.low %v13347_v52, %v13351_v19 }
 0xcde   : > { %v13215_v55 = vld [vmem:[%s24246_s17 + $0x2a0] sm:$0xff]  ;;  %17038 = vmatpush2.bf16.msra.mxu0 %v19801_v27 }
 0xcdf   : > { %v13339_v31 = vld [vmem:[%s24246_s17 + $0x680] sm:$0xff]  ;;  %v19794_v32 = vcombine.high %v13211_v7, %v13215_v55  ;;  %17078 = vmatprep.subr.bf16.mxu1 %v19930_v54  ;;  %v19793_v11 = vcombine.low %v13211_v7, %v13215_v55 }
 0xce0   : > { %v13343_v26 = vld [vmem:[%s24246_s17 + $0x6a0] sm:$0xff]  ;;  %17079 = vmatpush2.bf16.msra.mxu1 %v19929_v29 }
 0xce1   : > { %v19922_v33 = vcombine.high %v13339_v31, %v13343_v26  ;;  %v13203_v53 = vld [vmem:[%s24246_s17 + $0x240] sm:$0xff]  ;;  %17039 = vmatprep.subr.bf16.mxu0 %v19794_v32  ;;  %v19921_v35 = vcombine.low %v13339_v31, %v13343_v26 }
 0xce2   : > { %v13207_v43 = vld [vmem:[%s24246_s17 + $0x260] sm:$0xff]  ;;  %17040 = vmatpush2.bf16.msra.mxu0 %v19793_v11 }
 0xce3   : > { %v13331_v41 = vld [vmem:[%s24246_s17 + $0x640] sm:$0xff]  ;;  %v19786_v3 = vcombine.high %v13203_v53, %v13207_v43  ;;  %17080 = vmatprep.subr.bf16.mxu1 %v19922_v33  ;;  %v19785_v40 = vcombine.low %v13203_v53, %v13207_v43 }
 0xce4   : > { %v13335_v34 = vld [vmem:[%s24246_s17 + $0x660] sm:$0xff]  ;;  %17081 = vmatpush2.bf16.msra.mxu1 %v19921_v35 }
 0xce5   : > { %v19914_v38 = vcombine.high %v13331_v41, %v13335_v34  ;;  %v13195_v56 = vld [vmem:[%s24246_s17 + $0x200] sm:$0xff]  ;;  %17041 = vmatprep.subr.bf16.mxu0 %v19786_v3  ;;  %v19913_v13 = vcombine.low %v13331_v41, %v13335_v34 }
 0xce6   : > { %v13199_v8 = vld [vmem:[%s24246_s17 + $0x220] sm:$0xff]  ;;  %17042 = vmatpush2.bf16.msra.mxu0 %v19785_v40 }
 0xce7   : > { %v13323_v48 = vld [vmem:[%s24246_s17 + $0x600] sm:$0xff]  ;;  %v19778_v49 = vcombine.high %v13195_v56, %v13199_v8  ;;  %17082 = vmatprep.subr.bf16.mxu1 %v19914_v38  ;;  %v19777_v60 = vcombine.low %v13195_v56, %v13199_v8 }
 0xce8   : > { %v13327_v62 = vld [vmem:[%s24246_s17 + $0x620] sm:$0xff]  ;;  %17083 = vmatpush2.bf16.msra.mxu1 %v19913_v13 }
 0xce9   : > { %v19906_v50 = vcombine.high %v13323_v48, %v13327_v62  ;;  %v13443_v59 = vld [vmem:[%s24246_s17 + $0x9c0] sm:$0xff]  ;;  %17043 = vmatprep.subr.bf16.mxu0 %v19778_v49  ;;  %v19905_v6 = vcombine.low %v13323_v48, %v13327_v62 }
 0xcea   : > { %v13447_v10 = vld [vmem:[%s24246_s17 + $0x9e0] sm:$0xff]  ;;  %17044 = vmatpush2.bf16.msra.mxu0 %v19777_v60 }
 0xceb   : > { %v13571_v2 = vld [vmem:[%s24246_s17 + $0xdc0] sm:$0xff]  ;;  %v20026_v47 = vcombine.high %v13443_v59, %v13447_v10  ;;  %17084 = vmatprep.subr.bf16.mxu1 %v19906_v50  ;;  %v20025_v9 = vcombine.low %v13443_v59, %v13447_v10 }
 0xcec   : > { %v13575_v51 = vld [vmem:[%s24246_s17 + $0xde0] sm:$0xff]  ;;  %17085 = vmatpush2.bf16.msra.mxu1 %v19905_v6 }
 0xced   : > { %v13111_v61 = vld [vmem:[#allocation2 + $0x30] sm:$0xff]  ;;  %v13113_v46 = vld [vmem:[#allocation2 + $0x18] sm:$0xff]  ;;  %v20154_v0 = vcombine.high %v13571_v2, %v13575_v51  ;;  %17095 = vmatprep.subr.bf16.mxu0 %v20026_v47  ;;  %v20153_v58 = vcombine.low %v13571_v2, %v13575_v51 }
 0xcee   : > { %v13435_v1 = vld [vmem:[%s24246_s17 + $0x980] sm:$0xff]  ;;  %v25314_v20 = vpack.c.bf16 %v13111_v61, %v13111_v61  ;;  %v25318_v57 = vpack.c.bf16 %v13113_v46, %v13113_v46 }
 0xcef   : > { %v13439_v36 = vld [vmem:[%s24246_s17 + $0x9a0] sm:$0xff]  ;;  %17136 = vmatprep.subr.bf16.mxu1 %v20154_v0 }
 0xcf0   : > { %v13563_v63 = vld [vmem:[%s24246_s17 + $0xd80] sm:$0xff]  ;;  %v20018_v28 = vcombine.high %v13435_v1, %v13439_v36  ;;  %17046 = vmatmul.mubr.bf16.vlgmr.msra.gmra.mxu0 %v25314_v20  ;;  %17087 = vmatmul.mubr.bf16.vlgmr.msra.gmra.mxu1 %v25318_v57  ;;  %v20017_v17 = vcombine.low %v13435_v1, %v13439_v36 }
 0xcf1   : > { %v13567_v37 = vld [vmem:[%s24246_s17 + $0xda0] sm:$0xff]  ;;  %17096 = vmatpush1.bf16.msra.mxu0 %v20025_v9  ;;  %17137 = vmatpush1.bf16.msra.mxu1 %v20153_v58 }
 0xcf2   : > { %v20146_v4 = vcombine.high %v13563_v63, %v13567_v37  ;;  %v13427_v12 = vld [vmem:[%s24246_s17 + $0x940] sm:$0xff]  ;;  %17097 = vmatprep.subr.bf16.mxu0 %v20018_v28  ;;  %v20145_v18 = vcombine.low %v13563_v63, %v13567_v37  ;;  %17127 = vmatprep.mubr.bf16.mxu0 %v25322_v21 }
 0xcf3   : > { %v13431_v14 = vld [vmem:[%s24246_s17 + $0x960] sm:$0xff]  ;;  %17168 = vmatprep.mubr.bf16.mxu1 %v25327_v15 }
 0xcf4   : > { %v13555_v44 = vld [vmem:[%s24246_s17 + $0xd40] sm:$0xff]  ;;  %v20010_v23 = vcombine.high %v13427_v12, %v13431_v14  ;;  %17138 = vmatprep.subr.bf16.mxu1 %v20146_v4  ;;  %v20009_v25 = vcombine.low %v13427_v12, %v13431_v14 }
 0xcf5   : > { %v13559_v42 = vld [vmem:[%s24246_s17 + $0xd60] sm:$0xff]  ;;  %17098 = vmatpush1.bf16.msra.mxu0 %v20017_v17  ;;  %17139 = vmatpush1.bf16.msra.mxu1 %v20145_v18 }
 0xcf6   : > { %v20138_v16 = vcombine.high %v13555_v44, %v13559_v42  ;;  %v13419_v52 = vld [vmem:[%s24246_s17 + $0x900] sm:$0xff]  ;;  %17099 = vmatprep.subr.bf16.mxu0 %v20010_v23  ;;  %v20137_v54 = vcombine.low %v13555_v44, %v13559_v42 }
 0xcf7   : > { %v13423_v19 = vld [vmem:[%s24246_s17 + $0x920] sm:$0xff] }
 0xcf8   : > { %v13547_v24 = vld [vmem:[%s24246_s17 + $0xd00] sm:$0xff]  ;;  %v20002_v7 = vcombine.high %v13419_v52, %v13423_v19  ;;  %17140 = vmatprep.subr.bf16.mxu1 %v20138_v16  ;;  %v20001_v32 = vcombine.low %v13419_v52, %v13423_v19 }
 0xcf9   : > { %v13551_v5 = vld [vmem:[%s24246_s17 + $0xd20] sm:$0xff]  ;;  %17100 = vmatpush1.bf16.msra.mxu0 %v20009_v25  ;;  %17141 = vmatpush1.bf16.msra.mxu1 %v20137_v54 }
 0xcfa   : > { %v20130_v55 = vcombine.high %v13547_v24, %v13551_v5  ;;  %v13411_v31 = vld [vmem:[%s24246_s17 + $0x8c0] sm:$0xff]  ;;  %17101 = vmatprep.subr.bf16.mxu0 %v20002_v7  ;;  %v20129_v33 = vcombine.low %v13547_v24, %v13551_v5 }
 0xcfb   : > { %v13415_v26 = vld [vmem:[%s24246_s17 + $0x8e0] sm:$0xff] }
 0xcfc   : > { %v13539_v27 = vld [vmem:[%s24246_s17 + $0xcc0] sm:$0xff]  ;;  %v19994_v53 = vcombine.high %v13411_v31, %v13415_v26  ;;  %17142 = vmatprep.subr.bf16.mxu1 %v20130_v55  ;;  %v19993_v3 = vcombine.low %v13411_v31, %v13415_v26 }
 0xcfd   : > { %v13543_v29 = vld [vmem:[%s24246_s17 + $0xce0] sm:$0xff]  ;;  %17102 = vmatpush1.bf16.msra.mxu0 %v20001_v32  ;;  %17143 = vmatpush1.bf16.msra.mxu1 %v20129_v33 }
 0xcfe   : > { %v20122_v43 = vcombine.high %v13539_v27, %v13543_v29  ;;  %v13403_v41 = vld [vmem:[%s24246_s17 + $0x880] sm:$0xff]  ;;  %17103 = vmatprep.subr.bf16.mxu0 %v19994_v53  ;;  %v20121_v38 = vcombine.low %v13539_v27, %v13543_v29 }
 0xcff   : > { %v13407_v34 = vld [vmem:[%s24246_s17 + $0x8a0] sm:$0xff] }
 0xd00   : > { %v13531_v11 = vld [vmem:[%s24246_s17 + $0xc80] sm:$0xff]  ;;  %v19986_v56 = vcombine.high %v13403_v41, %v13407_v34  ;;  %17144 = vmatprep.subr.bf16.mxu1 %v20122_v43  ;;  %v19985_v49 = vcombine.low %v13403_v41, %v13407_v34 }
 0xd01   : > { %v13535_v35 = vld [vmem:[%s24246_s17 + $0xca0] sm:$0xff]  ;;  %17104 = vmatpush1.bf16.msra.mxu0 %v19993_v3  ;;  %17145 = vmatpush1.bf16.msra.mxu1 %v20121_v38 }
 0xd02   : > { %v20114_v8 = vcombine.high %v13531_v11, %v13535_v35  ;;  %v13395_v48 = vld [vmem:[%s24246_s17 + $0x840] sm:$0xff]  ;;  %17105 = vmatprep.subr.bf16.mxu0 %v19986_v56  ;;  %v20113_v50 = vcombine.low %v13531_v11, %v13535_v35 }
 0xd03   : > { %v13399_v62 = vld [vmem:[%s24246_s17 + $0x860] sm:$0xff] }
 0xd04   : > { %v13523_v40 = vld [vmem:[%s24246_s17 + $0xc40] sm:$0xff]  ;;  %v19978_v59 = vcombine.high %v13395_v48, %v13399_v62  ;;  %17146 = vmatprep.subr.bf16.mxu1 %v20114_v8  ;;  %v19977_v6 = vcombine.low %v13395_v48, %v13399_v62 }
 0xd05   : > { %v13527_v13 = vld [vmem:[%s24246_s17 + $0xc60] sm:$0xff]  ;;  %17106 = vmatpush1.bf16.msra.mxu0 %v19985_v49  ;;  %17147 = vmatpush1.bf16.msra.mxu1 %v20113_v50 }
 0xd06   : > { %v20106_v10 = vcombine.high %v13523_v40, %v13527_v13  ;;  %v13387_v2 = vld [vmem:[%s24246_s17 + $0x800] sm:$0xff]  ;;  %17107 = vmatprep.subr.bf16.mxu0 %v19978_v59  ;;  %v20105_v46 = vcombine.low %v13523_v40, %v13527_v13 }
 0xd07   : > { %v13391_v51 = vld [vmem:[%s24246_s17 + $0x820] sm:$0xff] }
 0xd08   : > { %v13515_v60 = vld [vmem:[%s24246_s17 + $0xc00] sm:$0xff]  ;;  %v19970_v47 = vcombine.high %v13387_v2, %v13391_v51  ;;  %17148 = vmatprep.subr.bf16.mxu1 %v20106_v10  ;;  %v19969_v30 = vcombine.low %v13387_v2, %v13391_v51 }
 0xd09   : > { %v13519_v61 = vld [vmem:[%s24246_s17 + $0xc20] sm:$0xff]  ;;  %17108 = vmatpush1.bf16.msra.mxu0 %v19977_v6  ;;  %17149 = vmatpush1.bf16.msra.mxu1 %v20105_v46 }
 0xd0a   : > { %v20098_v0 = vcombine.high %v13515_v60, %v13519_v61  ;;  %v13507_v1 = vld [vmem:[%s24246_s17 + $0xbc0] sm:$0xff]  ;;  %17109 = vmatprep.subr.bf16.mxu0 %v19970_v47  ;;  %v20097_v9 = vcombine.low %v13515_v60, %v13519_v61 }
 0xd0b   : > { %v13511_v36 = vld [vmem:[%s24246_s17 + $0xbe0] sm:$0xff] }
 0xd0c   : > { %v13635_v63 = vld [vmem:[%s24246_s17 + $0xfc0] sm:$0xff]  ;;  %v20090_v22 = vcombine.high %v13507_v1, %v13511_v36  ;;  %17150 = vmatprep.subr.bf16.mxu1 %v20098_v0  ;;  %v20089_v44 = vcombine.low %v13507_v1, %v13511_v36 }
 0xd0d   : > { %v13639_v37 = vld [vmem:[%s24246_s17 + $0xfe0] sm:$0xff]  ;;  %17110 = vmatpush1.bf16.msra.mxu0 %v19969_v30  ;;  %17151 = vmatpush1.bf16.msra.mxu1 %v20097_v9 }
 0xd0e   : > { %v20218_v58 = vcombine.high %v13635_v63, %v13639_v37  ;;  %v13499_v28 = vld [vmem:[%s24246_s17 + $0xb80] sm:$0xff]  ;;  %17111 = vmatprep.subr.bf16.mxu0 %v20090_v22  ;;  %v20217_v42 = vcombine.low %v13635_v63, %v13639_v37 }
 0xd0f   : > { %v13503_v4 = vld [vmem:[%s24246_s17 + $0xba0] sm:$0xff] }
 0xd10   : > { %v13627_v12 = vld [vmem:[%s24246_s17 + $0xf80] sm:$0xff]  ;;  %v20082_v17 = vcombine.high %v13499_v28, %v13503_v4  ;;  %17152 = vmatprep.subr.bf16.mxu1 %v20218_v58  ;;  %v20081_v24 = vcombine.low %v13499_v28, %v13503_v4  ;;  %v13188_v28 = vld [vmem:[%s24246_s17 + $0x1c8] sm:$0xff] }
 0xd11   : > { %v13631_v14 = vld [vmem:[%s24246_s17 + $0xfa0] sm:$0xff]  ;;  %17112 = vmatpush2.bf16.msra.mxu0 %v20089_v44  ;;  %17153 = vmatpush2.bf16.msra.mxu1 %v20217_v42  ;;  %v13192_v4 = vld [vmem:[%s24246_s17 + $0x1e8] sm:$0xff]  ;;  %v13117_v42 = vld [vmem:[#allocation2 + $0x8] sm:$0xff] }
 0xd12   : > { %v20210_v18 = vcombine.high %v13627_v12, %v13631_v14  ;;  %v13491_v23 = vld [vmem:[%s24246_s17 + $0xb40] sm:$0xff]  ;;  %17113 = vmatprep.subr.bf16.mxu0 %v20082_v17  ;;  %v20209_v5 = vcombine.low %v13627_v12, %v13631_v14  ;;  %v13115_v14 = vld [vmem:[#allocation2 + $0x48] sm:$0xff] }
 0xd13   : > { %v13495_v16 = vld [vmem:[%s24246_s17 + $0xb60] sm:$0xff] }
 0xd14   : > { %v13619_v52 = vld [vmem:[%s24246_s17 + $0xf40] sm:$0xff]  ;;  %v20074_v25 = vcombine.high %v13491_v23, %v13495_v16  ;;  %17154 = vmatprep.subr.bf16.mxu1 %v20210_v18  ;;  %v20073_v27 = vcombine.low %v13491_v23, %v13495_v16  ;;  %v19772_v18 = vcombine.high %v13188_v28, %v13192_v4 }
 0xd15   : > { %v13623_v19 = vld [vmem:[%s24246_s17 + $0xf60] sm:$0xff]  ;;  %17114 = vmatpush2.bf16.msra.mxu0 %v20081_v24  ;;  %17155 = vmatpush2.bf16.msra.mxu1 %v20209_v5  ;;  %v13184_v24 = vld [vmem:[%s24246_s17 + $0x1a8] sm:$0xff] }
 0xd16   : > { %v20202_v54 = vcombine.high %v13619_v52, %v13623_v19  ;;  %v13483_v7 = vld [vmem:[%s24246_s17 + $0xb00] sm:$0xff]  ;;  %17115 = vmatprep.subr.bf16.mxu0 %v20074_v25  ;;  %v20201_v29 = vcombine.low %v13619_v52, %v13623_v19  ;;  %v25390_v52 = vpack.c.bf16 %v13115_v14, %v13115_v14  ;;  %v13180_v19 = vld [vmem:[%s24246_s17 + $0x188] sm:$0xff]  ;;  %v25394_v25 = vpack.c.bf16 %v13117_v42, %v13117_v42 }
 0xd17   : > { %v13487_v55 = vld [vmem:[%s24246_s17 + $0xb20] sm:$0xff]  ;;  %v13136_v42 = vld [vmem:[%s24246_s17 + $0x28] sm:$0xff] }
 0xd18   : > { %v13611_v31 = vld [vmem:[%s24246_s17 + $0xf00] sm:$0xff]  ;;  %v20066_v32 = vcombine.high %v13483_v7, %v13487_v55  ;;  %17156 = vmatprep.subr.bf16.mxu1 %v20202_v54  ;;  %v20065_v11 = vcombine.low %v13483_v7, %v13487_v55  ;;  %v19771_v7 = vcombine.low %v13188_v28, %v13192_v4 }
 0xd19   : > { %v13615_v26 = vld [vmem:[%s24246_s17 + $0xf20] sm:$0xff]  ;;  %17116 = vmatpush2.bf16.msra.mxu0 %v20073_v27  ;;  %17157 = vmatpush2.bf16.msra.mxu1 %v20201_v29 }
 0xd1a   : > { %v20194_v33 = vcombine.high %v13611_v31, %v13615_v26  ;;  %v13475_v53 = vld [vmem:[%s24246_s17 + $0xac0] sm:$0xff]  ;;  %17117 = vmatprep.subr.bf16.mxu0 %v20066_v32  ;;  %v20193_v35 = vcombine.low %v13611_v31, %v13615_v26  ;;  %v19764_v31 = vcombine.high %v13180_v19, %v13184_v24  ;;  %v13172_v32 = vld [vmem:[%s24246_s17 + $0x148] sm:$0xff] }
 0xd1b   : > { %v13479_v43 = vld [vmem:[%s24246_s17 + $0xae0] sm:$0xff] }
 0xd1c   : > { %v13603_v41 = vld [vmem:[%s24246_s17 + $0xec0] sm:$0xff]  ;;  %v20058_v3 = vcombine.high %v13475_v53, %v13479_v43  ;;  %17158 = vmatprep.subr.bf16.mxu1 %v20194_v33  ;;  %v20057_v40 = vcombine.low %v13475_v53, %v13479_v43  ;;  %v13176_v33 = vld [vmem:[%s24246_s17 + $0x168] sm:$0xff]  ;;  %v19763_v43 = vcombine.low %v13180_v19, %v13184_v24 }
 0xd1d   : > { %v13607_v34 = vld [vmem:[%s24246_s17 + $0xee0] sm:$0xff]  ;;  %17118 = vmatpush2.bf16.msra.mxu0 %v20065_v11  ;;  %17159 = vmatpush2.bf16.msra.mxu1 %v20193_v35 }
 0xd1e   : > { %v20186_v38 = vcombine.high %v13603_v41, %v13607_v34  ;;  %v13467_v56 = vld [vmem:[%s24246_s17 + $0xa80] sm:$0xff]  ;;  %17119 = vmatprep.subr.bf16.mxu0 %v20058_v3  ;;  %v20185_v13 = vcombine.low %v13603_v41, %v13607_v34  ;;  %v19756_v34 = vcombine.high %v13172_v32, %v13176_v33  ;;  %v13164_v3 = vld [vmem:[%s24246_s17 + $0x108] sm:$0xff] }
 0xd1f   : > { %v13471_v8 = vld [vmem:[%s24246_s17 + $0xaa0] sm:$0xff] }
 0xd20   : > { %v13595_v48 = vld [vmem:[%s24246_s17 + $0xe80] sm:$0xff]  ;;  %v20050_v49 = vcombine.high %v13467_v56, %v13471_v8  ;;  %17160 = vmatprep.subr.bf16.mxu1 %v20186_v38  ;;  %v20049_v60 = vcombine.low %v13467_v56, %v13471_v8  ;;  %v13168_v38 = vld [vmem:[%s24246_s17 + $0x128] sm:$0xff]  ;;  %v19755_v8 = vcombine.low %v13172_v32, %v13176_v33 }
 0xd21   : > { %v13599_v62 = vld [vmem:[%s24246_s17 + $0xea0] sm:$0xff]  ;;  %17120 = vmatpush2.bf16.msra.mxu0 %v20057_v40  ;;  %17161 = vmatpush2.bf16.msra.mxu1 %v20185_v13  ;;  %v13244_v33 = vld [vmem:[%s24246_s17 + $0x388] sm:$0xff] }
 0xd22   : > { %v20178_v50 = vcombine.high %v13595_v48, %v13599_v62  ;;  %v13459_v59 = vld [vmem:[%s24246_s17 + $0xa40] sm:$0xff]  ;;  %17121 = vmatprep.subr.bf16.mxu0 %v20050_v49  ;;  %v20177_v61 = vcombine.low %v13595_v48, %v13599_v62  ;;  %v19748_v62 = vcombine.high %v13164_v3, %v13168_v38  ;;  %v13156_v49 = vld [vmem:[%s24246_s17 + $0xc8] sm:$0xff] }
 0xd23   : > { %v13463_v10 = vld [vmem:[%s24246_s17 + $0xa60] sm:$0xff] }
 0xd24   : > { %v13587_v2 = vld [vmem:[%s24246_s17 + $0xe40] sm:$0xff]  ;;  %v20042_v6 = vcombine.high %v13459_v59, %v13463_v10  ;;  %17162 = vmatprep.subr.bf16.mxu1 %v20178_v50  ;;  %v20041_v63 = vcombine.low %v13459_v59, %v13463_v10  ;;  %v13160_v50 = vld [vmem:[%s24246_s17 + $0xe8] sm:$0xff]  ;;  %v19747_v10 = vcombine.low %v13164_v3, %v13168_v38 }
 0xd25   : > { %v13591_v51 = vld [vmem:[%s24246_s17 + $0xe60] sm:$0xff]  ;;  %17122 = vmatpush2.bf16.msra.mxu0 %v20049_v60  ;;  %17163 = vmatpush2.bf16.msra.mxu1 %v20177_v61  ;;  %v13236_v38 = vld [vmem:[%s24246_s17 + $0x348] sm:$0xff] }
 0xd26   : > { %v20170_v46 = vcombine.high %v13587_v2, %v13591_v51  ;;  %v13451_v47 = vld [vmem:[%s24246_s17 + $0xa00] sm:$0xff]  ;;  %17123 = vmatprep.subr.bf16.mxu0 %v20042_v6  ;;  %v20169_v37 = vcombine.low %v13587_v2, %v13591_v51  ;;  %v19740_v51 = vcombine.high %v13156_v49, %v13160_v50  ;;  %v13148_v6 = vld [vmem:[%s24246_s17 + $0x88] sm:$0xff] }
 0xd27   : > { %v13455_v0 = vld [vmem:[%s24246_s17 + $0xa20] sm:$0xff] }
 0xd28   : > { %v13579_v1 = vld [vmem:[%s24246_s17 + $0xe00] sm:$0xff]  ;;  %v20034_v30 = vcombine.high %v13451_v47, %v13455_v0  ;;  %17164 = vmatprep.subr.bf16.mxu1 %v20170_v46  ;;  %v20033_v12 = vcombine.low %v13451_v47, %v13455_v0  ;;  %v13152_v46 = vld [vmem:[%s24246_s17 + $0xa8] sm:$0xff]  ;;  %v19739_v0 = vcombine.low %v13156_v49, %v13160_v50 }
 0xd29   : > { %v13583_v36 = vld [vmem:[%s24246_s17 + $0xe20] sm:$0xff]  ;;  %17124 = vmatpush2.bf16.msra.mxu0 %v20041_v63  ;;  %17165 = vmatpush2.bf16.msra.mxu1 %v20169_v37  ;;  %v13228_v50 = vld [vmem:[%s24246_s17 + $0x308] sm:$0xff] }
 0xd2a   : > { %v20162_v9 = vcombine.high %v13579_v1, %v13583_v36  ;;  %v13699_v22 = vld [vmem:[%s24246_s17 + $0x11c0] sm:$0xff]  ;;  %17125 = vmatprep.subr.bf16.mxu0 %v20034_v30  ;;  %v20161_v44 = vcombine.low %v13579_v1, %v13583_v36  ;;  %v19732_v36 = vcombine.high %v13148_v6, %v13152_v46  ;;  %v13140_v30 = vld [vmem:[%s24246_s17 + $0x48] sm:$0xff] }
 0xd2b   : > { %v13703_v58 = vld [vmem:[%s24246_s17 + $0x11e0] sm:$0xff] }
 0xd2c   : > { %v20282_v17 = vcombine.high %v13699_v22, %v13703_v58  ;;  %17166 = vmatprep.subr.bf16.mxu1 %v20162_v9  ;;  %v13691_v23 = vld [vmem:[%s24246_s17 + $0x1180] sm:$0xff]  ;;  %v20281_v54 = vcombine.low %v13699_v22, %v13703_v58  ;;  %v13144_v9 = vld [vmem:[%s24246_s17 + $0x68] sm:$0xff]  ;;  %v19731_v58 = vcombine.low %v13148_v6, %v13152_v46 }
 0xd2d   : > { %v13695_v16 = vld [vmem:[%s24246_s17 + $0x11a0] sm:$0xff]  ;;  %17126 = vmatpush2.bf16.msra.mxu0 %v20033_v12  ;;  %17167 = vmatpush2.bf16.msra.mxu1 %v20161_v44  ;;  %v19724_v4 = vcombine.high %v13140_v30, %v13144_v9  ;;  %v13132_v44 = vld [vmem:[%s24246_s17 + $0x8] sm:$0xff] }
 0xd2e   : > { %v13120_v5 = vld [vmem:[#allocation2 + $0x38] sm:$0xff]  ;;  %17177 = vmatprep.subr.bf16.mxu0 %v20282_v17  ;;  %v20274_v55 = vcombine.high %v13691_v23, %v13695_v16  ;;  %17218 = vmatprep.subr.bf16.mxu1 %v19772_v18  ;;  %v20273_v53 = vcombine.low %v13691_v23, %v13695_v16  ;;  %v19723_v18 = vcombine.low %v13140_v30, %v13144_v9 }
 0xd2f   : > { %v13683_v26 = vld [vmem:[%s24246_s17 + $0x1140] sm:$0xff]  ;;  %v25398_v29 = vpack.c.bf16 %v13120_v5, %v13120_v5  ;;  %v19716_v16 = vcombine.high %v13132_v44, %v13136_v42  ;;  %v13252_v5 = vld [vmem:[%s24246_s17 + $0x3c8] sm:$0xff] }
 0xd30   : > { %v13687_v27 = vld [vmem:[%s24246_s17 + $0x1160] sm:$0xff]  ;;  %17128 = vmatmul.mubr.bf16.vlgmr.msra.gmra.mxu0 %v25390_v52  ;;  %17169 = vmatmul.mubr.bf16.vlgmr.msra.gmra.mxu1 %v25394_v25  ;;  %v13220_v46 = vld [vmem:[%s24246_s17 + $0x2c8] sm:$0xff] }
 0xd31   : > { %17178 = vmatpush1.bf16.msra.mxu0 %v20281_v54  ;;  %17219 = vmatpush1.bf16.msra.mxu1 %v19771_v7  ;;  %v20266_v41 = vcombine.high %v13683_v26, %v13687_v27  ;;  %v13675_v11 = vld [vmem:[%s24246_s17 + $0x1100] sm:$0xff]  ;;  %v20265_v56 = vcombine.low %v13683_v26, %v13687_v27  ;;  %v13256_v54 = vld [vmem:[%s24246_s17 + $0x3e8] sm:$0xff] }
 0xd32   : > { %17179 = vmatprep.subr.bf16.mxu0 %v20274_v55  ;;  %17220 = vmatprep.subr.bf16.mxu1 %v19764_v31  ;;  %v13679_v35 = vld [vmem:[%s24246_s17 + $0x1120] sm:$0xff]  ;;  %v19715_v55 = vcombine.low %v13132_v44, %v13136_v42  ;;  %v19836_v26 = vcombine.high %v13252_v5, %v13256_v54  ;;  %v13212_v9 = vld [vmem:[%s24246_s17 + $0x288] sm:$0xff] }
 0xd33   : > { %17209 = vmatprep.mubr.bf16.mxu0 %v25398_v29  ;;  %17250 = vmatprep.mubr.bf16.mxu1 %v25268_v45  ;;  %v20258_v48 = vcombine.high %v13675_v11, %v13679_v35  ;;  %v13667_v40 = vld [vmem:[%s24246_s17 + $0x10c0] sm:$0xff]  ;;  %v20257_v59 = vcombine.low %v13675_v11, %v13679_v35  ;;  %v13204_v42 = vld [vmem:[%s24246_s17 + $0x248] sm:$0xff] }
 0xd34   : > { %v13671_v13 = vld [vmem:[%s24246_s17 + $0x10e0] sm:$0xff] }
 0xd35   : > { %17180 = vmatpush1.bf16.msra.mxu0 %v20273_v53  ;;  %17221 = vmatpush1.bf16.msra.mxu1 %v19763_v43  ;;  %v20250_v2 = vcombine.high %v13667_v40, %v13671_v13  ;;  %v13659_v60 = vld [vmem:[%s24246_s17 + $0x1080] sm:$0xff]  ;;  %v20249_v47 = vcombine.low %v13667_v40, %v13671_v13  ;;  %v13248_v53 = vld [vmem:[%s24246_s17 + $0x3a8] sm:$0xff] }
 0xd36   : > { %17181 = vmatprep.subr.bf16.mxu0 %v20266_v41  ;;  %17222 = vmatprep.subr.bf16.mxu1 %v19756_v34  ;;  %v13663_v61 = vld [vmem:[%s24246_s17 + $0x10a0] sm:$0xff]  ;;  %v19835_v41 = vcombine.low %v13252_v5, %v13256_v54  ;;  %v19828_v11 = vcombine.high %v13244_v33, %v13248_v53  ;;  %v13196_v54 = vld [vmem:[%s24246_s17 + $0x208] sm:$0xff] }
 0xd37   : > { %v20242_v1 = vcombine.high %v13659_v60, %v13663_v61  ;;  %v13651_v63 = vld [vmem:[%s24246_s17 + $0x1040] sm:$0xff]  ;;  %v20241_v22 = vcombine.low %v13659_v60, %v13663_v61 }
 0xd38   : > { %v13655_v37 = vld [vmem:[%s24246_s17 + $0x1060] sm:$0xff] }
 0xd39   : > { %17182 = vmatpush1.bf16.msra.mxu0 %v20265_v56  ;;  %17223 = vmatpush1.bf16.msra.mxu1 %v19755_v8  ;;  %v20234_v28 = vcombine.high %v13651_v63, %v13655_v37  ;;  %v13643_v12 = vld [vmem:[%s24246_s17 + $0x1000] sm:$0xff]  ;;  %v20233_v17 = vcombine.low %v13651_v63, %v13655_v37  ;;  %v13240_v56 = vld [vmem:[%s24246_s17 + $0x368] sm:$0xff] }
 0xd3a   : > { %17183 = vmatprep.subr.bf16.mxu0 %v20258_v48  ;;  %17224 = vmatprep.subr.bf16.mxu1 %v19748_v62  ;;  %v13647_v14 = vld [vmem:[%s24246_s17 + $0x1020] sm:$0xff]  ;;  %v19827_v48 = vcombine.low %v13244_v33, %v13248_v53  ;;  %v19820_v40 = vcombine.high %v13236_v38, %v13240_v56  ;;  %v13320_v33 = vld [vmem:[%s24246_s17 + $0x5e8] sm:$0xff] }
 0xd3b   : > { %v20226_v23 = vcombine.high %v13643_v12, %v13647_v14  ;;  %v13763_v19 = vld [vmem:[%s24246_s17 + $0x13c0] sm:$0xff]  ;;  %v20225_v7 = vcombine.low %v13643_v12, %v13647_v14  ;;  %v13444_v53 = vld [vmem:[%s24246_s17 + $0x9c8] sm:$0xff] }
 0xd3c   : > { %v13767_v24 = vld [vmem:[%s24246_s17 + $0x13e0] sm:$0xff] }
 0xd3d   : > { %17184 = vmatpush1.bf16.msra.mxu0 %v20257_v59  ;;  %17225 = vmatpush1.bf16.msra.mxu1 %v19747_v10  ;;  %v20346_v31 = vcombine.high %v13763_v19, %v13767_v24  ;;  %v13755_v27 = vld [vmem:[%s24246_s17 + $0x1380] sm:$0xff]  ;;  %v20345_v43 = vcombine.low %v13763_v19, %v13767_v24  ;;  %v13232_v59 = vld [vmem:[%s24246_s17 + $0x328] sm:$0xff] }
 0xd3e   : > { %17185 = vmatprep.subr.bf16.mxu0 %v20250_v2  ;;  %17226 = vmatprep.subr.bf16.mxu1 %v19740_v51  ;;  %v13759_v32 = vld [vmem:[%s24246_s17 + $0x13a0] sm:$0xff]  ;;  %v19819_v2 = vcombine.low %v13236_v38, %v13240_v56  ;;  %v19812_v60 = vcombine.high %v13228_v50, %v13232_v59  ;;  %v13308_v38 = vld [vmem:[%s24246_s17 + $0x588] sm:$0xff] }
 0xd3f   : > { %v20338_v34 = vcombine.high %v13755_v27, %v13759_v32  ;;  %v13747_v35 = vld [vmem:[%s24246_s17 + $0x1340] sm:$0xff]  ;;  %v20337_v8 = vcombine.low %v13755_v27, %v13759_v32  ;;  %v13316_v32 = vld [vmem:[%s24246_s17 + $0x5c8] sm:$0xff] }
 0xd40   : > { %v13751_v3 = vld [vmem:[%s24246_s17 + $0x1360] sm:$0xff]  ;;  %v13312_v56 = vld [vmem:[%s24246_s17 + $0x5a8] sm:$0xff] }
 0xd41   : > { %17186 = vmatpush1.bf16.msra.mxu0 %v20249_v47  ;;  %17227 = vmatpush1.bf16.msra.mxu1 %v19739_v0  ;;  %v20330_v62 = vcombine.high %v13747_v35, %v13751_v3  ;;  %v13739_v13 = vld [vmem:[%s24246_s17 + $0x1300] sm:$0xff]  ;;  %v20329_v10 = vcombine.low %v13747_v35, %v13751_v3  ;;  %v13224_v47 = vld [vmem:[%s24246_s17 + $0x2e8] sm:$0xff]  ;;  %v19900_v35 = vcombine.high %v13316_v32, %v13320_v33 }
 0xd42   : > { %17187 = vmatprep.subr.bf16.mxu0 %v20242_v1  ;;  %17228 = vmatprep.subr.bf16.mxu1 %v19732_v36  ;;  %v13743_v49 = vld [vmem:[%s24246_s17 + $0x1320] sm:$0xff]  ;;  %v19811_v1 = vcombine.low %v13228_v50, %v13232_v59  ;;  %v19804_v63 = vcombine.high %v13220_v46, %v13224_v47  ;;  %v13300_v59 = vld [vmem:[%s24246_s17 + $0x548] sm:$0xff] }
 0xd43   : > { %v20322_v51 = vcombine.high %v13739_v13, %v13743_v49  ;;  %v13731_v61 = vld [vmem:[%s24246_s17 + $0x12c0] sm:$0xff]  ;;  %v20321_v0 = vcombine.low %v13739_v13, %v13743_v49  ;;  %v19892_v49 = vcombine.high %v13308_v38, %v13312_v56 }
 0xd44   : > { %v13735_v6 = vld [vmem:[%s24246_s17 + $0x12e0] sm:$0xff] }
 0xd45   : > { %17188 = vmatpush1.bf16.msra.mxu0 %v20241_v22  ;;  %17229 = vmatpush1.bf16.msra.mxu1 %v19731_v58  ;;  %v20314_v36 = vcombine.high %v13731_v61, %v13735_v6  ;;  %v13723_v37 = vld [vmem:[%s24246_s17 + $0x1280] sm:$0xff]  ;;  %v13216_v22 = vld [vmem:[%s24246_s17 + $0x2a8] sm:$0xff]  ;;  %v20313_v58 = vcombine.low %v13731_v61, %v13735_v6 }
 0xd46   : > { %17189 = vmatprep.subr.bf16.mxu0 %v20234_v28  ;;  %17230 = vmatprep.subr.bf16.mxu1 %v19724_v4  ;;  %v13727_v30 = vld [vmem:[%s24246_s17 + $0x12a0] sm:$0xff]  ;;  %v19803_v28 = vcombine.low %v13220_v46, %v13224_v47  ;;  %v19796_v12 = vcombine.high %v13212_v9, %v13216_v22  ;;  %v13292_v47 = vld [vmem:[%s24246_s17 + $0x508] sm:$0xff] }
 0xd47   : > { %v20306_v4 = vcombine.high %v13723_v37, %v13727_v30  ;;  %v13715_v14 = vld [vmem:[%s24246_s17 + $0x1240] sm:$0xff] }
 0xd48   : > { %v13719_v44 = vld [vmem:[%s24246_s17 + $0x1260] sm:$0xff] }
 0xd49   : > { %17190 = vmatpush1.bf16.msra.mxu0 %v20233_v17  ;;  %17231 = vmatpush1.bf16.msra.mxu1 %v19723_v18  ;;  %v13208_v17 = vld [vmem:[%s24246_s17 + $0x268] sm:$0xff]  ;;  %v20305_v18 = vcombine.low %v13723_v37, %v13727_v30  ;;  %v13707_v24 = vld [vmem:[%s24246_s17 + $0x1200] sm:$0xff] }
 0xd4a   : > { %17191 = vmatprep.subr.bf16.mxu0 %v20226_v23  ;;  %17232 = vmatprep.subr.bf16.mxu1 %v19716_v16  ;;  %v19795_v23 = vcombine.low %v13212_v9, %v13216_v22  ;;  %v20298_v16 = vcombine.high %v13715_v14, %v13719_v44  ;;  %v19788_v19 = vcombine.high %v13204_v42, %v13208_v17  ;;  %v13711_v5 = vld [vmem:[%s24246_s17 + $0x1220] sm:$0xff]  ;;  %v13284_v22 = vld [vmem:[%s24246_s17 + $0x4c8] sm:$0xff] }
 0xd4d   : > { %17192 = vmatpush1.bf16.msra.mxu0 %v20225_v7  ;;  %17233 = vmatpush1.bf16.msra.mxu1 %v19715_v55  ;;  %v13200_v7 = vld [vmem:[%s24246_s17 + $0x228] sm:$0xff]  ;;  %v20297_v55 = vcombine.low %v13715_v14, %v13719_v44 }
 0xd4e   : > { %17193 = vmatprep.subr.bf16.mxu0 %v20346_v31  ;;  %17234 = vmatprep.subr.bf16.mxu1 %v19836_v26  ;;  %v19787_v31 = vcombine.low %v13204_v42, %v13208_v17  ;;  %v20290_v26 = vcombine.high %v13707_v24, %v13711_v5  ;;  %v19780_v27 = vcombine.high %v13196_v54, %v13200_v7  ;;  %v13276_v17 = vld [vmem:[%s24246_s17 + $0x488] sm:$0xff] }
 0xd51   : > { %17194 = vmatpush2.bf16.msra.mxu0 %v20345_v43  ;;  %17235 = vmatpush2.bf16.msra.mxu1 %v19835_v41  ;;  %v13448_v43 = vld [vmem:[%s24246_s17 + $0x9e8] sm:$0xff]  ;;  %v20289_v41 = vcombine.low %v13707_v24, %v13711_v5 }
 0xd52   : > { %17195 = vmatprep.subr.bf16.mxu0 %v20338_v34  ;;  %17236 = vmatprep.subr.bf16.mxu1 %v19828_v11  ;;  %v13119_v34 = vld [vmem:[#allocation2 + $0x40] sm:$0xff]  ;;  %v19779_v11 = vcombine.low %v13196_v54, %v13200_v7  ;;  %v20028_v3 = vcombine.high %v13444_v53, %v13448_v43  ;;  %v20027_v13 = vcombine.low %v13444_v53, %v13448_v43 }
 0xd53   : > { %v13268_v7 = vld [vmem:[%s24246_s17 + $0x448] sm:$0xff] }
 0xd54   : > { %v13260_v43 = vld [vmem:[%s24246_s17 + $0x408] sm:$0xff] }
 0xd55   : > { %17196 = vmatpush2.bf16.msra.mxu0 %v20337_v8  ;;  %17237 = vmatpush2.bf16.msra.mxu1 %v19827_v48  ;;  %v25464_v8 = vpack.c.bf16 %v13119_v34, %v13119_v34  ;;  %v13436_v48 = vld [vmem:[%s24246_s17 + $0x988] sm:$0xff] }
 0xd56   : > { %17197 = vmatprep.subr.bf16.mxu0 %v20330_v62  ;;  %17238 = vmatprep.subr.bf16.mxu1 %v19820_v40  ;;  %v13440_v62 = vld [vmem:[%s24246_s17 + $0x9a8] sm:$0xff]  ;;  %v19899_v40 = vcombine.low %v13316_v32, %v13320_v33 }
 0xd57   : > { %v20020_v50 = vcombine.high %v13436_v48, %v13440_v62  ;;  %v20019_v61 = vcombine.low %v13436_v48, %v13440_v62  ;;  %v13388_v34 = vld [vmem:[%s24246_s17 + $0x808] sm:$0xff] }
 0xd58   : > { %v13380_v48 = vld [vmem:[%s24246_s17 + $0x7c8] sm:$0xff] }
 0xd59   : > { %17198 = vmatpush2.bf16.msra.mxu0 %v20329_v10  ;;  %17239 = vmatpush2.bf16.msra.mxu1 %v19819_v2  ;;  %v13304_v10 = vld [vmem:[%s24246_s17 + $0x568] sm:$0xff] }
 0xd5a   : > { %17199 = vmatprep.subr.bf16.mxu0 %v20322_v51  ;;  %17240 = vmatprep.subr.bf16.mxu1 %v19812_v60  ;;  %v13428_v2 = vld [vmem:[%s24246_s17 + $0x948] sm:$0xff]  ;;  %v19891_v60 = vcombine.low %v13308_v38, %v13312_v56  ;;  %v19884_v6 = vcombine.high %v13300_v59, %v13304_v10 }
 0xd5b   : > { %v13432_v51 = vld [vmem:[%s24246_s17 + $0x968] sm:$0xff] }
 0xd5c   : > { %v20012_v46 = vcombine.high %v13428_v2, %v13432_v51  ;;  %v20011_v37 = vcombine.low %v13428_v2, %v13432_v51  ;;  %v13384_v62 = vld [vmem:[%s24246_s17 + $0x7e8] sm:$0xff] }
 0xd5d   : > { %17200 = vmatpush2.bf16.msra.mxu0 %v20321_v0  ;;  %17241 = vmatpush2.bf16.msra.mxu1 %v19811_v1  ;;  %v13296_v0 = vld [vmem:[%s24246_s17 + $0x528] sm:$0xff] }
 0xd5e   : > { %17201 = vmatprep.subr.bf16.mxu0 %v20314_v36  ;;  %17242 = vmatprep.subr.bf16.mxu1 %v19804_v63  ;;  %v13420_v1 = vld [vmem:[%s24246_s17 + $0x908] sm:$0xff]  ;;  %v19883_v63 = vcombine.low %v13300_v59, %v13304_v10  ;;  %v19876_v30 = vcombine.high %v13292_v47, %v13296_v0  ;;  %v19964_v59 = vcombine.high %v13380_v48, %v13384_v62 }
 0xd5f   : > { %v13424_v36 = vld [vmem:[%s24246_s17 + $0x928] sm:$0xff] }
 0xd60   : > { %v20004_v9 = vcombine.high %v13420_v1, %v13424_v36  ;;  %v20003_v14 = vcombine.low %v13420_v1, %v13424_v36  ;;  %v13372_v2 = vld [vmem:[%s24246_s17 + $0x788] sm:$0xff] }
 0xd61   : > { %17202 = vmatpush2.bf16.msra.mxu0 %v20313_v58  ;;  %17243 = vmatpush2.bf16.msra.mxu1 %v19803_v28  ;;  %v13288_v58 = vld [vmem:[%s24246_s17 + $0x4e8] sm:$0xff] }
 0xd62   : > { %17203 = vmatprep.subr.bf16.mxu0 %v20306_v4  ;;  %17244 = vmatprep.subr.bf16.mxu1 %v19796_v12  ;;  %v13412_v28 = vld [vmem:[%s24246_s17 + $0x8c8] sm:$0xff]  ;;  %v19875_v12 = vcombine.low %v13292_v47, %v13296_v0  ;;  %v19868_v44 = vcombine.high %v13284_v22, %v13288_v58 }
 0xd63   : > { %v13416_v4 = vld [vmem:[%s24246_s17 + $0x8e8] sm:$0xff] }
 0xd64   : > { %v19996_v42 = vcombine.high %v13412_v28, %v13416_v4  ;;  %v19995_v24 = vcombine.low %v13412_v28, %v13416_v4  ;;  %v13376_v51 = vld [vmem:[%s24246_s17 + $0x7a8] sm:$0xff] }
 0xd65   : > { %17204 = vmatpush2.bf16.msra.mxu0 %v20305_v18  ;;  %17245 = vmatpush2.bf16.msra.mxu1 %v19795_v23  ;;  %v13280_v18 = vld [vmem:[%s24246_s17 + $0x4a8] sm:$0xff]  ;;  %v19956_v47 = vcombine.high %v13372_v2, %v13376_v51 }
 0xd66   : > { %17205 = vmatprep.subr.bf16.mxu0 %v20298_v16  ;;  %17246 = vmatprep.subr.bf16.mxu1 %v19788_v19  ;;  %v13404_v23 = vld [vmem:[%s24246_s17 + $0x888] sm:$0xff]  ;;  %v19867_v19 = vcombine.low %v13284_v22, %v13288_v58  ;;  %v19860_v5 = vcombine.high %v13276_v17, %v13280_v18 }
 0xd67   : > { %v13408_v16 = vld [vmem:[%s24246_s17 + $0x8a8] sm:$0xff] }
 0xd68   : > { %v19988_v54 = vcombine.high %v13404_v23, %v13408_v16  ;;  %v19987_v32 = vcombine.low %v13404_v23, %v13408_v16  ;;  %v13364_v1 = vld [vmem:[%s24246_s17 + $0x748] sm:$0xff] }
 0xd69   : > { %17206 = vmatpush2.bf16.msra.mxu0 %v20297_v55  ;;  %17247 = vmatpush2.bf16.msra.mxu1 %v19787_v31  ;;  %v13272_v55 = vld [vmem:[%s24246_s17 + $0x468] sm:$0xff] }
 0xd6a   : > { %17207 = vmatprep.subr.bf16.mxu0 %v20290_v26  ;;  %17248 = vmatprep.subr.bf16.mxu1 %v19780_v27  ;;  %v13396_v31 = vld [vmem:[%s24246_s17 + $0x848] sm:$0xff]  ;;  %v19859_v27 = vcombine.low %v13276_v17, %v13280_v18  ;;  %v19852_v33 = vcombine.high %v13268_v7, %v13272_v55 }
 0xd6b   : > { %v13400_v26 = vld [vmem:[%s24246_s17 + $0x868] sm:$0xff] }
 0xd6c   : > { %v19980_v53 = vcombine.high %v13396_v31, %v13400_v26  ;;  %v13368_v36 = vld [vmem:[%s24246_s17 + $0x768] sm:$0xff] }
 0xd6d   : > { %17208 = vmatpush2.bf16.msra.mxu0 %v20289_v41  ;;  %17249 = vmatpush2.bf16.msra.mxu1 %v19779_v11  ;;  %v13264_v41 = vld [vmem:[%s24246_s17 + $0x428] sm:$0xff]  ;;  %v19948_v22 = vcombine.high %v13364_v1, %v13368_v36 }
 0xd6e   : > { %17259 = vmatprep.subr.bf16.mxu0 %v19900_v35  ;;  %17300 = vmatprep.subr.bf16.mxu1 %v20028_v3  ;;  %v13392_v11 = vld [vmem:[%s24246_s17 + $0x828] sm:$0xff]  ;;  %v19851_v35 = vcombine.low %v13268_v7, %v13272_v55  ;;  %v19979_v3 = vcombine.low %v13396_v31, %v13400_v26  ;;  %v19844_v38 = vcombine.high %v13260_v43, %v13264_v41 }
 0xd6f   : > { %v19972_v56 = vcombine.high %v13388_v34, %v13392_v11  ;;  %v13356_v28 = vld [vmem:[%s24246_s17 + $0x708] sm:$0xff] }
 0xd70   : > { %17210 = vmatmul.mubr.bf16.vlgmr.msra.gmra.mxu0 %v25464_v8  ;;  %17251 = vmatmul.mubr.bf16.vlgmr.msra.gmra.mxu1 %v25314_v20  ;;  %v13360_v4 = vld [vmem:[%s24246_s17 + $0x728] sm:$0xff] }
 0xd71   : > { %17260 = vmatpush1.bf16.msra.mxu0 %v19899_v40  ;;  %17301 = vmatpush1.bf16.msra.mxu1 %v20027_v13  ;;  %v13508_v40 = vld [vmem:[%s24246_s17 + $0xbc8] sm:$0xff]  ;;  %v19940_v17 = vcombine.high %v13356_v28, %v13360_v4 }
 0xd72   : > { %17261 = vmatprep.subr.bf16.mxu0 %v19892_v49  ;;  %17302 = vmatprep.subr.bf16.mxu1 %v20020_v50  ;;  %v13512_v13 = vld [vmem:[%s24246_s17 + $0xbe8] sm:$0xff]  ;;  %v19843_v49 = vcombine.low %v13260_v43, %v13264_v41  ;;  %v19971_v50 = vcombine.low %v13388_v34, %v13392_v11 }
 0xd73   : > { %17291 = vmatprep.mubr.bf16.mxu0 %v25270_v39  ;;  %17332 = vmatprep.mubr.bf16.mxu1 %v25322_v21  ;;  %v20092_v10 = vcombine.high %v13508_v40, %v13512_v13  ;;  %v13348_v23 = vld [vmem:[%s24246_s17 + $0x6c8] sm:$0xff] }
 0xd74   : > { %v13352_v16 = vld [vmem:[%s24246_s17 + $0x6e8] sm:$0xff] }
 0xd75   : > { %17262 = vmatpush1.bf16.msra.mxu0 %v19891_v60  ;;  %17303 = vmatpush1.bf16.msra.mxu1 %v20019_v61  ;;  %v13500_v60 = vld [vmem:[%s24246_s17 + $0xb88] sm:$0xff]  ;;  %v19932_v7 = vcombine.high %v13348_v23, %v13352_v16 }
 0xd76   : > { %17263 = vmatprep.subr.bf16.mxu0 %v19884_v6  ;;  %17304 = vmatprep.subr.bf16.mxu1 %v20012_v46  ;;  %v13504_v61 = vld [vmem:[%s24246_s17 + $0xba8] sm:$0xff]  ;;  %v19963_v6 = vcombine.low %v13380_v48, %v13384_v62  ;;  %v20091_v46 = vcombine.low %v13508_v40, %v13512_v13 }
 0xd77   : > { %v20084_v0 = vcombine.high %v13500_v60, %v13504_v61  ;;  %v13340_v31 = vld [vmem:[%s24246_s17 + $0x688] sm:$0xff] }
 0xd78   : > { %v13344_v26 = vld [vmem:[%s24246_s17 + $0x6a8] sm:$0xff] }
 0xd79   : > { %17264 = vmatpush1.bf16.msra.mxu0 %v19883_v63  ;;  %17305 = vmatpush1.bf16.msra.mxu1 %v20011_v37  ;;  %v13492_v63 = vld [vmem:[%s24246_s17 + $0xb48] sm:$0xff]  ;;  %v19924_v43 = vcombine.high %v13340_v31, %v13344_v26 }
 0xd7a   : > { %17265 = vmatprep.subr.bf16.mxu0 %v19876_v30  ;;  %17306 = vmatprep.subr.bf16.mxu1 %v20004_v9  ;;  %v13496_v37 = vld [vmem:[%s24246_s17 + $0xb68] sm:$0xff]  ;;  %v19955_v30 = vcombine.low %v13372_v2, %v13376_v51  ;;  %v20083_v9 = vcombine.low %v13500_v60, %v13504_v61 }
 0xd7b   : > { %v20076_v58 = vcombine.high %v13492_v63, %v13496_v37  ;;  %v13332_v34 = vld [vmem:[%s24246_s17 + $0x648] sm:$0xff] }
 0xd7c   : > { %v13336_v11 = vld [vmem:[%s24246_s17 + $0x668] sm:$0xff] }
 0xd7d   : > { %17266 = vmatpush1.bf16.msra.mxu0 %v19875_v12  ;;  %17307 = vmatpush1.bf16.msra.mxu1 %v20003_v14  ;;  %v13484_v12 = vld [vmem:[%s24246_s17 + $0xb08] sm:$0xff]  ;;  %v19916_v62 = vcombine.high %v13332_v34, %v13336_v11 }
 0xd7e   : > { %17267 = vmatprep.subr.bf16.mxu0 %v19868_v44  ;;  %17308 = vmatprep.subr.bf16.mxu1 %v19996_v42  ;;  %v13488_v14 = vld [vmem:[%s24246_s17 + $0xb28] sm:$0xff]  ;;  %v19947_v44 = vcombine.low %v13364_v1, %v13368_v36  ;;  %v20075_v42 = vcombine.low %v13492_v63, %v13496_v37 }
 0xd7f   : > { %v20068_v18 = vcombine.high %v13484_v12, %v13488_v14  ;;  %v13324_v13 = vld [vmem:[%s24246_s17 + $0x608] sm:$0xff] }
 0xd80   : > { %v13771_v37 = vld [vmem:[%s24254_s6] sm:$0xff] }
 0xd81   : > { %17268 = vmatpush1.bf16.msra.mxu0 %v19867_v19  ;;  %17309 = vmatpush1.bf16.msra.mxu1 %v19995_v24  ;;  %v13476_v19 = vld [vmem:[%s24246_s17 + $0xac8] sm:$0xff] }
 0xd82   : > { %17269 = vmatprep.subr.bf16.mxu0 %v19860_v5  ;;  %17310 = vmatprep.subr.bf16.mxu1 %v19988_v54  ;;  %v13480_v24 = vld [vmem:[%s24246_s17 + $0xae8] sm:$0xff]  ;;  %v19939_v5 = vcombine.low %v13356_v28, %v13360_v4  ;;  %v20067_v54 = vcombine.low %v13484_v12, %v13488_v14 }
 0xd83   : > { %v20060_v55 = vcombine.high %v13476_v19, %v13480_v24  ;;  %v13568_v28 = vld [vmem:[%s24246_s17 + $0xda8] sm:$0xff] }
 0xd84   : > { %v13692_v4 = vld [vmem:[%s24246_s17 + $0x1188] sm:$0xff] }
 0xd85   : > { %17270 = vmatpush1.bf16.msra.mxu0 %v19859_v27  ;;  %17311 = vmatpush1.bf16.msra.mxu1 %v19987_v32  ;;  %v13468_v27 = vld [vmem:[%s24246_s17 + $0xa88] sm:$0xff] }
 0xd86   : > { %17271 = vmatprep.subr.bf16.mxu0 %v19852_v33  ;;  %17312 = vmatprep.subr.bf16.mxu1 %v19980_v53  ;;  %v13472_v32 = vld [vmem:[%s24246_s17 + $0xaa8] sm:$0xff]  ;;  %v19931_v33 = vcombine.low %v13348_v23, %v13352_v16  ;;  %v20059_v53 = vcombine.low %v13476_v19, %v13480_v24 }
 0xd87   : > { %v20052_v41 = vcombine.high %v13468_v27, %v13472_v32  ;;  %v20051_v48 = vcombine.low %v13468_v27, %v13472_v32  ;;  %v13696_v12 = vld [vmem:[%s24246_s17 + $0x11a8] sm:$0xff] }
 0xd88   : > { %v20276_v23 = vcombine.high %v13692_v4, %v13696_v12  ;;  %v13556_v16 = vld [vmem:[%s24246_s17 + $0xd48] sm:$0xff]  ;;  %v20275_v27 = vcombine.low %v13692_v4, %v13696_v12 }
 0xd89   : > { %17272 = vmatpush1.bf16.msra.mxu0 %v19851_v35  ;;  %17313 = vmatpush1.bf16.msra.mxu1 %v19979_v3  ;;  %v13460_v35 = vld [vmem:[%s24246_s17 + $0xa48] sm:$0xff] }
 0xd8a   : > { %17273 = vmatprep.subr.bf16.mxu0 %v19844_v38  ;;  %17314 = vmatprep.subr.bf16.mxu1 %v19972_v56  ;;  %v13464_v3 = vld [vmem:[%s24246_s17 + $0xa68] sm:$0xff]  ;;  %v19923_v38 = vcombine.low %v13340_v31, %v13344_v26  ;;  %v13773_v56 = vlaneseq }
 0xd8b   : > { %v20044_v40 = vcombine.high %v13460_v35, %v13464_v3  ;;  %v20043_v51 = vcombine.low %v13460_v35, %v13464_v3  ;;  %v13560_v19 = vld [vmem:[%s24246_s17 + $0xd68] sm:$0xff] }
 0xd8c   : > { %v25528_v2 = vshrl.u32 %v13773_v56, 7  ;;  %v20140_v32 = vcombine.high %v13556_v16, %v13560_v19  ;;  %v13676_v3 = vld [vmem:[%s24246_s17 + $0x1108] sm:$0xff] }
 0xd8d   : > { %17274 = vmatpush1.bf16.msra.mxu0 %v19843_v49  ;;  %17315 = vmatpush1.bf16.msra.mxu1 %v19971_v50  ;;  %v13328_v49 = vld [vmem:[%s24246_s17 + $0x628] sm:$0xff] }
 0xd8e   : > { %17275 = vmatprep.subr.bf16.mxu0 %v19964_v59  ;;  %17316 = vmatprep.subr.bf16.mxu1 %v20092_v10  ;;  %v13452_v50 = vld [vmem:[%s24246_s17 + $0xa08] sm:$0xff]  ;;  %v19915_v10 = vcombine.low %v13332_v34, %v13336_v11  ;;  %v19908_v60 = vcombine.high %v13324_v13, %v13328_v49  ;;  %v19907_v1 = vcombine.low %v13324_v13, %v13328_v49  ;;  %v13775_v36 = vsub.s32 0, %v25528_v2 }
 0xd8f   : > { %v13456_v59 = vld [vmem:[%s24246_s17 + $0xa28] sm:$0xff] }
 0xd90   : > { %v20036_v61 = vcombine.high %v13452_v50, %v13456_v59  ;;  %v20035_v63 = vcombine.low %v13452_v50, %v13456_v59  ;;  %v13776_v14 = vrot.slane %v13771_v37, %v13775_v36  ;;  %v13548_v34 = vld [vmem:[%s24246_s17 + $0xd08] sm:$0xff] }
 0xd91   : > { %17276 = vmatpush2.bf16.msra.mxu0 %v19963_v6  ;;  %17317 = vmatpush2.bf16.msra.mxu1 %v20091_v46  ;;  %v13572_v6 = vld [vmem:[%s24246_s17 + $0xdc8] sm:$0xff] }
 0xd92   : > { %17277 = vmatprep.subr.bf16.mxu0 %v19956_v47  ;;  %17318 = vmatprep.subr.bf16.mxu1 %v20084_v0  ;;  %v13576_v46 = vld [vmem:[%s24246_s17 + $0xde8] sm:$0xff] }
 0xd93   : > { %v13700_v47 = vld [vmem:[%s24246_s17 + $0x11c8] sm:$0xff] }
 0xd94   : > { %v13704_v0 = vld [vmem:[%s24246_s17 + $0x11e8] sm:$0xff] }
 0xd95   : > { %17278 = vmatpush2.bf16.msra.mxu0 %v19955_v30  ;;  %17319 = vmatpush2.bf16.msra.mxu1 %v20083_v9  ;;  %v20156_v30 = vcombine.high %v13572_v6, %v13576_v46  ;;  %v20284_v9 = vcombine.high %v13700_v47, %v13704_v0  ;;  %v13552_v11 = vld [vmem:[%s24246_s17 + $0xd28] sm:$0xff] }
 0xd96   : > { %17279 = vmatprep.subr.bf16.mxu0 %v19948_v22  ;;  %17320 = vmatprep.subr.bf16.mxu1 %v20076_v58  ;;  %v13779_v22 = vsub.s32 1, %v25528_v2  ;;  %v13564_v58 = vld [vmem:[%s24246_s17 + $0xd88] sm:$0xff]  ;;  %v20132_v49 = vcombine.high %v13548_v34, %v13552_v11 }
 0xd97   : > { %v20147_v31 = vcombine.low %v13564_v58, %v13568_v28  ;;  %v13536_v36 = vld [vmem:[%s24246_s17 + $0xca8] sm:$0xff] }
 0xd98   : > { %v13528_v4 = vld [vmem:[%s24246_s17 + $0xc68] sm:$0xff] }
 0xd99   : > { %17280 = vmatpush2.bf16.msra.mxu0 %v19947_v44  ;;  %17321 = vmatpush2.bf16.msra.mxu1 %v20075_v42  ;;  %v20155_v44 = vcombine.low %v13572_v6, %v13576_v46  ;;  %v20283_v42 = vcombine.low %v13700_v47, %v13704_v0  ;;  %v20131_v6 = vcombine.low %v13548_v34, %v13552_v11  ;;  %v13652_v12 = vld [vmem:[%s24246_s17 + $0x1048] sm:$0xff] }
 0xd9a   : > { %17281 = vmatprep.subr.bf16.mxu0 %v19940_v17  ;;  %17322 = vmatprep.subr.bf16.mxu1 %v20068_v18  ;;  %v20148_v17 = vcombine.high %v13564_v58, %v13568_v28  ;;  %v13780_v18 = vrot.slane %v13771_v37, %v13779_v22  ;;  %v13664_v37 = vld [vmem:[%s24246_s17 + $0x10a8] sm:$0xff] }
 0xd9b   : > { %v13524_v28 = vld [vmem:[%s24246_s17 + $0xc48] sm:$0xff] }
 0xd9c   : > { %v13628_v11 = vld [vmem:[%s24246_s17 + $0xf88] sm:$0xff] }
 0xd9d   : > { %17282 = vmatpush2.bf16.msra.mxu0 %v19939_v5  ;;  %17323 = vmatpush2.bf16.msra.mxu1 %v20067_v54  ;;  %v13684_v5 = vld [vmem:[%s24246_s17 + $0x1148] sm:$0xff] }
 0xd9e   : > { %17283 = vmatprep.subr.bf16.mxu0 %v19932_v7  ;;  %17324 = vmatprep.subr.bf16.mxu1 %v20060_v55  ;;  %v13688_v54 = vld [vmem:[%s24246_s17 + $0x1168] sm:$0xff] }
 0xd9f   : > { %v20267_v13 = vcombine.low %v13684_v5, %v13688_v54 }
 0xda1   : > { %17284 = vmatpush2.bf16.msra.mxu0 %v19931_v33  ;;  %17325 = vmatpush2.bf16.msra.mxu1 %v20059_v53 }
 0xda2   : > { %17285 = vmatprep.subr.bf16.mxu0 %v19924_v43  ;;  %17326 = vmatprep.subr.bf16.mxu1 %v20052_v41  ;;  %v20268_v41 = vcombine.high %v13684_v5, %v13688_v54  ;;  %v20107_v5 = vcombine.low %v13524_v28, %v13528_v4 }
 0xda5   : > { %17286 = vmatpush2.bf16.msra.mxu0 %v19923_v38  ;;  %17327 = vmatpush2.bf16.msra.mxu1 %v20051_v48  ;;  %v13680_v38 = vld [vmem:[%s24246_s17 + $0x1128] sm:$0xff] }
 0xda6   : > { %17287 = vmatprep.subr.bf16.mxu0 %v19916_v62  ;;  %17328 = vmatprep.subr.bf16.mxu1 %v20044_v40  ;;  %v20139_v62 = vcombine.low %v13556_v16, %v13560_v19  ;;  %v20260_v59 = vcombine.high %v13676_v3, %v13680_v38  ;;  %v20259_v46 = vcombine.low %v13676_v3, %v13680_v38  ;;  %v13520_v16 = vld [vmem:[%s24246_s17 + $0xc28] sm:$0xff] }
 0xda7   : > { %v13644_v19 = vld [vmem:[%s24246_s17 + $0x1008] sm:$0xff] }
 0xda8   : > { %v13756_v3 = vld [vmem:[%s24246_s17 + $0x1388] sm:$0xff] }
 0xda9   : > { %17288 = vmatpush2.bf16.msra.mxu0 %v19915_v10  ;;  %17329 = vmatpush2.bf16.msra.mxu1 %v20043_v51  ;;  %v13540_v10 = vld [vmem:[%s24246_s17 + $0xcc8] sm:$0xff] }
 0xdaa   : > { %17289 = vmatprep.subr.bf16.mxu0 %v19908_v60  ;;  %17330 = vmatprep.subr.bf16.mxu1 %v20036_v61  ;;  %v13544_v51 = vld [vmem:[%s24246_s17 + $0xce8] sm:$0xff] }
 0xdab   : > { %v13668_v60 = vld [vmem:[%s24246_s17 + $0x10c8] sm:$0xff]  ;;  %v20124_v47 = vcombine.high %v13540_v10, %v13544_v51 }
 0xdac   : > { %v13672_v61 = vld [vmem:[%s24246_s17 + $0x10e8] sm:$0xff] }
 0xdad   : > { %17290 = vmatpush2.bf16.msra.mxu0 %v19907_v1  ;;  %17331 = vmatpush2.bf16.msra.mxu1 %v20035_v63  ;;  %v20252_v0 = vcombine.high %v13668_v60, %v13672_v61  ;;  %v13532_v1 = vld [vmem:[%s24246_s17 + $0xc88] sm:$0xff] }
 0xdae   : > { %17341 = vmatprep.subr.bf16.mxu0 %v20156_v30  ;;  %17382 = vmatprep.subr.bf16.mxu1 %v20284_v9  ;;  %v13660_v63 = vld [vmem:[%s24246_s17 + $0x1088] sm:$0xff]  ;;  %v20123_v30 = vcombine.low %v13540_v10, %v13544_v51  ;;  %v20251_v9 = vcombine.low %v13668_v60, %v13672_v61  ;;  %v20116_v22 = vcombine.high %v13532_v1, %v13536_v36 }
 0xdaf   : > { %v20244_v58 = vcombine.high %v13660_v63, %v13664_v37  ;;  %v13760_v38 = vld [vmem:[%s24246_s17 + $0x13a8] sm:$0xff] }
 0xdb0   : > { %v17047_v24 = vpop.f32.mrf.mxu0  ;;  %17292 = vmatmul.mubr.bf16.vlgmr.msra.gmra.mxu0 %v25318_v57  ;;  %v17088_v55 = vpop.f32.mrf.mxu1  ;;  %17333 = vmatmul.mubr.bf16.vlgmr.msra.gmra.mxu1 %v25390_v52  ;;  %v13752_v10 = vld [vmem:[%s24246_s17 + $0x1368] sm:$0xff]  ;;  %v20339_v60 = vcombine.low %v13756_v3, %v13760_v38 }
 0xdb1   : > { %v17048_v7 = vadd.f32 %v17047_v24, %v13776_v14  ;;  %17342 = vmatpush1.bf16.msra.mxu0 %v20155_v44  ;;  %17383 = vmatpush1.bf16.msra.mxu1 %v20283_v42  ;;  %v13656_v14 = vld [vmem:[%s24246_s17 + $0x1068] sm:$0xff]  ;;  %v20115_v44 = vcombine.low %v13532_v1, %v13536_v36  ;;  %v20243_v42 = vcombine.low %v13660_v63, %v13664_v37 }
 0xdb2   : > { %v17049_v26 = vpop.f32.mrf.mxu0  ;;  %17343 = vmatprep.subr.bf16.mxu0 %v20148_v17  ;;  %v17090_v43 = vpop.f32.mrf.mxu1  ;;  %17384 = vmatprep.subr.bf16.mxu1 %v20276_v23  ;;  %v20108_v17 = vcombine.high %v13524_v28, %v13528_v4  ;;  %v13516_v23 = vld [vmem:[%s24246_s17 + $0xc08] sm:$0xff]  ;;  %v20235_v54 = vcombine.low %v13652_v12, %v13656_v14 }
 0xdb3   : > { %v25547_v33 = vadd.f32 %v17088_v55, %v17048_v7  ;;  %v17050_v53 = vadd.f32 %v17049_v26, %v13780_v18  ;;  %17373 = vmatprep.mubr.bf16.mxu0 %v25327_v15  ;;  %17414 = vmatprep.mubr.bf16.mxu1 %v25398_v29  ;;  %v20236_v18 = vcombine.high %v13652_v12, %v13656_v14  ;;  %v13648_v24 = vld [vmem:[%s24246_s17 + $0x1028] sm:$0xff] }
 0xdb4   : > { %v17051_v35 = vpop.f32.mrf.mxu0  ;;  %v17092_v48 = vpop.f32.mrf.mxu1  ;;  %v20100_v7 = vcombine.high %v13516_v23, %v13520_v16  ;;  %v20228_v55 = vcombine.high %v13644_v19, %v13648_v24  ;;  %v13640_v26 = vld [vmem:[%s24246_s17 + $0xfe8] sm:$0xff] }
 0xdb5   : > { %v25555_v56 = vadd.f32 %v17090_v43, %v17050_v53  ;;  %17344 = vmatpush1.bf16.msra.mxu0 %v20147_v31  ;;  %17385 = vmatpush1.bf16.msra.mxu1 %v20275_v27  ;;  %v13636_v31 = vld [vmem:[%s24246_s17 + $0xfc8] sm:$0xff]  ;;  %v20099_v53 = vcombine.low %v13516_v23, %v13520_v16  ;;  %v20227_v43 = vcombine.low %v13644_v19, %v13648_v24 }
 0xdb6   : > { %v17052_v40 = vpop.f32.mrf.mxu0  ;;  %17345 = vmatprep.subr.bf16.mxu0 %v20140_v32  ;;  %v17093_v50 = vpop.f32.mrf.mxu1  ;;  %17386 = vmatprep.subr.bf16.mxu1 %v20268_v41  ;;  %v13764_v27 = vld [vmem:[%s24246_s17 + $0x13c8] sm:$0xff]  ;;  %v20220_v41 = vcombine.high %v13636_v31, %v13640_v26  ;;  %v20219_v48 = vcombine.low %v13636_v31, %v13640_v26 }
 0xdb7   : > { %v13768_v32 = vld [vmem:[%s24246_s17 + $0x13e8] sm:$0xff] }
 0xdb8   : > { %v20348_v34 = vcombine.high %v13764_v27, %v13768_v32  ;;  %v13632_v35 = vld [vmem:[%s24246_s17 + $0xfa8] sm:$0xff] }
 0xdb9   : > { %17346 = vmatpush1.bf16.msra.mxu0 %v20139_v62  ;;  %17387 = vmatpush1.bf16.msra.mxu1 %v20267_v13  ;;  %v20347_v62 = vcombine.low %v13764_v27, %v13768_v32  ;;  %v20212_v40 = vcombine.high %v13628_v11, %v13632_v35  ;;  %v20340_v13 = vcombine.high %v13756_v3, %v13760_v38  ;;  %v13624_v50 = vld [vmem:[%s24246_s17 + $0xf68] sm:$0xff] }
 0xdba   : > { %17347 = vmatprep.subr.bf16.mxu0 %v20132_v49  ;;  %17388 = vmatprep.subr.bf16.mxu1 %v20260_v59  ;;  %v13620_v49 = vld [vmem:[%s24246_s17 + $0xf48] sm:$0xff]  ;;  %v20211_v51 = vcombine.low %v13628_v11, %v13632_v35 }
 0xdbb   : > { %v13748_v59 = vld [vmem:[%s24246_s17 + $0x1348] sm:$0xff]  ;;  %v20204_v61 = vcombine.high %v13620_v49, %v13624_v50  ;;  %v20203_v36 = vcombine.low %v13620_v49, %v13624_v50  ;;  %v13321_v49 = vld [vmem:[%s24246_s17 + $0x5f0] sm:$0xff] }
 0xdbc   : > { %v13744_v1 = vld [vmem:[%s24246_s17 + $0x1328] sm:$0xff]  ;;  %v20331_v63 = vcombine.low %v13748_v59, %v13752_v10 }
 0xdbd   : > { %17348 = vmatpush1.bf16.msra.mxu0 %v20131_v6  ;;  %17389 = vmatpush1.bf16.msra.mxu1 %v20259_v46  ;;  %v20332_v6 = vcombine.high %v13748_v59, %v13752_v10  ;;  %v13612_v46 = vld [vmem:[%s24246_s17 + $0xf08] sm:$0xff] }
 0xdbe   : > { %17349 = vmatprep.subr.bf16.mxu0 %v20124_v47  ;;  %17390 = vmatprep.subr.bf16.mxu1 %v20252_v0  ;;  %v13616_v47 = vld [vmem:[%s24246_s17 + $0xf28] sm:$0xff] }
 0xdbf   : > { %v13740_v0 = vld [vmem:[%s24246_s17 + $0x1308] sm:$0xff]  ;;  %v20196_v37 = vcombine.high %v13612_v46, %v13616_v47  ;;  %v20195_v4 = vcombine.low %v13612_v46, %v13616_v47  ;;  %v13313_v46 = vld [vmem:[%s24246_s17 + $0x5b0] sm:$0xff] }
 0xdc0   : > { %v13736_v28 = vld [vmem:[%s24246_s17 + $0x12e8] sm:$0xff]  ;;  %v20323_v12 = vcombine.low %v13740_v0, %v13744_v1 }
 0xdc1   : > { %17350 = vmatpush1.bf16.msra.mxu0 %v20123_v30  ;;  %17391 = vmatpush1.bf16.msra.mxu1 %v20251_v9  ;;  %v20324_v30 = vcombine.high %v13740_v0, %v13744_v1  ;;  %v13604_v9 = vld [vmem:[%s24246_s17 + $0xec8] sm:$0xff] }
 0xdc2   : > { %17351 = vmatprep.subr.bf16.mxu0 %v20116_v22  ;;  %17392 = vmatprep.subr.bf16.mxu1 %v20244_v58  ;;  %v13608_v22 = vld [vmem:[%s24246_s17 + $0xee8] sm:$0xff] }
 0xdc3   : > { %v13732_v58 = vld [vmem:[%s24246_s17 + $0x12c8] sm:$0xff]  ;;  %v20188_v14 = vcombine.high %v13604_v9, %v13608_v22  ;;  %v20187_v16 = vcombine.low %v13604_v9, %v13608_v22  ;;  %v13301_v9 = vld [vmem:[%s24246_s17 + $0x550] sm:$0xff] }
 0xdc4   : > { %v13728_v23 = vld [vmem:[%s24246_s17 + $0x12a8] sm:$0xff]  ;;  %v20315_v19 = vcombine.low %v13732_v58, %v13736_v28  ;;  %v13305_v22 = vld [vmem:[%s24246_s17 + $0x570] sm:$0xff] }
 0xdc5   : > { %17352 = vmatpush1.bf16.msra.mxu0 %v20115_v44  ;;  %17393 = vmatpush1.bf16.msra.mxu1 %v20243_v42  ;;  %v20316_v44 = vcombine.high %v13732_v58, %v13736_v28  ;;  %v13596_v42 = vld [vmem:[%s24246_s17 + $0xe88] sm:$0xff] }
 0xdc6   : > { %17353 = vmatprep.subr.bf16.mxu0 %v20108_v17  ;;  %17394 = vmatprep.subr.bf16.mxu1 %v20236_v18  ;;  %v13600_v17 = vld [vmem:[%s24246_s17 + $0xea8] sm:$0xff] }
 0xdc7   : > { %v13724_v18 = vld [vmem:[%s24246_s17 + $0x1288] sm:$0xff]  ;;  %v20180_v24 = vcombine.high %v13596_v42, %v13600_v17  ;;  %v20179_v26 = vcombine.low %v13596_v42, %v13600_v17  ;;  %v19886_v42 = vcombine.high %v13301_v9, %v13305_v22  ;;  %v13165_v17 = vld [vmem:[%s24246_s17 + $0x110] sm:$0xff] }
 0xdc8   : > { %v13720_v31 = vld [vmem:[%s24246_s17 + $0x1268] sm:$0xff]  ;;  %v20307_v27 = vcombine.low %v13724_v18, %v13728_v23 }
 0xdc9   : > { %17354 = vmatpush1.bf16.msra.mxu0 %v20107_v5  ;;  %17395 = vmatpush1.bf16.msra.mxu1 %v20235_v54  ;;  %v20308_v5 = vcombine.high %v13724_v18, %v13728_v23  ;;  %v13588_v54 = vld [vmem:[%s24246_s17 + $0xe48] sm:$0xff]  ;;  %v13169_v18 = vld [vmem:[%s24246_s17 + $0x130] sm:$0xff] }
 0xdca   : > { %17355 = vmatprep.subr.bf16.mxu0 %v20100_v7  ;;  %17396 = vmatprep.subr.bf16.mxu1 %v20228_v55  ;;  %v13592_v7 = vld [vmem:[%s24246_s17 + $0xe68] sm:$0xff] }
 0xdcb   : > { %v13716_v55 = vld [vmem:[%s24246_s17 + $0x1248] sm:$0xff]  ;;  %v20172_v32 = vcombine.high %v13588_v54, %v13592_v7  ;;  %v20171_v35 = vcombine.low %v13588_v54, %v13592_v7  ;;  %v19885_v7 = vcombine.low %v13301_v9, %v13305_v22 }
 0xdcc   : > { %v13712_v11 = vld [vmem:[%s24246_s17 + $0x1228] sm:$0xff]  ;;  %v20299_v3 = vcombine.low %v13716_v55, %v13720_v31 }
 0xdcd   : > { %17356 = vmatpush1.bf16.msra.mxu0 %v20099_v53  ;;  %17397 = vmatpush1.bf16.msra.mxu1 %v20227_v43  ;;  %v20300_v53 = vcombine.high %v13716_v55, %v13720_v31  ;;  %v13580_v43 = vld [vmem:[%s24246_s17 + $0xe08] sm:$0xff]  ;;  %v19750_v55 = vcombine.high %v13165_v17, %v13169_v18 }
 0xdce   : > { %17357 = vmatprep.subr.bf16.mxu0 %v20220_v41  ;;  %17398 = vmatprep.subr.bf16.mxu1 %v20348_v34  ;;  %v13584_v41 = vld [vmem:[%s24246_s17 + $0xe28] sm:$0xff] }
 0xdcf   : > { %v13708_v34 = vld [vmem:[%s24246_s17 + $0x1208] sm:$0xff]  ;;  %v20164_v38 = vcombine.high %v13580_v43, %v13584_v41  ;;  %v20163_v50 = vcombine.low %v13580_v43, %v13584_v41  ;;  %v13289_v43 = vld [vmem:[%s24246_s17 + $0x4f0] sm:$0xff]  ;;  %v19749_v41 = vcombine.low %v13165_v17, %v13169_v18 }
 0xdd0   : > { %v20291_v59 = vcombine.low %v13708_v34, %v13712_v11  ;;  %v13385_v17 = vld [vmem:[%s24246_s17 + $0x7f0] sm:$0xff] }
 0xdd1   : > { %17358 = vmatpush2.bf16.msra.mxu0 %v20219_v48  ;;  %17399 = vmatpush2.bf16.msra.mxu1 %v20347_v62  ;;  %v20292_v48 = vcombine.high %v13708_v34, %v13712_v11  ;;  %v13189_v62 = vld [vmem:[%s24246_s17 + $0x1d0] sm:$0xff] }
 0xdd2   : > { %17359 = vmatprep.subr.bf16.mxu0 %v20212_v40  ;;  %17400 = vmatprep.subr.bf16.mxu1 %v20340_v13  ;;  %v13193_v40 = vld [vmem:[%s24246_s17 + $0x1f0] sm:$0xff] }
 0xdd3   : > { %v13317_v13 = vld [vmem:[%s24246_s17 + $0x5d0] sm:$0xff]  ;;  %v19774_v10 = vcombine.high %v13189_v62, %v13193_v40  ;;  %v19773_v47 = vcombine.low %v13189_v62, %v13193_v40 }
 0xdd4   : > { %v19901_v0 = vcombine.low %v13317_v13, %v13321_v49  ;;  %v13281_v62 = vld [vmem:[%s24246_s17 + $0x4b0] sm:$0xff] }
 0xdd5   : > { %17360 = vmatpush2.bf16.msra.mxu0 %v20211_v51  ;;  %17401 = vmatpush2.bf16.msra.mxu1 %v20339_v60  ;;  %v19902_v51 = vcombine.high %v13317_v13, %v13321_v49  ;;  %v13181_v60 = vld [vmem:[%s24246_s17 + $0x190] sm:$0xff] }
 0xdd6   : > { %17361 = vmatprep.subr.bf16.mxu0 %v20204_v61  ;;  %17402 = vmatprep.subr.bf16.mxu1 %v20332_v6  ;;  %v13185_v61 = vld [vmem:[%s24246_s17 + $0x1b0] sm:$0xff] }
 0xdd7   : > { %v13309_v6 = vld [vmem:[%s24246_s17 + $0x590] sm:$0xff]  ;;  %v19766_v1 = vcombine.high %v13181_v60, %v13185_v61  ;;  %v19765_v28 = vcombine.low %v13181_v60, %v13185_v61 }
 0xdd8   : > { %v13273_v60 = vld [vmem:[%s24246_s17 + $0x470] sm:$0xff] }
 0xdd9   : > { %17362 = vmatpush2.bf16.msra.mxu0 %v20203_v36  ;;  %17403 = vmatpush2.bf16.msra.mxu1 %v20331_v63  ;;  %v19894_v36 = vcombine.high %v13309_v6, %v13313_v46  ;;  %v13173_v63 = vld [vmem:[%s24246_s17 + $0x150] sm:$0xff] }
 0xdda   : > { %17363 = vmatprep.subr.bf16.mxu0 %v20196_v37  ;;  %17404 = vmatprep.subr.bf16.mxu1 %v20324_v30  ;;  %v13177_v37 = vld [vmem:[%s24246_s17 + $0x170] sm:$0xff] }
 0xddd   : > { %17364 = vmatpush2.bf16.msra.mxu0 %v20195_v4  ;;  %17405 = vmatpush2.bf16.msra.mxu1 %v20323_v12  ;;  %v19893_v12 = vcombine.low %v13309_v6, %v13313_v46 }
 0xdde   : > { %17365 = vmatprep.subr.bf16.mxu0 %v20188_v14  ;;  %17406 = vmatprep.subr.bf16.mxu1 %v20316_v44  ;;  %v19758_v14 = vcombine.high %v13173_v63, %v13177_v37 }
 0xde1   : > { %17366 = vmatpush2.bf16.msra.mxu0 %v20187_v16  ;;  %17407 = vmatpush2.bf16.msra.mxu1 %v20315_v19  ;;  %v13293_v16 = vld [vmem:[%s24246_s17 + $0x510] sm:$0xff] }
 0xde2   : > { %17367 = vmatprep.subr.bf16.mxu0 %v20180_v24  ;;  %17408 = vmatprep.subr.bf16.mxu1 %v20308_v5  ;;  %v13297_v19 = vld [vmem:[%s24246_s17 + $0x530] sm:$0xff]  ;;  %v19757_v5 = vcombine.low %v13173_v63, %v13177_v37 }
 0xde3   : > { %v19877_v34 = vcombine.low %v13293_v16, %v13297_v19  ;;  %v13265_v63 = vld [vmem:[%s24246_s17 + $0x430] sm:$0xff] }
 0xde5   : > { %17368 = vmatpush2.bf16.msra.mxu0 %v20179_v26  ;;  %17409 = vmatpush2.bf16.msra.mxu1 %v20307_v27  ;;  %v19878_v26 = vcombine.high %v13293_v16, %v13297_v19  ;;  %v13157_v27 = vld [vmem:[%s24246_s17 + $0xd0] sm:$0xff] }
 0xde6   : > { %17369 = vmatprep.subr.bf16.mxu0 %v20172_v32  ;;  %17410 = vmatprep.subr.bf16.mxu1 %v20300_v53  ;;  %v13161_v32 = vld [vmem:[%s24246_s17 + $0xf0] sm:$0xff] }
 0xde7   : > { %v13285_v53 = vld [vmem:[%s24246_s17 + $0x4d0] sm:$0xff]  ;;  %v19742_v11 = vcombine.high %v13157_v27, %v13161_v32  ;;  %v19741_v40 = vcombine.low %v13157_v27, %v13161_v32 }
 0xde8   : > { %v19869_v13 = vcombine.low %v13285_v53, %v13289_v43  ;;  %v13237_v32 = vld [vmem:[%s24246_s17 + $0x350] sm:$0xff] }
 0xde9   : > { %17370 = vmatpush2.bf16.msra.mxu0 %v20171_v35  ;;  %17411 = vmatpush2.bf16.msra.mxu1 %v20299_v3  ;;  %v19870_v35 = vcombine.high %v13285_v53, %v13289_v43  ;;  %v13149_v3 = vld [vmem:[%s24246_s17 + $0x90] sm:$0xff] }
 0xdea   : > { %17371 = vmatprep.subr.bf16.mxu0 %v20164_v38  ;;  %17412 = vmatprep.subr.bf16.mxu1 %v20292_v48  ;;  %v13153_v38 = vld [vmem:[%s24246_s17 + $0xb0] sm:$0xff] }
 0xdeb   : > { %v13277_v48 = vld [vmem:[%s24246_s17 + $0x490] sm:$0xff]  ;;  %v19734_v49 = vcombine.high %v13149_v3, %v13153_v38  ;;  %v19733_v61 = vcombine.low %v13149_v3, %v13153_v38 }
 0xdec   : > { %v19861_v6 = vcombine.low %v13277_v48, %v13281_v62  ;;  %v13241_v53 = vld [vmem:[%s24246_s17 + $0x370] sm:$0xff] }
 0xded   : > { %17372 = vmatpush2.bf16.msra.mxu0 %v20163_v50  ;;  %17413 = vmatpush2.bf16.msra.mxu1 %v20291_v59  ;;  %v19862_v50 = vcombine.high %v13277_v48, %v13281_v62  ;;  %v13141_v59 = vld [vmem:[%s24246_s17 + $0x50] sm:$0xff] }
 0xdee   : > { %17423 = vmatprep.subr.bf16.mxu0 %v19774_v10  ;;  %17464 = vmatprep.subr.bf16.mxu1 %v19902_v51  ;;  %v13145_v10 = vld [vmem:[%s24246_s17 + $0x70] sm:$0xff] }
 0xdef   : > { %v13269_v51 = vld [vmem:[%s24246_s17 + $0x450] sm:$0xff]  ;;  %v19726_v46 = vcombine.high %v13141_v59, %v13145_v10  ;;  %v19725_v37 = vcombine.low %v13141_v59, %v13145_v10 }
 0xdf0   : > { %v25615_v30 = vpop.f32.mrf.mxu0  ;;  %17374 = vmatmul.mubr.bf16.vlgmr.msra.gmra.mxu0 %v25394_v25  ;;  %v25620_v58 = vpop.f32.mrf.mxu1  ;;  %17415 = vmatmul.mubr.bf16.vlgmr.msra.gmra.mxu1 %v25464_v8  ;;  %v19853_v9 = vcombine.low %v13269_v51, %v13273_v60  ;;  %v13365_v43 = vld [vmem:[%s24246_s17 + $0x750] sm:$0xff] }
 0xdf1   : > { %17424 = vmatpush1.bf16.msra.mxu0 %v19773_v47  ;;  %17465 = vmatpush1.bf16.msra.mxu1 %v19901_v0  ;;  %v19854_v47 = vcombine.high %v13269_v51, %v13273_v60  ;;  %v13133_v0 = vld [vmem:[%s24246_s17 + $0x10] sm:$0xff] }
 0xdf2   : > { %v25623_v4 = vpop.f32.mrf.mxu0  ;;  %17425 = vmatprep.subr.bf16.mxu0 %v19766_v1  ;;  %v25625_v44 = vpop.f32.mrf.mxu1  ;;  %17466 = vmatprep.subr.bf16.mxu1 %v19894_v36  ;;  %v13137_v1 = vld [vmem:[%s24246_s17 + $0x30] sm:$0xff] }
 0xdf3   : > { %17455 = vmatprep.mubr.bf16.mxu0 %v25268_v45  ;;  %17496 = vmatprep.mubr.bf16.mxu1 %v25270_v39  ;;  %v13261_v36 = vld [vmem:[%s24246_s17 + $0x410] sm:$0xff]  ;;  %v19718_v22 = vcombine.high %v13133_v0, %v13137_v1  ;;  %v19717_v18 = vcombine.low %v13133_v0, %v13137_v1 }
 0xdf4   : > { %v17133_v23 = vpop.f32.mrf.mxu0  ;;  %v17174_v24 = vpop.f32.mrf.mxu1  ;;  %v13229_v38 = vld [vmem:[%s24246_s17 + $0x310] sm:$0xff] }
 0xdf5   : > { %17426 = vmatpush1.bf16.msra.mxu0 %v19765_v28  ;;  %17467 = vmatpush1.bf16.msra.mxu1 %v19893_v12  ;;  %v19846_v28 = vcombine.high %v13261_v36, %v13265_v63  ;;  %v13253_v12 = vld [vmem:[%s24246_s17 + $0x3d0] sm:$0xff]  ;;  %v19845_v23 = vcombine.low %v13261_v36, %v13265_v63 }
 0xdf6   : > { %v17134_v54 = vpop.f32.mrf.mxu0  ;;  %17427 = vmatprep.subr.bf16.mxu0 %v19758_v14  ;;  %v17175_v31 = vpop.f32.mrf.mxu1  ;;  %17468 = vmatprep.subr.bf16.mxu1 %v19886_v42  ;;  %v13257_v14 = vld [vmem:[%s24246_s17 + $0x3f0] sm:$0xff] }
 0xdf7   : > { %v13381_v42 = vld [vmem:[%s24246_s17 + $0x7d0] sm:$0xff]  ;;  %v19838_v16 = vcombine.high %v13253_v12, %v13257_v14 }
 0xdf8   : > { %v19966_v19 = vcombine.high %v13381_v42, %v13385_v17  ;;  %v13245_v24 = vld [vmem:[%s24246_s17 + $0x390] sm:$0xff]  ;;  %v19965_v31 = vcombine.low %v13381_v42, %v13385_v17 }
 0xdf9   : > { %17428 = vmatpush1.bf16.msra.mxu0 %v19757_v5  ;;  %17469 = vmatpush1.bf16.msra.mxu1 %v19885_v7  ;;  %v13249_v5 = vld [vmem:[%s24246_s17 + $0x3b0] sm:$0xff] }
 0xdfa   : > { %17429 = vmatprep.subr.bf16.mxu0 %v19750_v55  ;;  %17470 = vmatprep.subr.bf16.mxu1 %v19878_v26  ;;  %v13373_v54 = vld [vmem:[%s24246_s17 + $0x790] sm:$0xff]  ;;  %v19837_v55 = vcombine.low %v13253_v12, %v13257_v14  ;;  %v19830_v26 = vcombine.high %v13245_v24, %v13249_v5 }
 0xdfb   : > { %v13377_v7 = vld [vmem:[%s24246_s17 + $0x7b0] sm:$0xff] }
 0xdfc   : > { %v19958_v27 = vcombine.high %v13373_v54, %v13377_v7  ;;  %v13233_v48 = vld [vmem:[%s24246_s17 + $0x330] sm:$0xff] }
 0xdfd   : > { %17430 = vmatpush1.bf16.msra.mxu0 %v19749_v41  ;;  %17471 = vmatpush1.bf16.msra.mxu1 %v19877_v34  ;;  %v13369_v41 = vld [vmem:[%s24246_s17 + $0x770] sm:$0xff]  ;;  %v19829_v34 = vcombine.low %v13245_v24, %v13249_v5 }
 0xdfe   : > { %17431 = vmatprep.subr.bf16.mxu0 %v19742_v11  ;;  %17472 = vmatprep.subr.bf16.mxu1 %v19870_v35  ;;  %v19957_v11 = vcombine.low %v13373_v54, %v13377_v7  ;;  %v19822_v35 = vcombine.high %v13237_v32, %v13241_v53  ;;  %v19950_v3 = vcombine.high %v13365_v43, %v13369_v41  ;;  %v13357_v62 = vld [vmem:[%s24246_s17 + $0x710] sm:$0xff] }
 0xdff   : > { %v13221_v10 = vld [vmem:[%s24246_s17 + $0x2d0] sm:$0xff] }
 0xe00   : > { %v13225_v51 = vld [vmem:[%s24246_s17 + $0x2f0] sm:$0xff] }
 0xe01   : > { %17432 = vmatpush1.bf16.msra.mxu0 %v19741_v40  ;;  %17473 = vmatpush1.bf16.msra.mxu1 %v19869_v13  ;;  %v13361_v40 = vld [vmem:[%s24246_s17 + $0x730] sm:$0xff]  ;;  %v19821_v13 = vcombine.low %v13237_v32, %v13241_v53 }
 0xe02   : > { %17433 = vmatprep.subr.bf16.mxu0 %v19734_v49  ;;  %17474 = vmatprep.subr.bf16.mxu1 %v19862_v50  ;;  %v19949_v49 = vcombine.low %v13365_v43, %v13369_v41  ;;  %v19814_v50 = vcombine.high %v13229_v38, %v13233_v48  ;;  %v19942_v59 = vcombine.high %v13357_v62, %v13361_v40  ;;  %v13349_v60 = vld [vmem:[%s24246_s17 + $0x6d0] sm:$0xff] }
 0xe03   : > { %v13213_v1 = vld [vmem:[%s24246_s17 + $0x290] sm:$0xff] }
 0xe04   : > { %v13217_v36 = vld [vmem:[%s24246_s17 + $0x2b0] sm:$0xff] }
 0xe05   : > { %17434 = vmatpush1.bf16.msra.mxu0 %v19733_v61  ;;  %17475 = vmatpush1.bf16.msra.mxu1 %v19861_v6  ;;  %v13353_v61 = vld [vmem:[%s24246_s17 + $0x6f0] sm:$0xff]  ;;  %v19813_v6 = vcombine.low %v13229_v38, %v13233_v48  ;;  %v17130_v38 = vadd.f32 %v25615_v30, %v25547_v33 }
 0xe06   : > { %17435 = vmatprep.subr.bf16.mxu0 %v19726_v46  ;;  %17476 = vmatprep.subr.bf16.mxu1 %v19854_v47  ;;  %v19941_v46 = vcombine.low %v13357_v62, %v13361_v40  ;;  %v19806_v47 = vcombine.high %v13221_v10, %v13225_v51  ;;  %v19934_v0 = vcombine.high %v13349_v60, %v13353_v61  ;;  %v13341_v63 = vld [vmem:[%s24246_s17 + $0x690] sm:$0xff] }
 0xe07   : > { %v13205_v14 = vld [vmem:[%s24246_s17 + $0x250] sm:$0xff]  ;;  %v17171_v33 = vadd.f32 %v25620_v58, %v17130_v38 }
 0xe08   : > { %v13209_v42 = vld [vmem:[%s24246_s17 + $0x270] sm:$0xff] }
 0xe09   : > { %17436 = vmatpush1.bf16.msra.mxu0 %v19725_v37  ;;  %17477 = vmatpush1.bf16.msra.mxu1 %v19853_v9  ;;  %v13345_v37 = vld [vmem:[%s24246_s17 + $0x6b0] sm:$0xff]  ;;  %v19805_v9 = vcombine.low %v13221_v10, %v13225_v51 }
 0xe0a   : > { %17437 = vmatprep.subr.bf16.mxu0 %v19718_v22  ;;  %17478 = vmatprep.subr.bf16.mxu1 %v19846_v28  ;;  %v19933_v22 = vcombine.low %v13349_v60, %v13353_v61  ;;  %v19798_v28 = vcombine.high %v13213_v1, %v13217_v36  ;;  %v19926_v12 = vcombine.high %v13341_v63, %v13345_v37  ;;  %v13333_v17 = vld [vmem:[%s24246_s17 + $0x650] sm:$0xff] }
 0xe0b   : > { %v13197_v5 = vld [vmem:[%s24246_s17 + $0x210] sm:$0xff] }
 0xe0c   : > { %v13201_v54 = vld [vmem:[%s24246_s17 + $0x230] sm:$0xff] }
 0xe0d   : > { %17438 = vmatpush1.bf16.msra.mxu0 %v19717_v18  ;;  %17479 = vmatpush1.bf16.msra.mxu1 %v19845_v23  ;;  %v13337_v18 = vld [vmem:[%s24246_s17 + $0x670] sm:$0xff]  ;;  %v19797_v23 = vcombine.low %v13213_v1, %v13217_v36 }
 0xe0e   : > { %17439 = vmatprep.subr.bf16.mxu0 %v19838_v16  ;;  %17480 = vmatprep.subr.bf16.mxu1 %v19966_v19  ;;  %v19925_v16 = vcombine.low %v13341_v63, %v13345_v37  ;;  %v19790_v19 = vcombine.high %v13205_v14, %v13209_v42  ;;  %v19918_v24 = vcombine.high %v13333_v17, %v13337_v18  ;;  %v13325_v7 = vld [vmem:[%s24246_s17 + $0x610] sm:$0xff] }
 0xe0f   : > { %v13445_v53 = vld [vmem:[%s24246_s17 + $0x9d0] sm:$0xff] }
 0xe10   : > { %v13449_v43 = vld [vmem:[%s24246_s17 + $0x9f0] sm:$0xff] }
 0xe11   : > { %17440 = vmatpush2.bf16.msra.mxu0 %v19837_v55  ;;  %17481 = vmatpush2.bf16.msra.mxu1 %v19965_v31  ;;  %v13329_v55 = vld [vmem:[%s24246_s17 + $0x630] sm:$0xff]  ;;  %v19789_v31 = vcombine.low %v13205_v14, %v13209_v42 }
 0xe12   : > { %17441 = vmatprep.subr.bf16.mxu0 %v19830_v26  ;;  %17482 = vmatprep.subr.bf16.mxu1 %v19958_v27  ;;  %v19917_v26 = vcombine.low %v13333_v17, %v13337_v18  ;;  %v19782_v27 = vcombine.high %v13197_v5, %v13201_v54  ;;  %v19910_v32 = vcombine.high %v13325_v7, %v13329_v55  ;;  %v13573_v41 = vld [vmem:[%s24246_s17 + $0xdd0] sm:$0xff] }
 0xe13   : > { %v13437_v62 = vld [vmem:[%s24246_s17 + $0x990] sm:$0xff] }
 0xe14   : > { %v13441_v40 = vld [vmem:[%s24246_s17 + $0x9b0] sm:$0xff] }
 0xe15   : > { %17442 = vmatpush2.bf16.msra.mxu0 %v19829_v34  ;;  %17483 = vmatpush2.bf16.msra.mxu1 %v19957_v11  ;;  %v13577_v34 = vld [vmem:[%s24246_s17 + $0xdf0] sm:$0xff]  ;;  %v19781_v11 = vcombine.low %v13197_v5, %v13201_v54  ;;  %v20022_v51 = vcombine.high %v13437_v62, %v13441_v40  ;;  %v20021_v58 = vcombine.low %v13437_v62, %v13441_v40 }
 0xe16   : > { %17443 = vmatprep.subr.bf16.mxu0 %v19822_v35  ;;  %17484 = vmatprep.subr.bf16.mxu1 %v19950_v3  ;;  %v19909_v35 = vcombine.low %v13325_v7, %v13329_v55  ;;  %v20030_v3 = vcombine.high %v13445_v53, %v13449_v43  ;;  %v20158_v48 = vcombine.high %v13573_v41, %v13577_v34  ;;  %v13429_v60 = vld [vmem:[%s24246_s17 + $0x950] sm:$0xff] }
 0xe17   : > { %v20157_v10 = vcombine.low %v13573_v41, %v13577_v34  ;;  %v13433_v61 = vld [vmem:[%s24246_s17 + $0x970] sm:$0xff] }
 0xe18   : > { %v20014_v63 = vcombine.high %v13429_v60, %v13433_v61  ;;  %v13549_v14 = vld [vmem:[%s24246_s17 + $0xd10] sm:$0xff]  ;;  %v20013_v18 = vcombine.low %v13429_v60, %v13433_v61 }
 0xe19   : > { %17444 = vmatpush2.bf16.msra.mxu0 %v19821_v13  ;;  %17485 = vmatpush2.bf16.msra.mxu1 %v19949_v49  ;;  %v13565_v13 = vld [vmem:[%s24246_s17 + $0xd90] sm:$0xff] }
 0xe1a   : > { %17445 = vmatprep.subr.bf16.mxu0 %v19814_v50  ;;  %17486 = vmatprep.subr.bf16.mxu1 %v19942_v59  ;;  %v13569_v49 = vld [vmem:[%s24246_s17 + $0xdb0] sm:$0xff]  ;;  %v17132_v50 = vadd.f32 %v25623_v4, %v25555_v56  ;;  %v20029_v59 = vcombine.low %v13445_v53, %v13449_v43 }
 0xe1b   : > { %v20150_v30 = vcombine.high %v13565_v13, %v13569_v49  ;;  %v20149_v36 = vcombine.low %v13565_v13, %v13569_v49  ;;  %v13553_v42 = vld [vmem:[%s24246_s17 + $0xd30] sm:$0xff] }
 0xe1c   : > { %v17173_v56 = vadd.f32 %v25625_v44, %v17132_v50  ;;  %v20134_v5 = vcombine.high %v13549_v14, %v13553_v42  ;;  %v13413_v54 = vld [vmem:[%s24246_s17 + $0x8d0] sm:$0xff] }
 0xe1d   : > { %17446 = vmatpush2.bf16.msra.mxu0 %v19813_v6  ;;  %17487 = vmatpush2.bf16.msra.mxu1 %v19941_v46  ;;  %v13557_v46 = vld [vmem:[%s24246_s17 + $0xd50] sm:$0xff] }
 0xe1e   : > { %17447 = vmatprep.subr.bf16.mxu0 %v19806_v47  ;;  %17488 = vmatprep.subr.bf16.mxu1 %v19934_v0  ;;  %v13561_v47 = vld [vmem:[%s24246_s17 + $0xd70] sm:$0xff] }
 0xe1f   : > { %v13417_v7 = vld [vmem:[%s24246_s17 + $0x8f0] sm:$0xff] }
 0xe20   : > { %v13541_v55 = vld [vmem:[%s24246_s17 + $0xcd0] sm:$0xff] }
 0xe21   : > { %17448 = vmatpush2.bf16.msra.mxu0 %v19805_v9  ;;  %17489 = vmatpush2.bf16.msra.mxu1 %v19933_v22  ;;  %v20142_v9 = vcombine.high %v13557_v46, %v13561_v47  ;;  %v13421_v22 = vld [vmem:[%s24246_s17 + $0x910] sm:$0xff] }
 0xe22   : > { %17449 = vmatprep.subr.bf16.mxu0 %v19798_v28  ;;  %17490 = vmatprep.subr.bf16.mxu1 %v19926_v12  ;;  %v13425_v28 = vld [vmem:[%s24246_s17 + $0x930] sm:$0xff] }
 0xe23   : > { %v13405_v43 = vld [vmem:[%s24246_s17 + $0x890] sm:$0xff] }
 0xe24   : > { %v13409_v41 = vld [vmem:[%s24246_s17 + $0x8b0] sm:$0xff] }
 0xe25   : > { %17450 = vmatpush2.bf16.msra.mxu0 %v19797_v23  ;;  %17491 = vmatpush2.bf16.msra.mxu1 %v19925_v16  ;;  %v20141_v16 = vcombine.low %v13557_v46, %v13561_v47  ;;  %v13533_v34 = vld [vmem:[%s24246_s17 + $0xc90] sm:$0xff]  ;;  %v19990_v38 = vcombine.high %v13405_v43, %v13409_v41  ;;  %v19989_v50 = vcombine.low %v13405_v43, %v13409_v41 }
 0xe26   : > { %17451 = vmatprep.subr.bf16.mxu0 %v19790_v19  ;;  %17492 = vmatprep.subr.bf16.mxu1 %v19918_v24  ;;  %v20006_v19 = vcombine.high %v13421_v22, %v13425_v28  ;;  %v13397_v62 = vld [vmem:[%s24246_s17 + $0x850] sm:$0xff] }
 0xe27   : > { %v13401_v40 = vld [vmem:[%s24246_s17 + $0x870] sm:$0xff] }
 0xe28   : > { %v13525_v13 = vld [vmem:[%s24246_s17 + $0xc50] sm:$0xff] }
 0xe29   : > { %17452 = vmatpush2.bf16.msra.mxu0 %v19789_v31  ;;  %17493 = vmatpush2.bf16.msra.mxu1 %v19917_v26  ;;  %v13545_v31 = vld [vmem:[%s24246_s17 + $0xcf0] sm:$0xff]  ;;  %v20005_v26 = vcombine.low %v13421_v22, %v13425_v28 }
 0xe2a   : > { %17453 = vmatprep.subr.bf16.mxu0 %v19782_v27  ;;  %17494 = vmatprep.subr.bf16.mxu1 %v19910_v32  ;;  %v20133_v27 = vcombine.low %v13549_v14, %v13553_v42  ;;  %v19998_v32 = vcombine.high %v13413_v54, %v13417_v7  ;;  %v20126_v53 = vcombine.high %v13541_v55, %v13545_v31  ;;  %v13529_v49 = vld [vmem:[%s24246_s17 + $0xc70] sm:$0xff] }
 0xe2b   : > { %v13517_v60 = vld [vmem:[%s24246_s17 + $0xc10] sm:$0xff]  ;;  %v20109_v46 = vcombine.low %v13525_v13, %v13529_v49 }
 0xe2c   : > { %v13521_v61 = vld [vmem:[%s24246_s17 + $0xc30] sm:$0xff] }
 0xe2d   : > { %17454 = vmatpush2.bf16.msra.mxu0 %v19781_v11  ;;  %17495 = vmatpush2.bf16.msra.mxu1 %v19909_v35  ;;  %v13537_v11 = vld [vmem:[%s24246_s17 + $0xcb0] sm:$0xff]  ;;  %v19997_v35 = vcombine.low %v13413_v54, %v13417_v7 }
 0xe2e   : > { %17505 = vmatprep.subr.bf16.mxu0 %v20030_v3  ;;  %17546 = vmatprep.subr.bf16.mxu1 %v20158_v48  ;;  %v20125_v3 = vcombine.low %v13541_v55, %v13545_v31  ;;  %v20118_v48 = vcombine.high %v13533_v34, %v13537_v11  ;;  %v13501_v28 = vld [vmem:[%s24246_s17 + $0xb90] sm:$0xff] }
 0xe2f   : > { %v13629_v14 = vld [vmem:[%s24246_s17 + $0xf90] sm:$0xff] }
 0xe30   : > { %v17211_v6 = vpop.f32.mrf.mxu0  ;;  %17456 = vmatmul.mubr.bf16.vlgmr.msra.gmra.mxu0 %v25314_v20  ;;  %v25700_v0 = vpop.f32.mrf.mxu1  ;;  %17497 = vmatmul.mubr.bf16.vlgmr.msra.gmra.mxu1 %v25318_v57  ;;  %v13633_v42 = vld [vmem:[%s24246_s17 + $0xfb0] sm:$0xff] }
 0xe31   : > { %v17212_v4 = vadd.f32 %v17211_v6, %v17171_v33  ;;  %17506 = vmatpush1.bf16.msra.mxu0 %v20029_v59  ;;  %17547 = vmatpush1.bf16.msra.mxu1 %v20157_v10  ;;  %v20117_v59 = vcombine.low %v13533_v34, %v13537_v11  ;;  %v19982_v10 = vcombine.high %v13397_v62, %v13401_v40  ;;  %v13389_v33 = vld [vmem:[%s24246_s17 + $0x810] sm:$0xff] }
 0xe32   : > { %v17213_v1 = vpop.f32.mrf.mxu0  ;;  %17507 = vmatprep.subr.bf16.mxu0 %v20022_v51  ;;  %v25704_v44 = vpop.f32.mrf.mxu1  ;;  %17548 = vmatprep.subr.bf16.mxu1 %v20150_v30  ;;  %v20110_v51 = vcombine.high %v13525_v13, %v13529_v49  ;;  %v13393_v30 = vld [vmem:[%s24246_s17 + $0x830] sm:$0xff]  ;;  %v19981_v6 = vcombine.low %v13397_v62, %v13401_v40  ;;  %v20213_v55 = vcombine.low %v13629_v14, %v13633_v42 }
 0xe33   : > { %17833 = vst [vmem:[%s24256_s5] sm:$0xff] %v17212_v4  ;;  %v17214_v37 = vadd.f32 %v17213_v1, %v17173_v56  ;;  %17537 = vmatprep.mubr.bf16.mxu0 %v25322_v21  ;;  %17578 = vmatprep.mubr.bf16.mxu1 %v25327_v15  ;;  %v19974_v47 = vcombine.high %v13389_v33, %v13393_v30  ;;  %v13509_v4 = vld [vmem:[%s24246_s17 + $0xbd0] sm:$0xff] }
 0xe34   : > { %v17215_v12 = vpop.f32.mrf.mxu0  ;;  %v17256_v17 = vpop.f32.mrf.mxu1  ;;  %v20102_v56 = vcombine.high %v13517_v60, %v13521_v61  ;;  %v13637_v1 = vld [vmem:[%s24246_s17 + $0xfd0] sm:$0xff] }
 0xe35   : > { %17834 = vst [vmem:[%s24256_s5 + $0x8] sm:$0xff] %v17214_v37  ;;  %17508 = vmatpush1.bf16.msra.mxu0 %v20021_v58  ;;  %17549 = vmatpush1.bf16.msra.mxu1 %v20149_v36  ;;  %v13513_v58 = vld [vmem:[%s24246_s17 + $0xbf0] sm:$0xff]  ;;  %v20101_v37 = vcombine.low %v13517_v60, %v13521_v61 }
 0xe36   : > { %v17216_v23 = vpop.f32.mrf.mxu0  ;;  %17509 = vmatprep.subr.bf16.mxu0 %v20014_v63  ;;  %v17257_v24 = vpop.f32.mrf.mxu1  ;;  %17550 = vmatprep.subr.bf16.mxu1 %v20142_v9  ;;  %v13641_v36 = vld [vmem:[%s24246_s17 + $0xff0] sm:$0xff]  ;;  %v19973_v63 = vcombine.low %v13389_v33, %v13393_v30  ;;  %v20094_v9 = vcombine.high %v13509_v4, %v13513_v58  ;;  %v20093_v17 = vcombine.low %v13509_v4, %v13513_v58 }
 0xe37   : > { %v20222_v22 = vcombine.high %v13637_v1, %v13641_v36  ;;  %v13505_v12 = vld [vmem:[%s24246_s17 + $0xbb0] sm:$0xff] }
 0xe38   : > { %v20086_v23 = vcombine.high %v13501_v28, %v13505_v12  ;;  %v13497_v24 = vld [vmem:[%s24246_s17 + $0xb70] sm:$0xff]  ;;  %v20085_v7 = vcombine.low %v13501_v28, %v13505_v12 }
 0xe39   : > { %17510 = vmatpush1.bf16.msra.mxu0 %v20013_v18  ;;  %17551 = vmatpush1.bf16.msra.mxu1 %v20141_v16  ;;  %v20221_v18 = vcombine.low %v13637_v1, %v13641_v36  ;;  %v20214_v16 = vcombine.high %v13629_v14, %v13633_v42  ;;  %v13625_v54 = vld [vmem:[%s24246_s17 + $0xf70] sm:$0xff] }
 0xe3a   : > { %17511 = vmatprep.subr.bf16.mxu0 %v20006_v19  ;;  %17552 = vmatprep.subr.bf16.mxu1 %v20134_v5  ;;  %v13493_v19 = vld [vmem:[%s24246_s17 + $0xb50] sm:$0xff] }
 0xe3b   : > { %v13621_v5 = vld [vmem:[%s24246_s17 + $0xf50] sm:$0xff]  ;;  %v20078_v31 = vcombine.high %v13493_v19, %v13497_v24  ;;  %v20077_v41 = vcombine.low %v13493_v19, %v13497_v24  ;;  %v13194_v19 = vld [vmem:[%s24246_s17 + $0x1f8] sm:$0xff] }
 0xe3c   : > { %v13617_v43 = vld [vmem:[%s24246_s17 + $0xf30] sm:$0xff]  ;;  %v20205_v34 = vcombine.low %v13621_v5, %v13625_v54 }
 0xe3d   : > { %17512 = vmatpush1.bf16.msra.mxu0 %v20005_v26  ;;  %17553 = vmatpush1.bf16.msra.mxu1 %v20133_v27  ;;  %v20206_v26 = vcombine.high %v13621_v5, %v13625_v54  ;;  %v13485_v27 = vld [vmem:[%s24246_s17 + $0xb10] sm:$0xff] }
 0xe3e   : > { %17513 = vmatprep.subr.bf16.mxu0 %v19998_v32  ;;  %17554 = vmatprep.subr.bf16.mxu1 %v20126_v53  ;;  %v13489_v32 = vld [vmem:[%s24246_s17 + $0xb30] sm:$0xff] }
 0xe3f   : > { %v13613_v53 = vld [vmem:[%s24246_s17 + $0xf10] sm:$0xff]  ;;  %v20070_v11 = vcombine.high %v13485_v27, %v13489_v32  ;;  %v20069_v40 = vcombine.low %v13485_v27, %v13489_v32  ;;  %v13186_v27 = vld [vmem:[%s24246_s17 + $0x1b8] sm:$0xff] }
 0xe40   : > { %v13609_v62 = vld [vmem:[%s24246_s17 + $0xef0] sm:$0xff]  ;;  %v20197_v13 = vcombine.low %v13613_v53, %v13617_v43 }
 0xe41   : > { %17514 = vmatpush1.bf16.msra.mxu0 %v19997_v35  ;;  %17555 = vmatpush1.bf16.msra.mxu1 %v20125_v3  ;;  %v20198_v35 = vcombine.high %v13613_v53, %v13617_v43  ;;  %v13477_v3 = vld [vmem:[%s24246_s17 + $0xad0] sm:$0xff] }
 0xe42   : > { %17515 = vmatprep.subr.bf16.mxu0 %v19990_v38  ;;  %17556 = vmatprep.subr.bf16.mxu1 %v20118_v48  ;;  %v13481_v38 = vld [vmem:[%s24246_s17 + $0xaf0] sm:$0xff] }
 0xe43   : > { %v13605_v48 = vld [vmem:[%s24246_s17 + $0xed0] sm:$0xff]  ;;  %v20062_v49 = vcombine.high %v13477_v3, %v13481_v38  ;;  %v20061_v30 = vcombine.low %v13477_v3, %v13481_v38  ;;  %v13174_v3 = vld [vmem:[%s24246_s17 + $0x158] sm:$0xff] }
 0xe44   : > { %v13601_v33 = vld [vmem:[%s24246_s17 + $0xeb0] sm:$0xff]  ;;  %v20189_v60 = vcombine.low %v13605_v48, %v13609_v62  ;;  %v13178_v38 = vld [vmem:[%s24246_s17 + $0x178] sm:$0xff] }
 0xe45   : > { %17516 = vmatpush1.bf16.msra.mxu0 %v19989_v50  ;;  %17557 = vmatpush1.bf16.msra.mxu1 %v20117_v59  ;;  %v20190_v50 = vcombine.high %v13605_v48, %v13609_v62  ;;  %v13469_v59 = vld [vmem:[%s24246_s17 + $0xa90] sm:$0xff] }
 0xe46   : > { %17517 = vmatprep.subr.bf16.mxu0 %v19982_v10  ;;  %17558 = vmatprep.subr.bf16.mxu1 %v20110_v51  ;;  %v13473_v10 = vld [vmem:[%s24246_s17 + $0xab0] sm:$0xff] }
 0xe47   : > { %v13597_v51 = vld [vmem:[%s24246_s17 + $0xe90] sm:$0xff]  ;;  %v20054_v61 = vcombine.high %v13469_v59, %v13473_v10  ;;  %v20053_v58 = vcombine.low %v13469_v59, %v13473_v10  ;;  %v19760_v59 = vcombine.high %v13174_v3, %v13178_v38 }
 0xe48   : > { %v13593_v4 = vld [vmem:[%s24246_s17 + $0xe70] sm:$0xff]  ;;  %v20181_v1 = vcombine.low %v13597_v51, %v13601_v33 }
 0xe49   : > { %17518 = vmatpush1.bf16.msra.mxu0 %v19981_v6  ;;  %17559 = vmatpush1.bf16.msra.mxu1 %v20109_v46  ;;  %v20182_v6 = vcombine.high %v13597_v51, %v13601_v33  ;;  %v13461_v46 = vld [vmem:[%s24246_s17 + $0xa50] sm:$0xff] }
 0xe4a   : > { %17519 = vmatprep.subr.bf16.mxu0 %v19974_v47  ;;  %17560 = vmatprep.subr.bf16.mxu1 %v20102_v56  ;;  %v13465_v47 = vld [vmem:[%s24246_s17 + $0xa70] sm:$0xff] }
 0xe4b   : > { %v13589_v56 = vld [vmem:[%s24246_s17 + $0xe50] sm:$0xff]  ;;  %v20046_v36 = vcombine.high %v13461_v46, %v13465_v47  ;;  %v20045_v12 = vcombine.low %v13461_v46, %v13465_v47  ;;  %v19759_v47 = vcombine.low %v13174_v3, %v13178_v38 }
 0xe4c   : > { %v13585_v28 = vld [vmem:[%s24246_s17 + $0xe30] sm:$0xff]  ;;  %v20173_v14 = vcombine.low %v13589_v56, %v13593_v4 }
 0xe4d   : > { %17520 = vmatpush1.bf16.msra.mxu0 %v19973_v63  ;;  %17561 = vmatpush1.bf16.msra.mxu1 %v20101_v37  ;;  %v20174_v63 = vcombine.high %v13589_v56, %v13593_v4  ;;  %v13453_v37 = vld [vmem:[%s24246_s17 + $0xa10] sm:$0xff] }
 0xe4e   : > { %17521 = vmatprep.subr.bf16.mxu0 %v20094_v9  ;;  %17562 = vmatprep.subr.bf16.mxu1 %v20222_v22  ;;  %v13457_v9 = vld [vmem:[%s24246_s17 + $0xa30] sm:$0xff] }
 0xe4f   : > { %v13581_v22 = vld [vmem:[%s24246_s17 + $0xe10] sm:$0xff]  ;;  %v20038_v42 = vcombine.high %v13453_v37, %v13457_v9  ;;  %v20037_v24 = vcombine.low %v13453_v37, %v13457_v9  ;;  %v13162_v37 = vld [vmem:[%s24246_s17 + $0xf8] sm:$0xff] }
 0xe50   : > { %v20165_v5 = vcombine.low %v13581_v22, %v13585_v28  ;;  %v13677_v10 = vld [vmem:[%s24246_s17 + $0x1110] sm:$0xff] }
 0xe51   : > { %17522 = vmatpush2.bf16.msra.mxu0 %v20093_v17  ;;  %17563 = vmatpush2.bf16.msra.mxu1 %v20221_v18  ;;  %v20166_v17 = vcombine.high %v13581_v22, %v13585_v28  ;;  %v13701_v18 = vld [vmem:[%s24246_s17 + $0x11d0] sm:$0xff] }
 0xe52   : > { %17523 = vmatprep.subr.bf16.mxu0 %v20086_v23  ;;  %17564 = vmatprep.subr.bf16.mxu1 %v20214_v16  ;;  %v13705_v23 = vld [vmem:[%s24246_s17 + $0x11f0] sm:$0xff]  ;;  %v13190_v16 = vld [vmem:[%s24246_s17 + $0x1d8] sm:$0xff] }
 0xe53   : > { %v20286_v54 = vcombine.high %v13701_v18, %v13705_v23  ;;  %v20285_v32 = vcombine.low %v13701_v18, %v13705_v23  ;;  %v19775_v53 = vcombine.low %v13190_v16, %v13194_v19  ;;  %v13681_v51 = vld [vmem:[%s24246_s17 + $0x1130] sm:$0xff] }
 0xe54   : > { %v20262_v56 = vcombine.high %v13677_v10, %v13681_v51 }
 0xe55   : > { %17524 = vmatpush2.bf16.msra.mxu0 %v20085_v7  ;;  %17565 = vmatpush2.bf16.msra.mxu1 %v20213_v55  ;;  %v19776_v7 = vcombine.high %v13190_v16, %v13194_v19  ;;  %v13693_v55 = vld [vmem:[%s24246_s17 + $0x1190] sm:$0xff] }
 0xe56   : > { %17525 = vmatprep.subr.bf16.mxu0 %v20078_v31  ;;  %17566 = vmatprep.subr.bf16.mxu1 %v20206_v26  ;;  %v13697_v31 = vld [vmem:[%s24246_s17 + $0x11b0] sm:$0xff]  ;;  %v13182_v26 = vld [vmem:[%s24246_s17 + $0x198] sm:$0xff] }
 0xe57   : > { %v20278_v43 = vcombine.high %v13693_v55, %v13697_v31  ;;  %v20277_v62 = vcombine.low %v13693_v55, %v13697_v31 }
 0xe59   : > { %17526 = vmatpush2.bf16.msra.mxu0 %v20077_v41  ;;  %17567 = vmatpush2.bf16.msra.mxu1 %v20205_v34  ;;  %v19768_v41 = vcombine.high %v13182_v26, %v13186_v27  ;;  %v13685_v34 = vld [vmem:[%s24246_s17 + $0x1150] sm:$0xff] }
 0xe5a   : > { %17527 = vmatprep.subr.bf16.mxu0 %v20070_v11  ;;  %17568 = vmatprep.subr.bf16.mxu1 %v20198_v35  ;;  %v13689_v11 = vld [vmem:[%s24246_s17 + $0x1170] sm:$0xff] }
 0xe5d   : > { %17528 = vmatpush2.bf16.msra.mxu0 %v20069_v40  ;;  %17569 = vmatpush2.bf16.msra.mxu1 %v20197_v13  ;;  %v19767_v13 = vcombine.low %v13182_v26, %v13186_v27 }
 0xe5e   : > { %17529 = vmatprep.subr.bf16.mxu0 %v20062_v49  ;;  %17570 = vmatprep.subr.bf16.mxu1 %v20190_v50  ;;  %v20270_v49 = vcombine.high %v13685_v34, %v13689_v11 }
 0xe61   : > { %17530 = vmatpush2.bf16.msra.mxu0 %v20061_v30  ;;  %17571 = vmatpush2.bf16.msra.mxu1 %v20189_v60  ;;  %v13166_v30 = vld [vmem:[%s24246_s17 + $0x118] sm:$0xff] }
 0xe62   : > { %17531 = vmatprep.subr.bf16.mxu0 %v20054_v61  ;;  %17572 = vmatprep.subr.bf16.mxu1 %v20182_v6  ;;  %v13170_v60 = vld [vmem:[%s24246_s17 + $0x138] sm:$0xff]  ;;  %v20269_v6 = vcombine.low %v13685_v34, %v13689_v11 }
 0xe63   : > { %v19751_v9 = vcombine.low %v13166_v30, %v13170_v60 }
 0xe65   : > { %17532 = vmatpush2.bf16.msra.mxu0 %v20053_v58  ;;  %17573 = vmatpush2.bf16.msra.mxu1 %v20181_v1  ;;  %v19752_v58 = vcombine.high %v13166_v30, %v13170_v60  ;;  %v13669_v1 = vld [vmem:[%s24246_s17 + $0x10d0] sm:$0xff] }
 0xe66   : > { %17533 = vmatprep.subr.bf16.mxu0 %v20046_v36  ;;  %17574 = vmatprep.subr.bf16.mxu1 %v20174_v63  ;;  %v13673_v36 = vld [vmem:[%s24246_s17 + $0x10f0] sm:$0xff]  ;;  %v13158_v63 = vld [vmem:[%s24246_s17 + $0xd8] sm:$0xff] }
 0xe67   : > { %v20254_v22 = vcombine.high %v13669_v1, %v13673_v36  ;;  %v19744_v28 = vcombine.high %v13158_v63, %v13162_v37  ;;  %v20253_v18 = vcombine.low %v13669_v1, %v13673_v36  ;;  %v19743_v23 = vcombine.low %v13158_v63, %v13162_v37  ;;  %v13757_v60 = vld [vmem:[%s24246_s17 + $0x1390] sm:$0xff]  ;;  %v13238_v63 = vld [vmem:[%s24246_s17 + $0x358] sm:$0xff] }
 0xe68   : > { %v13749_v1 = vld [vmem:[%s24246_s17 + $0x1350] sm:$0xff]  ;;  %v13242_v37 = vld [vmem:[%s24246_s17 + $0x378] sm:$0xff] }
 0xe69   : > { %17534 = vmatpush2.bf16.msra.mxu0 %v20045_v12  ;;  %17575 = vmatpush2.bf16.msra.mxu1 %v20173_v14  ;;  %v13661_v12 = vld [vmem:[%s24246_s17 + $0x1090] sm:$0xff] }
 0xe6a   : > { %17535 = vmatprep.subr.bf16.mxu0 %v20038_v42  ;;  %17576 = vmatprep.subr.bf16.mxu1 %v20166_v17  ;;  %v13665_v14 = vld [vmem:[%s24246_s17 + $0x10b0] sm:$0xff]  ;;  %v13150_v42 = vld [vmem:[%s24246_s17 + $0x98] sm:$0xff] }
 0xe6b   : > { %v13154_v17 = vld [vmem:[%s24246_s17 + $0xb8] sm:$0xff]  ;;  %v20246_v16 = vcombine.high %v13661_v12, %v13665_v14  ;;  %v20245_v55 = vcombine.low %v13661_v12, %v13665_v14  ;;  %v13753_v36 = vld [vmem:[%s24246_s17 + $0x1370] sm:$0xff] }
 0xe6c   : > { %v19736_v19 = vcombine.high %v13150_v42, %v13154_v17  ;;  %v19735_v31 = vcombine.low %v13150_v42, %v13154_v17  ;;  %v13741_v12 = vld [vmem:[%s24246_s17 + $0x1310] sm:$0xff]  ;;  %v13230_v42 = vld [vmem:[%s24246_s17 + $0x318] sm:$0xff] }
 0xe6d   : > { %17536 = vmatpush2.bf16.msra.mxu0 %v20037_v24  ;;  %17577 = vmatpush2.bf16.msra.mxu1 %v20165_v5  ;;  %v13653_v24 = vld [vmem:[%s24246_s17 + $0x1050] sm:$0xff]  ;;  %v13234_v17 = vld [vmem:[%s24246_s17 + $0x338] sm:$0xff] }
 0xe6e   : > { %17587 = vmatprep.subr.bf16.mxu0 %v20286_v54  ;;  %17628 = vmatprep.subr.bf16.mxu1 %v19776_v7  ;;  %v13657_v5 = vld [vmem:[%s24246_s17 + $0x1070] sm:$0xff]  ;;  %v13142_v54 = vld [vmem:[%s24246_s17 + $0x58] sm:$0xff] }
 0xe6f   : > { %v13146_v7 = vld [vmem:[%s24246_s17 + $0x78] sm:$0xff]  ;;  %v20238_v26 = vcombine.high %v13653_v24, %v13657_v5  ;;  %v20237_v34 = vcombine.low %v13653_v24, %v13657_v5  ;;  %v13745_v14 = vld [vmem:[%s24246_s17 + $0x1330] sm:$0xff] }
 0xe70   : > { %v25771_v35 = vpop.f32.mrf.mxu0  ;;  %17538 = vmatmul.mubr.bf16.vlgmr.msra.gmra.mxu0 %v25390_v52  ;;  %v25776_v48 = vpop.f32.mrf.mxu1  ;;  %17579 = vmatmul.mubr.bf16.vlgmr.msra.gmra.mxu1 %v25394_v25  ;;  %v19728_v27 = vcombine.high %v13142_v54, %v13146_v7  ;;  %v19727_v11 = vcombine.low %v13142_v54, %v13146_v7  ;;  %v13733_v24 = vld [vmem:[%s24246_s17 + $0x12d0] sm:$0xff]  ;;  %v13222_v54 = vld [vmem:[%s24246_s17 + $0x2d8] sm:$0xff] }
 0xe71   : > { %17588 = vmatpush1.bf16.msra.mxu0 %v20285_v32  ;;  %17629 = vmatpush1.bf16.msra.mxu1 %v19775_v53  ;;  %v13645_v32 = vld [vmem:[%s24246_s17 + $0x1010] sm:$0xff]  ;;  %v13226_v7 = vld [vmem:[%s24246_s17 + $0x2f8] sm:$0xff] }
 0xe72   : > { %v25779_v40 = vpop.f32.mrf.mxu0  ;;  %17589 = vmatprep.subr.bf16.mxu0 %v20278_v43  ;;  %v25781_v50 = vpop.f32.mrf.mxu1  ;;  %17630 = vmatprep.subr.bf16.mxu1 %v19768_v41  ;;  %v13649_v53 = vld [vmem:[%s24246_s17 + $0x1030] sm:$0xff]  ;;  %v13134_v43 = vld [vmem:[%s24246_s17 + $0x18] sm:$0xff] }
 0xe73   : > { %17619 = vmatprep.mubr.bf16.mxu0 %v25398_v29  ;;  %17660 = vmatprep.mubr.bf16.mxu1 %v25268_v45  ;;  %v20261_v45 = vcombine.low %v13677_v10, %v13681_v51  ;;  %v13138_v41 = vld [vmem:[%s24246_s17 + $0x38] sm:$0xff]  ;;  %v20230_v3 = vcombine.high %v13645_v32, %v13649_v53  ;;  %v20229_v10 = vcombine.low %v13645_v32, %v13649_v53  ;;  %v13737_v5 = vld [vmem:[%s24246_s17 + $0x12f0] sm:$0xff] }
 0xe74   : > { %v17297_v33 = vpop.f32.mrf.mxu0  ;;  %v17338_v61 = vpop.f32.mrf.mxu1  ;;  %v19720_v38 = vcombine.high %v13134_v43, %v13138_v41  ;;  %v19719_v51 = vcombine.low %v13134_v43, %v13138_v41  ;;  %v13725_v32 = vld [vmem:[%s24246_s17 + $0x1290] sm:$0xff]  ;;  %v13214_v43 = vld [vmem:[%s24246_s17 + $0x298] sm:$0xff] }
 0xe75   : > { %17590 = vmatpush1.bf16.msra.mxu0 %v20277_v62  ;;  %17631 = vmatpush1.bf16.msra.mxu1 %v19767_v13  ;;  %v13765_v62 = vld [vmem:[%s24246_s17 + $0x13d0] sm:$0xff]  ;;  %v13218_v41 = vld [vmem:[%s24246_s17 + $0x2b8] sm:$0xff] }
 0xe76   : > { %v17298_v46 = vpop.f32.mrf.mxu0  ;;  %17591 = vmatprep.subr.bf16.mxu0 %v20270_v49  ;;  %v17339_v4 = vpop.f32.mrf.mxu1  ;;  %17632 = vmatprep.subr.bf16.mxu1 %v19760_v59  ;;  %v13769_v13 = vld [vmem:[%s24246_s17 + $0x13f0] sm:$0xff]  ;;  %v13254_v49 = vld [vmem:[%s24246_s17 + $0x3d8] sm:$0xff] }
 0xe77   : > { %v13258_v59 = vld [vmem:[%s24246_s17 + $0x3f8] sm:$0xff]  ;;  %v20350_v33 = vcombine.high %v13765_v62, %v13769_v13  ;;  %v13761_v61 = vld [vmem:[%s24246_s17 + $0x13b0] sm:$0xff] }
 0xe78   : > { %v19840_v30 = vcombine.high %v13254_v49, %v13258_v59  ;;  %v13250_v46 = vld [vmem:[%s24246_s17 + $0x3b8] sm:$0xff]  ;;  %v20342_v4 = vcombine.high %v13757_v60, %v13761_v61  ;;  %v13729_v53 = vld [vmem:[%s24246_s17 + $0x12b0] sm:$0xff] }
 0xe79   : > { %17592 = vmatpush1.bf16.msra.mxu0 %v20269_v6  ;;  %17633 = vmatpush1.bf16.msra.mxu1 %v19759_v47  ;;  %v13246_v6 = vld [vmem:[%s24246_s17 + $0x398] sm:$0xff]  ;;  %v20349_v47 = vcombine.low %v13765_v62, %v13769_v13  ;;  %v13717_v62 = vld [vmem:[%s24246_s17 + $0x1250] sm:$0xff] }
 0xe7a   : > { %17593 = vmatprep.subr.bf16.mxu0 %v20262_v56  ;;  %17634 = vmatprep.subr.bf16.mxu1 %v19752_v58  ;;  %v19839_v56 = vcombine.low %v13254_v49, %v13258_v59  ;;  %v19832_v58 = vcombine.high %v13246_v6, %v13250_v46  ;;  %v13721_v13 = vld [vmem:[%s24246_s17 + $0x1270] sm:$0xff]  ;;  %v13206_v49 = vld [vmem:[%s24246_s17 + $0x258] sm:$0xff] }
 0xe7b   : > { %v13210_v59 = vld [vmem:[%s24246_s17 + $0x278] sm:$0xff] }
 0xe7d   : > { %17594 = vmatpush1.bf16.msra.mxu0 %v20261_v45  ;;  %17635 = vmatpush1.bf16.msra.mxu1 %v19751_v9  ;;  %v20341_v45 = vcombine.low %v13757_v60, %v13761_v61  ;;  %v19831_v9 = vcombine.low %v13246_v6, %v13250_v46  ;;  %v13787_v60 = vsub.s32 3, %v25528_v2  ;;  %v19792_v61 = vcombine.high %v13206_v49, %v13210_v59  ;;  %v13709_v6 = vld [vmem:[%s24246_s17 + $0x1210] sm:$0xff] }
 0xe7e   : > { %17595 = vmatprep.subr.bf16.mxu0 %v20254_v22  ;;  %17636 = vmatprep.subr.bf16.mxu1 %v19744_v28  ;;  %v20334_v22 = vcombine.high %v13749_v1, %v13753_v36  ;;  %v19824_v28 = vcombine.high %v13238_v63, %v13242_v37  ;;  %v13713_v46 = vld [vmem:[%s24246_s17 + $0x1230] sm:$0xff] }
 0xe81   : > { %17596 = vmatpush1.bf16.msra.mxu0 %v20253_v18  ;;  %17637 = vmatpush1.bf16.msra.mxu1 %v19743_v23  ;;  %v20333_v18 = vcombine.low %v13749_v1, %v13753_v36  ;;  %v19823_v23 = vcombine.low %v13238_v63, %v13242_v37  ;;  %v20301_v1 = vcombine.low %v13717_v62, %v13721_v13 }
 0xe82   : > { %17597 = vmatprep.subr.bf16.mxu0 %v20246_v16  ;;  %17638 = vmatprep.subr.bf16.mxu1 %v19736_v19  ;;  %v20326_v16 = vcombine.high %v13741_v12, %v13745_v14  ;;  %v19816_v19 = vcombine.high %v13230_v42, %v13234_v17  ;;  %v19791_v36 = vcombine.low %v13206_v49, %v13210_v59 }
 0xe83   : > { %v20294_v63 = vcombine.high %v13709_v6, %v13713_v46 }
 0xe85   : > { %17598 = vmatpush1.bf16.msra.mxu0 %v20245_v55  ;;  %17639 = vmatpush1.bf16.msra.mxu1 %v19735_v31  ;;  %v20325_v55 = vcombine.low %v13741_v12, %v13745_v14  ;;  %v19815_v31 = vcombine.low %v13230_v42, %v13234_v17  ;;  %v13450_v12 = vld [vmem:[%s24246_s17 + $0x9f8] sm:$0xff]  ;;  %v20293_v42 = vcombine.low %v13709_v6, %v13713_v46 }
 0xe86   : > { %17599 = vmatprep.subr.bf16.mxu0 %v20238_v26  ;;  %17640 = vmatprep.subr.bf16.mxu1 %v19728_v27  ;;  %v20318_v26 = vcombine.high %v13733_v24, %v13737_v5  ;;  %v19808_v27 = vcombine.high %v13222_v54, %v13226_v7 }
 0xe89   : > { %17600 = vmatpush1.bf16.msra.mxu0 %v20237_v34  ;;  %17641 = vmatpush1.bf16.msra.mxu1 %v19727_v11  ;;  %v20317_v34 = vcombine.low %v13733_v24, %v13737_v5  ;;  %v19807_v11 = vcombine.low %v13222_v54, %v13226_v7  ;;  %v13310_v24 = vld [vmem:[%s24246_s17 + $0x598] sm:$0xff] }
 0xe8a   : > { %17601 = vmatprep.subr.bf16.mxu0 %v20230_v3  ;;  %17642 = vmatprep.subr.bf16.mxu1 %v19720_v38  ;;  %v20310_v3 = vcombine.high %v13725_v32, %v13729_v53  ;;  %v19800_v38 = vcombine.high %v13214_v43, %v13218_v41  ;;  %v13314_v5 = vld [vmem:[%s24246_s17 + $0x5b8] sm:$0xff] }
 0xe8b   : > { %v13438_v54 = vld [vmem:[%s24246_s17 + $0x998] sm:$0xff] }
 0xe8c   : > { %v13442_v7 = vld [vmem:[%s24246_s17 + $0x9b8] sm:$0xff] }
 0xe8d   : > { %17602 = vmatpush1.bf16.msra.mxu0 %v20229_v10  ;;  %17643 = vmatpush1.bf16.msra.mxu1 %v19719_v51  ;;  %v13783_v10 = vsub.s32 2, %v25528_v2  ;;  %v20309_v51 = vcombine.low %v13725_v32, %v13729_v53  ;;  %v13306_v32 = vld [vmem:[%s24246_s17 + $0x578] sm:$0xff] }
 0xe8e   : > { %17603 = vmatprep.subr.bf16.mxu0 %v20350_v33  ;;  %17644 = vmatprep.subr.bf16.mxu1 %v19840_v30  ;;  %v19799_v33 = vcombine.low %v13214_v43, %v13218_v41  ;;  %v20302_v30 = vcombine.high %v13717_v62, %v13721_v13  ;;  %v13430_v43 = vld [vmem:[%s24246_s17 + $0x958] sm:$0xff] }
 0xe8f   : > { %v13434_v41 = vld [vmem:[%s24246_s17 + $0x978] sm:$0xff] }
 0xe91   : > { %17604 = vmatpush2.bf16.msra.mxu0 %v20349_v47  ;;  %17645 = vmatpush2.bf16.msra.mxu1 %v19839_v56  ;;  %v13198_v47 = vld [vmem:[%s24246_s17 + $0x218] sm:$0xff] }
 0xe92   : > { %17605 = vmatprep.subr.bf16.mxu0 %v20342_v4  ;;  %17646 = vmatprep.subr.bf16.mxu1 %v19832_v58  ;;  %v13202_v56 = vld [vmem:[%s24246_s17 + $0x238] sm:$0xff]  ;;  %v25840_v4 = vld [vmem:[%s24254_s6] sm:$0xff] }
 0xe93   : > { %v13784_v58 = vrot.slane %v25840_v4, %v13783_v10  ;;  %v13788_v37 = vrot.slane %v25840_v4, %v13787_v60  ;;  %v19783_v17 = vcombine.low %v13198_v47, %v13202_v56  ;;  %v13294_v10 = vld [vmem:[%s24246_s17 + $0x518] sm:$0xff] }
 0xe95   : > { %17606 = vmatpush2.bf16.msra.mxu0 %v20341_v45  ;;  %17647 = vmatpush2.bf16.msra.mxu1 %v19831_v9  ;;  %v19784_v45 = vcombine.high %v13198_v47, %v13202_v56  ;;  %v13318_v9 = vld [vmem:[%s24246_s17 + $0x5d8] sm:$0xff]  ;;  %v17253_v14 = vadd.f32 %v25700_v0, %v13784_v58  ;;  %v20015_v47 = vcombine.low %v13430_v43, %v13434_v41 }
 0xe96   : > { %17607 = vmatprep.subr.bf16.mxu0 %v20334_v22  ;;  %17648 = vmatprep.subr.bf16.mxu1 %v19824_v28  ;;  %v13322_v22 = vld [vmem:[%s24246_s17 + $0x5f8] sm:$0xff] }
 0xe97   : > { %v13446_v28 = vld [vmem:[%s24246_s17 + $0x9d8] sm:$0xff] }
 0xe98   : > { %v13286_v58 = vld [vmem:[%s24246_s17 + $0x4d8] sm:$0xff] }
 0xe99   : > { %17608 = vmatpush2.bf16.msra.mxu0 %v20333_v18  ;;  %17649 = vmatpush2.bf16.msra.mxu1 %v19823_v23  ;;  %v19904_v18 = vcombine.high %v13318_v9, %v13322_v22  ;;  %v17255_v23 = vadd.f32 %v25704_v44, %v13788_v37  ;;  %v19896_v44 = vcombine.high %v13310_v24, %v13314_v5 }
 0xe9a   : > { %17609 = vmatprep.subr.bf16.mxu0 %v20326_v16  ;;  %17650 = vmatprep.subr.bf16.mxu1 %v19816_v19  ;;  %v17294_v16 = vadd.f32 %v25771_v35, %v17253_v14  ;;  %v20032_v19 = vcombine.high %v13446_v28, %v13450_v12  ;;  %v13406_v14 = vld [vmem:[%s24246_s17 + $0x898] sm:$0xff] }
 0xe9b   : > { %v17296_v0 = vadd.f32 %v25779_v40, %v17255_v23 }
 0xe9c   : > { %v17335_v35 = vadd.f32 %v25776_v48, %v17294_v16  ;;  %v19895_v48 = vcombine.low %v13310_v24, %v13314_v5  ;;  %v13274_v24 = vld [vmem:[%s24246_s17 + $0x478] sm:$0xff] }
 0xe9d   : > { %17610 = vmatpush2.bf16.msra.mxu0 %v20325_v55  ;;  %17651 = vmatpush2.bf16.msra.mxu1 %v19815_v31  ;;  %v19903_v55 = vcombine.low %v13318_v9, %v13322_v22  ;;  %v20031_v31 = vcombine.low %v13446_v28, %v13450_v12  ;;  %v13278_v28 = vld [vmem:[%s24246_s17 + $0x498] sm:$0xff] }
 0xe9e   : > { %17611 = vmatprep.subr.bf16.mxu0 %v20318_v26  ;;  %17652 = vmatprep.subr.bf16.mxu1 %v19808_v27  ;;  %v20024_v26 = vcombine.high %v13438_v54, %v13442_v7  ;;  %v13302_v27 = vld [vmem:[%s24246_s17 + $0x558] sm:$0xff] }
 0xe9f   : > { %v19888_v62 = vcombine.high %v13302_v27, %v13306_v32  ;;  %v19887_v6 = vcombine.low %v13302_v27, %v13306_v32  ;;  %v13282_v12 = vld [vmem:[%s24246_s17 + $0x4b8] sm:$0xff] }
 0xea0   : > { %v19864_v23 = vcombine.high %v13278_v28, %v13282_v12  ;;  %v13398_v5 = vld [vmem:[%s24246_s17 + $0x858] sm:$0xff] }
 0xea1   : > { %17612 = vmatpush2.bf16.msra.mxu0 %v20317_v34  ;;  %17653 = vmatpush2.bf16.msra.mxu1 %v19807_v11  ;;  %v17337_v34 = vadd.f32 %v25781_v50, %v17296_v0  ;;  %v20016_v50 = vcombine.high %v13430_v43, %v13434_v41  ;;  %v13394_v27 = vld [vmem:[%s24246_s17 + $0x838] sm:$0xff] }
 0xea2   : > { %17613 = vmatprep.subr.bf16.mxu0 %v20310_v3  ;;  %17654 = vmatprep.subr.bf16.mxu1 %v19800_v38  ;;  %v20023_v38 = vcombine.low %v13438_v54, %v13442_v7  ;;  %v13402_v54 = vld [vmem:[%s24246_s17 + $0x878] sm:$0xff]  ;;  %v19863_v7 = vcombine.low %v13278_v28, %v13282_v12 }
 0xea3   : > { %v13350_v28 = vld [vmem:[%s24246_s17 + $0x6d8] sm:$0xff] }
 0xea4   : > { %v13354_v12 = vld [vmem:[%s24246_s17 + $0x6f8] sm:$0xff] }
 0xea5   : > { %17614 = vmatpush2.bf16.msra.mxu0 %v20309_v51  ;;  %17655 = vmatpush2.bf16.msra.mxu1 %v19799_v33  ;;  %v13298_v51 = vld [vmem:[%s24246_s17 + $0x538] sm:$0xff] }
 0xea6   : > { %17615 = vmatprep.subr.bf16.mxu0 %v20302_v30  ;;  %17656 = vmatprep.subr.bf16.mxu1 %v19792_v61  ;;  %v13422_v33 = vld [vmem:[%s24246_s17 + $0x918] sm:$0xff]  ;;  %v19880_v56 = vcombine.high %v13294_v10, %v13298_v51  ;;  %v19879_v37 = vcombine.low %v13294_v10, %v13298_v51 }
 0xea7   : > { %v13426_v30 = vld [vmem:[%s24246_s17 + $0x938] sm:$0xff] }
 0xea8   : > { %v13506_v10 = vld [vmem:[%s24246_s17 + $0xbb8] sm:$0xff] }
 0xea9   : > { %17616 = vmatpush2.bf16.msra.mxu0 %v20301_v1  ;;  %17657 = vmatpush2.bf16.msra.mxu1 %v19791_v36  ;;  %v13290_v1 = vld [vmem:[%s24246_s17 + $0x4f8] sm:$0xff] }
 0xeaa   : > { %17617 = vmatprep.subr.bf16.mxu0 %v20294_v63  ;;  %17658 = vmatprep.subr.bf16.mxu1 %v19784_v45  ;;  %v13414_v36 = vld [vmem:[%s24246_s17 + $0x8d8] sm:$0xff]  ;;  %v20007_v45 = vcombine.low %v13422_v33, %v13426_v30  ;;  %v19872_v9 = vcombine.high %v13286_v58, %v13290_v1 }
 0xeab   : > { %v13418_v63 = vld [vmem:[%s24246_s17 + $0x8f8] sm:$0xff] }
 0xeac   : > { %v20000_v22 = vcombine.high %v13414_v36, %v13418_v63 }
 0xead   : > { %17618 = vmatpush2.bf16.msra.mxu0 %v20293_v42  ;;  %17659 = vmatpush2.bf16.msra.mxu1 %v19783_v17  ;;  %v13410_v42 = vld [vmem:[%s24246_s17 + $0x8b8] sm:$0xff]  ;;  %v19871_v17 = vcombine.low %v13286_v58, %v13290_v1 }
 0xeae   : > { %17669 = vmatprep.subr.bf16.mxu0 %v19904_v18  ;;  %17710 = vmatprep.subr.bf16.mxu1 %v20032_v19  ;;  %v19999_v18 = vcombine.low %v13414_v36, %v13418_v63  ;;  %v19992_v16 = vcombine.high %v13406_v14, %v13410_v42  ;;  %v13270_v19 = vld [vmem:[%s24246_s17 + $0x458] sm:$0xff]  ;;  %v19991_v0 = vcombine.low %v13406_v14, %v13410_v42 }
 0xeaf   : > { %v19855_v32 = vcombine.low %v13270_v19, %v13274_v24  ;;  %v13358_v58 = vld [vmem:[%s24246_s17 + $0x718] sm:$0xff] }
 0xeb0   : > { %v17375_v53 = vpop.f32.mrf.mxu0  ;;  %17620 = vmatmul.mubr.bf16.vlgmr.msra.gmra.mxu0 %v25464_v8  ;;  %v17416_v11 = vpop.f32.mrf.mxu1  ;;  %17661 = vmatmul.mubr.bf16.vlgmr.msra.gmra.mxu1 %v25314_v20  ;;  %v13362_v1 = vld [vmem:[%s24246_s17 + $0x738] sm:$0xff] }
 0xeb1   : > { %v17376_v40 = vadd.f32 %v17375_v53, %v17335_v35  ;;  %17670 = vmatpush1.bf16.msra.mxu0 %v19903_v55  ;;  %17711 = vmatpush1.bf16.msra.mxu1 %v20031_v31  ;;  %v19856_v55 = vcombine.high %v13270_v19, %v13274_v24  ;;  %v19984_v31 = vcombine.high %v13398_v5, %v13402_v54  ;;  %v13266_v35 = vld [vmem:[%s24246_s17 + $0x438] sm:$0xff] }
 0xeb2   : > { %v17377_v3 = vpop.f32.mrf.mxu0  ;;  %17671 = vmatprep.subr.bf16.mxu0 %v19896_v44  ;;  %v17418_v59 = vpop.f32.mrf.mxu1  ;;  %17712 = vmatprep.subr.bf16.mxu1 %v20024_v26  ;;  %v13262_v44 = vld [vmem:[%s24246_s17 + $0x418] sm:$0xff]  ;;  %v19983_v53 = vcombine.low %v13398_v5, %v13402_v54 }
 0xeb3   : > { %v17417_v13 = vadd.f32 %v17416_v11, %v17376_v40  ;;  %v17378_v49 = vadd.f32 %v17377_v3, %v17337_v34  ;;  %17701 = vmatprep.mubr.bf16.mxu0 %v25270_v39  ;;  %17742 = vmatprep.mubr.bf16.mxu1 %v25322_v21  ;;  %v20008_v21 = vcombine.high %v13422_v33, %v13426_v30  ;;  %v13390_v26 = vld [vmem:[%s24246_s17 + $0x818] sm:$0xff] }
 0xeb4   : > { %v17379_v20 = vpop.f32.mrf.mxu0  ;;  %v17420_v61 = vpop.f32.mrf.mxu1  ;;  %v19848_v43 = vcombine.high %v13262_v44, %v13266_v35  ;;  %v19976_v41 = vcombine.high %v13390_v26, %v13394_v27  ;;  %v13382_v34 = vld [vmem:[%s24246_s17 + $0x7d8] sm:$0xff]  ;;  %v19847_v3 = vcombine.low %v13262_v44, %v13266_v35 }
 0xeb5   : > { %17835 = vst [vmem:[%s24256_s5 + $0x10] sm:$0xff] %v17417_v13  ;;  %v17419_v60 = vadd.f32 %v17418_v59, %v17378_v49  ;;  %17672 = vmatpush1.bf16.msra.mxu0 %v19895_v48  ;;  %17713 = vmatpush1.bf16.msra.mxu1 %v20023_v38  ;;  %v13386_v40 = vld [vmem:[%s24246_s17 + $0x7f8] sm:$0xff]  ;;  %v19975_v38 = vcombine.low %v13390_v26, %v13394_v27 }
 0xeb6   : > { %v17380_v46 = vpop.f32.mrf.mxu0  ;;  %17673 = vmatprep.subr.bf16.mxu0 %v19888_v62  ;;  %v17421_v39 = vpop.f32.mrf.mxu1  ;;  %17714 = vmatprep.subr.bf16.mxu1 %v20016_v50  ;;  %v13510_v11 = vld [vmem:[%s24246_s17 + $0xbd8] sm:$0xff]  ;;  %v19968_v62 = vcombine.high %v13382_v34, %v13386_v40  ;;  %v19967_v51 = vcombine.low %v13382_v34, %v13386_v40 }
 0xeb7   : > { %17836 = vst [vmem:[%s24256_s5 + $0x18] sm:$0xff] %v17419_v60  ;;  %v13514_v48 = vld [vmem:[%s24246_s17 + $0xbf8] sm:$0xff] }
 0xeb8   : > { %v20096_v13 = vcombine.high %v13510_v11, %v13514_v48  ;;  %v13374_v49 = vld [vmem:[%s24246_s17 + $0x798] sm:$0xff]  ;;  %v20095_v20 = vcombine.low %v13510_v11, %v13514_v48 }
 0xeb9   : > { %17674 = vmatpush1.bf16.msra.mxu0 %v19887_v6  ;;  %17715 = vmatpush1.bf16.msra.mxu1 %v20015_v47  ;;  %v13378_v59 = vld [vmem:[%s24246_s17 + $0x7b8] sm:$0xff] }
 0xeba   : > { %17675 = vmatprep.subr.bf16.mxu0 %v19880_v56  ;;  %17716 = vmatprep.subr.bf16.mxu1 %v20008_v21  ;;  %v13502_v50 = vld [vmem:[%s24246_s17 + $0xb98] sm:$0xff]  ;;  %v19960_v33 = vcombine.high %v13374_v49, %v13378_v59  ;;  %v19959_v47 = vcombine.low %v13374_v49, %v13378_v59 }
 0xebb   : > { %v20088_v30 = vcombine.high %v13502_v50, %v13506_v10  ;;  %v13366_v60 = vld [vmem:[%s24246_s17 + $0x758] sm:$0xff]  ;;  %v20087_v56 = vcombine.low %v13502_v50, %v13506_v10 }
 0xebc   : > { %v13370_v61 = vld [vmem:[%s24246_s17 + $0x778] sm:$0xff] }
 0xebd   : > { %17676 = vmatpush1.bf16.msra.mxu0 %v19879_v37  ;;  %17717 = vmatpush1.bf16.msra.mxu1 %v20007_v45  ;;  %v13494_v6 = vld [vmem:[%s24246_s17 + $0xb58] sm:$0xff]  ;;  %v19952_v39 = vcombine.high %v13366_v60, %v13370_v61  ;;  %v19951_v37 = vcombine.low %v13366_v60, %v13370_v61  ;;  %v13795_v61 = vsub.s32 5, %v25528_v2 }
 0xebe   : > { %17677 = vmatprep.subr.bf16.mxu0 %v19872_v9  ;;  %17718 = vmatprep.subr.bf16.mxu1 %v20000_v22  ;;  %v13498_v46 = vld [vmem:[%s24246_s17 + $0xb78] sm:$0xff]  ;;  %v19944_v9 = vcombine.high %v13358_v58, %v13362_v1 }
 0xebf   : > { %v20080_v21 = vcombine.high %v13494_v6, %v13498_v46  ;;  %v13486_v36 = vld [vmem:[%s24246_s17 + $0xb18] sm:$0xff]  ;;  %v20079_v45 = vcombine.low %v13494_v6, %v13498_v46 }
 0xec0   : > { %v13490_v63 = vld [vmem:[%s24246_s17 + $0xb38] sm:$0xff] }
 0xec1   : > { %17678 = vmatpush1.bf16.msra.mxu0 %v19871_v17  ;;  %17719 = vmatpush1.bf16.msra.mxu1 %v19999_v18  ;;  %v20072_v22 = vcombine.high %v13486_v36, %v13490_v63  ;;  %v13478_v14 = vld [vmem:[%s24246_s17 + $0xad8] sm:$0xff]  ;;  %v19943_v17 = vcombine.low %v13358_v58, %v13362_v1  ;;  %v20071_v18 = vcombine.low %v13486_v36, %v13490_v63 }
 0xec2   : > { %17679 = vmatprep.subr.bf16.mxu0 %v19864_v23  ;;  %17720 = vmatprep.subr.bf16.mxu1 %v19992_v16  ;;  %v13482_v42 = vld [vmem:[%s24246_s17 + $0xaf8] sm:$0xff]  ;;  %v19936_v23 = vcombine.high %v13350_v28, %v13354_v12  ;;  %v13796_v36 = vrot.slane %v25840_v4, %v13795_v61 }
 0xec3   : > { %v20064_v16 = vcombine.high %v13478_v14, %v13482_v42  ;;  %v13342_v19 = vld [vmem:[%s24246_s17 + $0x698] sm:$0xff] }
 0xec4   : > { %v13346_v24 = vld [vmem:[%s24246_s17 + $0x6b8] sm:$0xff] }
 0xec5   : > { %17680 = vmatpush1.bf16.msra.mxu0 %v19863_v7  ;;  %17721 = vmatpush1.bf16.msra.mxu1 %v19991_v0  ;;  %v13470_v5 = vld [vmem:[%s24246_s17 + $0xa98] sm:$0xff]  ;;  %v19935_v7 = vcombine.low %v13350_v28, %v13354_v12  ;;  %v20063_v0 = vcombine.low %v13478_v14, %v13482_v42 }
 0xec6   : > { %17681 = vmatprep.subr.bf16.mxu0 %v19856_v55  ;;  %17722 = vmatprep.subr.bf16.mxu1 %v19984_v31  ;;  %v13474_v54 = vld [vmem:[%s24246_s17 + $0xab8] sm:$0xff]  ;;  %v19928_v55 = vcombine.high %v13342_v19, %v13346_v24 }
 0xec7   : > { %v20056_v31 = vcombine.high %v13470_v5, %v13474_v54  ;;  %v13334_v44 = vld [vmem:[%s24246_s17 + $0x658] sm:$0xff] }
 0xec8   : > { %v13338_v35 = vld [vmem:[%s24246_s17 + $0x678] sm:$0xff] }
 0xec9   : > { %17682 = vmatpush1.bf16.msra.mxu0 %v19855_v32  ;;  %17723 = vmatpush1.bf16.msra.mxu1 %v19983_v53  ;;  %v13462_v26 = vld [vmem:[%s24246_s17 + $0xa58] sm:$0xff]  ;;  %v19927_v32 = vcombine.low %v13342_v19, %v13346_v24  ;;  %v20055_v53 = vcombine.low %v13470_v5, %v13474_v54 }
 0xeca   : > { %17683 = vmatprep.subr.bf16.mxu0 %v19848_v43  ;;  %17724 = vmatprep.subr.bf16.mxu1 %v19976_v41  ;;  %v13466_v27 = vld [vmem:[%s24246_s17 + $0xa78] sm:$0xff]  ;;  %v19920_v43 = vcombine.high %v13334_v44, %v13338_v35 }
 0xecb   : > { %v20048_v41 = vcombine.high %v13462_v26, %v13466_v27  ;;  %v13326_v34 = vld [vmem:[%s24246_s17 + $0x618] sm:$0xff] }
 0xecc   : > { %v13330_v40 = vld [vmem:[%s24246_s17 + $0x638] sm:$0xff] }
 0xecd   : > { %17684 = vmatpush1.bf16.msra.mxu0 %v19847_v3  ;;  %17725 = vmatpush1.bf16.msra.mxu1 %v19975_v38  ;;  %v13454_v11 = vld [vmem:[%s24246_s17 + $0xa18] sm:$0xff]  ;;  %v19919_v3 = vcombine.low %v13334_v44, %v13338_v35  ;;  %v20047_v38 = vcombine.low %v13462_v26, %v13466_v27 }
 0xece   : > { %17685 = vmatprep.subr.bf16.mxu0 %v19968_v62  ;;  %17726 = vmatprep.subr.bf16.mxu1 %v20096_v13  ;;  %v13458_v48 = vld [vmem:[%s24246_s17 + $0xa38] sm:$0xff]  ;;  %v19912_v62 = vcombine.high %v13326_v34, %v13330_v40 }
 0xecf   : > { %v20040_v13 = vcombine.high %v13454_v11, %v13458_v48  ;;  %v13574_v49 = vld [vmem:[%s24246_s17 + $0xdd8] sm:$0xff] }
 0xed0   : > { %v13578_v59 = vld [vmem:[%s24246_s17 + $0xdf8] sm:$0xff] }
 0xed1   : > { %17686 = vmatpush2.bf16.msra.mxu0 %v19967_v51  ;;  %17727 = vmatpush2.bf16.msra.mxu1 %v20095_v20  ;;  %v13702_v50 = vld [vmem:[%s24246_s17 + $0x11d8] sm:$0xff]  ;;  %v19911_v51 = vcombine.low %v13326_v34, %v13330_v40  ;;  %v13791_v20 = vsub.s32 4, %v25528_v2 }
 0xed2   : > { %17687 = vmatprep.subr.bf16.mxu0 %v19960_v33  ;;  %17728 = vmatprep.subr.bf16.mxu1 %v20088_v30  ;;  %v13706_v10 = vld [vmem:[%s24246_s17 + $0x11f8] sm:$0xff]  ;;  %v20039_v33 = vcombine.low %v13454_v11, %v13458_v48  ;;  %v20160_v30 = vcombine.high %v13574_v49, %v13578_v59 }
 0xed3   : > { %v20288_v60 = vcombine.high %v13702_v50, %v13706_v10  ;;  %v13566_v6 = vld [vmem:[%s24246_s17 + $0xd98] sm:$0xff]  ;;  %v20287_v58 = vcombine.low %v13702_v50, %v13706_v10 }
 0xed4   : > { %v13570_v46 = vld [vmem:[%s24246_s17 + $0xdb8] sm:$0xff] }
 0xed5   : > { %17688 = vmatpush2.bf16.msra.mxu0 %v19959_v47  ;;  %17729 = vmatpush2.bf16.msra.mxu1 %v20087_v56  ;;  %v13694_v47 = vld [vmem:[%s24246_s17 + $0x1198] sm:$0xff]  ;;  %v20152_v1 = vcombine.high %v13566_v6, %v13570_v46  ;;  %v20151_v42 = vcombine.low %v13566_v6, %v13570_v46 }
 0xed6   : > { %17689 = vmatprep.subr.bf16.mxu0 %v19952_v39  ;;  %17730 = vmatprep.subr.bf16.mxu1 %v20080_v21  ;;  %v13698_v56 = vld [vmem:[%s24246_s17 + $0x11b8] sm:$0xff]  ;;  %v13792_v39 = vrot.slane %v25840_v4, %v13791_v20  ;;  %v20159_v21 = vcombine.low %v13574_v49, %v13578_v59 }
 0xed7   : > { %v20280_v63 = vcombine.high %v13694_v47, %v13698_v56  ;;  %v13690_v28 = vld [vmem:[%s24246_s17 + $0x1178] sm:$0xff] }
 0xed8   : > { %v13550_v5 = vld [vmem:[%s24246_s17 + $0xd18] sm:$0xff] }
 0xed9   : > { %17690 = vmatpush2.bf16.msra.mxu0 %v19951_v37  ;;  %17731 = vmatpush2.bf16.msra.mxu1 %v20079_v45  ;;  %v13558_v37 = vld [vmem:[%s24246_s17 + $0xd58] sm:$0xff] }
 0xeda   : > { %17691 = vmatprep.subr.bf16.mxu0 %v19944_v9  ;;  %17732 = vmatprep.subr.bf16.mxu1 %v20072_v22  ;;  %v13562_v45 = vld [vmem:[%s24246_s17 + $0xd78] sm:$0xff] }
 0xedb   : > { %v13686_v22 = vld [vmem:[%s24246_s17 + $0x1158] sm:$0xff]  ;;  %v20143_v44 = vcombine.low %v13558_v37, %v13562_v45 }
 0xedc   : > { %v20272_v24 = vcombine.high %v13686_v22, %v13690_v28  ;;  %v13554_v54 = vld [vmem:[%s24246_s17 + $0xd38] sm:$0xff]  ;;  %v20271_v26 = vcombine.low %v13686_v22, %v13690_v28 }
 0xedd   : > { %17692 = vmatpush2.bf16.msra.mxu0 %v19943_v17  ;;  %17733 = vmatpush2.bf16.msra.mxu1 %v20071_v18  ;;  %v20279_v18 = vcombine.low %v13694_v47, %v13698_v56  ;;  %v20136_v27 = vcombine.high %v13550_v5, %v13554_v54  ;;  %v20135_v34 = vcombine.low %v13550_v5, %v13554_v54  ;;  %v13530_v20 = vld [vmem:[%s24246_s17 + $0xc78] sm:$0xff] }
 0xede   : > { %17693 = vmatprep.subr.bf16.mxu0 %v19936_v23  ;;  %17734 = vmatprep.subr.bf16.mxu1 %v20064_v16  ;;  %v20144_v23 = vcombine.high %v13558_v37, %v13562_v45  ;;  %v13518_v47 = vld [vmem:[%s24246_s17 + $0xc18] sm:$0xff] }
 0xedf   : > { %v13522_v56 = vld [vmem:[%s24246_s17 + $0xc38] sm:$0xff] }
 0xee0   : > { %v13638_v37 = vld [vmem:[%s24246_s17 + $0xfd8] sm:$0xff]  ;;  %v20103_v28 = vcombine.low %v13518_v47, %v13522_v56 }
 0xee1   : > { %17694 = vmatpush2.bf16.msra.mxu0 %v19935_v7  ;;  %17735 = vmatpush2.bf16.msra.mxu1 %v20063_v0  ;;  %v13678_v7 = vld [vmem:[%s24246_s17 + $0x1118] sm:$0xff] }
 0xee2   : > { %17695 = vmatprep.subr.bf16.mxu0 %v19928_v55  ;;  %17736 = vmatprep.subr.bf16.mxu1 %v20056_v31  ;;  %v13682_v0 = vld [vmem:[%s24246_s17 + $0x1138] sm:$0xff] }
 0xee3   : > { %v20263_v40 = vcombine.low %v13678_v7, %v13682_v0  ;;  %v13642_v45 = vld [vmem:[%s24246_s17 + $0xff8] sm:$0xff] }
 0xee4   : > { %v13770_v22 = vld [vmem:[%s24246_s17 + $0x13f8] sm:$0xff] }
 0xee5   : > { %17696 = vmatpush2.bf16.msra.mxu0 %v19927_v32  ;;  %17737 = vmatpush2.bf16.msra.mxu1 %v20055_v53  ;;  %v20264_v32 = vcombine.high %v13678_v7, %v13682_v0  ;;  %v13542_v53 = vld [vmem:[%s24246_s17 + $0xcd8] sm:$0xff] }
 0xee6   : > { %17697 = vmatprep.subr.bf16.mxu0 %v19920_v43  ;;  %17738 = vmatprep.subr.bf16.mxu1 %v20048_v41  ;;  %v13670_v43 = vld [vmem:[%s24246_s17 + $0x10d8] sm:$0xff] }
 0xee7   : > { %v13674_v41 = vld [vmem:[%s24246_s17 + $0x10f8] sm:$0xff] }
 0xee8   : > { %v20256_v48 = vcombine.high %v13670_v43, %v13674_v41  ;;  %v20255_v59 = vcombine.low %v13670_v43, %v13674_v41  ;;  %v13626_v7 = vld [vmem:[%s24246_s17 + $0xf78] sm:$0xff] }
 0xee9   : > { %17698 = vmatpush2.bf16.msra.mxu0 %v19919_v3  ;;  %17739 = vmatpush2.bf16.msra.mxu1 %v20047_v38  ;;  %v13534_v3 = vld [vmem:[%s24246_s17 + $0xc98] sm:$0xff] }
 0xeea   : > { %17699 = vmatprep.subr.bf16.mxu0 %v19912_v62  ;;  %17740 = vmatprep.subr.bf16.mxu1 %v20040_v13  ;;  %v13538_v38 = vld [vmem:[%s24246_s17 + $0xcb8] sm:$0xff] }
 0xeeb   : > { %v13662_v62 = vld [vmem:[%s24246_s17 + $0x1098] sm:$0xff]  ;;  %v20120_v50 = vcombine.high %v13534_v3, %v13538_v38 }
 0xeec   : > { %v13666_v13 = vld [vmem:[%s24246_s17 + $0x10b8] sm:$0xff] }
 0xeed   : > { %17700 = vmatpush2.bf16.msra.mxu0 %v19911_v51  ;;  %17741 = vmatpush2.bf16.msra.mxu1 %v20039_v33  ;;  %v20248_v10 = vcombine.high %v13662_v62, %v13666_v13  ;;  %v13526_v51 = vld [vmem:[%s24246_s17 + $0xc58] sm:$0xff]  ;;  %v20247_v61 = vcombine.low %v13662_v62, %v13666_v13 }
 0xeee   : > { %17751 = vmatprep.subr.bf16.mxu0 %v20160_v30  ;;  %17792 = vmatprep.subr.bf16.mxu1 %v20288_v60  ;;  %v13654_v33 = vld [vmem:[%s24246_s17 + $0x1058] sm:$0xff]  ;;  %v20119_v60 = vcombine.low %v13534_v3, %v13538_v38  ;;  %v20112_v6 = vcombine.high %v13526_v51, %v13530_v20 }
 0xeef   : > { %v13658_v30 = vld [vmem:[%s24246_s17 + $0x1078] sm:$0xff] }
 0xef0   : > { %v17457_v9 = vpop.f32.mrf.mxu0  ;;  %17702 = vmatmul.mubr.bf16.vlgmr.msra.gmra.mxu0 %v25318_v57  ;;  %v17498_v14 = vpop.f32.mrf.mxu1  ;;  %17743 = vmatmul.mubr.bf16.vlgmr.msra.gmra.mxu1 %v25390_v52  ;;  %v20240_v46 = vcombine.high %v13654_v33, %v13658_v30  ;;  %v13750_v0 = vld [vmem:[%s24246_s17 + $0x1358] sm:$0xff] }
 0xef1   : > { %v17458_v12 = vadd.f32 %v17457_v9, %v13792_v39  ;;  %17752 = vmatpush1.bf16.msra.mxu0 %v20159_v21  ;;  %17793 = vmatpush1.bf16.msra.mxu1 %v20287_v58  ;;  %v13646_v39 = vld [vmem:[%s24246_s17 + $0x1018] sm:$0xff]  ;;  %v20111_v58 = vcombine.low %v13526_v51, %v13530_v20 }
 0xef2   : > { %v17459_v17 = vpop.f32.mrf.mxu0  ;;  %17753 = vmatprep.subr.bf16.mxu0 %v20152_v1  ;;  %v17500_v19 = vpop.f32.mrf.mxu1  ;;  %17794 = vmatprep.subr.bf16.mxu1 %v20280_v63  ;;  %v13650_v21 = vld [vmem:[%s24246_s17 + $0x1038] sm:$0xff]  ;;  %v20239_v1 = vcombine.low %v13654_v33, %v13658_v30 }
 0xef3   : > { %v25938_v16 = vadd.f32 %v17498_v14, %v17458_v12  ;;  %v17460_v57 = vadd.f32 %v17459_v17, %v13796_v36  ;;  %17783 = vmatprep.mubr.bf16.mxu0 %v25327_v15  ;;  %17824 = vmatprep.mubr.bf16.mxu1 %v25398_v29  ;;  %v13546_v29 = vld [vmem:[%s24246_s17 + $0xcf8] sm:$0xff]  ;;  %v20104_v36 = vcombine.high %v13518_v47, %v13522_v56 }
 0xef4   : > { %v17461_v52 = vpop.f32.mrf.mxu0  ;;  %v17502_v31 = vpop.f32.mrf.mxu1  ;;  %v20128_v11 = vcombine.high %v13542_v53, %v13546_v29  ;;  %v20127_v49 = vcombine.low %v13542_v53, %v13546_v29  ;;  %v20232_v63 = vcombine.high %v13646_v39, %v13650_v21  ;;  %v13766_v9 = vld [vmem:[%s24246_s17 + $0x13d8] sm:$0xff]  ;;  %v20231_v12 = vcombine.low %v13646_v39, %v13650_v21 }
 0xef5   : > { %v25946_v55 = vadd.f32 %v17500_v19, %v17460_v57  ;;  %17754 = vmatpush1.bf16.msra.mxu0 %v20151_v42  ;;  %17795 = vmatpush1.bf16.msra.mxu1 %v20279_v18  ;;  %v20224_v14 = vcombine.high %v13638_v37, %v13642_v45  ;;  %v20352_v42 = vcombine.high %v13766_v9, %v13770_v22  ;;  %v13630_v17 = vld [vmem:[%s24246_s17 + $0xf98] sm:$0xff] }
 0xef6   : > { %v17462_v35 = vpop.f32.mrf.mxu0  ;;  %17755 = vmatprep.subr.bf16.mxu0 %v20144_v23  ;;  %v17503_v15 = vpop.f32.mrf.mxu1  ;;  %17796 = vmatprep.subr.bf16.mxu1 %v20272_v24  ;;  %v13634_v18 = vld [vmem:[%s24246_s17 + $0xfb8] sm:$0xff]  ;;  %v20223_v19 = vcombine.low %v13638_v37, %v13642_v45  ;;  %v20351_v24 = vcombine.low %v13766_v9, %v13770_v22 }
 0xef7   : > { %v13758_v23 = vld [vmem:[%s24246_s17 + $0x1398] sm:$0xff]  ;;  %v20216_v5 = vcombine.high %v13630_v17, %v13634_v18 }
 0xef8   : > { %v13762_v57 = vld [vmem:[%s24246_s17 + $0x13b8] sm:$0xff] }
 0xef9   : > { %17756 = vmatpush1.bf16.msra.mxu0 %v20143_v44  ;;  %17797 = vmatpush1.bf16.msra.mxu1 %v20271_v26  ;;  %v20344_v54 = vcombine.high %v13758_v23, %v13762_v57  ;;  %v13622_v52 = vld [vmem:[%s24246_s17 + $0xf58] sm:$0xff]  ;;  %v20215_v44 = vcombine.low %v13630_v17, %v13634_v18  ;;  %v20343_v35 = vcombine.low %v13758_v23, %v13762_v57 }
 0xefa   : > { %17757 = vmatprep.subr.bf16.mxu0 %v20136_v27  ;;  %17798 = vmatprep.subr.bf16.mxu1 %v20264_v32  ;;  %v13754_v31 = vld [vmem:[%s24246_s17 + $0x1378] sm:$0xff]  ;;  %v20208_v26 = vcombine.high %v13622_v52, %v13626_v7  ;;  %v20207_v43 = vcombine.low %v13622_v52, %v13626_v7 }
 0xefb   : > { %v20336_v27 = vcombine.high %v13750_v0, %v13754_v31  ;;  %v13614_v15 = vld [vmem:[%s24246_s17 + $0xf18] sm:$0xff]  ;;  %v20335_v41 = vcombine.low %v13750_v0, %v13754_v31 }
 0xefc   : > { %v13618_v32 = vld [vmem:[%s24246_s17 + $0xf38] sm:$0xff] }
 0xefd   : > { %17758 = vmatpush1.bf16.msra.mxu0 %v20135_v34  ;;  %17799 = vmatpush1.bf16.msra.mxu1 %v20263_v40  ;;  %v13742_v53 = vld [vmem:[%s24246_s17 + $0x1318] sm:$0xff]  ;;  %v20200_v34 = vcombine.high %v13614_v15, %v13618_v32  ;;  %v20199_v62 = vcombine.low %v13614_v15, %v13618_v32 }
 0xefe   : > { %17759 = vmatprep.subr.bf16.mxu0 %v20128_v11  ;;  %17800 = vmatprep.subr.bf16.mxu1 %v20256_v48  ;;  %v13746_v29 = vld [vmem:[%s24246_s17 + $0x1338] sm:$0xff] }
 0xeff   : > { %v20328_v40 = vcombine.high %v13742_v53, %v13746_v29  ;;  %v13606_v11 = vld [vmem:[%s24246_s17 + $0xed8] sm:$0xff]  ;;  %v20327_v13 = vcombine.low %v13742_v53, %v13746_v29 }
 0xf00   : > { %v13610_v48 = vld [vmem:[%s24246_s17 + $0xef8] sm:$0xff] }
 0xf01   : > { %17760 = vmatpush1.bf16.msra.mxu0 %v20127_v49  ;;  %17801 = vmatpush1.bf16.msra.mxu1 %v20255_v59  ;;  %v13734_v3 = vld [vmem:[%s24246_s17 + $0x12d8] sm:$0xff]  ;;  %v20192_v49 = vcombine.high %v13606_v11, %v13610_v48  ;;  %v20191_v33 = vcombine.low %v13606_v11, %v13610_v48 }
 0xf02   : > { %17761 = vmatprep.subr.bf16.mxu0 %v20120_v50  ;;  %17802 = vmatprep.subr.bf16.mxu1 %v20248_v10  ;;  %v13738_v38 = vld [vmem:[%s24246_s17 + $0x12f8] sm:$0xff] }
 0xf03   : > { %v20320_v59 = vcombine.high %v13734_v3, %v13738_v38  ;;  %v13598_v50 = vld [vmem:[%s24246_s17 + $0xe98] sm:$0xff]  ;;  %v20319_v30 = vcombine.low %v13734_v3, %v13738_v38  ;;  %v13799_v3 = vsub.s32 6, %v25528_v2  ;;  %v13803_v38 = vsub.s32 7, %v25528_v2 }
 0xf04   : > { %v13602_v10 = vld [vmem:[%s24246_s17 + $0xeb8] sm:$0xff] }
 0xf05   : > { %17762 = vmatpush1.bf16.msra.mxu0 %v20119_v60  ;;  %17803 = vmatpush1.bf16.msra.mxu1 %v20247_v61  ;;  %v13726_v51 = vld [vmem:[%s24246_s17 + $0x1298] sm:$0xff]  ;;  %v20184_v60 = vcombine.high %v13598_v50, %v13602_v10  ;;  %v20183_v39 = vcombine.low %v13598_v50, %v13602_v10 }
 0xf06   : > { %17763 = vmatprep.subr.bf16.mxu0 %v20112_v6  ;;  %17804 = vmatprep.subr.bf16.mxu1 %v20240_v46  ;;  %v13730_v20 = vld [vmem:[%s24246_s17 + $0x12b8] sm:$0xff] }
 0xf07   : > { %v20312_v61 = vcombine.high %v13726_v51, %v13730_v20  ;;  %v13590_v6 = vld [vmem:[%s24246_s17 + $0xe58] sm:$0xff]  ;;  %v20311_v21 = vcombine.low %v13726_v51, %v13730_v20 }
 0xf08   : > { %v13594_v46 = vld [vmem:[%s24246_s17 + $0xe78] sm:$0xff] }
 0xf09   : > { %17764 = vmatpush1.bf16.msra.mxu0 %v20111_v58  ;;  %17805 = vmatpush1.bf16.msra.mxu1 %v20239_v1  ;;  %v13718_v47 = vld [vmem:[%s24246_s17 + $0x1258] sm:$0xff]  ;;  %v20176_v58 = vcombine.high %v13590_v6, %v13594_v46  ;;  %v20175_v9 = vcombine.low %v13590_v6, %v13594_v46 }
 0xf0a   : > { %17765 = vmatprep.subr.bf16.mxu0 %v20104_v36  ;;  %17806 = vmatprep.subr.bf16.mxu1 %v20232_v63  ;;  %v13722_v56 = vld [vmem:[%s24246_s17 + $0x1278] sm:$0xff] }
 0xf0b   : > { %v20304_v1 = vcombine.high %v13718_v47, %v13722_v56  ;;  %v13582_v36 = vld [vmem:[%s24246_s17 + $0xe18] sm:$0xff]  ;;  %v20303_v22 = vcombine.low %v13718_v47, %v13722_v56 }
 0xf0c   : > { %v13586_v63 = vld [vmem:[%s24246_s17 + $0xe38] sm:$0xff] }
 0xf0d   : > { %17766 = vmatpush1.bf16.msra.mxu0 %v20103_v28  ;;  %17807 = vmatpush1.bf16.msra.mxu1 %v20231_v12  ;;  %v13710_v37 = vld [vmem:[%s24246_s17 + $0x1218] sm:$0xff]  ;;  %v20168_v28 = vcombine.high %v13582_v36, %v13586_v63 }
 0xf0e   : > { %17767 = vmatprep.subr.bf16.mxu0 %v20224_v14  ;;  %17808 = vmatprep.subr.bf16.mxu1 %v20352_v42  ;;  %v13714_v45 = vld [vmem:[%s24246_s17 + $0x1238] sm:$0xff]  ;;  %v20167_v14 = vcombine.low %v13582_v36, %v13586_v63 }
 0xf0f   : > { %v20296_v12 = vcombine.high %v13710_v37, %v13714_v45  ;;  %v20295_v42 = vcombine.low %v13710_v37, %v13714_v45 }
 0xf11   : > { %17768 = vmatpush2.bf16.msra.mxu0 %v20223_v19  ;;  %17809 = vmatpush2.bf16.msra.mxu1 %v20351_v24 }
 0xf12   : > { %17769 = vmatprep.subr.bf16.mxu0 %v20216_v5  ;;  %17810 = vmatprep.subr.bf16.mxu1 %v20344_v54 }
 0xf15   : > { %17770 = vmatpush2.bf16.msra.mxu0 %v20215_v44  ;;  %17811 = vmatpush2.bf16.msra.mxu1 %v20343_v35 }
 0xf16   : > { %17771 = vmatprep.subr.bf16.mxu0 %v20208_v26  ;;  %17812 = vmatprep.subr.bf16.mxu1 %v20336_v27 }
 0xf19   : > { %17772 = vmatpush2.bf16.msra.mxu0 %v20207_v43  ;;  %17813 = vmatpush2.bf16.msra.mxu1 %v20335_v41 }
 0xf1a   : > { %17773 = vmatprep.subr.bf16.mxu0 %v20200_v34  ;;  %17814 = vmatprep.subr.bf16.mxu1 %v20328_v40 }
 0xf1d   : > { %17774 = vmatpush2.bf16.msra.mxu0 %v20199_v62  ;;  %17815 = vmatpush2.bf16.msra.mxu1 %v20327_v13  ;;  %v13800_v62 = vrot.slane %v25840_v4, %v13799_v3  ;;  %v13804_v13 = vrot.slane %v25840_v4, %v13803_v38 }
 0xf1e   : > { %17775 = vmatprep.subr.bf16.mxu0 %v20192_v49  ;;  %17816 = vmatprep.subr.bf16.mxu1 %v20320_v59 }
 0xf21   : > { %17776 = vmatpush2.bf16.msra.mxu0 %v20191_v33  ;;  %17817 = vmatpush2.bf16.msra.mxu1 %v20319_v30 }
 0xf22   : > { %17777 = vmatprep.subr.bf16.mxu0 %v20184_v60  ;;  %17818 = vmatprep.subr.bf16.mxu1 %v20312_v61 }
 0xf25   : > { %17778 = vmatpush2.bf16.msra.mxu0 %v20183_v39  ;;  %17819 = vmatpush2.bf16.msra.mxu1 %v20311_v21 }
 0xf26   : > { %17779 = vmatprep.subr.bf16.mxu0 %v20176_v58  ;;  %17820 = vmatprep.subr.bf16.mxu1 %v20304_v1 }
 0xf29   : > { %17780 = vmatpush2.bf16.msra.mxu0 %v20175_v9  ;;  %17821 = vmatpush2.bf16.msra.mxu1 %v20303_v22 }
 0xf2a   : > { %17781 = vmatprep.subr.bf16.mxu0 %v20168_v28  ;;  %17822 = vmatprep.subr.bf16.mxu1 %v20296_v12 }
 0xf2d   : > { %17782 = vmatpush2.bf16.msra.mxu0 %v20167_v14  ;;  %17823 = vmatpush2.bf16.msra.mxu1 %v20295_v42 }
 0xf30   : > { %v17539_v17 = vpop.f32.mrf.mxu0  ;;  %17784 = vmatmul.mubr.bf16.vlgmr.msra.gmra.mxu0 %v25394_v25  ;;  %v17580_v18 = vpop.f32.mrf.mxu1  ;;  %17825 = vmatmul.mubr.bf16.vlgmr.msra.gmra.mxu1 %v25464_v8 }
 0xf31   : > { %v17540_v52 = vadd.f32 %v17539_v17, %v25938_v16 }
 0xf32   : > { %v17541_v23 = vpop.f32.mrf.mxu0  ;;  %v17582_v57 = vpop.f32.mrf.mxu1 }
 0xf33   : > { %v17542_v7 = vadd.f32 %v17541_v23, %v25946_v55  ;;  %v17581_v0 = vadd.f32 %v17580_v18, %v17540_v52 }
 0xf34   : > { %v17543_v19 = vpop.f32.mrf.mxu0  ;;  %v17584_v24 = vpop.f32.mrf.mxu1 }
 0xf35   : > { %v17583_v44 = vadd.f32 %v17582_v57, %v17542_v7 }
 0xf36   : > { %v17544_v5 = vpop.f32.mrf.mxu0  ;;  %v17585_v54 = vpop.f32.mrf.mxu1 }
 0xf70   : > { %v17621_v31 = vpop.f32.mrf.mxu0  ;;  %v17662_v25 = vpop.f32.mrf.mxu1 }
 0xf71   : > { %v17622_v35 = vadd.f32 %v17621_v31, %v17581_v0  ;;  %v17663_v49 = vadd.f32 %v17662_v25, %v13800_v62 }
 0xf72   : > { %v17623_v26 = vpop.f32.mrf.mxu0  ;;  %v17664_v8 = vpop.f32.mrf.mxu1 }
 0xf73   : > { %17837 = vst [vmem:[%s24256_s5 + $0x20] sm:$0xff] %v17622_v35  ;;  %v17624_v27 = vadd.f32 %v17623_v26, %v17583_v44  ;;  %v17665_v59 = vadd.f32 %v17664_v8, %v13804_v13 }
 0xf74   : > { %v17625_v15 = vpop.f32.mrf.mxu0  ;;  %v17666_v32 = vpop.f32.mrf.mxu1 }
 0xf75   : > { %17838 = vst [vmem:[%s24256_s5 + $0x28] sm:$0xff] %v17624_v27 }
 0xf76   : > { %v17626_v53 = vpop.f32.mrf.mxu0  ;;  %v17667_v29 = vpop.f32.mrf.mxu1 }
 0xfb0   : > { %v17703_v43 = vpop.f32.mrf.mxu0  ;;  %v17744_v41 = vpop.f32.mrf.mxu1 }
 0xfb1   : > { %v17704_v50 = vadd.f32 %v17703_v43, %v17663_v49 }
 0xfb2   : > { %v17705_v34 = vpop.f32.mrf.mxu0  ;;  %v17746_v16 = vpop.f32.mrf.mxu1 }
 0xfb3   : > { %v17706_v10 = vadd.f32 %v17705_v34, %v17665_v59  ;;  %v17745_v51 = vadd.f32 %v17744_v41, %v17704_v50 }
 0xfb4   : > { %v17707_v40 = vpop.f32.mrf.mxu0  ;;  %v17748_v55 = vpop.f32.mrf.mxu1 }
 0xfb5   : > { %v17747_v33 = vadd.f32 %v17746_v16, %v17706_v10 }
 0xfb6   : > { %v17708_v11 = vpop.f32.mrf.mxu0  ;;  %v17749_v48 = vpop.f32.mrf.mxu1 }
 0xff0   : > { %v17785_v20 = vpop.f32.mrf.mxu0  ;;  %v17826_v60 = vpop.f32.mrf.mxu1 }
 0xff1   : > { %v17786_v30 = vadd.f32 %v17785_v20, %v17745_v51 }
 0xff2   : > { %v17787_v61 = vpop.f32.mrf.mxu0  ;;  %v17828_v47 = vpop.f32.mrf.mxu1 }
 0xff3   : > { %v17827_v6 = vadd.f32 %v17826_v60, %v17786_v30  ;;  %v17788_v46 = vadd.f32 %v17787_v61, %v17747_v33 }
 0xff4   : > { %v17789_v2 = vpop.f32.mrf.mxu0  ;;  %v17830_v39 = vpop.f32.mrf.mxu1 }
 0xff5   : > { %17839 = vst [vmem:[%s24256_s5 + $0x30] sm:$0xff] %v17827_v6  ;;  %v17829_v56 = vadd.f32 %v17828_v47, %v17788_v46 }
 0xff6   : > { %v17790_v21 = vpop.f32.mrf.mxu0  ;;  %v17831_v4 = vpop.f32.mrf.mxu1 }
 0xff7   : > { %17840 = vst [vmem:[%s24256_s5 + $0x38] sm:$0xff] %v17829_v56 }
 0xff8 PF: > { %s20354_s2 = sadd.s32 4294967292, %s23832_s19  ;;  %s17859_s14 = sshll.u32 %s24256_s5, 4  ;;  %s17860_s14 = int_to_ptr.vmem [resolvable:$true] %s17859_s14 }
 0xff9   : > { %p17850_p11 = scmp.gt.s32.totalorder %s20354_s2, 0  ;;  %s26184_s9 = sld [smem:[#allocation65_spill]] }
 0xffa   : > { %s17842_s3 = scalar_lea.sflag [#allocation5], %s24243_s7  ;;  %s23550_s10 = scalar_lea.vmem %s17860_s14, 1024 }
 0xffb   : > { %s26202_s2 = smov (!%p17850_p11, %s20354_s2), 0  ;;  %p23551_p13 = scmp.ne.s32.totalorder %s17860_s14, %s23550_s10 }
 0xffc   : > { %s20362_s18 = sshll.u32 %s26202_s2, 10  ;;  %p26185_p10 = scmp.ne.s32.totalorder %s26132_s27, 0 }
 0xffd   : > { %s23705_s4 = smov [#allocation30]  }
 0xffe   : > { %p23552_p1 = pnand %p23551_p13, %p26185_p10  ;;  %s23554_s30 = sshll.u32 %s23705_s4, 4  ;;  %s23555_s30 = int_to_ptr.vmem [resolvable:$false] %s23554_s30 }
 0xfff   : > { %s17857_s29 = scalar_lea.hbm %s26184_s9, %s20362_s18  ;;  %s23556_s24 = scalar_lea.vmem %s23555_s30, 2048 }
0x1000   : > { %p23553_p7 = pneg %p23552_p1  ;;  %p23557_p3 = scmp.lt.s32.totalorder %s17860_s14, %s23555_s30 }
0x1001   : > { %p23558_p4 = scmp.lt.s32.totalorder %s23556_s24, %s23550_s10 }
0x1003   : > { %p23559_p12 = por %p23558_p4, %p23557_p3 }
0x1005   : > { %p23560_p8 = pnand %p23559_p12, %p23553_p7 }
0x1007   : > { %23563 = shalt.err (!%p23560_p8)
}
0x1008   : > { %s23564_s19 = scalar_lea.hbm %s17857_s29, 1024  ;;  %s23568_s7 = scalar_lea.hbm %s26184_s9, 4096 }
0x1009   : > { %p23565_p6 = scmp.ne.s32.totalorder %s17857_s29, %s23564_s19  ;;  %p23569_p5 = scmp.lt.s32.totalorder %s17857_s29, %s26184_s9 }
0x100a   : > { %p23570_p0 = scmp.lt.s32.totalorder %s23568_s7, %s23564_s19 }
0x100b   : > { %p23566_p9 = pnand %p23565_p6, %p26185_p10 }
0x100c   : > { %p23571_p11 = por %p23570_p0, %p23569_p5 }
0x100d   : > { %p23567_p2 = pneg %p23566_p9 }
0x100f   : > { %p23572_p13 = pnand %p23571_p11, %p23567_p2 }
0x1011   : > { %23575 = shalt.err (!%p23572_p13)
}
0x1012   : > { %20698 = dma.vmem_to_hbm [thread:$0]  (%p26185_p10), %s17860_s14, 1024, %s17857_s29, %s17842_s3  }
0x1013 PF: > { %s26186_s17 = sld [smem:[#allocation42_spill]]  ;;  %p20784_p1 = scmp.ge.s32.totalorder %s23674_s0, 2 }
0x1014   : > { %s26187_s22 = sld [smem:[#allocation46_spill]] }
0x1019   : > { %s17871_s1 = sand.u32 1, %s26186_s17  }
0x101a   : > { %p26188_p7 = scmp.ne.s32.totalorder %s26187_s22, 0  ;;  %s17872_s6 = scalar_lea.sflag [#allocation5], %s17871_s1 }
0x101c   : > { %p20754_p3 = pnand %p20784_p1, %p26188_p7 }
0x101e   : > { %p20755_p4 = pneg %p20754_p3 }
0x1020   : > { %23645 = dma.done.wait (%p20755_p4), %s17872_s6, 1024  }
0x1021   : > { %23647 = vsyncadd (%p20755_p4), %s17872_s6, 4294966272  ;;  %s26189_s5 = sld [smem:[#allocation44_spill]]  ;;  %p42_p10 = scmp.ge.s32.totalorder %s24055_s23, 10  }
0x1022   : > { %s26190_s29 = sld [smem:[#allocation47_spill]]  ;;  %s26191_s24 = smov %s23654_s25 }
0x1023   : > { %s26192_s25 = smov %s23658_s26  ;;  %s26193_s26 = smov %s24099_s12 }
0x1024   : > { %s26194_s27 = smov %s23666_s28  ;;  %s26196_s0 = smov %s24055_s23 }
0x1025   :  { %44 = sbr.rel (!%p42_p10) target bundleno = 36 (0x24), region = 238 }
0x1027   : > { %s26195_s28 = smov %s26189_s5 }
0x102a   :  { %17877 = vsyncpa [#allocation4], 1 }
0x102b   :  { %17879 = vsyncpa [#allocation4 + $0x1], 1 }
0x102c   :  { %17880 = vsyncpa [#allocation7], 1 }
0x102d   :  { %17882 = vsyncpa [#allocation7 + $0x1], 1 }
0x102e   :  { %17883 = vsyncpa [#allocation10], 1 }
0x102f   :  { %17884 = vsyncpa [#allocation13], 1 }
0x1030   :  { %17885 = vsyncpa [#allocation16], 1 }
0x1031   :  { %17886 = vsyncpa [#allocation19], 1 }
0x1032   :  { %17887 = vsyncpa [#allocation22], 1 }
0x1033   :  { %17888 = vsyncpa [#allocation25], 1 }
0x1034   :  { %17889 = vsyncpa [#allocation28], 1 }
0x1035   :  { %17891 = vsyncpa [#allocation28 + $0x1], 1 }
0x1036   :  { %17892 = vsyncpa [#allocation5], 1 }
0x1037   :  { %17894 = vsyncpa [#allocation5 + $0x1], 1 }

</bundles_post_ra>
